<compile_context>
chip_gen: v6e
topology: v6e:2x2x1
jax: 0.10.0
libtpu: 0.0.40
codegen_flags: <defaults>
</compile_context>

<pallas_src>
import numpy as np
import jax
import jax.numpy as jnp
from jax.experimental import pallas as pl
from jax.experimental.pallas import tpu as pltpu

ACT_DTYPE = jnp.bfloat16          # HBM storage dtype for activations
ROW_TILE_TARGET = 1024            # target rows per grid step (rows on lanes)


def _cdiv(a, b):
    return -(-a // b)


def _round_up(x, m):
    return ((x + m - 1) // m) * m


def _plan_rows(rows, target=ROW_TILE_TARGET):
    """(padded_rows, tile): tile is a multiple of 128 dividing padded_rows.

    Sized from the actual row count (tiny graphs only pad to 128) while
    forcing >= 2 grid steps whenever rows >= 256 so megacore sharding and
    BlockSpec double-buffering have work to overlap.
    """
    r128 = _round_up(max(int(rows), 1), 128)
    want = max(1, _cdiv(r128, target))
    if r128 >= 256:
        want = max(want, 2)
    tile = max(128, (r128 // want) // 128 * 128)
    n_tiles = _cdiv(r128, tile)
    return n_tiles * tile, tile


def _vmem_limit_bytes():
    cap = 64 << 20
    try:
        cap = int(getattr(pltpu.get_tpu_info(), "vmem_capacity_bytes", cap))
    except Exception:
        pass
    return int(max(min((cap * 3) // 4, 96 << 20), 32 << 20))


_CPARAMS = pltpu.CompilerParams(dimension_semantics=("parallel",),
                                vmem_limit_bytes=_vmem_limit_bytes())


# ----------------------------- BlockSpec helpers ----------------------------

def _srow_spec(tile, x):      # scalars [C, rows], tiled over rows (lane axis)
    return pl.BlockSpec((x.shape[0], tile), lambda i: (0, i))


def _vrow_spec(tile, x):      # vectors [3, C, rows], tiled over rows
    return pl.BlockSpec((3, x.shape[1], tile), lambda i: (0, 0, i))


def _resident_spec(x):        # whole array, resident across all grid steps
    nd = x.ndim
    return pl.BlockSpec(x.shape, lambda i, _nd=nd: (0,) * _nd)


# ----------------------------- in-kernel building blocks --------------------

def _gvp_t(s_parts, v_parts, ws_n, b, wv, scalar_act, vector_act):
    """Geometric Vector Perceptron on a transposed tile ([C, T] layout).

    s_parts : list of (s [si_k, T], w [so, si_k]) scalar input segments.
    v_parts : list of ((vx, vy, vz) each [vi_k, T], wh [h, vi_k]) vector
              segments.  Per-segment partial products sum, so callers never
              materialize concatenated message tensors.
    Returns (s_out [so, T], (vox, voy, voz) each [vo, T]) or (s_out, None).
    """
    vh = [None, None, None]
    for comps, wh in v_parts:
        for c in range(3):
            d = jnp.dot(wh, comps[c], preferred_element_type=jnp.float32)
            vh[c] = d if vh[c] is None else vh[c] + d
    # _norm_no_nan over xyz, eps=1e-8 (clamp then sqrt)
    vn = jnp.sqrt(jnp.maximum(vh[0] * vh[0] + vh[1] * vh[1] + vh[2] * vh[2],
                              1e-8))
    s_out = jnp.dot(ws_n, vn, preferred_element_type=jnp.float32) + b
    for s, w in s_parts:
        s_out = s_out + jnp.dot(w, s, preferred_element_type=jnp.float32)
    if scalar_act:                                    # relu
        s_out = jnp.maximum(s_out, 0.0)
    if wv is None:
        return s_out, None
    vo = [jnp.dot(wv, vh[c], preferred_element_type=jnp.float32)
          for c in range(3)]
    if vector_act:                                    # v * sigmoid(||v||)
        nrm = jnp.sqrt(jnp.maximum(vo[0] * vo[0] + vo[1] * vo[1]
                                   + vo[2] * vo[2], 1e-8))
        gate = jax.nn.sigmoid(nrm)
        vo = [vo[c] * gate for c in range(3)]
    return s_out, tuple(vo)


def _ln_t(s, v3, g, b):
    """gvp.LayerNorm on [C, T] tiles (channel reductions done as matmuls with
    a ones row so no cross-sublane reduce op is needed)."""
    c_s = s.shape[0]
    ones_s = jnp.ones((1, c_s), jnp.float32)
    mu = jnp.dot(ones_s, s, preferred_element_type=jnp.float32) * (1.0 / c_s)
    d = s - mu
    var = jnp.dot(ones_s, d * d, preferred_element_type=jnp.float32) * (1.0 / c_s)
    s_out = d * jax.lax.rsqrt(var + 1e-5) * g + b
    c_v = v3[0].shape[0]
    ones_v = jnp.ones((1, c_v), jnp.float32)
    sq = jnp.maximum(v3[0] * v3[0] + v3[1] * v3[1] + v3[2] * v3[2], 1e-8)
    mean_sq = jnp.dot(ones_v, sq, preferred_element_type=jnp.float32) * (1.0 / c_v)
    inv = jax.lax.rsqrt(mean_sq)                     # [1, T]
    return s_out, tuple(vc * inv for vc in v3)


# ----------------------------- fused Pallas kernels -------------------------

def _embed_kernel(s_ref, v_ref, wh, ws_s, ws_n, b, wv, g, bln, so_ref, vo_ref):
    """GVP (no activations) + LayerNorm  (W_v / W_e input embeddings)."""
    s = s_ref[...].astype(jnp.float32)
    v = tuple(v_ref[c].astype(jnp.float32) for c in range(3))
    s1, v1 = _gvp_t([(s, ws_s[...])], [(v, wh[...])],
                    ws_n[...], b[...], wv[...], False, False)
    s1, v1 = _ln_t(s1, v1, g[...], bln[...])
    so_ref[...] = s1.astype(so_ref.dtype)
    for c in range(3):
        vo_ref[c] = v1[c].astype(vo_ref.dtype)


def _message_body(se_ref, ve_ref, src_ref, dst_ref, em_ref,
                  sx_ref, vx_ref, salt_ref, valt_ref, w, ms_ref, mv_ref):
    """Edge gathers (one-hot matmuls against resident node tables) +
    autoregressive select + 3-GVP message function + padding mask."""
    (whj, whe, whi, wsj, wse, wsi, wn0, b0, wv0,
     wh1, ws1, wn1, b1, wv1,
     wh2, ws2, wn2, b2, wv2) = w

    n_pad = sx_ref.shape[1]
    t = se_ref.shape[1]
    src = src_ref[...]                                   # [1, T] int32
    dst = dst_ref[...]
    iota = jax.lax.broadcasted_iota(jnp.int32, (n_pad, t), 0)
    oh_src = jnp.where(iota == src, 1.0, 0.0).astype(jnp.float32)   # [N, T]
    oh_dst = jnp.where(iota == dst, 1.0, 0.0).astype(jnp.float32)

    def load_table(s_r, v_r):
        return (s_r[...].astype(jnp.float32),
                tuple(v_r[c].astype(jnp.float32) for c in range(3)))

    def gather(tab, oh):
        ts, tv = tab
        gs = jnp.dot(ts, oh, preferred_element_type=jnp.float32)
        gv = tuple(jnp.dot(tv[c], oh, preferred_element_type=jnp.float32)
                   for c in range(3))
        return gs, gv

    tab_x = load_table(sx_ref, vx_ref)
    s_j, v_j = gather(tab_x, oh_src)
    s_i, v_i = gather(tab_x, oh_dst)
    if salt_ref is not None:
        # autoregressive: forward edges (src < dst) read live node state,
        # backward edges read the frozen encoder embeddings.
        tab_a = load_table(salt_ref, valt_ref)
        sa_j, va_j = gather(tab_a, oh_src)
        sa_i, va_i = gather(tab_a, oh_dst)
        fwd = jnp.where(src < dst, 1.0, 0.0).astype(jnp.float32)    # [1, T]
        bwd = 1.0 - fwd
        s_j = s_j * fwd + sa_j * bwd
        s_i = s_i * fwd + sa_i * bwd
        v_j = tuple(v_j[c] * fwd + va_j[c] * bwd for c in range(3))
        v_i = tuple(v_i[c] * fwd + va_i[c] * bwd for c in range(3))

    s_e = se_ref[...].astype(jnp.float32)
    v_e = tuple(ve_ref[c].astype(jnp.float32) for c in range(3))

    # 3-GVP message function; first GVP uses per-segment weight splits so the
    # concatenated [2ns+es, T] / [3, 2nv+ev, T] tensors are never built.
    s, v = _gvp_t([(s_j, wsj[...]), (s_e, wse[...]), (s_i, wsi[...])],
                  [(v_j, whj[...]), (v_e, whe[...]), (v_i, whi[...])],
                  wn0[...], b0[...], wv0[...], True, True)
    s, v = _gvp_t([(s, ws1[...])], [(v, wh1[...])],
                  wn1[...], b1[...], wv1[...], True, True)
    s, v = _gvp_t([(s, ws2[...])], [(v, wh2[...])],
                  wn2[...], b2[...], wv2[...], False, False)

    m = em_ref[...]                                   # [1, T]: 1=real, 0=pad
    ms_ref[...] = (s * m).astype(ms_ref.dtype)
    for c in range(3):
        mv_ref[c] = (v[c] * m).astype(mv_ref.dtype)


def _make_message_kernel(autoregressive):
    if autoregressive:
        def kernel(se, ve, src, dst, em, sx, vx, salt, valt, *rest):
            _message_body(se, ve, src, dst, em, sx, vx, salt, valt,
                          rest[:-2], rest[-2], rest[-1])
    else:
        def kernel(se, ve, src, dst, em, sx, vx, *rest):
            _message_body(se, ve, src, dst, em, sx, vx, None, None,
                          rest[:-2], rest[-2], rest[-1])
    return kernel


def _node_update_kernel(s_ref, v_ref, ds_ref, dv_ref, cnt_ref,
                        g0, bg0,
                        whA, wsA, wnA, bA, wvA,
                        whB, wsB, wnB, bB, wvB,
                        g1, bg1, so_ref, vo_ref):
    """mean-normalize dh + residual + LN0 + FF (2 GVPs) + residual + LN1."""
    inv = 1.0 / cnt_ref[...]                          # [1, T], cnt >= 1
    s = s_ref[...].astype(jnp.float32) + ds_ref[...].astype(jnp.float32) * inv
    v = tuple(v_ref[c].astype(jnp.float32)
              + dv_ref[c].astype(jnp.float32) * inv for c in range(3))
    s, v = _ln_t(s, v, g0[...], bg0[...])
    fs, fv = _gvp_t([(s, wsA[...])], [(v, whA[...])],
                    wnA[...], bA[...], wvA[...], True, True)
    fs, fv = _gvp_t([(fs, wsB[...])], [(fv, whB[...])],
                    wnB[...], bB[...], wvB[...], False, False)
    s, v = _ln_t(s + fs, tuple(v[c] + fv[c] for c in range(3)),
                 g1[...], bg1[...])
    so_ref[...] = s.astype(so_ref.dtype)
    for c in range(3):
        vo_ref[c] = v[c].astype(vo_ref.dtype)


def _wout_kernel(s_ref, v_ref, wh, ws_s, ws_n, b, o_ref):
    """Scalar-only GVP (W_out)."""
    s = s_ref[...].astype(jnp.float32)
    v = tuple(v_ref[c].astype(jnp.float32) for c in range(3))
    so, _ = _gvp_t([(s, ws_s[...])], [(v, wh[...])],
                   ws_n[...], b[...], None, False, False)
    o_ref[...] = so.astype(o_ref.dtype)


# ----------------------------- Pallas wrappers ------------------------------

def embed_apply(p, ln, s, v, *, tile):
    r = s.shape[1]
    so, vo = p["ws_s"].shape[0], p["wv"].shape[0]
    args = (s, v, p["wh"], p["ws_s"], p["ws_n"], p["b"], p["wv"],
            ln["g"], ln["b"])
    return pl.pallas_call(
        _embed_kernel,
        grid=(r // tile,),
        out_shape=(jax.ShapeDtypeStruct((so, r), ACT_DTYPE),
                   jax.ShapeDtypeStruct((3, vo, r), ACT_DTYPE)),
        in_specs=[_srow_spec(tile, s), _vrow_spec(tile, v)]
                 + [_resident_spec(w) for w in args[2:]],
        out_specs=(pl.BlockSpec((so, tile), lambda i: (0, i)),
                   pl.BlockSpec((3, vo, tile), lambda i: (0, 0, i))),
        compiler_params=_CPARAMS,
    )(*args)


def message_apply(msg_params, sE, vE, src_row, dst_row, emask_row,
                  sX, vX, sAlt, vAlt, *, tile, autoregressive):
    p0, p1, p2 = msg_params
    ns_out = p2["ws_s"].shape[0]
    nv_out = p2["wv"].shape[0]
    nv_in, ev = vX.shape[1], vE.shape[1]
    nsx, nse = sX.shape[0], sE.shape[0]
    e_pad = sE.shape[1]

    # split the first GVP's weights per input segment (node_j / edge / node_i)
    wh0, ws0 = p0["wh"], p0["ws_s"]
    whj, whe, whi = wh0[:, :nv_in], wh0[:, nv_in:nv_in + ev], wh0[:, nv_in + ev:]
    wsj, wse, wsi = ws0[:, :nsx], ws0[:, nsx:nsx + nse], ws0[:, nsx + nse:]

    weights = (whj, whe, whi, wsj, wse, wsi, p0["ws_n"], p0["b"], p0["wv"],
               p1["wh"], p1["ws_s"], p1["ws_n"], p1["b"], p1["wv"],
               p2["wh"], p2["ws_s"], p2["ws_n"], p2["b"], p2["wv"])
    data = [sE, vE, src_row, dst_row, emask_row, sX, vX]
    data_specs = [_srow_spec(tile, sE), _vrow_spec(tile, vE),
                  _srow_spec(tile, src_row), _srow_spec(tile, dst_row),
                  _srow_spec(tile, emask_row),
                  _resident_spec(sX), _resident_spec(vX)]
    if autoregressive:
        data += [sAlt, vAlt]
        data_specs += [_resident_spec(sAlt), _resident_spec(vAlt)]

    return pl.pallas_call(
        _make_message_kernel(autoregressive),
        grid=(e_pad // tile,),
        out_shape=(jax.ShapeDtypeStruct((ns_out, e_pad), ACT_DTYPE),
                   jax.ShapeDtypeStruct((3, nv_out, e_pad), ACT_DTYPE)),
        in_specs=data_specs + [_resident_spec(w) for w in weights],
        out_specs=(pl.BlockSpec((ns_out, tile), lambda i: (0, i)),
                   pl.BlockSpec((3, nv_out, tile), lambda i: (0, 0, i))),
        compiler_params=_CPARAMS,
    )(*(tuple(data) + weights))


def node_update_apply(lp, s, v, dh_s, dh_v, count_row, *, tile):
    ns, r = s.shape
    nv = v.shape[1]
    ff0, ff1 = lp["ff"]
    args = (s, v, dh_s, dh_v, count_row,
            lp["norm0"]["g"], lp["norm0"]["b"],
            ff0["wh"], ff0["ws_s"], ff0["ws_n"], ff0["b"], ff0["wv"],
            ff1["wh"], ff1["ws_s"], ff1["ws_n"], ff1["b"], ff1["wv"],
            lp["norm1"]["g"], lp["norm1"]["b"])
    return pl.pallas_call(
        _node_update_kernel,
        grid=(r // tile,),
        out_shape=(jax.ShapeDtypeStruct((ns, r), ACT_DTYPE),
                   jax.ShapeDtypeStruct((3, nv, r), ACT_DTYPE)),
        in_specs=[_srow_spec(tile, s), _vrow_spec(tile, v),
                  _srow_spec(tile, dh_s), _vrow_spec(tile, dh_v),
                  _srow_spec(tile, count_row)]
                 + [_resident_spec(w) for w in args[5:]],
        out_specs=(pl.BlockSpec((ns, tile), lambda i: (0, i)),
                   pl.BlockSpec((3, nv, tile), lambda i: (0, 0, i))),
        compiler_params=_CPARAMS,
    )(*args)


def wout_apply(p, s, v, *, tile):
    r = s.shape[1]
    so = p["ws_s"].shape[0]
    args = (s, v, p["wh"], p["ws_s"], p["ws_n"], p["b"])
    return pl.pallas_call(
        _wout_kernel,
        grid=(r // tile,),
        out_shape=jax.ShapeDtypeStruct((so, r), jnp.float32),
        in_specs=[_srow_spec(tile, s), _vrow_spec(tile, v)]
                 + [_resident_spec(w) for w in args[2:]],
        out_specs=pl.BlockSpec((so, tile), lambda i: (0, i)),
        compiler_params=_CPARAMS,
    )(*args)


# ----------------------------- model glue (plain JAX) -----------------------

def conv_layer_apply(lp, hV, sE, vE, src_row, dst_row, emask_row,
                     onehot_dst, count_row, hV_enc, *,
                     etile, ntile, autoregressive):
    """GVPConvLayer forward (eval mode)."""
    sX, vX = hV
    if autoregressive:
        sAlt, vAlt = hV_enc
    else:
        sAlt, vAlt = sX, vX     # unused

    m_s, m_v = message_apply(lp["msg"], sE, vE, src_row, dst_row, emask_row,
                             sX, vX, sAlt, vAlt,
                             tile=etile, autoregressive=autoregressive)

    # dst scatter-add as ONE dense one-hot matmul (lane-dense, MXU friendly);
    # the division by the per-node edge count happens inside the node-update
    # kernel (count_row is passed as a [1, N] input).
    dh_s = jnp.dot(m_s, onehot_dst,
                   preferred_element_type=jnp.float32).astype(ACT_DTYPE)
    dh_v = jnp.einsum("cve,en->cvn", m_v, onehot_dst,
                      preferred_element_type=jnp.float32).astype(ACT_DTYPE)

    return node_update_apply(lp, sX, vX, dh_s, dh_v, count_row, tile=ntile)


def cpd_forward(params, s_V, v_V, edge_index, s_E, v_E, seq):
    n, e = s_V.shape[0], s_E.shape[0]
    n_pad, ntile = _plan_rows(n)
    e_pad, etile = _plan_rows(e)

    # lane-dense layout: channels on sublanes, rows (nodes / edges) on lanes.
    sV = jnp.pad(s_V, ((0, n_pad - n), (0, 0))).T.astype(ACT_DTYPE)
    vV = jnp.pad(jnp.transpose(v_V, (1, 2, 0)),
                 ((0, 0), (0, 0), (0, n_pad - n))).astype(ACT_DTYPE)
    sE = jnp.pad(s_E, ((0, e_pad - e), (0, 0))).T.astype(ACT_DTYPE)
    vE = jnp.pad(jnp.transpose(v_E, (1, 2, 0)),
                 ((0, 0), (0, 0), (0, e_pad - e))).astype(ACT_DTYPE)
    src = jnp.pad(edge_index[0].astype(jnp.int32), (0, e_pad - e))
    dst = jnp.pad(edge_index[1].astype(jnp.int32), (0, e_pad - e))
    emask = jnp.pad(jnp.ones((e,), jnp.float32), (0, e_pad - e))
    src_row, dst_row, emask_row = src[None, :], dst[None, :], emask[None, :]
    seq_p = jnp.pad(seq.astype(jnp.int32), (0, n_pad - n))

    # dense scatter matrix + per-node incoming-edge count, shared by ALL layers
    iota_n = jnp.arange(n_pad, dtype=jnp.int32)
    onehot_dst = ((dst[:, None] == iota_n[None, :]).astype(jnp.float32)
                  * emask[:, None]).astype(ACT_DTYPE)                # [E, N]
    count_row = jnp.maximum(
        jax.ops.segment_sum(emask, dst, num_segments=n_pad), 1.0)[None, :]

    hV = embed_apply(params["W_v"], params["W_v_ln"], sV, vV, tile=ntile)
    hE = embed_apply(params["W_e"], params["W_e_ln"], sE, vE, tile=etile)

    for lp in params["encoder"]:
        hV = conv_layer_apply(lp, hV, hE[0], hE[1], src_row, dst_row,
                              emask_row, onehot_dst, count_row, None,
                              etile=etile, ntile=ntile, autoregressive=False)
    hV_enc = hV

    # decoder edge scalars: sequence embedding of the source node, zeroed on
    # non-forward edges (src >= dst), concatenated onto the edge scalars.
    hS = params["W_s"][seq_p].T.astype(ACT_DTYPE)                    # [20, N]
    hS_e = jnp.take(hS, src, axis=1) \
        * (src < dst).astype(ACT_DTYPE)[None, :]                     # [20, E]
    sE_dec = jnp.concatenate([hE[0], hS_e], axis=0)                  # [es+20, E]

    for lp in params["decoder"]:
        hV = conv_layer_apply(lp, hV, sE_dec, hE[1], src_row, dst_row,
                              emask_row, onehot_dst, count_row, hV_enc,
                              etile=etile, ntile=ntile, autoregressive=True)

    logits = wout_apply(params["W_out"], hV[0], hV[1], tile=ntile)   # [20, N]
    return logits.T[:n]


# ----------------------------- deterministic init ---------------------------

def _uniform(key, shape, bound):
    return jax.random.uniform(key, shape, jnp.float32, -bound, bound)


def init_gvp(key, si, vi, so, vo):
    """Weights stored transposed ([out, in]) for left-multiplication on [C, T]."""
    h = max(vi, vo)
    ks = jax.random.split(key, 5)
    p = dict(
        wh=_uniform(ks[0], (h, vi), 1.0 / np.sqrt(vi)),          # Linear(vi, h)
        ws_s=_uniform(ks[1], (so, si), 1.0 / np.sqrt(si + h)),   # Linear(si+h, so)
        ws_n=_uniform(ks[2], (so, h), 1.0 / np.sqrt(si + h)),
        b=_uniform(ks[3], (so, 1), 1.0 / np.sqrt(si + h)),
    )
    if vo > 0:
        p["wv"] = _uniform(ks[4], (vo, h), 1.0 / np.sqrt(h))     # Linear(h, vo)
    return p


def init_layernorm(ns):
    return dict(g=jnp.ones((ns, 1), jnp.float32),
                b=jnp.zeros((ns, 1), jnp.float32))


def init_conv_layer(key, ns, nv, es, ev):
    ks = jax.random.split(key, 5)
    msg = [init_gvp(ks[0], 2 * ns + es, 2 * nv + ev, ns, nv),
           init_gvp(ks[1], ns, nv, ns, nv),
           init_gvp(ks[2], ns, nv, ns, nv)]
    ff = [init_gvp(ks[3], ns, nv, 4 * ns, 2 * nv),
          init_gvp(ks[4], 4 * ns, 2 * nv, ns, nv)]
    return dict(msg=msg, ff=ff,
                norm0=init_layernorm(ns), norm1=init_layernorm(ns))


def init_cpd_model(key, node_in, node_h, edge_in, edge_h, num_layers):
    ks = jax.random.split(key, 6 + 2 * num_layers)
    ns, nv = node_h
    es, ev = edge_h
    return dict(
        W_v=init_gvp(ks[0], node_in[0], node_in[1], ns, nv),
        W_v_ln=init_layernorm(ns),
        W_e=init_gvp(ks[1], edge_in[0], edge_in[1], es, ev),
        W_e_ln=init_layernorm(es),
        encoder=[init_conv_layer(ks[2 + i], ns, nv, es, ev)
                 for i in range(num_layers)],
        W_s=jax.random.normal(ks[2 + num_layers], (20, 20), jnp.float32),
        decoder=[init_conv_layer(ks[3 + num_layers + i], ns, nv, es + 20, ev)
                 for i in range(num_layers)],
        W_out=init_gvp(ks[3 + 2 * num_layers], ns, nv, 20, 0),
    )


# ----------------------------------- main -----------------------------------

if __name__ == "__main__":
    key = jax.random.PRNGKey(0)
    node_in = (6, 3)     # original GVP node features
    node_h = (32, 4)     # small hidden dims
    edge_in = (32, 1)    # original GVP edge features
    edge_h = (16, 2)
    num_layers = 2
    n_nodes = 8

    k_par, k_in = jax.random.split(key)
    params = init_cpd_model(k_par, node_in, node_h, edge_in, edge_h, num_layers)

    # small directed graph: each node i receives edges from (i-1)%N and (i-2)%N
    src_l, dst_l = [], []
    for i in range(n_nodes):
        for d in (1, 2):
            src_l.append((i - d) % n_nodes)
            dst_l.append(i)
    edge_index = jnp.array([src_l, dst_l], dtype=jnp.int32)   # [2, E]
    n_edges = edge_index.shape[1]

    ks = jax.random.split(k_in, 5)
    s_V = jax.random.normal(ks[0], (n_nodes, node_in[0]), jnp.float32)
    v_V = jax.random.normal(ks[1], (n_nodes, 3, node_in[1]), jnp.float32)
    s_E = jax.random.normal(ks[2], (n_edges, edge_in[0]), jnp.float32)
    v_E = jax.random.normal(ks[3], (n_edges, 3, edge_in[1]), jnp.float32)
    seq = jax.random.randint(ks[4], (n_nodes,), 0, 20, jnp.int32)

    fwd_fn = jax.jit(cpd_forward)
    logits = fwd_fn(params, s_V, v_V, edge_index, s_E, v_E, seq)
    jax.block_until_ready(logits)
    assert logits.shape == (n_nodes, 20)
    assert bool(jnp.all(jnp.isfinite(logits)))
    print("KERNEL_OK")
</pallas_src>

<mosaic_0001>
module attributes {stable_mosaic.version = 11 : i64} {
  func.func private @main(%arg0: i32) attributes {dimension_semantics = [#tpu.dimension_semantics<core_parallel>], iteration_bounds = array<i64: 2>, tpu.core_type = #tpu.core_type<sc_scalar_subcore>, window_params = []} {
    return
  }
}

module attributes {stable_mosaic.version = 11 : i64} {
  func.func private @main(%arg0: i32) attributes {dimension_semantics = [#tpu.dimension_semantics<core_parallel>], iteration_bounds = array<i64: 2>, tpu.core_type = #tpu.core_type<sc_scalar_subcore>, window_params = []} {
    return
  }
}

module attributes {stable_mosaic.version = 11 : i64} {
  func.func @_embed_kernel(%arg0: i32, %arg1: memref<32x128xbf16, #tpu.memory_space<vmem>>, %arg2: memref<3x1x128xbf16, #tpu.memory_space<vmem>>, %arg3: memref<2x1xf32, #tpu.memory_space<vmem>>, %arg4: memref<16x32xf32, #tpu.memory_space<vmem>>, %arg5: memref<16x2xf32, #tpu.memory_space<vmem>>, %arg6: memref<16x1xf32, #tpu.memory_space<vmem>>, %arg7: memref<2x2xf32, #tpu.memory_space<vmem>>, %arg8: memref<16x1xf32, #tpu.memory_space<vmem>>, %arg9: memref<16x1xf32, #tpu.memory_space<vmem>>, %arg10: memref<16x128xbf16, #tpu.memory_space<vmem>>, %arg11: memref<3x2x128xbf16, #tpu.memory_space<vmem>>) attributes {dimension_semantics = [#tpu.dimension_semantics<parallel>], iteration_bounds = array<i64: 1>, scalar_prefetch = 0 : i64, scratch_operands = 0 : i64, tpu.core_type = #tpu.core_type<tc>, window_params = [{transform_indices = @transform_0, window_bounds = array<i64: 32, 128>}, {transform_indices = @transform_1, window_bounds = array<i64: 3, 1, 128>}, {pipeline_mode = #tpu.pipeline_mode<synchronous>, transform_indices = @transform_2, window_bounds = array<i64: 2, 1>}, {pipeline_mode = #tpu.pipeline_mode<synchronous>, transform_indices = @transform_3, window_bounds = array<i64: 16, 32>}, {pipeline_mode = #tpu.pipeline_mode<synchronous>, transform_indices = @transform_4, window_bounds = array<i64: 16, 2>}, {pipeline_mode = #tpu.pipeline_mode<synchronous>, transform_indices = @transform_5, window_bounds = array<i64: 16, 1>}, {pipeline_mode = #tpu.pipeline_mode<synchronous>, transform_indices = @transform_6, window_bounds = array<i64: 2, 2>}, {pipeline_mode = #tpu.pipeline_mode<synchronous>, transform_indices = @transform_7, window_bounds = array<i64: 16, 1>}, {pipeline_mode = #tpu.pipeline_mode<synchronous>, transform_indices = @transform_8, window_bounds = array<i64: 16, 1>}, {transform_indices = @transform_9, window_bounds = array<i64: 16, 128>}, {transform_indices = @transform_10, window_bounds = array<i64: 3, 2, 128>}]} {
    %c0 = arith.constant 0 : index
    %c0_0 = arith.constant 0 : index
    %0 = vector.load %arg1[%c0, %c0_0] : memref<32x128xbf16, #tpu.memory_space<vmem>>, vector<32x128xbf16>
    %1 = arith.extf %0 : vector<32x128xbf16> to vector<32x128xf32>
    %c0_1 = arith.constant 0 : index
    %c0_2 = arith.constant 0 : index
    %c0_3 = arith.constant 0 : index
    %2 = vector.load %arg2[%c0_1, %c0_2, %c0_3] : memref<3x1x128xbf16, #tpu.memory_space<vmem>>, vector<1x1x128xbf16>
    %3 = vector.shape_cast %2 : vector<1x1x128xbf16> to vector<1x128xbf16>
    %4 = arith.extf %3 : vector<1x128xbf16> to vector<1x128xf32>
    %c1 = arith.constant 1 : index
    %c0_4 = arith.constant 0 : index
    %c0_5 = arith.constant 0 : index
    %5 = vector.load %arg2[%c1, %c0_4, %c0_5] : memref<3x1x128xbf16, #tpu.memory_space<vmem>>, vector<1x1x128xbf16>
    %6 = vector.shape_cast %5 : vector<1x1x128xbf16> to vector<1x128xbf16>
    %7 = arith.extf %6 : vector<1x128xbf16> to vector<1x128xf32>
    %c2 = arith.constant 2 : index
    %c0_6 = arith.constant 0 : index
    %c0_7 = arith.constant 0 : index
    %8 = vector.load %arg2[%c2, %c0_6, %c0_7] : memref<3x1x128xbf16, #tpu.memory_space<vmem>>, vector<1x1x128xbf16>
    %9 = vector.shape_cast %8 : vector<1x1x128xbf16> to vector<1x128xbf16>
    %10 = arith.extf %9 : vector<1x128xbf16> to vector<1x128xf32>
    %c0_8 = arith.constant 0 : index
    %c0_9 = arith.constant 0 : index
    %11 = vector.load %arg4[%c0_8, %c0_9] : memref<16x32xf32, #tpu.memory_space<vmem>>, vector<16x32xf32>
    %c0_10 = arith.constant 0 : index
    %c0_11 = arith.constant 0 : index
    %12 = vector.load %arg3[%c0_10, %c0_11] : memref<2x1xf32, #tpu.memory_space<vmem>>, vector<2x1xf32>
    %c0_12 = arith.constant 0 : index
    %c0_13 = arith.constant 0 : index
    %13 = vector.load %arg5[%c0_12, %c0_13] : memref<16x2xf32, #tpu.memory_space<vmem>>, vector<16x2xf32>
    %c0_14 = arith.constant 0 : index
    %c0_15 = arith.constant 0 : index
    %14 = vector.load %arg6[%c0_14, %c0_15] : memref<16x1xf32, #tpu.memory_space<vmem>>, vector<16x1xf32>
    %c0_16 = arith.constant 0 : index
    %c0_17 = arith.constant 0 : index
    %15 = vector.load %arg7[%c0_16, %c0_17] : memref<2x2xf32, #tpu.memory_space<vmem>>, vector<2x2xf32>
    %cst = arith.constant dense<0.000000e+00> : vector<2x128xf32>
    %16 = tpu.matmul %12, %4, %cst {dimension_numbers = #tpu.dot_dimension_numbers<[1], [0], [0], [1], [0, 0, 1, 1], [], []>} : vector<2x1xf32>, vector<1x128xf32>, vector<2x128xf32> -> vector<2x128xf32>
    %cst_18 = arith.constant dense<0.000000e+00> : vector<2x128xf32>
    %17 = tpu.matmul %12, %7, %cst_18 {dimension_numbers = #tpu.dot_dimension_numbers<[1], [0], [0], [1], [0, 0, 1, 1], [], []>} : vector<2x1xf32>, vector<1x128xf32>, vector<2x128xf32> -> vector<2x128xf32>
    %cst_19 = arith.constant dense<0.000000e+00> : vector<2x128xf32>
    %18 = tpu.matmul %12, %10, %cst_19 {dimension_numbers = #tpu.dot_dimension_numbers<[1], [0], [0], [1], [0, 0, 1, 1], [], []>} : vector<2x1xf32>, vector<1x128xf32>, vector<2x128xf32> -> vector<2x128xf32>
    %19 = arith.mulf %16, %16 : vector<2x128xf32>
    %20 = arith.mulf %17, %17 : vector<2x128xf32>
    %21 = arith.addf %19, %20 : vector<2x128xf32>
    %22 = arith.mulf %18, %18 : vector<2x128xf32>
    %23 = arith.addf %21, %22 : vector<2x128xf32>
    %cst_20 = arith.constant 9.99999993E-9 : f32
    %24 = vector.broadcast %cst_20 : f32 to vector<2x128xf32>
    %25 = arith.maximumf %23, %24 : vector<2x128xf32>
    %26 = math.sqrt %25 : vector<2x128xf32>
    %cst_21 = arith.constant dense<0.000000e+00> : vector<16x128xf32>
    %27 = tpu.matmul %13, %26, %cst_21 {dimension_numbers = #tpu.dot_dimension_numbers<[1], [0], [0], [1], [0, 0, 1, 1], [], []>} : vector<16x2xf32>, vector<2x128xf32>, vector<16x128xf32> -> vector<16x128xf32>
    %28 = vector.broadcast %14 : vector<16x1xf32> to vector<16x128xf32>
    %29 = arith.addf %27, %28 : vector<16x128xf32>
    %cst_22 = arith.constant dense<0.000000e+00> : vector<16x128xf32>
    %30 = tpu.matmul %11, %1, %cst_22 {dimension_numbers = #tpu.dot_dimension_numbers<[1], [0], [0], [1], [0, 0, 1, 1], [], []>} : vector<16x32xf32>, vector<32x128xf32>, vector<16x128xf32> -> vector<16x128xf32>
    %31 = arith.addf %29, %30 : vector<16x128xf32>
    %cst_23 = arith.constant dense<0.000000e+00> : vector<2x128xf32>
    %32 = tpu.matmul %15, %16, %cst_23 {dimension_numbers = #tpu.dot_dimension_numbers<[1], [0], [0], [1], [0, 0, 1, 1], [], []>} : vector<2x2xf32>, vector<2x128xf32>, vector<2x128xf32> -> vector<2x128xf32>
    %cst_24 = arith.constant dense<0.000000e+00> : vector<2x128xf32>
    %33 = tpu.matmul %15, %17, %cst_24 {dimension_numbers = #tpu.dot_dimension_numbers<[1], [0], [0], [1], [0, 0, 1, 1], [], []>} : vector<2x2xf32>, vector<2x128xf32>, vector<2x128xf32> -> vector<2x128xf32>
    %cst_25 = arith.constant dense<0.000000e+00> : vector<2x128xf32>
    %34 = tpu.matmul %15, %18, %cst_25 {dimension_numbers = #tpu.dot_dimension_numbers<[1], [0], [0], [1], [0, 0, 1, 1], [], []>} : vector<2x2xf32>, vector<2x128xf32>, vector<2x128xf32> -> vector<2x128xf32>
    %c0_26 = arith.constant 0 : index
    %c0_27 = arith.constant 0 : index
    %35 = vector.load %arg8[%c0_26, %c0_27] : memref<16x1xf32, #tpu.memory_space<vmem>>, vector<16x1xf32>
    %c0_28 = arith.constant 0 : index
    %c0_29 = arith.constant 0 : index
    %36 = vector.load %arg9[%c0_28, %c0_29] : memref<16x1xf32, #tpu.memory_space<vmem>>, vector<16x1xf32>
    %cst_30 = arith.constant 1.000000e+00 : f32
    %37 = vector.broadcast %cst_30 : f32 to vector<1x16xf32>
    %cst_31 = arith.constant dense<0.000000e+00> : vector<1x128xf32>
    %38 = tpu.matmul %37, %31, %cst_31 {dimension_numbers = #tpu.dot_dimension_numbers<[1], [0], [0], [1], [0, 0, 1, 1], [], []>} : vector<1x16xf32>, vector<16x128xf32>, vector<1x128xf32> -> vector<1x128xf32>
    %cst_32 = arith.constant 6.250000e-02 : f32
    %39 = vector.broadcast %cst_32 : f32 to vector<1x128xf32>
    %40 = arith.mulf %38, %39 : vector<1x128xf32>
    %41 = vector.broadcast %40 : vector<1x128xf32> to vector<16x128xf32>
    %42 = arith.subf %31, %41 : vector<16x128xf32>
    %43 = arith.mulf %42, %42 : vector<16x128xf32>
    %cst_33 = arith.constant dense<0.000000e+00> : vector<1x128xf32>
    %44 = tpu.matmul %37, %43, %cst_33 {dimension_numbers = #tpu.dot_dimension_numbers<[1], [0], [0], [1], [0, 0, 1, 1], [], []>} : vector<1x16xf32>, vector<16x128xf32>, vector<1x128xf32> -> vector<1x128xf32>
    %cst_34 = arith.constant 6.250000e-02 : f32
    %45 = vector.broadcast %cst_34 : f32 to vector<1x128xf32>
    %46 = arith.mulf %44, %45 : vector<1x128xf32>
    %cst_35 = arith.constant 9.99999974E-6 : f32
    %47 = vector.broadcast %cst_35 : f32 to vector<1x128xf32>
    %48 = arith.addf %46, %47 : vector<1x128xf32>
    %49 = math.rsqrt %48 : vector<1x128xf32>
    %50 = vector.broadcast %49 : vector<1x128xf32> to vector<16x128xf32>
    %51 = arith.mulf %42, %50 : vector<16x128xf32>
    %52 = vector.broadcast %35 : vector<16x1xf32> to vector<16x128xf32>
    %53 = arith.mulf %51, %52 : vector<16x128xf32>
    %54 = vector.broadcast %36 : vector<16x1xf32> to vector<16x128xf32>
    %55 = arith.addf %53, %54 : vector<16x128xf32>
    %cst_36 = arith.constant 1.000000e+00 : f32
    %56 = vector.broadcast %cst_36 : f32 to vector<1x2xf32>
    %57 = arith.mulf %32, %32 : vector<2x128xf32>
    %58 = arith.mulf %33, %33 : vector<2x128xf32>
    %59 = arith.addf %57, %58 : vector<2x128xf32>
    %60 = arith.mulf %34, %34 : vector<2x128xf32>
    %61 = arith.addf %59, %60 : vector<2x128xf32>
    %cst_37 = arith.constant 9.99999993E-9 : f32
    %62 = vector.broadcast %cst_37 : f32 to vector<2x128xf32>
    %63 = arith.maximumf %61, %62 : vector<2x128xf32>
    %cst_38 = arith.constant dense<0.000000e+00> : vector<1x128xf32>
    %64 = tpu.matmul %56, %63, %cst_38 {dimension_numbers = #tpu.dot_dimension_numbers<[1], [0], [0], [1], [0, 0, 1, 1], [], []>} : vector<1x2xf32>, vector<2x128xf32>, vector<1x128xf32> -> vector<1x128xf32>
    %cst_39 = arith.constant 5.000000e-01 : f32
    %65 = vector.broadcast %cst_39 : f32 to vector<1x128xf32>
    %66 = arith.mulf %64, %65 : vector<1x128xf32>
    %67 = math.rsqrt %66 : vector<1x128xf32>
    %68 = vector.broadcast %67 : vector<1x128xf32> to vector<2x128xf32>
    %69 = arith.mulf %32, %68 : vector<2x128xf32>
    %70 = vector.broadcast %67 : vector<1x128xf32> to vector<2x128xf32>
    %71 = arith.mulf %33, %70 : vector<2x128xf32>
    %72 = vector.broadcast %67 : vector<1x128xf32> to vector<2x128xf32>
    %73 = arith.mulf %34, %72 : vector<2x128xf32>
    %74 = arith.truncf %55 : vector<16x128xf32> to vector<16x128xbf16>
    %c0_40 = arith.constant 0 : index
    %c0_41 = arith.constant 0 : index
    %75 = vector.load %arg10[%c0_40, %c0_41] : memref<16x128xbf16, #tpu.memory_space<vmem>>, vector<16x128xbf16>
    tpu.vector_store %arg10[%c0_40, %c0_41], %74 {strides = array<i32>} : memref<16x128xbf16, #tpu.memory_space<vmem>>, vector<16x128xbf16>,
    %76 = arith.truncf %69 : vector<2x128xf32> to vector<2x128xbf16>
    %c0_42 = arith.constant 0 : index
    %c0_43 = arith.constant 0 : index
    %c0_44 = arith.constant 0 : index
    %77 = vector.load %arg11[%c0_42, %c0_43, %c0_44] : memref<3x2x128xbf16, #tpu.memory_space<vmem>>, vector<1x2x128xbf16>
    %78 = vector.shape_cast %77 : vector<1x2x128xbf16> to vector<2x128xbf16>
    %79 = vector.shape_cast %76 : vector<2x128xbf16> to vector<1x2x128xbf16>
    tpu.vector_store %arg11[%c0_42, %c0_43, %c0_44], %79 {strides = array<i32>} : memref<3x2x128xbf16, #tpu.memory_space<vmem>>, vector<1x2x128xbf16>,
    %80 = arith.truncf %71 : vector<2x128xf32> to vector<2x128xbf16>
    %c1_45 = arith.constant 1 : index
    %c0_46 = arith.constant 0 : index
    %c0_47 = arith.constant 0 : index
    %81 = vector.load %arg11[%c1_45, %c0_46, %c0_47] : memref<3x2x128xbf16, #tpu.memory_space<vmem>>, vector<1x2x128xbf16>
    %82 = vector.shape_cast %81 : vector<1x2x128xbf16> to vector<2x128xbf16>
    %83 = vector.shape_cast %80 : vector<2x128xbf16> to vector<1x2x128xbf16>
    tpu.vector_store %arg11[%c1_45, %c0_46, %c0_47], %83 {strides = array<i32>} : memref<3x2x128xbf16, #tpu.memory_space<vmem>>, vector<1x2x128xbf16>,
    %84 = arith.truncf %73 : vector<2x128xf32> to vector<2x128xbf16>
    %c2_48 = arith.constant 2 : index
    %c0_49 = arith.constant 0 : index
    %c0_50 = arith.constant 0 : index
    %85 = vector.load %arg11[%c2_48, %c0_49, %c0_50] : memref<3x2x128xbf16, #tpu.memory_space<vmem>>, vector<1x2x128xbf16>
    %86 = vector.shape_cast %85 : vector<1x2x128xbf16> to vector<2x128xbf16>
    %87 = vector.shape_cast %84 : vector<2x128xbf16> to vector<1x2x128xbf16>
    tpu.vector_store %arg11[%c2_48, %c0_49, %c0_50], %87 {strides = array<i32>} : memref<3x2x128xbf16, #tpu.memory_space<vmem>>, vector<1x2x128xbf16>,
    return
  }
  func.func @transform_0(%arg0: i32) -> (i32, i32) {
    %c0_i32 = arith.constant 0 : i32
    %c0_i32_0 = arith.constant 0 : i32
    return %c0_i32, %arg0 : i32, i32
  }
  func.func @transform_1(%arg0: i32) -> (i32, i32, i32) {
    %c0_i32 = arith.constant 0 : i32
    %c0_i32_0 = arith.constant 0 : i32
    %c0_i32_1 = arith.constant 0 : i32
    return %c0_i32, %c0_i32_0, %arg0 : i32, i32, i32
  }
  func.func @transform_2(%arg0: i32) -> (i32, i32) {
    %c0_i32 = arith.constant 0 : i32
    %c0_i32_0 = arith.constant 0 : i32
    %c0_i32_1 = arith.constant 0 : i32
    return %c0_i32, %c0_i32_0 : i32, i32
  }
  func.func @transform_3(%arg0: i32) -> (i32, i32) {
    %c0_i32 = arith.constant 0 : i32
    %c0_i32_0 = arith.constant 0 : i32
    %c0_i32_1 = arith.constant 0 : i32
    return %c0_i32, %c0_i32_0 : i32, i32
  }
  func.func @transform_4(%arg0: i32) -> (i32, i32) {
    %c0_i32 = arith.constant 0 : i32
    %c0_i32_0 = arith.constant 0 : i32
    %c0_i32_1 = arith.constant 0 : i32
    return %c0_i32, %c0_i32_0 : i32, i32
  }
  func.func @transform_5(%arg0: i32) -> (i32, i32) {
    %c0_i32 = arith.constant 0 : i32
    %c0_i32_0 = arith.constant 0 : i32
    %c0_i32_1 = arith.constant 0 : i32
    return %c0_i32, %c0_i32_0 : i32, i32
  }
  func.func @transform_6(%arg0: i32) -> (i32, i32) {
    %c0_i32 = arith.constant 0 : i32
    %c0_i32_0 = arith.constant 0 : i32
    %c0_i32_1 = arith.constant 0 : i32
    return %c0_i32, %c0_i32_0 : i32, i32
  }
  func.func @transform_7(%arg0: i32) -> (i32, i32) {
    %c0_i32 = arith.constant 0 : i32
    %c0_i32_0 = arith.constant 0 : i32
    %c0_i32_1 = arith.constant 0 : i32
    return %c0_i32, %c0_i32_0 : i32, i32
  }
  func.func @transform_8(%arg0: i32) -> (i32, i32) {
    %c0_i32 = arith.constant 0 : i32
    %c0_i32_0 = arith.constant 0 : i32
    %c0_i32_1 = arith.constant 0 : i32
    return %c0_i32, %c0_i32_0 : i32, i32
  }
  func.func @transform_9(%arg0: i32) -> (i32, i32) {
    %c0_i32 = arith.constant 0 : i32
    %c0_i32_0 = arith.constant 0 : i32
    return %c0_i32, %arg0 : i32, i32
  }
  func.func @transform_10(%arg0: i32) -> (i32, i32, i32) {
    %c0_i32 = arith.constant 0 : i32
    %c0_i32_0 = arith.constant 0 : i32
    %c0_i32_1 = arith.constant 0 : i32
    return %c0_i32, %c0_i32_0, %arg0 : i32, i32, i32
  }
}

module attributes {stable_mosaic.version = 11 : i64} {
  func.func @_embed_kernel(%arg0: i32, %arg1: memref<6x128xbf16, #tpu.memory_space<vmem>>, %arg2: memref<3x3x128xbf16, #tpu.memory_space<vmem>>, %arg3: memref<4x3xf32, #tpu.memory_space<vmem>>, %arg4: memref<32x6xf32, #tpu.memory_space<vmem>>, %arg5: memref<32x4xf32, #tpu.memory_space<vmem>>, %arg6: memref<32x1xf32, #tpu.memory_space<vmem>>, %arg7: memref<4x4xf32, #tpu.memory_space<vmem>>, %arg8: memref<32x1xf32, #tpu.memory_space<vmem>>, %arg9: memref<32x1xf32, #tpu.memory_space<vmem>>, %arg10: memref<32x128xbf16, #tpu.memory_space<vmem>>, %arg11: memref<3x4x128xbf16, #tpu.memory_space<vmem>>) attributes {dimension_semantics = [#tpu.dimension_semantics<parallel>], iteration_bounds = array<i64: 1>, scalar_prefetch = 0 : i64, scratch_operands = 0 : i64, tpu.core_type = #tpu.core_type<tc>, window_params = [{transform_indices = @transform_0, window_bounds = array<i64: 6, 128>}, {transform_indices = @transform_1, window_bounds = array<i64: 3, 3, 128>}, {pipeline_mode = #tpu.pipeline_mode<synchronous>, transform_indices = @transform_2, window_bounds = array<i64: 4, 3>}, {pipeline_mode = #tpu.pipeline_mode<synchronous>, transform_indices = @transform_3, window_bounds = array<i64: 32, 6>}, {pipeline_mode = #tpu.pipeline_mode<synchronous>, transform_indices = @transform_4, window_bounds = array<i64: 32, 4>}, {pipeline_mode = #tpu.pipeline_mode<synchronous>, transform_indices = @transform_5, window_bounds = array<i64: 32, 1>}, {pipeline_mode = #tpu.pipeline_mode<synchronous>, transform_indices = @transform_6, window_bounds = array<i64: 4, 4>}, {pipeline_mode = #tpu.pipeline_mode<synchronous>, transform_indices = @transform_7, window_bounds = array<i64: 32, 1>}, {pipeline_mode = #tpu.pipeline_mode<synchronous>, transform_indices = @transform_8, window_bounds = array<i64: 32, 1>}, {transform_indices = @transform_9, window_bounds = array<i64: 32, 128>}, {transform_indices = @transform_10, window_bounds = array<i64: 3, 4, 128>}]} {
    %c0 = arith.constant 0 : index
    %c0_0 = arith.constant 0 : index
    %0 = vector.load %arg1[%c0, %c0_0] : memref<6x128xbf16, #tpu.memory_space<vmem>>, vector<6x128xbf16>
    %1 = arith.extf %0 : vector<6x128xbf16> to vector<6x128xf32>
    %c0_1 = arith.constant 0 : index
    %c0_2 = arith.constant 0 : index
    %c0_3 = arith.constant 0 : index
    %2 = vector.load %arg2[%c0_1, %c0_2, %c0_3] : memref<3x3x128xbf16, #tpu.memory_space<vmem>>, vector<1x3x128xbf16>
    %3 = vector.shape_cast %2 : vector<1x3x128xbf16> to vector<3x128xbf16>
    %4 = arith.extf %3 : vector<3x128xbf16> to vector<3x128xf32>
    %c1 = arith.constant 1 : index
    %c0_4 = arith.constant 0 : index
    %c0_5 = arith.constant 0 : index
    %5 = vector.load %arg2[%c1, %c0_4, %c0_5] : memref<3x3x128xbf16, #tpu.memory_space<vmem>>, vector<1x3x128xbf16>
    %6 = vector.shape_cast %5 : vector<1x3x128xbf16> to vector<3x128xbf16>
    %7 = arith.extf %6 : vector<3x128xbf16> to vector<3x128xf32>
    %c2 = arith.constant 2 : index
    %c0_6 = arith.constant 0 : index
    %c0_7 = arith.constant 0 : index
    %8 = vector.load %arg2[%c2, %c0_6, %c0_7] : memref<3x3x128xbf16, #tpu.memory_space<vmem>>, vector<1x3x128xbf16>
    %9 = vector.shape_cast %8 : vector<1x3x128xbf16> to vector<3x128xbf16>
    %10 = arith.extf %9 : vector<3x128xbf16> to vector<3x128xf32>
    %c0_8 = arith.constant 0 : index
    %c0_9 = arith.constant 0 : index
    %11 = vector.load %arg4[%c0_8, %c0_9] : memref<32x6xf32, #tpu.memory_space<vmem>>, vector<32x6xf32>
    %c0_10 = arith.constant 0 : index
    %c0_11 = arith.constant 0 : index
    %12 = vector.load %arg3[%c0_10, %c0_11] : memref<4x3xf32, #tpu.memory_space<vmem>>, vector<4x3xf32>
    %c0_12 = arith.constant 0 : index
    %c0_13 = arith.constant 0 : index
    %13 = vector.load %arg5[%c0_12, %c0_13] : memref<32x4xf32, #tpu.memory_space<vmem>>, vector<32x4xf32>
    %c0_14 = arith.constant 0 : index
    %c0_15 = arith.constant 0 : index
    %14 = vector.load %arg6[%c0_14, %c0_15] : memref<32x1xf32, #tpu.memory_space<vmem>>, vector<32x1xf32>
    %c0_16 = arith.constant 0 : index
    %c0_17 = arith.constant 0 : index
    %15 = vector.load %arg7[%c0_16, %c0_17] : memref<4x4xf32, #tpu.memory_space<vmem>>, vector<4x4xf32>
    %cst = arith.constant dense<0.000000e+00> : vector<4x128xf32>
    %16 = tpu.matmul %12, %4, %cst {dimension_numbers = #tpu.dot_dimension_numbers<[1], [0], [0], [1], [0, 0, 1, 1], [], []>} : vector<4x3xf32>, vector<3x128xf32>, vector<4x128xf32> -> vector<4x128xf32>
    %cst_18 = arith.constant dense<0.000000e+00> : vector<4x128xf32>
    %17 = tpu.matmul %12, %7, %cst_18 {dimension_numbers = #tpu.dot_dimension_numbers<[1], [0], [0], [1], [0, 0, 1, 1], [], []>} : vector<4x3xf32>, vector<3x128xf32>, vector<4x128xf32> -> vector<4x128xf32>
    %cst_19 = arith.constant dense<0.000000e+00> : vector<4x128xf32>
    %18 = tpu.matmul %12, %10, %cst_19 {dimension_numbers = #tpu.dot_dimension_numbers<[1], [0], [0], [1], [0, 0, 1, 1], [], []>} : vector<4x3xf32>, vector<3x128xf32>, vector<4x128xf32> -> vector<4x128xf32>
    %19 = arith.mulf %16, %16 : vector<4x128xf32>
    %20 = arith.mulf %17, %17 : vector<4x128xf32>
    %21 = arith.addf %19, %20 : vector<4x128xf32>
    %22 = arith.mulf %18, %18 : vector<4x128xf32>
    %23 = arith.addf %21, %22 : vector<4x128xf32>
    %cst_20 = arith.constant 9.99999993E-9 : f32
    %24 = vector.broadcast %cst_20 : f32 to vector<4x128xf32>
    %25 = arith.maximumf %23, %24 : vector<4x128xf32>
    %26 = math.sqrt %25 : vector<4x128xf32>
    %cst_21 = arith.constant dense<0.000000e+00> : vector<32x128xf32>
    %27 = tpu.matmul %13, %26, %cst_21 {dimension_numbers = #tpu.dot_dimension_numbers<[1], [0], [0], [1], [0, 0, 1, 1], [], []>} : vector<32x4xf32>, vector<4x128xf32>, vector<32x128xf32> -> vector<32x128xf32>
    %28 = vector.broadcast %14 : vector<32x1xf32> to vector<32x128xf32>
    %29 = arith.addf %27, %28 : vector<32x128xf32>
    %cst_22 = arith.constant dense<0.000000e+00> : vector<32x128xf32>
    %30 = tpu.matmul %11, %1, %cst_22 {dimension_numbers = #tpu.dot_dimension_numbers<[1], [0], [0], [1], [0, 0, 1, 1], [], []>} : vector<32x6xf32>, vector<6x128xf32>, vector<32x128xf32> -> vector<32x128xf32>
    %31 = arith.addf %29, %30 : vector<32x128xf32>
    %cst_23 = arith.constant dense<0.000000e+00> : vector<4x128xf32>
    %32 = tpu.matmul %15, %16, %cst_23 {dimension_numbers = #tpu.dot_dimension_numbers<[1], [0], [0], [1], [0, 0, 1, 1], [], []>} : vector<4x4xf32>, vector<4x128xf32>, vector<4x128xf32> -> vector<4x128xf32>
    %cst_24 = arith.constant dense<0.000000e+00> : vector<4x128xf32>
    %33 = tpu.matmul %15, %17, %cst_24 {dimension_numbers = #tpu.dot_dimension_numbers<[1], [0], [0], [1], [0, 0, 1, 1], [], []>} : vector<4x4xf32>, vector<4x128xf32>, vector<4x128xf32> -> vector<4x128xf32>
    %cst_25 = arith.constant dense<0.000000e+00> : vector<4x128xf32>
    %34 = tpu.matmul %15, %18, %cst_25 {dimension_numbers = #tpu.dot_dimension_numbers<[1], [0], [0], [1], [0, 0, 1, 1], [], []>} : vector<4x4xf32>, vector<4x128xf32>, vector<4x128xf32> -> vector<4x128xf32>
    %c0_26 = arith.constant 0 : index
    %c0_27 = arith.constant 0 : index
    %35 = vector.load %arg8[%c0_26, %c0_27] : memref<32x1xf32, #tpu.memory_space<vmem>>, vector<32x1xf32>
    %c0_28 = arith.constant 0 : index
    %c0_29 = arith.constant 0 : index
    %36 = vector.load %arg9[%c0_28, %c0_29] : memref<32x1xf32, #tpu.memory_space<vmem>>, vector<32x1xf32>
    %cst_30 = arith.constant 1.000000e+00 : f32
    %37 = vector.broadcast %cst_30 : f32 to vector<1x32xf32>
    %cst_31 = arith.constant dense<0.000000e+00> : vector<1x128xf32>
    %38 = tpu.matmul %37, %31, %cst_31 {dimension_numbers = #tpu.dot_dimension_numbers<[1], [0], [0], [1], [0, 0, 1, 1], [], []>} : vector<1x32xf32>, vector<32x128xf32>, vector<1x128xf32> -> vector<1x128xf32>
    %cst_32 = arith.constant 3.125000e-02 : f32
    %39 = vector.broadcast %cst_32 : f32 to vector<1x128xf32>
    %40 = arith.mulf %38, %39 : vector<1x128xf32>
    %41 = vector.broadcast %40 : vector<1x128xf32> to vector<32x128xf32>
    %42 = arith.subf %31, %41 : vector<32x128xf32>
    %43 = arith.mulf %42, %42 : vector<32x128xf32>
    %cst_33 = arith.constant dense<0.000000e+00> : vector<1x128xf32>
    %44 = tpu.matmul %37, %43, %cst_33 {dimension_numbers = #tpu.dot_dimension_numbers<[1], [0], [0], [1], [0, 0, 1, 1], [], []>} : vector<1x32xf32>, vector<32x128xf32>, vector<1x128xf32> -> vector<1x128xf32>
    %cst_34 = arith.constant 3.125000e-02 : f32
    %45 = vector.broadcast %cst_34 : f32 to vector<1x128xf32>
    %46 = arith.mulf %44, %45 : vector<1x128xf32>
    %cst_35 = arith.constant 9.99999974E-6 : f32
    %47 = vector.broadcast %cst_35 : f32 to vector<1x128xf32>
    %48 = arith.addf %46, %47 : vector<1x128xf32>
    %49 = math.rsqrt %48 : vector<1x128xf32>
    %50 = vector.broadcast %49 : vector<1x128xf32> to vector<32x128xf32>
    %51 = arith.mulf %42, %50 : vector<32x128xf32>
    %52 = vector.broadcast %35 : vector<32x1xf32> to vector<32x128xf32>
    %53 = arith.mulf %51, %52 : vector<32x128xf32>
    %54 = vector.broadcast %36 : vector<32x1xf32> to vector<32x128xf32>
    %55 = arith.addf %53, %54 : vector<32x128xf32>
    %cst_36 = arith.constant 1.000000e+00 : f32
    %56 = vector.broadcast %cst_36 : f32 to vector<1x4xf32>
    %57 = arith.mulf %32, %32 : vector<4x128xf32>
    %58 = arith.mulf %33, %33 : vector<4x128xf32>
    %59 = arith.addf %57, %58 : vector<4x128xf32>
    %60 = arith.mulf %34, %34 : vector<4x128xf32>
    %61 = arith.addf %59, %60 : vector<4x128xf32>
    %cst_37 = arith.constant 9.99999993E-9 : f32
    %62 = vector.broadcast %cst_37 : f32 to vector<4x128xf32>
    %63 = arith.maximumf %61, %62 : vector<4x128xf32>
    %cst_38 = arith.constant dense<0.000000e+00> : vector<1x128xf32>
    %64 = tpu.matmul %56, %63, %cst_38 {dimension_numbers = #tpu.dot_dimension_numbers<[1], [0], [0], [1], [0, 0, 1, 1], [], []>} : vector<1x4xf32>, vector<4x128xf32>, vector<1x128xf32> -> vector<1x128xf32>
    %cst_39 = arith.constant 2.500000e-01 : f32
    %65 = vector.broadcast %cst_39 : f32 to vector<1x128xf32>
    %66 = arith.mulf %64, %65 : vector<1x128xf32>
    %67 = math.rsqrt %66 : vector<1x128xf32>
    %68 = vector.broadcast %67 : vector<1x128xf32> to vector<4x128xf32>
    %69 = arith.mulf %32, %68 : vector<4x128xf32>
    %70 = vector.broadcast %67 : vector<1x128xf32> to vector<4x128xf32>
    %71 = arith.mulf %33, %70 : vector<4x128xf32>
    %72 = vector.broadcast %67 : vector<1x128xf32> to vector<4x128xf32>
    %73 = arith.mulf %34, %72 : vector<4x128xf32>
    %74 = arith.truncf %55 : vector<32x128xf32> to vector<32x128xbf16>
    %c0_40 = arith.constant 0 : index
    %c0_41 = arith.constant 0 : index
    %75 = vector.load %arg10[%c0_40, %c0_41] : memref<32x128xbf16, #tpu.memory_space<vmem>>, vector<32x128xbf16>
    tpu.vector_store %arg10[%c0_40, %c0_41], %74 {strides = array<i32>} : memref<32x128xbf16, #tpu.memory_space<vmem>>, vector<32x128xbf16>,
    %76 = arith.truncf %69 : vector<4x128xf32> to vector<4x128xbf16>
    %c0_42 = arith.constant 0 : index
    %c0_43 = arith.constant 0 : index
    %c0_44 = arith.constant 0 : index
    %77 = vector.load %arg11[%c0_42, %c0_43, %c0_44] : memref<3x4x128xbf16, #tpu.memory_space<vmem>>, vector<1x4x128xbf16>
    %78 = vector.shape_cast %77 : vector<1x4x128xbf16> to vector<4x128xbf16>
    %79 = vector.shape_cast %76 : vector<4x128xbf16> to vector<1x4x128xbf16>
    tpu.vector_store %arg11[%c0_42, %c0_43, %c0_44], %79 {strides = array<i32>} : memref<3x4x128xbf16, #tpu.memory_space<vmem>>, vector<1x4x128xbf16>,
    %80 = arith.truncf %71 : vector<4x128xf32> to vector<4x128xbf16>
    %c1_45 = arith.constant 1 : index
    %c0_46 = arith.constant 0 : index
    %c0_47 = arith.constant 0 : index
    %81 = vector.load %arg11[%c1_45, %c0_46, %c0_47] : memref<3x4x128xbf16, #tpu.memory_space<vmem>>, vector<1x4x128xbf16>
    %82 = vector.shape_cast %81 : vector<1x4x128xbf16> to vector<4x128xbf16>
    %83 = vector.shape_cast %80 : vector<4x128xbf16> to vector<1x4x128xbf16>
    tpu.vector_store %arg11[%c1_45, %c0_46, %c0_47], %83 {strides = array<i32>} : memref<3x4x128xbf16, #tpu.memory_space<vmem>>, vector<1x4x128xbf16>,
    %84 = arith.truncf %73 : vector<4x128xf32> to vector<4x128xbf16>
    %c2_48 = arith.constant 2 : index
    %c0_49 = arith.constant 0 : index
    %c0_50 = arith.constant 0 : index
    %85 = vector.load %arg11[%c2_48, %c0_49, %c0_50] : memref<3x4x128xbf16, #tpu.memory_space<vmem>>, vector<1x4x128xbf16>
    %86 = vector.shape_cast %85 : vector<1x4x128xbf16> to vector<4x128xbf16>
    %87 = vector.shape_cast %84 : vector<4x128xbf16> to vector<1x4x128xbf16>
    tpu.vector_store %arg11[%c2_48, %c0_49, %c0_50], %87 {strides = array<i32>} : memref<3x4x128xbf16, #tpu.memory_space<vmem>>, vector<1x4x128xbf16>,
    return
  }
  func.func @transform_0(%arg0: i32) -> (i32, i32) {
    %c0_i32 = arith.constant 0 : i32
    %c0_i32_0 = arith.constant 0 : i32
    return %c0_i32, %arg0 : i32, i32
  }
  func.func @transform_1(%arg0: i32) -> (i32, i32, i32) {
    %c0_i32 = arith.constant 0 : i32
    %c0_i32_0 = arith.constant 0 : i32
    %c0_i32_1 = arith.constant 0 : i32
    return %c0_i32, %c0_i32_0, %arg0 : i32, i32, i32
  }
  func.func @transform_2(%arg0: i32) -> (i32, i32) {
    %c0_i32 = arith.constant 0 : i32
    %c0_i32_0 = arith.constant 0 : i32
    %c0_i32_1 = arith.constant 0 : i32
    return %c0_i32, %c0_i32_0 : i32, i32
  }
  func.func @transform_3(%arg0: i32) -> (i32, i32) {
    %c0_i32 = arith.constant 0 : i32
    %c0_i32_0 = arith.constant 0 : i32
    %c0_i32_1 = arith.constant 0 : i32
    return %c0_i32, %c0_i32_0 : i32, i32
  }
  func.func @transform_4(%arg0: i32) -> (i32, i32) {
    %c0_i32 = arith.constant 0 : i32
    %c0_i32_0 = arith.constant 0 : i32
    %c0_i32_1 = arith.constant 0 : i32
    return %c0_i32, %c0_i32_0 : i32, i32
  }
  func.func @transform_5(%arg0: i32) -> (i32, i32) {
    %c0_i32 = arith.constant 0 : i32
    %c0_i32_0 = arith.constant 0 : i32
    %c0_i32_1 = arith.constant 0 : i32
    return %c0_i32, %c0_i32_0 : i32, i32
  }
  func.func @transform_6(%arg0: i32) -> (i32, i32) {
    %c0_i32 = arith.constant 0 : i32
    %c0_i32_0 = arith.constant 0 : i32
    %c0_i32_1 = arith.constant 0 : i32
    return %c0_i32, %c0_i32_0 : i32, i32
  }
  func.func @transform_7(%arg0: i32) -> (i32, i32) {
    %c0_i32 = arith.constant 0 : i32
    %c0_i32_0 = arith.constant 0 : i32
    %c0_i32_1 = arith.constant 0 : i32
    return %c0_i32, %c0_i32_0 : i32, i32
  }
  func.func @transform_8(%arg0: i32) -> (i32, i32) {
    %c0_i32 = arith.constant 0 : i32
    %c0_i32_0 = arith.constant 0 : i32
    %c0_i32_1 = arith.constant 0 : i32
    return %c0_i32, %c0_i32_0 : i32, i32
  }
  func.func @transform_9(%arg0: i32) -> (i32, i32) {
    %c0_i32 = arith.constant 0 : i32
    %c0_i32_0 = arith.constant 0 : i32
    return %c0_i32, %arg0 : i32, i32
  }
  func.func @transform_10(%arg0: i32) -> (i32, i32, i32) {
    %c0_i32 = arith.constant 0 : i32
    %c0_i32_0 = arith.constant 0 : i32
    %c0_i32_1 = arith.constant 0 : i32
    return %c0_i32, %c0_i32_0, %arg0 : i32, i32, i32
  }
}

module attributes {stable_mosaic.version = 11 : i64} {
  func.func @kernel(%arg0: i32, %arg1: memref<16x128xbf16, #tpu.memory_space<vmem>>, %arg2: memref<3x2x128xbf16, #tpu.memory_space<vmem>>, %arg3: memref<1x128xi32, #tpu.memory_space<vmem>>, %arg4: memref<1x128xi32, #tpu.memory_space<vmem>>, %arg5: memref<1x128xf32, #tpu.memory_space<vmem>>, %arg6: memref<32x128xbf16, #tpu.memory_space<vmem>>, %arg7: memref<3x4x128xbf16, #tpu.memory_space<vmem>>, %arg8: memref<10x4xf32, #tpu.memory_space<vmem>>, %arg9: memref<10x2xf32, #tpu.memory_space<vmem>>, %arg10: memref<10x4xf32, #tpu.memory_space<vmem>>, %arg11: memref<32x32xf32, #tpu.memory_space<vmem>>, %arg12: memref<32x16xf32, #tpu.memory_space<vmem>>, %arg13: memref<32x32xf32, #tpu.memory_space<vmem>>, %arg14: memref<32x10xf32, #tpu.memory_space<vmem>>, %arg15: memref<32x1xf32, #tpu.memory_space<vmem>>, %arg16: memref<4x10xf32, #tpu.memory_space<vmem>>, %arg17: memref<4x4xf32, #tpu.memory_space<vmem>>, %arg18: memref<32x32xf32, #tpu.memory_space<vmem>>, %arg19: memref<32x4xf32, #tpu.memory_space<vmem>>, %arg20: memref<32x1xf32, #tpu.memory_space<vmem>>, %arg21: memref<4x4xf32, #tpu.memory_space<vmem>>, %arg22: memref<4x4xf32, #tpu.memory_space<vmem>>, %arg23: memref<32x32xf32, #tpu.memory_space<vmem>>, %arg24: memref<32x4xf32, #tpu.memory_space<vmem>>, %arg25: memref<32x1xf32, #tpu.memory_space<vmem>>, %arg26: memref<4x4xf32, #tpu.memory_space<vmem>>, %arg27: memref<32x128xbf16, #tpu.memory_space<vmem>>, %arg28: memref<3x4x128xbf16, #tpu.memory_space<vmem>>) attributes {dimension_semantics = [#tpu.dimension_semantics<parallel>], iteration_bounds = array<i64: 1>, scalar_prefetch = 0 : i64, scratch_operands = 0 : i64, tpu.core_type = #tpu.core_type<tc>, window_params = [{transform_indices = @transform_0, window_bounds = array<i64: 16, 128>}, {transform_indices = @transform_1, window_bounds = array<i64: 3, 2, 128>}, {transform_indices = @transform_2, window_bounds = array<i64: 1, 128>}, {transform_indices = @transform_3, window_bounds = array<i64: 1, 128>}, {transform_indices = @transform_4, window_bounds = array<i64: 1, 128>}, {pipeline_mode = #tpu.pipeline_mode<synchronous>, transform_indices = @transform_5, window_bounds = array<i64: 32, 128>}, {pipeline_mode = #tpu.pipeline_mode<synchronous>, transform_indices = @transform_6, window_bounds = array<i64: 3, 4, 128>}, {pipeline_mode = #tpu.pipeline_mode<synchronous>, transform_indices = @transform_7, window_bounds = array<i64: 10, 4>}, {pipeline_mode = #tpu.pipeline_mode<synchronous>, transform_indices = @transform_8, window_bounds = array<i64: 10, 2>}, {pipeline_mode = #tpu.pipeline_mode<synchronous>, transform_indices = @transform_9, window_bounds = array<i64: 10, 4>}, {pipeline_mode = #tpu.pipeline_mode<synchronous>, transform_indices = @transform_10, window_bounds = array<i64: 32, 32>}, {pipeline_mode = #tpu.pipeline_mode<synchronous>, transform_indices = @transform_11, window_bounds = array<i64: 32, 16>}, {pipeline_mode = #tpu.pipeline_mode<synchronous>, transform_indices = @transform_12, window_bounds = array<i64: 32, 32>}, {pipeline_mode = #tpu.pipeline_mode<synchronous>, transform_indices = @transform_13, window_bounds = array<i64: 32, 10>}, {pipeline_mode = #tpu.pipeline_mode<synchronous>, transform_indices = @transform_14, window_bounds = array<i64: 32, 1>}, {pipeline_mode = #tpu.pipeline_mode<synchronous>, transform_indices = @transform_15, window_bounds = array<i64: 4, 10>}, {pipeline_mode = #tpu.pipeline_mode<synchronous>, transform_indices = @transform_16, window_bounds = array<i64: 4, 4>}, {pipeline_mode = #tpu.pipeline_mode<synchronous>, transform_indices = @transform_17, window_bounds = array<i64: 32, 32>}, {pipeline_mode = #tpu.pipeline_mode<synchronous>, transform_indices = @transform_18, window_bounds = array<i64: 32, 4>}, {pipeline_mode = #tpu.pipeline_mode<synchronous>, transform_indices = @transform_19, window_bounds = array<i64: 32, 1>}, {pipeline_mode = #tpu.pipeline_mode<synchronous>, transform_indices = @transform_20, window_bounds = array<i64: 4, 4>}, {pipeline_mode = #tpu.pipeline_mode<synchronous>, transform_indices = @transform_21, window_bounds = array<i64: 4, 4>}, {pipeline_mode = #tpu.pipeline_mode<synchronous>, transform_indices = @transform_22, window_bounds = array<i64: 32, 32>}, {pipeline_mode = #tpu.pipeline_mode<synchronous>, transform_indices = @transform_23, window_bounds = array<i64: 32, 4>}, {pipeline_mode = #tpu.pipeline_mode<synchronous>, transform_indices = @transform_24, window_bounds = array<i64: 32, 1>}, {pipeline_mode = #tpu.pipeline_mode<synchronous>, transform_indices = @transform_25, window_bounds = array<i64: 4, 4>}, {transform_indices = @transform_26, window_bounds = array<i64: 32, 128>}, {transform_indices = @transform_27, window_bounds = array<i64: 3, 4, 128>}]} {
    %c0 = arith.constant 0 : index
    %c0_0 = arith.constant 0 : index
    %0 = vector.load %arg3[%c0, %c0_0] : memref<1x128xi32, #tpu.memory_space<vmem>>, vector<1x128xi32>
    %c0_1 = arith.constant 0 : index
    %c0_2 = arith.constant 0 : index
    %1 = vector.load %arg4[%c0_1, %c0_2] : memref<1x128xi32, #tpu.memory_space<vmem>>, vector<1x128xi32>
    %2 = tpu.iota {dimensions = array<i32: 0>} : vector<128x128xi32>
    %3 = vector.broadcast %0 : vector<1x128xi32> to vector<128x128xi32>
    %4 = arith.cmpi eq, %2, %3 : vector<128x128xi32>
    %cst = arith.constant 1.000000e+00 : f32
    %cst_3 = arith.constant 0.000000e+00 : f32
    %5 = vector.broadcast %cst : f32 to vector<128x128xf32>
    %6 = vector.broadcast %cst_3 : f32 to vector<128x128xf32>
    %7 = arith.select %4, %5, %6 : vector<128x128xi1>, vector<128x128xf32>
    %8 = vector.broadcast %1 : vector<1x128xi32> to vector<128x128xi32>
    %9 = arith.cmpi eq, %2, %8 : vector<128x128xi32>
    %cst_4 = arith.constant 1.000000e+00 : f32
    %cst_5 = arith.constant 0.000000e+00 : f32
    %10 = vector.broadcast %cst_4 : f32 to vector<128x128xf32>
    %11 = vector.broadcast %cst_5 : f32 to vector<128x128xf32>
    %12 = arith.select %9, %10, %11 : vector<128x128xi1>, vector<128x128xf32>
    %c0_6 = arith.constant 0 : index
    %c0_7 = arith.constant 0 : index
    %13 = vector.load %arg6[%c0_6, %c0_7] : memref<32x128xbf16, #tpu.memory_space<vmem>>, vector<32x128xbf16>
    %14 = arith.extf %13 : vector<32x128xbf16> to vector<32x128xf32>
    %c0_8 = arith.constant 0 : index
    %c0_9 = arith.constant 0 : index
    %c0_10 = arith.constant 0 : index
    %15 = vector.load %arg7[%c0_8, %c0_9, %c0_10] : memref<3x4x128xbf16, #tpu.memory_space<vmem>>, vector<1x4x128xbf16>
    %16 = vector.shape_cast %15 : vector<1x4x128xbf16> to vector<4x128xbf16>
    %17 = arith.extf %16 : vector<4x128xbf16> to vector<4x128xf32>
    %c1 = arith.constant 1 : index
    %c0_11 = arith.constant 0 : index
    %c0_12 = arith.constant 0 : index
    %18 = vector.load %arg7[%c1, %c0_11, %c0_12] : memref<3x4x128xbf16, #tpu.memory_space<vmem>>, vector<1x4x128xbf16>
    %19 = vector.shape_cast %18 : vector<1x4x128xbf16> to vector<4x128xbf16>
    %20 = arith.extf %19 : vector<4x128xbf16> to vector<4x128xf32>
    %c2 = arith.constant 2 : index
    %c0_13 = arith.constant 0 : index
    %c0_14 = arith.constant 0 : index
    %21 = vector.load %arg7[%c2, %c0_13, %c0_14] : memref<3x4x128xbf16, #tpu.memory_space<vmem>>, vector<1x4x128xbf16>
    %22 = vector.shape_cast %21 : vector<1x4x128xbf16> to vector<4x128xbf16>
    %23 = arith.extf %22 : vector<4x128xbf16> to vector<4x128xf32>
    %cst_15 = arith.constant dense<0.000000e+00> : vector<32x128xf32>
    %24 = tpu.matmul %14, %7, %cst_15 {dimension_numbers = #tpu.dot_dimension_numbers<[1], [0], [0], [1], [0, 0, 1, 1], [], []>} : vector<32x128xf32>, vector<128x128xf32>, vector<32x128xf32> -> vector<32x128xf32>
    %cst_16 = arith.constant dense<0.000000e+00> : vector<4x128xf32>
    %25 = tpu.matmul %17, %7, %cst_16 {dimension_numbers = #tpu.dot_dimension_numbers<[1], [0], [0], [1], [0, 0, 1, 1], [], []>} : vector<4x128xf32>, vector<128x128xf32>, vector<4x128xf32> -> vector<4x128xf32>
    %cst_17 = arith.constant dense<0.000000e+00> : vector<4x128xf32>
    %26 = tpu.matmul %20, %7, %cst_17 {dimension_numbers = #tpu.dot_dimension_numbers<[1], [0], [0], [1], [0, 0, 1, 1], [], []>} : vector<4x128xf32>, vector<128x128xf32>, vector<4x128xf32> -> vector<4x128xf32>
    %cst_18 = arith.constant dense<0.000000e+00> : vector<4x128xf32>
    %27 = tpu.matmul %23, %7, %cst_18 {dimension_numbers = #tpu.dot_dimension_numbers<[1], [0], [0], [1], [0, 0, 1, 1], [], []>} : vector<4x128xf32>, vector<128x128xf32>, vector<4x128xf32> -> vector<4x128xf32>
    %cst_19 = arith.constant dense<0.000000e+00> : vector<32x128xf32>
    %28 = tpu.matmul %14, %12, %cst_19 {dimension_numbers = #tpu.dot_dimension_numbers<[1], [0], [0], [1], [0, 0, 1, 1], [], []>} : vector<32x128xf32>, vector<128x128xf32>, vector<32x128xf32> -> vector<32x128xf32>
    %cst_20 = arith.constant dense<0.000000e+00> : vector<4x128xf32>
    %29 = tpu.matmul %17, %12, %cst_20 {dimension_numbers = #tpu.dot_dimension_numbers<[1], [0], [0], [1], [0, 0, 1, 1], [], []>} : vector<4x128xf32>, vector<128x128xf32>, vector<4x128xf32> -> vector<4x128xf32>
    %cst_21 = arith.constant dense<0.000000e+00> : vector<4x128xf32>
    %30 = tpu.matmul %20, %12, %cst_21 {dimension_numbers = #tpu.dot_dimension_numbers<[1], [0], [0], [1], [0, 0, 1, 1], [], []>} : vector<4x128xf32>, vector<128x128xf32>, vector<4x128xf32> -> vector<4x128xf32>
    %cst_22 = arith.constant dense<0.000000e+00> : vector<4x128xf32>
    %31 = tpu.matmul %23, %12, %cst_22 {dimension_numbers = #tpu.dot_dimension_numbers<[1], [0], [0], [1], [0, 0, 1, 1], [], []>} : vector<4x128xf32>, vector<128x128xf32>, vector<4x128xf32> -> vector<4x128xf32>
    %c0_23 = arith.constant 0 : index
    %c0_24 = arith.constant 0 : index
    %32 = vector.load %arg1[%c0_23, %c0_24] : memref<16x128xbf16, #tpu.memory_space<vmem>>, vector<16x128xbf16>
    %33 = arith.extf %32 : vector<16x128xbf16> to vector<16x128xf32>
    %c0_25 = arith.constant 0 : index
    %c0_26 = arith.constant 0 : index
    %c0_27 = arith.constant 0 : index
    %34 = vector.load %arg2[%c0_25, %c0_26, %c0_27] : memref<3x2x128xbf16, #tpu.memory_space<vmem>>, vector<1x2x128xbf16>
    %35 = vector.shape_cast %34 : vector<1x2x128xbf16> to vector<2x128xbf16>
    %36 = arith.extf %35 : vector<2x128xbf16> to vector<2x128xf32>
    %c1_28 = arith.constant 1 : index
    %c0_29 = arith.constant 0 : index
    %c0_30 = arith.constant 0 : index
    %37 = vector.load %arg2[%c1_28, %c0_29, %c0_30] : memref<3x2x128xbf16, #tpu.memory_space<vmem>>, vector<1x2x128xbf16>
    %38 = vector.shape_cast %37 : vector<1x2x128xbf16> to vector<2x128xbf16>
    %39 = arith.extf %38 : vector<2x128xbf16> to vector<2x128xf32>
    %c2_31 = arith.constant 2 : index
    %c0_32 = arith.constant 0 : index
    %c0_33 = arith.constant 0 : index
    %40 = vector.load %arg2[%c2_31, %c0_32, %c0_33] : memref<3x2x128xbf16, #tpu.memory_space<vmem>>, vector<1x2x128xbf16>
    %41 = vector.shape_cast %40 : vector<1x2x128xbf16> to vector<2x128xbf16>
    %42 = arith.extf %41 : vector<2x128xbf16> to vector<2x128xf32>
    %c0_34 = arith.constant 0 : index
    %c0_35 = arith.constant 0 : index
    %43 = vector.load %arg11[%c0_34, %c0_35] : memref<32x32xf32, #tpu.memory_space<vmem>>, vector<32x32xf32>
    %c0_36 = arith.constant 0 : index
    %c0_37 = arith.constant 0 : index
    %44 = vector.load %arg12[%c0_36, %c0_37] : memref<32x16xf32, #tpu.memory_space<vmem>>, vector<32x16xf32>
    %c0_38 = arith.constant 0 : index
    %c0_39 = arith.constant 0 : index
    %45 = vector.load %arg13[%c0_38, %c0_39] : memref<32x32xf32, #tpu.memory_space<vmem>>, vector<32x32xf32>
    %c0_40 = arith.constant 0 : index
    %c0_41 = arith.constant 0 : index
    %46 = vector.load %arg8[%c0_40, %c0_41] : memref<10x4xf32, #tpu.memory_space<vmem>>, vector<10x4xf32>
    %c0_42 = arith.constant 0 : index
    %c0_43 = arith.constant 0 : index
    %47 = vector.load %arg9[%c0_42, %c0_43] : memref<10x2xf32, #tpu.memory_space<vmem>>, vector<10x2xf32>
    %c0_44 = arith.constant 0 : index
    %c0_45 = arith.constant 0 : index
    %48 = vector.load %arg10[%c0_44, %c0_45] : memref<10x4xf32, #tpu.memory_space<vmem>>, vector<10x4xf32>
    %c0_46 = arith.constant 0 : index
    %c0_47 = arith.constant 0 : index
    %49 = vector.load %arg14[%c0_46, %c0_47] : memref<32x10xf32, #tpu.memory_space<vmem>>, vector<32x10xf32>
    %c0_48 = arith.constant 0 : index
    %c0_49 = arith.constant 0 : index
    %50 = vector.load %arg15[%c0_48, %c0_49] : memref<32x1xf32, #tpu.memory_space<vmem>>, vector<32x1xf32>
    %c0_50 = arith.constant 0 : index
    %c0_51 = arith.constant 0 : index
    %51 = vector.load %arg16[%c0_50, %c0_51] : memref<4x10xf32, #tpu.memory_space<vmem>>, vector<4x10xf32>
    %cst_52 = arith.constant dense<0.000000e+00> : vector<10x128xf32>
    %52 = tpu.matmul %46, %25, %cst_52 {dimension_numbers = #tpu.dot_dimension_numbers<[1], [0], [0], [1], [0, 0, 1, 1], [], []>} : vector<10x4xf32>, vector<4x128xf32>, vector<10x128xf32> -> vector<10x128xf32>
    %cst_53 = arith.constant dense<0.000000e+00> : vector<10x128xf32>
    %53 = tpu.matmul %46, %26, %cst_53 {dimension_numbers = #tpu.dot_dimension_numbers<[1], [0], [0], [1], [0, 0, 1, 1], [], []>} : vector<10x4xf32>, vector<4x128xf32>, vector<10x128xf32> -> vector<10x128xf32>
    %cst_54 = arith.constant dense<0.000000e+00> : vector<10x128xf32>
    %54 = tpu.matmul %46, %27, %cst_54 {dimension_numbers = #tpu.dot_dimension_numbers<[1], [0], [0], [1], [0, 0, 1, 1], [], []>} : vector<10x4xf32>, vector<4x128xf32>, vector<10x128xf32> -> vector<10x128xf32>
    %cst_55 = arith.constant dense<0.000000e+00> : vector<10x128xf32>
    %55 = tpu.matmul %47, %36, %cst_55 {dimension_numbers = #tpu.dot_dimension_numbers<[1], [0], [0], [1], [0, 0, 1, 1], [], []>} : vector<10x2xf32>, vector<2x128xf32>, vector<10x128xf32> -> vector<10x128xf32>
    %56 = arith.addf %52, %55 : vector<10x128xf32>
    %cst_56 = arith.constant dense<0.000000e+00> : vector<10x128xf32>
    %57 = tpu.matmul %47, %39, %cst_56 {dimension_numbers = #tpu.dot_dimension_numbers<[1], [0], [0], [1], [0, 0, 1, 1], [], []>} : vector<10x2xf32>, vector<2x128xf32>, vector<10x128xf32> -> vector<10x128xf32>
    %58 = arith.addf %53, %57 : vector<10x128xf32>
    %cst_57 = arith.constant dense<0.000000e+00> : vector<10x128xf32>
    %59 = tpu.matmul %47, %42, %cst_57 {dimension_numbers = #tpu.dot_dimension_numbers<[1], [0], [0], [1], [0, 0, 1, 1], [], []>} : vector<10x2xf32>, vector<2x128xf32>, vector<10x128xf32> -> vector<10x128xf32>
    %60 = arith.addf %54, %59 : vector<10x128xf32>
    %cst_58 = arith.constant dense<0.000000e+00> : vector<10x128xf32>
    %61 = tpu.matmul %48, %29, %cst_58 {dimension_numbers = #tpu.dot_dimension_numbers<[1], [0], [0], [1], [0, 0, 1, 1], [], []>} : vector<10x4xf32>, vector<4x128xf32>, vector<10x128xf32> -> vector<10x128xf32>
    %62 = arith.addf %56, %61 : vector<10x128xf32>
    %cst_59 = arith.constant dense<0.000000e+00> : vector<10x128xf32>
    %63 = tpu.matmul %48, %30, %cst_59 {dimension_numbers = #tpu.dot_dimension_numbers<[1], [0], [0], [1], [0, 0, 1, 1], [], []>} : vector<10x4xf32>, vector<4x128xf32>, vector<10x128xf32> -> vector<10x128xf32>
    %64 = arith.addf %58, %63 : vector<10x128xf32>
    %cst_60 = arith.constant dense<0.000000e+00> : vector<10x128xf32>
    %65 = tpu.matmul %48, %31, %cst_60 {dimension_numbers = #tpu.dot_dimension_numbers<[1], [0], [0], [1], [0, 0, 1, 1], [], []>} : vector<10x4xf32>, vector<4x128xf32>, vector<10x128xf32> -> vector<10x128xf32>
    %66 = arith.addf %60, %65 : vector<10x128xf32>
    %67 = arith.mulf %62, %62 : vector<10x128xf32>
    %68 = arith.mulf %64, %64 : vector<10x128xf32>
    %69 = arith.addf %67, %68 : vector<10x128xf32>
    %70 = arith.mulf %66, %66 : vector<10x128xf32>
    %71 = arith.addf %69, %70 : vector<10x128xf32>
    %cst_61 = arith.constant 9.99999993E-9 : f32
    %72 = vector.broadcast %cst_61 : f32 to vector<10x128xf32>
    %73 = arith.maximumf %71, %72 : vector<10x128xf32>
    %74 = math.sqrt %73 : vector<10x128xf32>
    %cst_62 = arith.constant dense<0.000000e+00> : vector<32x128xf32>
    %75 = tpu.matmul %49, %74, %cst_62 {dimension_numbers = #tpu.dot_dimension_numbers<[1], [0], [0], [1], [0, 0, 1, 1], [], []>} : vector<32x10xf32>, vector<10x128xf32>, vector<32x128xf32> -> vector<32x128xf32>
    %76 = vector.broadcast %50 : vector<32x1xf32> to vector<32x128xf32>
    %77 = arith.addf %75, %76 : vector<32x128xf32>
    %cst_63 = arith.constant dense<0.000000e+00> : vector<32x128xf32>
    %78 = tpu.matmul %43, %24, %cst_63 {dimension_numbers = #tpu.dot_dimension_numbers<[1], [0], [0], [1], [0, 0, 1, 1], [], []>} : vector<32x32xf32>, vector<32x128xf32>, vector<32x128xf32> -> vector<32x128xf32>
    %79 = arith.addf %77, %78 : vector<32x128xf32>
    %cst_64 = arith.constant dense<0.000000e+00> : vector<32x128xf32>
    %80 = tpu.matmul %44, %33, %cst_64 {dimension_numbers = #tpu.dot_dimension_numbers<[1], [0], [0], [1], [0, 0, 1, 1], [], []>} : vector<32x16xf32>, vector<16x128xf32>, vector<32x128xf32> -> vector<32x128xf32>
    %81 = arith.addf %79, %80 : vector<32x128xf32>
    %cst_65 = arith.constant dense<0.000000e+00> : vector<32x128xf32>
    %82 = tpu.matmul %45, %28, %cst_65 {dimension_numbers = #tpu.dot_dimension_numbers<[1], [0], [0], [1], [0, 0, 1, 1], [], []>} : vector<32x32xf32>, vector<32x128xf32>, vector<32x128xf32> -> vector<32x128xf32>
    %83 = arith.addf %81, %82 : vector<32x128xf32>
    %cst_66 = arith.constant 0.000000e+00 : f32
    %84 = vector.broadcast %cst_66 : f32 to vector<32x128xf32>
    %85 = arith.maximumf %83, %84 : vector<32x128xf32>
    %cst_67 = arith.constant dense<0.000000e+00> : vector<4x128xf32>
    %86 = tpu.matmul %51, %62, %cst_67 {dimension_numbers = #tpu.dot_dimension_numbers<[1], [0], [0], [1], [0, 0, 1, 1], [], []>} : vector<4x10xf32>, vector<10x128xf32>, vector<4x128xf32> -> vector<4x128xf32>
    %cst_68 = arith.constant dense<0.000000e+00> : vector<4x128xf32>
    %87 = tpu.matmul %51, %64, %cst_68 {dimension_numbers = #tpu.dot_dimension_numbers<[1], [0], [0], [1], [0, 0, 1, 1], [], []>} : vector<4x10xf32>, vector<10x128xf32>, vector<4x128xf32> -> vector<4x128xf32>
    %cst_69 = arith.constant dense<0.000000e+00> : vector<4x128xf32>
    %88 = tpu.matmul %51, %66, %cst_69 {dimension_numbers = #tpu.dot_dimension_numbers<[1], [0], [0], [1], [0, 0, 1, 1], [], []>} : vector<4x10xf32>, vector<10x128xf32>, vector<4x128xf32> -> vector<4x128xf32>
    %89 = arith.mulf %86, %86 : vector<4x128xf32>
    %90 = arith.mulf %87, %87 : vector<4x128xf32>
    %91 = arith.addf %89, %90 : vector<4x128xf32>
    %92 = arith.mulf %88, %88 : vector<4x128xf32>
    %93 = arith.addf %91, %92 : vector<4x128xf32>
    %cst_70 = arith.constant 9.99999993E-9 : f32
    %94 = vector.broadcast %cst_70 : f32 to vector<4x128xf32>
    %95 = arith.maximumf %93, %94 : vector<4x128xf32>
    %96 = math.sqrt %95 : vector<4x128xf32>
    %97 = arith.negf %96 : vector<4x128xf32>
    %98 = math.exp %97 : vector<4x128xf32>
    %cst_71 = arith.constant 1.000000e+00 : f32
    %99 = vector.broadcast %cst_71 : f32 to vector<4x128xf32>
    %100 = arith.addf %99, %98 : vector<4x128xf32>
    %101 = arith.divf %99, %100 : vector<4x128xf32>
    %102 = arith.mulf %86, %101 : vector<4x128xf32>
    %103 = arith.mulf %87, %101 : vector<4x128xf32>
    %104 = arith.mulf %88, %101 : vector<4x128xf32>
    %c0_72 = arith.constant 0 : index
    %c0_73 = arith.constant 0 : index
    %105 = vector.load %arg18[%c0_72, %c0_73] : memref<32x32xf32, #tpu.memory_space<vmem>>, vector<32x32xf32>
    %c0_74 = arith.constant 0 : index
    %c0_75 = arith.constant 0 : index
    %106 = vector.load %arg17[%c0_74, %c0_75] : memref<4x4xf32, #tpu.memory_space<vmem>>, vector<4x4xf32>
    %c0_76 = arith.constant 0 : index
    %c0_77 = arith.constant 0 : index
    %107 = vector.load %arg19[%c0_76, %c0_77] : memref<32x4xf32, #tpu.memory_space<vmem>>, vector<32x4xf32>
    %c0_78 = arith.constant 0 : index
    %c0_79 = arith.constant 0 : index
    %108 = vector.load %arg20[%c0_78, %c0_79] : memref<32x1xf32, #tpu.memory_space<vmem>>, vector<32x1xf32>
    %c0_80 = arith.constant 0 : index
    %c0_81 = arith.constant 0 : index
    %109 = vector.load %arg21[%c0_80, %c0_81] : memref<4x4xf32, #tpu.memory_space<vmem>>, vector<4x4xf32>
    %cst_82 = arith.constant dense<0.000000e+00> : vector<4x128xf32>
    %110 = tpu.matmul %106, %102, %cst_82 {dimension_numbers = #tpu.dot_dimension_numbers<[1], [0], [0], [1], [0, 0, 1, 1], [], []>} : vector<4x4xf32>, vector<4x128xf32>, vector<4x128xf32> -> vector<4x128xf32>
    %cst_83 = arith.constant dense<0.000000e+00> : vector<4x128xf32>
    %111 = tpu.matmul %106, %103, %cst_83 {dimension_numbers = #tpu.dot_dimension_numbers<[1], [0], [0], [1], [0, 0, 1, 1], [], []>} : vector<4x4xf32>, vector<4x128xf32>, vector<4x128xf32> -> vector<4x128xf32>
    %cst_84 = arith.constant dense<0.000000e+00> : vector<4x128xf32>
    %112 = tpu.matmul %106, %104, %cst_84 {dimension_numbers = #tpu.dot_dimension_numbers<[1], [0], [0], [1], [0, 0, 1, 1], [], []>} : vector<4x4xf32>, vector<4x128xf32>, vector<4x128xf32> -> vector<4x128xf32>
    %113 = arith.mulf %110, %110 : vector<4x128xf32>
    %114 = arith.mulf %111, %111 : vector<4x128xf32>
    %115 = arith.addf %113, %114 : vector<4x128xf32>
    %116 = arith.mulf %112, %112 : vector<4x128xf32>
    %117 = arith.addf %115, %116 : vector<4x128xf32>
    %cst_85 = arith.constant 9.99999993E-9 : f32
    %118 = vector.broadcast %cst_85 : f32 to vector<4x128xf32>
    %119 = arith.maximumf %117, %118 : vector<4x128xf32>
    %120 = math.sqrt %119 : vector<4x128xf32>
    %cst_86 = arith.constant dense<0.000000e+00> : vector<32x128xf32>
    %121 = tpu.matmul %107, %120, %cst_86 {dimension_numbers = #tpu.dot_dimension_numbers<[1], [0], [0], [1], [0, 0, 1, 1], [], []>} : vector<32x4xf32>, vector<4x128xf32>, vector<32x128xf32> -> vector<32x128xf32>
    %122 = vector.broadcast %108 : vector<32x1xf32> to vector<32x128xf32>
    %123 = arith.addf %121, %122 : vector<32x128xf32>
    %cst_87 = arith.constant dense<0.000000e+00> : vector<32x128xf32>
    %124 = tpu.matmul %105, %85, %cst_87 {dimension_numbers = #tpu.dot_dimension_numbers<[1], [0], [0], [1], [0, 0, 1, 1], [], []>} : vector<32x32xf32>, vector<32x128xf32>, vector<32x128xf32> -> vector<32x128xf32>
    %125 = arith.addf %123, %124 : vector<32x128xf32>
    %cst_88 = arith.constant 0.000000e+00 : f32
    %126 = vector.broadcast %cst_88 : f32 to vector<32x128xf32>
    %127 = arith.maximumf %125, %126 : vector<32x128xf32>
    %cst_89 = arith.constant dense<0.000000e+00> : vector<4x128xf32>
    %128 = tpu.matmul %109, %110, %cst_89 {dimension_numbers = #tpu.dot_dimension_numbers<[1], [0], [0], [1], [0, 0, 1, 1], [], []>} : vector<4x4xf32>, vector<4x128xf32>, vector<4x128xf32> -> vector<4x128xf32>
    %cst_90 = arith.constant dense<0.000000e+00> : vector<4x128xf32>
    %129 = tpu.matmul %109, %111, %cst_90 {dimension_numbers = #tpu.dot_dimension_numbers<[1], [0], [0], [1], [0, 0, 1, 1], [], []>} : vector<4x4xf32>, vector<4x128xf32>, vector<4x128xf32> -> vector<4x128xf32>
    %cst_91 = arith.constant dense<0.000000e+00> : vector<4x128xf32>
    %130 = tpu.matmul %109, %112, %cst_91 {dimension_numbers = #tpu.dot_dimension_numbers<[1], [0], [0], [1], [0, 0, 1, 1], [], []>} : vector<4x4xf32>, vector<4x128xf32>, vector<4x128xf32> -> vector<4x128xf32>
    %131 = arith.mulf %128, %128 : vector<4x128xf32>
    %132 = arith.mulf %129, %129 : vector<4x128xf32>
    %133 = arith.addf %131, %132 : vector<4x128xf32>
    %134 = arith.mulf %130, %130 : vector<4x128xf32>
    %135 = arith.addf %133, %134 : vector<4x128xf32>
    %cst_92 = arith.constant 9.99999993E-9 : f32
    %136 = vector.broadcast %cst_92 : f32 to vector<4x128xf32>
    %137 = arith.maximumf %135, %136 : vector<4x128xf32>
    %138 = math.sqrt %137 : vector<4x128xf32>
    %139 = arith.negf %138 : vector<4x128xf32>
    %140 = math.exp %139 : vector<4x128xf32>
    %cst_93 = arith.constant 1.000000e+00 : f32
    %141 = vector.broadcast %cst_93 : f32 to vector<4x128xf32>
    %142 = arith.addf %141, %140 : vector<4x128xf32>
    %143 = arith.divf %141, %142 : vector<4x128xf32>
    %144 = arith.mulf %128, %143 : vector<4x128xf32>
    %145 = arith.mulf %129, %143 : vector<4x128xf32>
    %146 = arith.mulf %130, %143 : vector<4x128xf32>
    %c0_94 = arith.constant 0 : index
    %c0_95 = arith.constant 0 : index
    %147 = vector.load %arg23[%c0_94, %c0_95] : memref<32x32xf32, #tpu.memory_space<vmem>>, vector<32x32xf32>
    %c0_96 = arith.constant 0 : index
    %c0_97 = arith.constant 0 : index
    %148 = vector.load %arg22[%c0_96, %c0_97] : memref<4x4xf32, #tpu.memory_space<vmem>>, vector<4x4xf32>
    %c0_98 = arith.constant 0 : index
    %c0_99 = arith.constant 0 : index
    %149 = vector.load %arg24[%c0_98, %c0_99] : memref<32x4xf32, #tpu.memory_space<vmem>>, vector<32x4xf32>
    %c0_100 = arith.constant 0 : index
    %c0_101 = arith.constant 0 : index
    %150 = vector.load %arg25[%c0_100, %c0_101] : memref<32x1xf32, #tpu.memory_space<vmem>>, vector<32x1xf32>
    %c0_102 = arith.constant 0 : index
    %c0_103 = arith.constant 0 : index
    %151 = vector.load %arg26[%c0_102, %c0_103] : memref<4x4xf32, #tpu.memory_space<vmem>>, vector<4x4xf32>
    %cst_104 = arith.constant dense<0.000000e+00> : vector<4x128xf32>
    %152 = tpu.matmul %148, %144, %cst_104 {dimension_numbers = #tpu.dot_dimension_numbers<[1], [0], [0], [1], [0, 0, 1, 1], [], []>} : vector<4x4xf32>, vector<4x128xf32>, vector<4x128xf32> -> vector<4x128xf32>
    %cst_105 = arith.constant dense<0.000000e+00> : vector<4x128xf32>
    %153 = tpu.matmul %148, %145, %cst_105 {dimension_numbers = #tpu.dot_dimension_numbers<[1], [0], [0], [1], [0, 0, 1, 1], [], []>} : vector<4x4xf32>, vector<4x128xf32>, vector<4x128xf32> -> vector<4x128xf32>
    %cst_106 = arith.constant dense<0.000000e+00> : vector<4x128xf32>
    %154 = tpu.matmul %148, %146, %cst_106 {dimension_numbers = #tpu.dot_dimension_numbers<[1], [0], [0], [1], [0, 0, 1, 1], [], []>} : vector<4x4xf32>, vector<4x128xf32>, vector<4x128xf32> -> vector<4x128xf32>
    %155 = arith.mulf %152, %152 : vector<4x128xf32>
    %156 = arith.mulf %153, %153 : vector<4x128xf32>
    %157 = arith.addf %155, %156 : vector<4x128xf32>
    %158 = arith.mulf %154, %154 : vector<4x128xf32>
    %159 = arith.addf %157, %158 : vector<4x128xf32>
    %cst_107 = arith.constant 9.99999993E-9 : f32
    %160 = vector.broadcast %cst_107 : f32 to vector<4x128xf32>
    %161 = arith.maximumf %159, %160 : vector<4x128xf32>
    %162 = math.sqrt %161 : vector<4x128xf32>
    %cst_108 = arith.constant dense<0.000000e+00> : vector<32x128xf32>
    %163 = tpu.matmul %149, %162, %cst_108 {dimension_numbers = #tpu.dot_dimension_numbers<[1], [0], [0], [1], [0, 0, 1, 1], [], []>} : vector<32x4xf32>, vector<4x128xf32>, vector<32x128xf32> -> vector<32x128xf32>
    %164 = vector.broadcast %150 : vector<32x1xf32> to vector<32x128xf32>
    %165 = arith.addf %163, %164 : vector<32x128xf32>
    %cst_109 = arith.constant dense<0.000000e+00> : vector<32x128xf32>
    %166 = tpu.matmul %147, %127, %cst_109 {dimension_numbers = #tpu.dot_dimension_numbers<[1], [0], [0], [1], [0, 0, 1, 1], [], []>} : vector<32x32xf32>, vector<32x128xf32>, vector<32x128xf32> -> vector<32x128xf32>
    %167 = arith.addf %165, %166 : vector<32x128xf32>
    %cst_110 = arith.constant dense<0.000000e+00> : vector<4x128xf32>
    %168 = tpu.matmul %151, %152, %cst_110 {dimension_numbers = #tpu.dot_dimension_numbers<[1], [0], [0], [1], [0, 0, 1, 1], [], []>} : vector<4x4xf32>, vector<4x128xf32>, vector<4x128xf32> -> vector<4x128xf32>
    %cst_111 = arith.constant dense<0.000000e+00> : vector<4x128xf32>
    %169 = tpu.matmul %151, %153, %cst_111 {dimension_numbers = #tpu.dot_dimension_numbers<[1], [0], [0], [1], [0, 0, 1, 1], [], []>} : vector<4x4xf32>, vector<4x128xf32>, vector<4x128xf32> -> vector<4x128xf32>
    %cst_112 = arith.constant dense<0.000000e+00> : vector<4x128xf32>
    %170 = tpu.matmul %151, %154, %cst_112 {dimension_numbers = #tpu.dot_dimension_numbers<[1], [0], [0], [1], [0, 0, 1, 1], [], []>} : vector<4x4xf32>, vector<4x128xf32>, vector<4x128xf32> -> vector<4x128xf32>
    %c0_113 = arith.constant 0 : index
    %c0_114 = arith.constant 0 : index
    %171 = vector.load %arg5[%c0_113, %c0_114] : memref<1x128xf32, #tpu.memory_space<vmem>>, vector<1x128xf32>
    %172 = vector.broadcast %171 : vector<1x128xf32> to vector<32x128xf32>
    %173 = arith.mulf %167, %172 : vector<32x128xf32>
    %174 = arith.truncf %173 : vector<32x128xf32> to vector<32x128xbf16>
    %c0_115 = arith.constant 0 : index
    %c0_116 = arith.constant 0 : index
    %175 = vector.load %arg27[%c0_115, %c0_116] : memref<32x128xbf16, #tpu.memory_space<vmem>>, vector<32x128xbf16>
    tpu.vector_store %arg27[%c0_115, %c0_116], %174 {strides = array<i32>} : memref<32x128xbf16, #tpu.memory_space<vmem>>, vector<32x128xbf16>,
    %176 = vector.broadcast %171 : vector<1x128xf32> to vector<4x128xf32>
    %177 = arith.mulf %168, %176 : vector<4x128xf32>
    %178 = arith.truncf %177 : vector<4x128xf32> to vector<4x128xbf16>
    %c0_117 = arith.constant 0 : index
    %c0_118 = arith.constant 0 : index
    %c0_119 = arith.constant 0 : index
    %179 = vector.load %arg28[%c0_117, %c0_118, %c0_119] : memref<3x4x128xbf16, #tpu.memory_space<vmem>>, vector<1x4x128xbf16>
    %180 = vector.shape_cast %179 : vector<1x4x128xbf16> to vector<4x128xbf16>
    %181 = vector.shape_cast %178 : vector<4x128xbf16> to vector<1x4x128xbf16>
    tpu.vector_store %arg28[%c0_117, %c0_118, %c0_119], %181 {strides = array<i32>} : memref<3x4x128xbf16, #tpu.memory_space<vmem>>, vector<1x4x128xbf16>,
    %182 = vector.broadcast %171 : vector<1x128xf32> to vector<4x128xf32>
    %183 = arith.mulf %169, %182 : vector<4x128xf32>
    %184 = arith.truncf %183 : vector<4x128xf32> to vector<4x128xbf16>
    %c1_120 = arith.constant 1 : index
    %c0_121 = arith.constant 0 : index
    %c0_122 = arith.constant 0 : index
    %185 = vector.load %arg28[%c1_120, %c0_121, %c0_122] : memref<3x4x128xbf16, #tpu.memory_space<vmem>>, vector<1x4x128xbf16>
    %186 = vector.shape_cast %185 : vector<1x4x128xbf16> to vector<4x128xbf16>
    %187 = vector.shape_cast %184 : vector<4x128xbf16> to vector<1x4x128xbf16>
    tpu.vector_store %arg28[%c1_120, %c0_121, %c0_122], %187 {strides = array<i32>} : memref<3x4x128xbf16, #tpu.memory_space<vmem>>, vector<1x4x128xbf16>,
    %188 = vector.broadcast %171 : vector<1x128xf32> to vector<4x128xf32>
    %189 = arith.mulf %170, %188 : vector<4x128xf32>
    %190 = arith.truncf %189 : vector<4x128xf32> to vector<4x128xbf16>
    %c2_123 = arith.constant 2 : index
    %c0_124 = arith.constant 0 : index
    %c0_125 = arith.constant 0 : index
    %191 = vector.load %arg28[%c2_123, %c0_124, %c0_125] : memref<3x4x128xbf16, #tpu.memory_space<vmem>>, vector<1x4x128xbf16>
    %192 = vector.shape_cast %191 : vector<1x4x128xbf16> to vector<4x128xbf16>
    %193 = vector.shape_cast %190 : vector<4x128xbf16> to vector<1x4x128xbf16>
    tpu.vector_store %arg28[%c2_123, %c0_124, %c0_125], %193 {strides = array<i32>} : memref<3x4x128xbf16, #tpu.memory_space<vmem>>, vector<1x4x128xbf16>,
    return
  }
  func.func @transform_0(%arg0: i32) -> (i32, i32) {
    %c0_i32 = arith.constant 0 : i32
    %c0_i32_0 = arith.constant 0 : i32
    return %c0_i32, %arg0 : i32, i32
  }
  func.func @transform_1(%arg0: i32) -> (i32, i32, i32) {
    %c0_i32 = arith.constant 0 : i32
    %c0_i32_0 = arith.constant 0 : i32
    %c0_i32_1 = arith.constant 0 : i32
    return %c0_i32, %c0_i32_0, %arg0 : i32, i32, i32
  }
  func.func @transform_2(%arg0: i32) -> (i32, i32) {
    %c0_i32 = arith.constant 0 : i32
    %c0_i32_0 = arith.constant 0 : i32
    return %c0_i32, %arg0 : i32, i32
  }
  func.func @transform_3(%arg0: i32) -> (i32, i32) {
    %c0_i32 = arith.constant 0 : i32
    %c0_i32_0 = arith.constant 0 : i32
    return %c0_i32, %arg0 : i32, i32
  }
  func.func @transform_4(%arg0: i32) -> (i32, i32) {
    %c0_i32 = arith.constant 0 : i32
    %c0_i32_0 = arith.constant 0 : i32
    return %c0_i32, %arg0 : i32, i32
  }
  func.func @transform_5(%arg0: i32) -> (i32, i32) {
    %c0_i32 = arith.constant 0 : i32
    %c0_i32_0 = arith.constant 0 : i32
    %c0_i32_1 = arith.constant 0 : i32
    return %c0_i32, %c0_i32_0 : i32, i32
  }
  func.func @transform_6(%arg0: i32) -> (i32, i32, i32) {
    %c0_i32 = arith.constant 0 : i32
    %c0_i32_0 = arith.constant 0 : i32
    %c0_i32_1 = arith.constant 0 : i32
    %c0_i32_2 = arith.constant 0 : i32
    return %c0_i32, %c0_i32_0, %c0_i32_1 : i32, i32, i32
  }
  func.func @transform_7(%arg0: i32) -> (i32, i32) {
    %c0_i32 = arith.constant 0 : i32
    %c0_i32_0 = arith.constant 0 : i32
    %c0_i32_1 = arith.constant 0 : i32
    return %c0_i32, %c0_i32_0 : i32, i32
  }
  func.func @transform_8(%arg0: i32) -> (i32, i32) {
    %c0_i32 = arith.constant 0 : i32
    %c0_i32_0 = arith.constant 0 : i32
    %c0_i32_1 = arith.constant 0 : i32
    return %c0_i32, %c0_i32_0 : i32, i32
  }
  func.func @transform_9(%arg0: i32) -> (i32, i32) {
    %c0_i32 = arith.constant 0 : i32
    %c0_i32_0 = arith.constant 0 : i32
    %c0_i32_1 = arith.constant 0 : i32
    return %c0_i32, %c0_i32_0 : i32, i32
  }
  func.func @transform_10(%arg0: i32) -> (i32, i32) {
    %c0_i32 = arith.constant 0 : i32
    %c0_i32_0 = arith.constant 0 : i32
    %c0_i32_1 = arith.constant 0 : i32
    return %c0_i32, %c0_i32_0 : i32, i32
  }
  func.func @transform_11(%arg0: i32) -> (i32, i32) {
    %c0_i32 = arith.constant 0 : i32
    %c0_i32_0 = arith.constant 0 : i32
    %c0_i32_1 = arith.constant 0 : i32
    return %c0_i32, %c0_i32_0 : i32, i32
  }
  func.func @transform_12(%arg0: i32) -> (i32, i32) {
    %c0_i32 = arith.constant 0 : i32
    %c0_i32_0 = arith.constant 0 : i32
    %c0_i32_1 = arith.constant 0 : i32
    return %c0_i32, %c0_i32_0 : i32, i32
  }
  func.func @transform_13(%arg0: i32) -> (i32, i32) {
    %c0_i32 = arith.constant 0 : i32
    %c0_i32_0 = arith.constant 0 : i32
    %c0_i32_1 = arith.constant 0 : i32
    return %c0_i32, %c0_i32_0 : i32, i32
  }
  func.func @transform_14(%arg0: i32) -> (i32, i32) {
    %c0_i32 = arith.constant 0 : i32
    %c0_i32_0 = arith.constant 0 : i32
    %c0_i32_1 = arith.constant 0 : i32
    return %c0_i32, %c0_i32_0 : i32, i32
  }
  func.func @transform_15(%arg0: i32) -> (i32, i32) {
    %c0_i32 = arith.constant 0 : i32
    %c0_i32_0 = arith.constant 0 : i32
    %c0_i32_1 = arith.constant 0 : i32
    return %c0_i32, %c0_i32_0 : i32, i32
  }
  func.func @transform_16(%arg0: i32) -> (i32, i32) {
    %c0_i32 = arith.constant 0 : i32
    %c0_i32_0 = arith.constant 0 : i32
    %c0_i32_1 = arith.constant 0 : i32
    return %c0_i32, %c0_i32_0 : i32, i32
  }
  func.func @transform_17(%arg0: i32) -> (i32, i32) {
    %c0_i32 = arith.constant 0 : i32
    %c0_i32_0 = arith.constant 0 : i32
    %c0_i32_1 = arith.constant 0 : i32
    return %c0_i32, %c0_i32_0 : i32, i32
  }
  func.func @transform_18(%arg0: i32) -> (i32, i32) {
    %c0_i32 = arith.constant 0 : i32
    %c0_i32_0 = arith.constant 0 : i32
    %c0_i32_1 = arith.constant 0 : i32
    return %c0_i32, %c0_i32_0 : i32, i32
  }
  func.func @transform_19(%arg0: i32) -> (i32, i32) {
    %c0_i32 = arith.constant 0 : i32
    %c0_i32_0 = arith.constant 0 : i32
    %c0_i32_1 = arith.constant 0 : i32
    return %c0_i32, %c0_i32_0 : i32, i32
  }
  func.func @transform_20(%arg0: i32) -> (i32, i32) {
    %c0_i32 = arith.constant 0 : i32
    %c0_i32_0 = arith.constant 0 : i32
    %c0_i32_1 = arith.constant 0 : i32
    return %c0_i32, %c0_i32_0 : i32, i32
  }
  func.func @transform_21(%arg0: i32) -> (i32, i32) {
    %c0_i32 = arith.constant 0 : i32
    %c0_i32_0 = arith.constant 0 : i32
    %c0_i32_1 = arith.constant 0 : i32
    return %c0_i32, %c0_i32_0 : i32, i32
  }
  func.func @transform_22(%arg0: i32) -> (i32, i32) {
    %c0_i32 = arith.constant 0 : i32
    %c0_i32_0 = arith.constant 0 : i32
    %c0_i32_1 = arith.constant 0 : i32
    return %c0_i32, %c0_i32_0 : i32, i32
  }
  func.func @transform_23(%arg0: i32) -> (i32, i32) {
    %c0_i32 = arith.constant 0 : i32
    %c0_i32_0 = arith.constant 0 : i32
    %c0_i32_1 = arith.constant 0 : i32
    return %c0_i32, %c0_i32_0 : i32, i32
  }
  func.func @transform_24(%arg0: i32) -> (i32, i32) {
    %c0_i32 = arith.constant 0 : i32
    %c0_i32_0 = arith.constant 0 : i32
    %c0_i32_1 = arith.constant 0 : i32
    return %c0_i32, %c0_i32_0 : i32, i32
  }
  func.func @transform_25(%arg0: i32) -> (i32, i32) {
    %c0_i32 = arith.constant 0 : i32
    %c0_i32_0 = arith.constant 0 : i32
    %c0_i32_1 = arith.constant 0 : i32
    return %c0_i32, %c0_i32_0 : i32, i32
  }
  func.func @transform_26(%arg0: i32) -> (i32, i32) {
    %c0_i32 = arith.constant 0 : i32
    %c0_i32_0 = arith.constant 0 : i32
    return %c0_i32, %arg0 : i32, i32
  }
  func.func @transform_27(%arg0: i32) -> (i32, i32, i32) {
    %c0_i32 = arith.constant 0 : i32
    %c0_i32_0 = arith.constant 0 : i32
    %c0_i32_1 = arith.constant 0 : i32
    return %c0_i32, %c0_i32_0, %arg0 : i32, i32, i32
  }
}

module attributes {stable_mosaic.version = 11 : i64} {
  func.func @_wout_kernel(%arg0: i32, %arg1: memref<32x128xbf16, #tpu.memory_space<vmem>>, %arg2: memref<3x4x128xbf16, #tpu.memory_space<vmem>>, %arg3: memref<4x4xf32, #tpu.memory_space<vmem>>, %arg4: memref<20x32xf32, #tpu.memory_space<vmem>>, %arg5: memref<20x4xf32, #tpu.memory_space<vmem>>, %arg6: memref<20x1xf32, #tpu.memory_space<vmem>>, %arg7: memref<20x128xf32, #tpu.memory_space<vmem>>) attributes {dimension_semantics = [#tpu.dimension_semantics<parallel>], iteration_bounds = array<i64: 1>, scalar_prefetch = 0 : i64, scratch_operands = 0 : i64, tpu.core_type = #tpu.core_type<tc>, window_params = [{transform_indices = @transform_0, window_bounds = array<i64: 32, 128>}, {transform_indices = @transform_1, window_bounds = array<i64: 3, 4, 128>}, {pipeline_mode = #tpu.pipeline_mode<synchronous>, transform_indices = @transform_2, window_bounds = array<i64: 4, 4>}, {pipeline_mode = #tpu.pipeline_mode<synchronous>, transform_indices = @transform_3, window_bounds = array<i64: 20, 32>}, {pipeline_mode = #tpu.pipeline_mode<synchronous>, transform_indices = @transform_4, window_bounds = array<i64: 20, 4>}, {pipeline_mode = #tpu.pipeline_mode<synchronous>, transform_indices = @transform_5, window_bounds = array<i64: 20, 1>}, {transform_indices = @transform_6, window_bounds = array<i64: 20, 128>}]} {
    %c0 = arith.constant 0 : index
    %c0_0 = arith.constant 0 : index
    %0 = vector.load %arg1[%c0, %c0_0] : memref<32x128xbf16, #tpu.memory_space<vmem>>, vector<32x128xbf16>
    %1 = arith.extf %0 : vector<32x128xbf16> to vector<32x128xf32>
    %c0_1 = arith.constant 0 : index
    %c0_2 = arith.constant 0 : index
    %c0_3 = arith.constant 0 : index
    %2 = vector.load %arg2[%c0_1, %c0_2, %c0_3] : memref<3x4x128xbf16, #tpu.memory_space<vmem>>, vector<1x4x128xbf16>
    %3 = vector.shape_cast %2 : vector<1x4x128xbf16> to vector<4x128xbf16>
    %4 = arith.extf %3 : vector<4x128xbf16> to vector<4x128xf32>
    %c1 = arith.constant 1 : index
    %c0_4 = arith.constant 0 : index
    %c0_5 = arith.constant 0 : index
    %5 = vector.load %arg2[%c1, %c0_4, %c0_5] : memref<3x4x128xbf16, #tpu.memory_space<vmem>>, vector<1x4x128xbf16>
    %6 = vector.shape_cast %5 : vector<1x4x128xbf16> to vector<4x128xbf16>
    %7 = arith.extf %6 : vector<4x128xbf16> to vector<4x128xf32>
    %c2 = arith.constant 2 : index
    %c0_6 = arith.constant 0 : index
    %c0_7 = arith.constant 0 : index
    %8 = vector.load %arg2[%c2, %c0_6, %c0_7] : memref<3x4x128xbf16, #tpu.memory_space<vmem>>, vector<1x4x128xbf16>
    %9 = vector.shape_cast %8 : vector<1x4x128xbf16> to vector<4x128xbf16>
    %10 = arith.extf %9 : vector<4x128xbf16> to vector<4x128xf32>
    %c0_8 = arith.constant 0 : index
    %c0_9 = arith.constant 0 : index
    %11 = vector.load %arg4[%c0_8, %c0_9] : memref<20x32xf32, #tpu.memory_space<vmem>>, vector<20x32xf32>
    %c0_10 = arith.constant 0 : index
    %c0_11 = arith.constant 0 : index
    %12 = vector.load %arg3[%c0_10, %c0_11] : memref<4x4xf32, #tpu.memory_space<vmem>>, vector<4x4xf32>
    %c0_12 = arith.constant 0 : index
    %c0_13 = arith.constant 0 : index
    %13 = vector.load %arg5[%c0_12, %c0_13] : memref<20x4xf32, #tpu.memory_space<vmem>>, vector<20x4xf32>
    %c0_14 = arith.constant 0 : index
    %c0_15 = arith.constant 0 : index
    %14 = vector.load %arg6[%c0_14, %c0_15] : memref<20x1xf32, #tpu.memory_space<vmem>>, vector<20x1xf32>
    %cst = arith.constant dense<0.000000e+00> : vector<4x128xf32>
    %15 = tpu.matmul %12, %4, %cst {dimension_numbers = #tpu.dot_dimension_numbers<[1], [0], [0], [1], [0, 0, 1, 1], [], []>} : vector<4x4xf32>, vector<4x128xf32>, vector<4x128xf32> -> vector<4x128xf32>
    %cst_16 = arith.constant dense<0.000000e+00> : vector<4x128xf32>
    %16 = tpu.matmul %12, %7, %cst_16 {dimension_numbers = #tpu.dot_dimension_numbers<[1], [0], [0], [1], [0, 0, 1, 1], [], []>} : vector<4x4xf32>, vector<4x128xf32>, vector<4x128xf32> -> vector<4x128xf32>
    %cst_17 = arith.constant dense<0.000000e+00> : vector<4x128xf32>
    %17 = tpu.matmul %12, %10, %cst_17 {dimension_numbers = #tpu.dot_dimension_numbers<[1], [0], [0], [1], [0, 0, 1, 1], [], []>} : vector<4x4xf32>, vector<4x128xf32>, vector<4x128xf32> -> vector<4x128xf32>
    %18 = arith.mulf %15, %15 : vector<4x128xf32>
    %19 = arith.mulf %16, %16 : vector<4x128xf32>
    %20 = arith.addf %18, %19 : vector<4x128xf32>
    %21 = arith.mulf %17, %17 : vector<4x128xf32>
    %22 = arith.addf %20, %21 : vector<4x128xf32>
    %cst_18 = arith.constant 9.99999993E-9 : f32
    %23 = vector.broadcast %cst_18 : f32 to vector<4x128xf32>
    %24 = arith.maximumf %22, %23 : vector<4x128xf32>
    %25 = math.sqrt %24 : vector<4x128xf32>
    %cst_19 = arith.constant dense<0.000000e+00> : vector<20x128xf32>
    %26 = tpu.matmul %13, %25, %cst_19 {dimension_numbers = #tpu.dot_dimension_numbers<[1], [0], [0], [1], [0, 0, 1, 1], [], []>} : vector<20x4xf32>, vector<4x128xf32>, vector<20x128xf32> -> vector<20x128xf32>
    %27 = vector.broadcast %14 : vector<20x1xf32> to vector<20x128xf32>
    %28 = arith.addf %26, %27 : vector<20x128xf32>
    %cst_20 = arith.constant dense<0.000000e+00> : vector<20x128xf32>
    %29 = tpu.matmul %11, %1, %cst_20 {dimension_numbers = #tpu.dot_dimension_numbers<[1], [0], [0], [1], [0, 0, 1, 1], [], []>} : vector<20x32xf32>, vector<32x128xf32>, vector<20x128xf32> -> vector<20x128xf32>
    %30 = arith.addf %28, %29 : vector<20x128xf32>
    %c0_21 = arith.constant 0 : index
    %c0_22 = arith.constant 0 : index
    %31 = vector.load %arg7[%c0_21, %c0_22] : memref<20x128xf32, #tpu.memory_space<vmem>>, vector<20x128xf32>
    tpu.vector_store %arg7[%c0_21, %c0_22], %30 {strides = array<i32>} : memref<20x128xf32, #tpu.memory_space<vmem>>, vector<20x128xf32>,
    return
  }
  func.func @transform_0(%arg0: i32) -> (i32, i32) {
    %c0_i32 = arith.constant 0 : i32
    %c0_i32_0 = arith.constant 0 : i32
    return %c0_i32, %arg0 : i32, i32
  }
  func.func @transform_1(%arg0: i32) -> (i32, i32, i32) {
    %c0_i32 = arith.constant 0 : i32
    %c0_i32_0 = arith.constant 0 : i32
    %c0_i32_1 = arith.constant 0 : i32
    return %c0_i32, %c0_i32_0, %arg0 : i32, i32, i32
  }
  func.func @transform_2(%arg0: i32) -> (i32, i32) {
    %c0_i32 = arith.constant 0 : i32
    %c0_i32_0 = arith.constant 0 : i32
    %c0_i32_1 = arith.constant 0 : i32
    return %c0_i32, %c0_i32_0 : i32, i32
  }
  func.func @transform_3(%arg0: i32) -> (i32, i32) {
    %c0_i32 = arith.constant 0 : i32
    %c0_i32_0 = arith.constant 0 : i32
    %c0_i32_1 = arith.constant 0 : i32
    return %c0_i32, %c0_i32_0 : i32, i32
  }
  func.func @transform_4(%arg0: i32) -> (i32, i32) {
    %c0_i32 = arith.constant 0 : i32
    %c0_i32_0 = arith.constant 0 : i32
    %c0_i32_1 = arith.constant 0 : i32
    return %c0_i32, %c0_i32_0 : i32, i32
  }
  func.func @transform_5(%arg0: i32) -> (i32, i32) {
    %c0_i32 = arith.constant 0 : i32
    %c0_i32_0 = arith.constant 0 : i32
    %c0_i32_1 = arith.constant 0 : i32
    return %c0_i32, %c0_i32_0 : i32, i32
  }
  func.func @transform_6(%arg0: i32) -> (i32, i32) {
    %c0_i32 = arith.constant 0 : i32
    %c0_i32_0 = arith.constant 0 : i32
    return %c0_i32, %arg0 : i32, i32
  }
}

module attributes {stable_mosaic.version = 11 : i64} {
  func.func @_node_update_kernel(%arg0: i32, %arg1: memref<32x128xbf16, #tpu.memory_space<vmem>>, %arg2: memref<3x4x128xbf16, #tpu.memory_space<vmem>>, %arg3: memref<32x128xbf16, #tpu.memory_space<vmem>>, %arg4: memref<3x4x128xbf16, #tpu.memory_space<vmem>>, %arg5: memref<1x128xf32, #tpu.memory_space<vmem>>, %arg6: memref<32x1xf32, #tpu.memory_space<vmem>>, %arg7: memref<32x1xf32, #tpu.memory_space<vmem>>, %arg8: memref<8x4xf32, #tpu.memory_space<vmem>>, %arg9: memref<128x32xf32, #tpu.memory_space<vmem>>, %arg10: memref<128x8xf32, #tpu.memory_space<vmem>>, %arg11: memref<128x1xf32, #tpu.memory_space<vmem>>, %arg12: memref<8x8xf32, #tpu.memory_space<vmem>>, %arg13: memref<8x8xf32, #tpu.memory_space<vmem>>, %arg14: memref<32x128xf32, #tpu.memory_space<vmem>>, %arg15: memref<32x8xf32, #tpu.memory_space<vmem>>, %arg16: memref<32x1xf32, #tpu.memory_space<vmem>>, %arg17: memref<4x8xf32, #tpu.memory_space<vmem>>, %arg18: memref<32x1xf32, #tpu.memory_space<vmem>>, %arg19: memref<32x1xf32, #tpu.memory_space<vmem>>, %arg20: memref<32x128xbf16, #tpu.memory_space<vmem>>, %arg21: memref<3x4x128xbf16, #tpu.memory_space<vmem>>) attributes {dimension_semantics = [#tpu.dimension_semantics<parallel>], iteration_bounds = array<i64: 1>, scalar_prefetch = 0 : i64, scratch_operands = 0 : i64, tpu.core_type = #tpu.core_type<tc>, window_params = [{transform_indices = @transform_0, window_bounds = array<i64: 32, 128>}, {transform_indices = @transform_1, window_bounds = array<i64: 3, 4, 128>}, {transform_indices = @transform_2, window_bounds = array<i64: 32, 128>}, {transform_indices = @transform_3, window_bounds = array<i64: 3, 4, 128>}, {transform_indices = @transform_4, window_bounds = array<i64: 1, 128>}, {pipeline_mode = #tpu.pipeline_mode<synchronous>, transform_indices = @transform_5, window_bounds = array<i64: 32, 1>}, {pipeline_mode = #tpu.pipeline_mode<synchronous>, transform_indices = @transform_6, window_bounds = array<i64: 32, 1>}, {pipeline_mode = #tpu.pipeline_mode<synchronous>, transform_indices = @transform_7, window_bounds = array<i64: 8, 4>}, {pipeline_mode = #tpu.pipeline_mode<synchronous>, transform_indices = @transform_8, window_bounds = array<i64: 128, 32>}, {pipeline_mode = #tpu.pipeline_mode<synchronous>, transform_indices = @transform_9, window_bounds = array<i64: 128, 8>}, {pipeline_mode = #tpu.pipeline_mode<synchronous>, transform_indices = @transform_10, window_bounds = array<i64: 128, 1>}, {pipeline_mode = #tpu.pipeline_mode<synchronous>, transform_indices = @transform_11, window_bounds = array<i64: 8, 8>}, {pipeline_mode = #tpu.pipeline_mode<synchronous>, transform_indices = @transform_12, window_bounds = array<i64: 8, 8>}, {pipeline_mode = #tpu.pipeline_mode<synchronous>, transform_indices = @transform_13, window_bounds = array<i64: 32, 128>}, {pipeline_mode = #tpu.pipeline_mode<synchronous>, transform_indices = @transform_14, window_bounds = array<i64: 32, 8>}, {pipeline_mode = #tpu.pipeline_mode<synchronous>, transform_indices = @transform_15, window_bounds = array<i64: 32, 1>}, {pipeline_mode = #tpu.pipeline_mode<synchronous>, transform_indices = @transform_16, window_bounds = array<i64: 4, 8>}, {pipeline_mode = #tpu.pipeline_mode<synchronous>, transform_indices = @transform_17, window_bounds = array<i64: 32, 1>}, {pipeline_mode = #tpu.pipeline_mode<synchronous>, transform_indices = @transform_18, window_bounds = array<i64: 32, 1>}, {transform_indices = @transform_19, window_bounds = array<i64: 32, 128>}, {transform_indices = @transform_20, window_bounds = array<i64: 3, 4, 128>}]} {
    %c0 = arith.constant 0 : index
    %c0_0 = arith.constant 0 : index
    %0 = vector.load %arg5[%c0, %c0_0] : memref<1x128xf32, #tpu.memory_space<vmem>>, vector<1x128xf32>
    %cst = arith.constant 1.000000e+00 : f32
    %1 = vector.broadcast %cst : f32 to vector<1x128xf32>
    %2 = arith.divf %1, %0 : vector<1x128xf32>
    %c0_1 = arith.constant 0 : index
    %c0_2 = arith.constant 0 : index
    %3 = vector.load %arg1[%c0_1, %c0_2] : memref<32x128xbf16, #tpu.memory_space<vmem>>, vector<32x128xbf16>
    %4 = arith.extf %3 : vector<32x128xbf16> to vector<32x128xf32>
    %c0_3 = arith.constant 0 : index
    %c0_4 = arith.constant 0 : index
    %5 = vector.load %arg3[%c0_3, %c0_4] : memref<32x128xbf16, #tpu.memory_space<vmem>>, vector<32x128xbf16>
    %6 = arith.extf %5 : vector<32x128xbf16> to vector<32x128xf32>
    %7 = vector.broadcast %2 : vector<1x128xf32> to vector<32x128xf32>
    %8 = arith.mulf %6, %7 : vector<32x128xf32>
    %9 = arith.addf %4, %8 : vector<32x128xf32>
    %c0_5 = arith.constant 0 : index
    %c0_6 = arith.constant 0 : index
    %c0_7 = arith.constant 0 : index
    %10 = vector.load %arg2[%c0_5, %c0_6, %c0_7] : memref<3x4x128xbf16, #tpu.memory_space<vmem>>, vector<1x4x128xbf16>
    %11 = vector.shape_cast %10 : vector<1x4x128xbf16> to vector<4x128xbf16>
    %12 = arith.extf %11 : vector<4x128xbf16> to vector<4x128xf32>
    %c0_8 = arith.constant 0 : index
    %c0_9 = arith.constant 0 : index
    %c0_10 = arith.constant 0 : index
    %13 = vector.load %arg4[%c0_8, %c0_9, %c0_10] : memref<3x4x128xbf16, #tpu.memory_space<vmem>>, vector<1x4x128xbf16>
    %14 = vector.shape_cast %13 : vector<1x4x128xbf16> to vector<4x128xbf16>
    %15 = arith.extf %14 : vector<4x128xbf16> to vector<4x128xf32>
    %16 = vector.broadcast %2 : vector<1x128xf32> to vector<4x128xf32>
    %17 = arith.mulf %15, %16 : vector<4x128xf32>
    %18 = arith.addf %12, %17 : vector<4x128xf32>
    %c1 = arith.constant 1 : index
    %c0_11 = arith.constant 0 : index
    %c0_12 = arith.constant 0 : index
    %19 = vector.load %arg2[%c1, %c0_11, %c0_12] : memref<3x4x128xbf16, #tpu.memory_space<vmem>>, vector<1x4x128xbf16>
    %20 = vector.shape_cast %19 : vector<1x4x128xbf16> to vector<4x128xbf16>
    %21 = arith.extf %20 : vector<4x128xbf16> to vector<4x128xf32>
    %c1_13 = arith.constant 1 : index
    %c0_14 = arith.constant 0 : index
    %c0_15 = arith.constant 0 : index
    %22 = vector.load %arg4[%c1_13, %c0_14, %c0_15] : memref<3x4x128xbf16, #tpu.memory_space<vmem>>, vector<1x4x128xbf16>
    %23 = vector.shape_cast %22 : vector<1x4x128xbf16> to vector<4x128xbf16>
    %24 = arith.extf %23 : vector<4x128xbf16> to vector<4x128xf32>
    %25 = vector.broadcast %2 : vector<1x128xf32> to vector<4x128xf32>
    %26 = arith.mulf %24, %25 : vector<4x128xf32>
    %27 = arith.addf %21, %26 : vector<4x128xf32>
    %c2 = arith.constant 2 : index
    %c0_16 = arith.constant 0 : index
    %c0_17 = arith.constant 0 : index
    %28 = vector.load %arg2[%c2, %c0_16, %c0_17] : memref<3x4x128xbf16, #tpu.memory_space<vmem>>, vector<1x4x128xbf16>
    %29 = vector.shape_cast %28 : vector<1x4x128xbf16> to vector<4x128xbf16>
    %30 = arith.extf %29 : vector<4x128xbf16> to vector<4x128xf32>
    %c2_18 = arith.constant 2 : index
    %c0_19 = arith.constant 0 : index
    %c0_20 = arith.constant 0 : index
    %31 = vector.load %arg4[%c2_18, %c0_19, %c0_20] : memref<3x4x128xbf16, #tpu.memory_space<vmem>>, vector<1x4x128xbf16>
    %32 = vector.shape_cast %31 : vector<1x4x128xbf16> to vector<4x128xbf16>
    %33 = arith.extf %32 : vector<4x128xbf16> to vector<4x128xf32>
    %34 = vector.broadcast %2 : vector<1x128xf32> to vector<4x128xf32>
    %35 = arith.mulf %33, %34 : vector<4x128xf32>
    %36 = arith.addf %30, %35 : vector<4x128xf32>
    %c0_21 = arith.constant 0 : index
    %c0_22 = arith.constant 0 : index
    %37 = vector.load %arg6[%c0_21, %c0_22] : memref<32x1xf32, #tpu.memory_space<vmem>>, vector<32x1xf32>
    %c0_23 = arith.constant 0 : index
    %c0_24 = arith.constant 0 : index
    %38 = vector.load %arg7[%c0_23, %c0_24] : memref<32x1xf32, #tpu.memory_space<vmem>>, vector<32x1xf32>
    %cst_25 = arith.constant 1.000000e+00 : f32
    %39 = vector.broadcast %cst_25 : f32 to vector<1x32xf32>
    %cst_26 = arith.constant dense<0.000000e+00> : vector<1x128xf32>
    %40 = tpu.matmul %39, %9, %cst_26 {dimension_numbers = #tpu.dot_dimension_numbers<[1], [0], [0], [1], [0, 0, 1, 1], [], []>} : vector<1x32xf32>, vector<32x128xf32>, vector<1x128xf32> -> vector<1x128xf32>
    %cst_27 = arith.constant 3.125000e-02 : f32
    %41 = vector.broadcast %cst_27 : f32 to vector<1x128xf32>
    %42 = arith.mulf %40, %41 : vector<1x128xf32>
    %43 = vector.broadcast %42 : vector<1x128xf32> to vector<32x128xf32>
    %44 = arith.subf %9, %43 : vector<32x128xf32>
    %45 = arith.mulf %44, %44 : vector<32x128xf32>
    %cst_28 = arith.constant dense<0.000000e+00> : vector<1x128xf32>
    %46 = tpu.matmul %39, %45, %cst_28 {dimension_numbers = #tpu.dot_dimension_numbers<[1], [0], [0], [1], [0, 0, 1, 1], [], []>} : vector<1x32xf32>, vector<32x128xf32>, vector<1x128xf32> -> vector<1x128xf32>
    %cst_29 = arith.constant 3.125000e-02 : f32
    %47 = vector.broadcast %cst_29 : f32 to vector<1x128xf32>
    %48 = arith.mulf %46, %47 : vector<1x128xf32>
    %cst_30 = arith.constant 9.99999974E-6 : f32
    %49 = vector.broadcast %cst_30 : f32 to vector<1x128xf32>
    %50 = arith.addf %48, %49 : vector<1x128xf32>
    %51 = math.rsqrt %50 : vector<1x128xf32>
    %52 = vector.broadcast %51 : vector<1x128xf32> to vector<32x128xf32>
    %53 = arith.mulf %44, %52 : vector<32x128xf32>
    %54 = vector.broadcast %37 : vector<32x1xf32> to vector<32x128xf32>
    %55 = arith.mulf %53, %54 : vector<32x128xf32>
    %56 = vector.broadcast %38 : vector<32x1xf32> to vector<32x128xf32>
    %57 = arith.addf %55, %56 : vector<32x128xf32>
    %cst_31 = arith.constant 1.000000e+00 : f32
    %58 = vector.broadcast %cst_31 : f32 to vector<1x4xf32>
    %59 = arith.mulf %18, %18 : vector<4x128xf32>
    %60 = arith.mulf %27, %27 : vector<4x128xf32>
    %61 = arith.addf %59, %60 : vector<4x128xf32>
    %62 = arith.mulf %36, %36 : vector<4x128xf32>
    %63 = arith.addf %61, %62 : vector<4x128xf32>
    %cst_32 = arith.constant 9.99999993E-9 : f32
    %64 = vector.broadcast %cst_32 : f32 to vector<4x128xf32>
    %65 = arith.maximumf %63, %64 : vector<4x128xf32>
    %cst_33 = arith.constant dense<0.000000e+00> : vector<1x128xf32>
    %66 = tpu.matmul %58, %65, %cst_33 {dimension_numbers = #tpu.dot_dimension_numbers<[1], [0], [0], [1], [0, 0, 1, 1], [], []>} : vector<1x4xf32>, vector<4x128xf32>, vector<1x128xf32> -> vector<1x128xf32>
    %cst_34 = arith.constant 2.500000e-01 : f32
    %67 = vector.broadcast %cst_34 : f32 to vector<1x128xf32>
    %68 = arith.mulf %66, %67 : vector<1x128xf32>
    %69 = math.rsqrt %68 : vector<1x128xf32>
    %70 = vector.broadcast %69 : vector<1x128xf32> to vector<4x128xf32>
    %71 = arith.mulf %18, %70 : vector<4x128xf32>
    %72 = vector.broadcast %69 : vector<1x128xf32> to vector<4x128xf32>
    %73 = arith.mulf %27, %72 : vector<4x128xf32>
    %74 = vector.broadcast %69 : vector<1x128xf32> to vector<4x128xf32>
    %75 = arith.mulf %36, %74 : vector<4x128xf32>
    %c0_35 = arith.constant 0 : index
    %c0_36 = arith.constant 0 : index
    %76 = vector.load %arg9[%c0_35, %c0_36] : memref<128x32xf32, #tpu.memory_space<vmem>>, vector<128x32xf32>
    %c0_37 = arith.constant 0 : index
    %c0_38 = arith.constant 0 : index
    %77 = vector.load %arg8[%c0_37, %c0_38] : memref<8x4xf32, #tpu.memory_space<vmem>>, vector<8x4xf32>
    %c0_39 = arith.constant 0 : index
    %c0_40 = arith.constant 0 : index
    %78 = vector.load %arg10[%c0_39, %c0_40] : memref<128x8xf32, #tpu.memory_space<vmem>>, vector<128x8xf32>
    %c0_41 = arith.constant 0 : index
    %c0_42 = arith.constant 0 : index
    %79 = vector.load %arg11[%c0_41, %c0_42] : memref<128x1xf32, #tpu.memory_space<vmem>>, vector<128x1xf32>
    %c0_43 = arith.constant 0 : index
    %c0_44 = arith.constant 0 : index
    %80 = vector.load %arg12[%c0_43, %c0_44] : memref<8x8xf32, #tpu.memory_space<vmem>>, vector<8x8xf32>
    %cst_45 = arith.constant dense<0.000000e+00> : vector<8x128xf32>
    %81 = tpu.matmul %77, %71, %cst_45 {dimension_numbers = #tpu.dot_dimension_numbers<[1], [0], [0], [1], [0, 0, 1, 1], [], []>} : vector<8x4xf32>, vector<4x128xf32>, vector<8x128xf32> -> vector<8x128xf32>
    %cst_46 = arith.constant dense<0.000000e+00> : vector<8x128xf32>
    %82 = tpu.matmul %77, %73, %cst_46 {dimension_numbers = #tpu.dot_dimension_numbers<[1], [0], [0], [1], [0, 0, 1, 1], [], []>} : vector<8x4xf32>, vector<4x128xf32>, vector<8x128xf32> -> vector<8x128xf32>
    %cst_47 = arith.constant dense<0.000000e+00> : vector<8x128xf32>
    %83 = tpu.matmul %77, %75, %cst_47 {dimension_numbers = #tpu.dot_dimension_numbers<[1], [0], [0], [1], [0, 0, 1, 1], [], []>} : vector<8x4xf32>, vector<4x128xf32>, vector<8x128xf32> -> vector<8x128xf32>
    %84 = arith.mulf %81, %81 : vector<8x128xf32>
    %85 = arith.mulf %82, %82 : vector<8x128xf32>
    %86 = arith.addf %84, %85 : vector<8x128xf32>
    %87 = arith.mulf %83, %83 : vector<8x128xf32>
    %88 = arith.addf %86, %87 : vector<8x128xf32>
    %cst_48 = arith.constant 9.99999993E-9 : f32
    %89 = vector.broadcast %cst_48 : f32 to vector<8x128xf32>
    %90 = arith.maximumf %88, %89 : vector<8x128xf32>
    %91 = math.sqrt %90 : vector<8x128xf32>
    %cst_49 = arith.constant dense<0.000000e+00> : vector<128x128xf32>
    %92 = tpu.matmul %78, %91, %cst_49 {dimension_numbers = #tpu.dot_dimension_numbers<[1], [0], [0], [1], [0, 0, 1, 1], [], []>} : vector<128x8xf32>, vector<8x128xf32>, vector<128x128xf32> -> vector<128x128xf32>
    %93 = vector.broadcast %79 : vector<128x1xf32> to vector<128x128xf32>
    %94 = arith.addf %92, %93 : vector<128x128xf32>
    %cst_50 = arith.constant dense<0.000000e+00> : vector<128x128xf32>
    %95 = tpu.matmul %76, %57, %cst_50 {dimension_numbers = #tpu.dot_dimension_numbers<[1], [0], [0], [1], [0, 0, 1, 1], [], []>} : vector<128x32xf32>, vector<32x128xf32>, vector<128x128xf32> -> vector<128x128xf32>
    %96 = arith.addf %94, %95 : vector<128x128xf32>
    %cst_51 = arith.constant 0.000000e+00 : f32
    %97 = vector.broadcast %cst_51 : f32 to vector<128x128xf32>
    %98 = arith.maximumf %96, %97 : vector<128x128xf32>
    %cst_52 = arith.constant dense<0.000000e+00> : vector<8x128xf32>
    %99 = tpu.matmul %80, %81, %cst_52 {dimension_numbers = #tpu.dot_dimension_numbers<[1], [0], [0], [1], [0, 0, 1, 1], [], []>} : vector<8x8xf32>, vector<8x128xf32>, vector<8x128xf32> -> vector<8x128xf32>
    %cst_53 = arith.constant dense<0.000000e+00> : vector<8x128xf32>
    %100 = tpu.matmul %80, %82, %cst_53 {dimension_numbers = #tpu.dot_dimension_numbers<[1], [0], [0], [1], [0, 0, 1, 1], [], []>} : vector<8x8xf32>, vector<8x128xf32>, vector<8x128xf32> -> vector<8x128xf32>
    %cst_54 = arith.constant dense<0.000000e+00> : vector<8x128xf32>
    %101 = tpu.matmul %80, %83, %cst_54 {dimension_numbers = #tpu.dot_dimension_numbers<[1], [0], [0], [1], [0, 0, 1, 1], [], []>} : vector<8x8xf32>, vector<8x128xf32>, vector<8x128xf32> -> vector<8x128xf32>
    %102 = arith.mulf %99, %99 : vector<8x128xf32>
    %103 = arith.mulf %100, %100 : vector<8x128xf32>
    %104 = arith.addf %102, %103 : vector<8x128xf32>
    %105 = arith.mulf %101, %101 : vector<8x128xf32>
    %106 = arith.addf %104, %105 : vector<8x128xf32>
    %cst_55 = arith.constant 9.99999993E-9 : f32
    %107 = vector.broadcast %cst_55 : f32 to vector<8x128xf32>
    %108 = arith.maximumf %106, %107 : vector<8x128xf32>
    %109 = math.sqrt %108 : vector<8x128xf32>
    %110 = arith.negf %109 : vector<8x128xf32>
    %111 = math.exp %110 : vector<8x128xf32>
    %cst_56 = arith.constant 1.000000e+00 : f32
    %112 = vector.broadcast %cst_56 : f32 to vector<8x128xf32>
    %113 = arith.addf %112, %111 : vector<8x128xf32>
    %114 = arith.divf %112, %113 : vector<8x128xf32>
    %115 = arith.mulf %99, %114 : vector<8x128xf32>
    %116 = arith.mulf %100, %114 : vector<8x128xf32>
    %117 = arith.mulf %101, %114 : vector<8x128xf32>
    %c0_57 = arith.constant 0 : index
    %c0_58 = arith.constant 0 : index
    %118 = vector.load %arg14[%c0_57, %c0_58] : memref<32x128xf32, #tpu.memory_space<vmem>>, vector<32x128xf32>
    %c0_59 = arith.constant 0 : index
    %c0_60 = arith.constant 0 : index
    %119 = vector.load %arg13[%c0_59, %c0_60] : memref<8x8xf32, #tpu.memory_space<vmem>>, vector<8x8xf32>
    %c0_61 = arith.constant 0 : index
    %c0_62 = arith.constant 0 : index
    %120 = vector.load %arg15[%c0_61, %c0_62] : memref<32x8xf32, #tpu.memory_space<vmem>>, vector<32x8xf32>
    %c0_63 = arith.constant 0 : index
    %c0_64 = arith.constant 0 : index
    %121 = vector.load %arg16[%c0_63, %c0_64] : memref<32x1xf32, #tpu.memory_space<vmem>>, vector<32x1xf32>
    %c0_65 = arith.constant 0 : index
    %c0_66 = arith.constant 0 : index
    %122 = vector.load %arg17[%c0_65, %c0_66] : memref<4x8xf32, #tpu.memory_space<vmem>>, vector<4x8xf32>
    %cst_67 = arith.constant dense<0.000000e+00> : vector<8x128xf32>
    %123 = tpu.matmul %119, %115, %cst_67 {dimension_numbers = #tpu.dot_dimension_numbers<[1], [0], [0], [1], [0, 0, 1, 1], [], []>} : vector<8x8xf32>, vector<8x128xf32>, vector<8x128xf32> -> vector<8x128xf32>
    %cst_68 = arith.constant dense<0.000000e+00> : vector<8x128xf32>
    %124 = tpu.matmul %119, %116, %cst_68 {dimension_numbers = #tpu.dot_dimension_numbers<[1], [0], [0], [1], [0, 0, 1, 1], [], []>} : vector<8x8xf32>, vector<8x128xf32>, vector<8x128xf32> -> vector<8x128xf32>
    %cst_69 = arith.constant dense<0.000000e+00> : vector<8x128xf32>
    %125 = tpu.matmul %119, %117, %cst_69 {dimension_numbers = #tpu.dot_dimension_numbers<[1], [0], [0], [1], [0, 0, 1, 1], [], []>} : vector<8x8xf32>, vector<8x128xf32>, vector<8x128xf32> -> vector<8x128xf32>
    %126 = arith.mulf %123, %123 : vector<8x128xf32>
    %127 = arith.mulf %124, %124 : vector<8x128xf32>
    %128 = arith.addf %126, %127 : vector<8x128xf32>
    %129 = arith.mulf %125, %125 : vector<8x128xf32>
    %130 = arith.addf %128, %129 : vector<8x128xf32>
    %cst_70 = arith.constant 9.99999993E-9 : f32
    %131 = vector.broadcast %cst_70 : f32 to vector<8x128xf32>
    %132 = arith.maximumf %130, %131 : vector<8x128xf32>
    %133 = math.sqrt %132 : vector<8x128xf32>
    %cst_71 = arith.constant dense<0.000000e+00> : vector<32x128xf32>
    %134 = tpu.matmul %120, %133, %cst_71 {dimension_numbers = #tpu.dot_dimension_numbers<[1], [0], [0], [1], [0, 0, 1, 1], [], []>} : vector<32x8xf32>, vector<8x128xf32>, vector<32x128xf32> -> vector<32x128xf32>
    %135 = vector.broadcast %121 : vector<32x1xf32> to vector<32x128xf32>
    %136 = arith.addf %134, %135 : vector<32x128xf32>
    %cst_72 = arith.constant dense<0.000000e+00> : vector<32x128xf32>
    %137 = tpu.matmul %118, %98, %cst_72 {dimension_numbers = #tpu.dot_dimension_numbers<[1], [0], [0], [1], [0, 0, 1, 1], [], []>} : vector<32x128xf32>, vector<128x128xf32>, vector<32x128xf32> -> vector<32x128xf32>
    %138 = arith.addf %136, %137 : vector<32x128xf32>
    %cst_73 = arith.constant dense<0.000000e+00> : vector<4x128xf32>
    %139 = tpu.matmul %122, %123, %cst_73 {dimension_numbers = #tpu.dot_dimension_numbers<[1], [0], [0], [1], [0, 0, 1, 1], [], []>} : vector<4x8xf32>, vector<8x128xf32>, vector<4x128xf32> -> vector<4x128xf32>
    %cst_74 = arith.constant dense<0.000000e+00> : vector<4x128xf32>
    %140 = tpu.matmul %122, %124, %cst_74 {dimension_numbers = #tpu.dot_dimension_numbers<[1], [0], [0], [1], [0, 0, 1, 1], [], []>} : vector<4x8xf32>, vector<8x128xf32>, vector<4x128xf32> -> vector<4x128xf32>
    %cst_75 = arith.constant dense<0.000000e+00> : vector<4x128xf32>
    %141 = tpu.matmul %122, %125, %cst_75 {dimension_numbers = #tpu.dot_dimension_numbers<[1], [0], [0], [1], [0, 0, 1, 1], [], []>} : vector<4x8xf32>, vector<8x128xf32>, vector<4x128xf32> -> vector<4x128xf32>
    %142 = arith.addf %57, %138 : vector<32x128xf32>
    %143 = arith.addf %71, %139 : vector<4x128xf32>
    %144 = arith.addf %73, %140 : vector<4x128xf32>
    %145 = arith.addf %75, %141 : vector<4x128xf32>
    %c0_76 = arith.constant 0 : index
    %c0_77 = arith.constant 0 : index
    %146 = vector.load %arg18[%c0_76, %c0_77] : memref<32x1xf32, #tpu.memory_space<vmem>>, vector<32x1xf32>
    %c0_78 = arith.constant 0 : index
    %c0_79 = arith.constant 0 : index
    %147 = vector.load %arg19[%c0_78, %c0_79] : memref<32x1xf32, #tpu.memory_space<vmem>>, vector<32x1xf32>
    %cst_80 = arith.constant 1.000000e+00 : f32
    %148 = vector.broadcast %cst_80 : f32 to vector<1x32xf32>
    %cst_81 = arith.constant dense<0.000000e+00> : vector<1x128xf32>
    %149 = tpu.matmul %148, %142, %cst_81 {dimension_numbers = #tpu.dot_dimension_numbers<[1], [0], [0], [1], [0, 0, 1, 1], [], []>} : vector<1x32xf32>, vector<32x128xf32>, vector<1x128xf32> -> vector<1x128xf32>
    %cst_82 = arith.constant 3.125000e-02 : f32
    %150 = vector.broadcast %cst_82 : f32 to vector<1x128xf32>
    %151 = arith.mulf %149, %150 : vector<1x128xf32>
    %152 = vector.broadcast %151 : vector<1x128xf32> to vector<32x128xf32>
    %153 = arith.subf %142, %152 : vector<32x128xf32>
    %154 = arith.mulf %153, %153 : vector<32x128xf32>
    %cst_83 = arith.constant dense<0.000000e+00> : vector<1x128xf32>
    %155 = tpu.matmul %148, %154, %cst_83 {dimension_numbers = #tpu.dot_dimension_numbers<[1], [0], [0], [1], [0, 0, 1, 1], [], []>} : vector<1x32xf32>, vector<32x128xf32>, vector<1x128xf32> -> vector<1x128xf32>
    %cst_84 = arith.constant 3.125000e-02 : f32
    %156 = vector.broadcast %cst_84 : f32 to vector<1x128xf32>
    %157 = arith.mulf %155, %156 : vector<1x128xf32>
    %cst_85 = arith.constant 9.99999974E-6 : f32
    %158 = vector.broadcast %cst_85 : f32 to vector<1x128xf32>
    %159 = arith.addf %157, %158 : vector<1x128xf32>
    %160 = math.rsqrt %159 : vector<1x128xf32>
    %161 = vector.broadcast %160 : vector<1x128xf32> to vector<32x128xf32>
    %162 = arith.mulf %153, %161 : vector<32x128xf32>
    %163 = vector.broadcast %146 : vector<32x1xf32> to vector<32x128xf32>
    %164 = arith.mulf %162, %163 : vector<32x128xf32>
    %165 = vector.broadcast %147 : vector<32x1xf32> to vector<32x128xf32>
    %166 = arith.addf %164, %165 : vector<32x128xf32>
    %cst_86 = arith.constant 1.000000e+00 : f32
    %167 = vector.broadcast %cst_86 : f32 to vector<1x4xf32>
    %168 = arith.mulf %143, %143 : vector<4x128xf32>
    %169 = arith.mulf %144, %144 : vector<4x128xf32>
    %170 = arith.addf %168, %169 : vector<4x128xf32>
    %171 = arith.mulf %145, %145 : vector<4x128xf32>
    %172 = arith.addf %170, %171 : vector<4x128xf32>
    %cst_87 = arith.constant 9.99999993E-9 : f32
    %173 = vector.broadcast %cst_87 : f32 to vector<4x128xf32>
    %174 = arith.maximumf %172, %173 : vector<4x128xf32>
    %cst_88 = arith.constant dense<0.000000e+00> : vector<1x128xf32>
    %175 = tpu.matmul %167, %174, %cst_88 {dimension_numbers = #tpu.dot_dimension_numbers<[1], [0], [0], [1], [0, 0, 1, 1], [], []>} : vector<1x4xf32>, vector<4x128xf32>, vector<1x128xf32> -> vector<1x128xf32>
    %cst_89 = arith.constant 2.500000e-01 : f32
    %176 = vector.broadcast %cst_89 : f32 to vector<1x128xf32>
    %177 = arith.mulf %175, %176 : vector<1x128xf32>
    %178 = math.rsqrt %177 : vector<1x128xf32>
    %179 = vector.broadcast %178 : vector<1x128xf32> to vector<4x128xf32>
    %180 = arith.mulf %143, %179 : vector<4x128xf32>
    %181 = vector.broadcast %178 : vector<1x128xf32> to vector<4x128xf32>
    %182 = arith.mulf %144, %181 : vector<4x128xf32>
    %183 = vector.broadcast %178 : vector<1x128xf32> to vector<4x128xf32>
    %184 = arith.mulf %145, %183 : vector<4x128xf32>
    %185 = arith.truncf %166 : vector<32x128xf32> to vector<32x128xbf16>
    %c0_90 = arith.constant 0 : index
    %c0_91 = arith.constant 0 : index
    %186 = vector.load %arg20[%c0_90, %c0_91] : memref<32x128xbf16, #tpu.memory_space<vmem>>, vector<32x128xbf16>
    tpu.vector_store %arg20[%c0_90, %c0_91], %185 {strides = array<i32>} : memref<32x128xbf16, #tpu.memory_space<vmem>>, vector<32x128xbf16>,
    %187 = arith.truncf %180 : vector<4x128xf32> to vector<4x128xbf16>
    %c0_92 = arith.constant 0 : index
    %c0_93 = arith.constant 0 : index
    %c0_94 = arith.constant 0 : index
    %188 = vector.load %arg21[%c0_92, %c0_93, %c0_94] : memref<3x4x128xbf16, #tpu.memory_space<vmem>>, vector<1x4x128xbf16>
    %189 = vector.shape_cast %188 : vector<1x4x128xbf16> to vector<4x128xbf16>
    %190 = vector.shape_cast %187 : vector<4x128xbf16> to vector<1x4x128xbf16>
    tpu.vector_store %arg21[%c0_92, %c0_93, %c0_94], %190 {strides = array<i32>} : memref<3x4x128xbf16, #tpu.memory_space<vmem>>, vector<1x4x128xbf16>,
    %191 = arith.truncf %182 : vector<4x128xf32> to vector<4x128xbf16>
    %c1_95 = arith.constant 1 : index
    %c0_96 = arith.constant 0 : index
    %c0_97 = arith.constant 0 : index
    %192 = vector.load %arg21[%c1_95, %c0_96, %c0_97] : memref<3x4x128xbf16, #tpu.memory_space<vmem>>, vector<1x4x128xbf16>
    %193 = vector.shape_cast %192 : vector<1x4x128xbf16> to vector<4x128xbf16>
    %194 = vector.shape_cast %191 : vector<4x128xbf16> to vector<1x4x128xbf16>
    tpu.vector_store %arg21[%c1_95, %c0_96, %c0_97], %194 {strides = array<i32>} : memref<3x4x128xbf16, #tpu.memory_space<vmem>>, vector<1x4x128xbf16>,
    %195 = arith.truncf %184 : vector<4x128xf32> to vector<4x128xbf16>
    %c2_98 = arith.constant 2 : index
    %c0_99 = arith.constant 0 : index
    %c0_100 = arith.constant 0 : index
    %196 = vector.load %arg21[%c2_98, %c0_99, %c0_100] : memref<3x4x128xbf16, #tpu.memory_space<vmem>>, vector<1x4x128xbf16>
    %197 = vector.shape_cast %196 : vector<1x4x128xbf16> to vector<4x128xbf16>
    %198 = vector.shape_cast %195 : vector<4x128xbf16> to vector<1x4x128xbf16>
    tpu.vector_store %arg21[%c2_98, %c0_99, %c0_100], %198 {strides = array<i32>} : memref<3x4x128xbf16, #tpu.memory_space<vmem>>, vector<1x4x128xbf16>,
    return
  }
  func.func @transform_0(%arg0: i32) -> (i32, i32) {
    %c0_i32 = arith.constant 0 : i32
    %c0_i32_0 = arith.constant 0 : i32
    return %c0_i32, %arg0 : i32, i32
  }
  func.func @transform_1(%arg0: i32) -> (i32, i32, i32) {
    %c0_i32 = arith.constant 0 : i32
    %c0_i32_0 = arith.constant 0 : i32
    %c0_i32_1 = arith.constant 0 : i32
    return %c0_i32, %c0_i32_0, %arg0 : i32, i32, i32
  }
  func.func @transform_2(%arg0: i32) -> (i32, i32) {
    %c0_i32 = arith.constant 0 : i32
    %c0_i32_0 = arith.constant 0 : i32
    return %c0_i32, %arg0 : i32, i32
  }
  func.func @transform_3(%arg0: i32) -> (i32, i32, i32) {
    %c0_i32 = arith.constant 0 : i32
    %c0_i32_0 = arith.constant 0 : i32
    %c0_i32_1 = arith.constant 0 : i32
    return %c0_i32, %c0_i32_0, %arg0 : i32, i32, i32
  }
  func.func @transform_4(%arg0: i32) -> (i32, i32) {
    %c0_i32 = arith.constant 0 : i32
    %c0_i32_0 = arith.constant 0 : i32
    return %c0_i32, %arg0 : i32, i32
  }
  func.func @transform_5(%arg0: i32) -> (i32, i32) {
    %c0_i32 = arith.constant 0 : i32
    %c0_i32_0 = arith.constant 0 : i32
    %c0_i32_1 = arith.constant 0 : i32
    return %c0_i32, %c0_i32_0 : i32, i32
  }
  func.func @transform_6(%arg0: i32) -> (i32, i32) {
    %c0_i32 = arith.constant 0 : i32
    %c0_i32_0 = arith.constant 0 : i32
    %c0_i32_1 = arith.constant 0 : i32
    return %c0_i32, %c0_i32_0 : i32, i32
  }
  func.func @transform_7(%arg0: i32) -> (i32, i32) {
    %c0_i32 = arith.constant 0 : i32
    %c0_i32_0 = arith.constant 0 : i32
    %c0_i32_1 = arith.constant 0 : i32
    return %c0_i32, %c0_i32_0 : i32, i32
  }
  func.func @transform_8(%arg0: i32) -> (i32, i32) {
    %c0_i32 = arith.constant 0 : i32
    %c0_i32_0 = arith.constant 0 : i32
    %c0_i32_1 = arith.constant 0 : i32
    return %c0_i32, %c0_i32_0 : i32, i32
  }
  func.func @transform_9(%arg0: i32) -> (i32, i32) {
    %c0_i32 = arith.constant 0 : i32
    %c0_i32_0 = arith.constant 0 : i32
    %c0_i32_1 = arith.constant 0 : i32
    return %c0_i32, %c0_i32_0 : i32, i32
  }
  func.func @transform_10(%arg0: i32) -> (i32, i32) {
    %c0_i32 = arith.constant 0 : i32
    %c0_i32_0 = arith.constant 0 : i32
    %c0_i32_1 = arith.constant 0 : i32
    return %c0_i32, %c0_i32_0 : i32, i32
  }
  func.func @transform_11(%arg0: i32) -> (i32, i32) {
    %c0_i32 = arith.constant 0 : i32
    %c0_i32_0 = arith.constant 0 : i32
    %c0_i32_1 = arith.constant 0 : i32
    return %c0_i32, %c0_i32_0 : i32, i32
  }
  func.func @transform_12(%arg0: i32) -> (i32, i32) {
    %c0_i32 = arith.constant 0 : i32
    %c0_i32_0 = arith.constant 0 : i32
    %c0_i32_1 = arith.constant 0 : i32
    return %c0_i32, %c0_i32_0 : i32, i32
  }
  func.func @transform_13(%arg0: i32) -> (i32, i32) {
    %c0_i32 = arith.constant 0 : i32
    %c0_i32_0 = arith.constant 0 : i32
    %c0_i32_1 = arith.constant 0 : i32
    return %c0_i32, %c0_i32_0 : i32, i32
  }
  func.func @transform_14(%arg0: i32) -> (i32, i32) {
    %c0_i32 = arith.constant 0 : i32
    %c0_i32_0 = arith.constant 0 : i32
    %c0_i32_1 = arith.constant 0 : i32
    return %c0_i32, %c0_i32_0 : i32, i32
  }
  func.func @transform_15(%arg0: i32) -> (i32, i32) {
    %c0_i32 = arith.constant 0 : i32
    %c0_i32_0 = arith.constant 0 : i32
    %c0_i32_1 = arith.constant 0 : i32
    return %c0_i32, %c0_i32_0 : i32, i32
  }
  func.func @transform_16(%arg0: i32) -> (i32, i32) {
    %c0_i32 = arith.constant 0 : i32
    %c0_i32_0 = arith.constant 0 : i32
    %c0_i32_1 = arith.constant 0 : i32
    return %c0_i32, %c0_i32_0 : i32, i32
  }
  func.func @transform_17(%arg0: i32) -> (i32, i32) {
    %c0_i32 = arith.constant 0 : i32
    %c0_i32_0 = arith.constant 0 : i32
    %c0_i32_1 = arith.constant 0 : i32
    return %c0_i32, %c0_i32_0 : i32, i32
  }
  func.func @transform_18(%arg0: i32) -> (i32, i32) {
    %c0_i32 = arith.constant 0 : i32
    %c0_i32_0 = arith.constant 0 : i32
    %c0_i32_1 = arith.constant 0 : i32
    return %c0_i32, %c0_i32_0 : i32, i32
  }
  func.func @transform_19(%arg0: i32) -> (i32, i32) {
    %c0_i32 = arith.constant 0 : i32
    %c0_i32_0 = arith.constant 0 : i32
    return %c0_i32, %arg0 : i32, i32
  }
  func.func @transform_20(%arg0: i32) -> (i32, i32, i32) {
    %c0_i32 = arith.constant 0 : i32
    %c0_i32_0 = arith.constant 0 : i32
    %c0_i32_1 = arith.constant 0 : i32
    return %c0_i32, %c0_i32_0, %arg0 : i32, i32, i32
  }
}

module attributes {stable_mosaic.version = 11 : i64} {
  func.func @kernel(%arg0: i32, %arg1: memref<36x128xbf16, #tpu.memory_space<vmem>>, %arg2: memref<3x2x128xbf16, #tpu.memory_space<vmem>>, %arg3: memref<1x128xi32, #tpu.memory_space<vmem>>, %arg4: memref<1x128xi32, #tpu.memory_space<vmem>>, %arg5: memref<1x128xf32, #tpu.memory_space<vmem>>, %arg6: memref<32x128xbf16, #tpu.memory_space<vmem>>, %arg7: memref<3x4x128xbf16, #tpu.memory_space<vmem>>, %arg8: memref<32x128xbf16, #tpu.memory_space<vmem>>, %arg9: memref<3x4x128xbf16, #tpu.memory_space<vmem>>, %arg10: memref<10x4xf32, #tpu.memory_space<vmem>>, %arg11: memref<10x2xf32, #tpu.memory_space<vmem>>, %arg12: memref<10x4xf32, #tpu.memory_space<vmem>>, %arg13: memref<32x32xf32, #tpu.memory_space<vmem>>, %arg14: memref<32x36xf32, #tpu.memory_space<vmem>>, %arg15: memref<32x32xf32, #tpu.memory_space<vmem>>, %arg16: memref<32x10xf32, #tpu.memory_space<vmem>>, %arg17: memref<32x1xf32, #tpu.memory_space<vmem>>, %arg18: memref<4x10xf32, #tpu.memory_space<vmem>>, %arg19: memref<4x4xf32, #tpu.memory_space<vmem>>, %arg20: memref<32x32xf32, #tpu.memory_space<vmem>>, %arg21: memref<32x4xf32, #tpu.memory_space<vmem>>, %arg22: memref<32x1xf32, #tpu.memory_space<vmem>>, %arg23: memref<4x4xf32, #tpu.memory_space<vmem>>, %arg24: memref<4x4xf32, #tpu.memory_space<vmem>>, %arg25: memref<32x32xf32, #tpu.memory_space<vmem>>, %arg26: memref<32x4xf32, #tpu.memory_space<vmem>>, %arg27: memref<32x1xf32, #tpu.memory_space<vmem>>, %arg28: memref<4x4xf32, #tpu.memory_space<vmem>>, %arg29: memref<32x128xbf16, #tpu.memory_space<vmem>>, %arg30: memref<3x4x128xbf16, #tpu.memory_space<vmem>>) attributes {dimension_semantics = [#tpu.dimension_semantics<parallel>], iteration_bounds = array<i64: 1>, scalar_prefetch = 0 : i64, scratch_operands = 0 : i64, tpu.core_type = #tpu.core_type<tc>, window_params = [{transform_indices = @transform_0, window_bounds = array<i64: 36, 128>}, {transform_indices = @transform_1, window_bounds = array<i64: 3, 2, 128>}, {transform_indices = @transform_2, window_bounds = array<i64: 1, 128>}, {transform_indices = @transform_3, window_bounds = array<i64: 1, 128>}, {transform_indices = @transform_4, window_bounds = array<i64: 1, 128>}, {pipeline_mode = #tpu.pipeline_mode<synchronous>, transform_indices = @transform_5, window_bounds = array<i64: 32, 128>}, {pipeline_mode = #tpu.pipeline_mode<synchronous>, transform_indices = @transform_6, window_bounds = array<i64: 3, 4, 128>}, {pipeline_mode = #tpu.pipeline_mode<synchronous>, transform_indices = @transform_7, window_bounds = array<i64: 32, 128>}, {pipeline_mode = #tpu.pipeline_mode<synchronous>, transform_indices = @transform_8, window_bounds = array<i64: 3, 4, 128>}, {pipeline_mode = #tpu.pipeline_mode<synchronous>, transform_indices = @transform_9, window_bounds = array<i64: 10, 4>}, {pipeline_mode = #tpu.pipeline_mode<synchronous>, transform_indices = @transform_10, window_bounds = array<i64: 10, 2>}, {pipeline_mode = #tpu.pipeline_mode<synchronous>, transform_indices = @transform_11, window_bounds = array<i64: 10, 4>}, {pipeline_mode = #tpu.pipeline_mode<synchronous>, transform_indices = @transform_12, window_bounds = array<i64: 32, 32>}, {pipeline_mode = #tpu.pipeline_mode<synchronous>, transform_indices = @transform_13, window_bounds = array<i64: 32, 36>}, {pipeline_mode = #tpu.pipeline_mode<synchronous>, transform_indices = @transform_14, window_bounds = array<i64: 32, 32>}, {pipeline_mode = #tpu.pipeline_mode<synchronous>, transform_indices = @transform_15, window_bounds = array<i64: 32, 10>}, {pipeline_mode = #tpu.pipeline_mode<synchronous>, transform_indices = @transform_16, window_bounds = array<i64: 32, 1>}, {pipeline_mode = #tpu.pipeline_mode<synchronous>, transform_indices = @transform_17, window_bounds = array<i64: 4, 10>}, {pipeline_mode = #tpu.pipeline_mode<synchronous>, transform_indices = @transform_18, window_bounds = array<i64: 4, 4>}, {pipeline_mode = #tpu.pipeline_mode<synchronous>, transform_indices = @transform_19, window_bounds = array<i64: 32, 32>}, {pipeline_mode = #tpu.pipeline_mode<synchronous>, transform_indices = @transform_20, window_bounds = array<i64: 32, 4>}, {pipeline_mode = #tpu.pipeline_mode<synchronous>, transform_indices = @transform_21, window_bounds = array<i64: 32, 1>}, {pipeline_mode = #tpu.pipeline_mode<synchronous>, transform_indices = @transform_22, window_bounds = array<i64: 4, 4>}, {pipeline_mode = #tpu.pipeline_mode<synchronous>, transform_indices = @transform_23, window_bounds = array<i64: 4, 4>}, {pipeline_mode = #tpu.pipeline_mode<synchronous>, transform_indices = @transform_24, window_bounds = array<i64: 32, 32>}, {pipeline_mode = #tpu.pipeline_mode<synchronous>, transform_indices = @transform_25, window_bounds = array<i64: 32, 4>}, {pipeline_mode = #tpu.pipeline_mode<synchronous>, transform_indices = @transform_26, window_bounds = array<i64: 32, 1>}, {pipeline_mode = #tpu.pipeline_mode<synchronous>, transform_indices = @transform_27, window_bounds = array<i64: 4, 4>}, {transform_indices = @transform_28, window_bounds = array<i64: 32, 128>}, {transform_indices = @transform_29, window_bounds = array<i64: 3, 4, 128>}]} {
    %c0 = arith.constant 0 : index
    %c0_0 = arith.constant 0 : index
    %0 = vector.load %arg3[%c0, %c0_0] : memref<1x128xi32, #tpu.memory_space<vmem>>, vector<1x128xi32>
    %c0_1 = arith.constant 0 : index
    %c0_2 = arith.constant 0 : index
    %1 = vector.load %arg4[%c0_1, %c0_2] : memref<1x128xi32, #tpu.memory_space<vmem>>, vector<1x128xi32>
    %2 = tpu.iota {dimensions = array<i32: 0>} : vector<128x128xi32>
    %3 = vector.broadcast %0 : vector<1x128xi32> to vector<128x128xi32>
    %4 = arith.cmpi eq, %2, %3 : vector<128x128xi32>
    %cst = arith.constant 1.000000e+00 : f32
    %cst_3 = arith.constant 0.000000e+00 : f32
    %5 = vector.broadcast %cst : f32 to vector<128x128xf32>
    %6 = vector.broadcast %cst_3 : f32 to vector<128x128xf32>
    %7 = arith.select %4, %5, %6 : vector<128x128xi1>, vector<128x128xf32>
    %8 = vector.broadcast %1 : vector<1x128xi32> to vector<128x128xi32>
    %9 = arith.cmpi eq, %2, %8 : vector<128x128xi32>
    %cst_4 = arith.constant 1.000000e+00 : f32
    %cst_5 = arith.constant 0.000000e+00 : f32
    %10 = vector.broadcast %cst_4 : f32 to vector<128x128xf32>
    %11 = vector.broadcast %cst_5 : f32 to vector<128x128xf32>
    %12 = arith.select %9, %10, %11 : vector<128x128xi1>, vector<128x128xf32>
    %c0_6 = arith.constant 0 : index
    %c0_7 = arith.constant 0 : index
    %13 = vector.load %arg6[%c0_6, %c0_7] : memref<32x128xbf16, #tpu.memory_space<vmem>>, vector<32x128xbf16>
    %14 = arith.extf %13 : vector<32x128xbf16> to vector<32x128xf32>
    %c0_8 = arith.constant 0 : index
    %c0_9 = arith.constant 0 : index
    %c0_10 = arith.constant 0 : index
    %15 = vector.load %arg7[%c0_8, %c0_9, %c0_10] : memref<3x4x128xbf16, #tpu.memory_space<vmem>>, vector<1x4x128xbf16>
    %16 = vector.shape_cast %15 : vector<1x4x128xbf16> to vector<4x128xbf16>
    %17 = arith.extf %16 : vector<4x128xbf16> to vector<4x128xf32>
    %c1 = arith.constant 1 : index
    %c0_11 = arith.constant 0 : index
    %c0_12 = arith.constant 0 : index
    %18 = vector.load %arg7[%c1, %c0_11, %c0_12] : memref<3x4x128xbf16, #tpu.memory_space<vmem>>, vector<1x4x128xbf16>
    %19 = vector.shape_cast %18 : vector<1x4x128xbf16> to vector<4x128xbf16>
    %20 = arith.extf %19 : vector<4x128xbf16> to vector<4x128xf32>
    %c2 = arith.constant 2 : index
    %c0_13 = arith.constant 0 : index
    %c0_14 = arith.constant 0 : index
    %21 = vector.load %arg7[%c2, %c0_13, %c0_14] : memref<3x4x128xbf16, #tpu.memory_space<vmem>>, vector<1x4x128xbf16>
    %22 = vector.shape_cast %21 : vector<1x4x128xbf16> to vector<4x128xbf16>
    %23 = arith.extf %22 : vector<4x128xbf16> to vector<4x128xf32>
    %cst_15 = arith.constant dense<0.000000e+00> : vector<32x128xf32>
    %24 = tpu.matmul %14, %7, %cst_15 {dimension_numbers = #tpu.dot_dimension_numbers<[1], [0], [0], [1], [0, 0, 1, 1], [], []>} : vector<32x128xf32>, vector<128x128xf32>, vector<32x128xf32> -> vector<32x128xf32>
    %cst_16 = arith.constant dense<0.000000e+00> : vector<4x128xf32>
    %25 = tpu.matmul %17, %7, %cst_16 {dimension_numbers = #tpu.dot_dimension_numbers<[1], [0], [0], [1], [0, 0, 1, 1], [], []>} : vector<4x128xf32>, vector<128x128xf32>, vector<4x128xf32> -> vector<4x128xf32>
    %cst_17 = arith.constant dense<0.000000e+00> : vector<4x128xf32>
    %26 = tpu.matmul %20, %7, %cst_17 {dimension_numbers = #tpu.dot_dimension_numbers<[1], [0], [0], [1], [0, 0, 1, 1], [], []>} : vector<4x128xf32>, vector<128x128xf32>, vector<4x128xf32> -> vector<4x128xf32>
    %cst_18 = arith.constant dense<0.000000e+00> : vector<4x128xf32>
    %27 = tpu.matmul %23, %7, %cst_18 {dimension_numbers = #tpu.dot_dimension_numbers<[1], [0], [0], [1], [0, 0, 1, 1], [], []>} : vector<4x128xf32>, vector<128x128xf32>, vector<4x128xf32> -> vector<4x128xf32>
    %cst_19 = arith.constant dense<0.000000e+00> : vector<32x128xf32>
    %28 = tpu.matmul %14, %12, %cst_19 {dimension_numbers = #tpu.dot_dimension_numbers<[1], [0], [0], [1], [0, 0, 1, 1], [], []>} : vector<32x128xf32>, vector<128x128xf32>, vector<32x128xf32> -> vector<32x128xf32>
    %cst_20 = arith.constant dense<0.000000e+00> : vector<4x128xf32>
    %29 = tpu.matmul %17, %12, %cst_20 {dimension_numbers = #tpu.dot_dimension_numbers<[1], [0], [0], [1], [0, 0, 1, 1], [], []>} : vector<4x128xf32>, vector<128x128xf32>, vector<4x128xf32> -> vector<4x128xf32>
    %cst_21 = arith.constant dense<0.000000e+00> : vector<4x128xf32>
    %30 = tpu.matmul %20, %12, %cst_21 {dimension_numbers = #tpu.dot_dimension_numbers<[1], [0], [0], [1], [0, 0, 1, 1], [], []>} : vector<4x128xf32>, vector<128x128xf32>, vector<4x128xf32> -> vector<4x128xf32>
    %cst_22 = arith.constant dense<0.000000e+00> : vector<4x128xf32>
    %31 = tpu.matmul %23, %12, %cst_22 {dimension_numbers = #tpu.dot_dimension_numbers<[1], [0], [0], [1], [0, 0, 1, 1], [], []>} : vector<4x128xf32>, vector<128x128xf32>, vector<4x128xf32> -> vector<4x128xf32>
    %c0_23 = arith.constant 0 : index
    %c0_24 = arith.constant 0 : index
    %32 = vector.load %arg8[%c0_23, %c0_24] : memref<32x128xbf16, #tpu.memory_space<vmem>>, vector<32x128xbf16>
    %33 = arith.extf %32 : vector<32x128xbf16> to vector<32x128xf32>
    %c0_25 = arith.constant 0 : index
    %c0_26 = arith.constant 0 : index
    %c0_27 = arith.constant 0 : index
    %34 = vector.load %arg9[%c0_25, %c0_26, %c0_27] : memref<3x4x128xbf16, #tpu.memory_space<vmem>>, vector<1x4x128xbf16>
    %35 = vector.shape_cast %34 : vector<1x4x128xbf16> to vector<4x128xbf16>
    %36 = arith.extf %35 : vector<4x128xbf16> to vector<4x128xf32>
    %c1_28 = arith.constant 1 : index
    %c0_29 = arith.constant 0 : index
    %c0_30 = arith.constant 0 : index
    %37 = vector.load %arg9[%c1_28, %c0_29, %c0_30] : memref<3x4x128xbf16, #tpu.memory_space<vmem>>, vector<1x4x128xbf16>
    %38 = vector.shape_cast %37 : vector<1x4x128xbf16> to vector<4x128xbf16>
    %39 = arith.extf %38 : vector<4x128xbf16> to vector<4x128xf32>
    %c2_31 = arith.constant 2 : index
    %c0_32 = arith.constant 0 : index
    %c0_33 = arith.constant 0 : index
    %40 = vector.load %arg9[%c2_31, %c0_32, %c0_33] : memref<3x4x128xbf16, #tpu.memory_space<vmem>>, vector<1x4x128xbf16>
    %41 = vector.shape_cast %40 : vector<1x4x128xbf16> to vector<4x128xbf16>
    %42 = arith.extf %41 : vector<4x128xbf16> to vector<4x128xf32>
    %cst_34 = arith.constant dense<0.000000e+00> : vector<32x128xf32>
    %43 = tpu.matmul %33, %7, %cst_34 {dimension_numbers = #tpu.dot_dimension_numbers<[1], [0], [0], [1], [0, 0, 1, 1], [], []>} : vector<32x128xf32>, vector<128x128xf32>, vector<32x128xf32> -> vector<32x128xf32>
    %cst_35 = arith.constant dense<0.000000e+00> : vector<4x128xf32>
    %44 = tpu.matmul %36, %7, %cst_35 {dimension_numbers = #tpu.dot_dimension_numbers<[1], [0], [0], [1], [0, 0, 1, 1], [], []>} : vector<4x128xf32>, vector<128x128xf32>, vector<4x128xf32> -> vector<4x128xf32>
    %cst_36 = arith.constant dense<0.000000e+00> : vector<4x128xf32>
    %45 = tpu.matmul %39, %7, %cst_36 {dimension_numbers = #tpu.dot_dimension_numbers<[1], [0], [0], [1], [0, 0, 1, 1], [], []>} : vector<4x128xf32>, vector<128x128xf32>, vector<4x128xf32> -> vector<4x128xf32>
    %cst_37 = arith.constant dense<0.000000e+00> : vector<4x128xf32>
    %46 = tpu.matmul %42, %7, %cst_37 {dimension_numbers = #tpu.dot_dimension_numbers<[1], [0], [0], [1], [0, 0, 1, 1], [], []>} : vector<4x128xf32>, vector<128x128xf32>, vector<4x128xf32> -> vector<4x128xf32>
    %cst_38 = arith.constant dense<0.000000e+00> : vector<32x128xf32>
    %47 = tpu.matmul %33, %12, %cst_38 {dimension_numbers = #tpu.dot_dimension_numbers<[1], [0], [0], [1], [0, 0, 1, 1], [], []>} : vector<32x128xf32>, vector<128x128xf32>, vector<32x128xf32> -> vector<32x128xf32>
    %cst_39 = arith.constant dense<0.000000e+00> : vector<4x128xf32>
    %48 = tpu.matmul %36, %12, %cst_39 {dimension_numbers = #tpu.dot_dimension_numbers<[1], [0], [0], [1], [0, 0, 1, 1], [], []>} : vector<4x128xf32>, vector<128x128xf32>, vector<4x128xf32> -> vector<4x128xf32>
    %cst_40 = arith.constant dense<0.000000e+00> : vector<4x128xf32>
    %49 = tpu.matmul %39, %12, %cst_40 {dimension_numbers = #tpu.dot_dimension_numbers<[1], [0], [0], [1], [0, 0, 1, 1], [], []>} : vector<4x128xf32>, vector<128x128xf32>, vector<4x128xf32> -> vector<4x128xf32>
    %cst_41 = arith.constant dense<0.000000e+00> : vector<4x128xf32>
    %50 = tpu.matmul %42, %12, %cst_41 {dimension_numbers = #tpu.dot_dimension_numbers<[1], [0], [0], [1], [0, 0, 1, 1], [], []>} : vector<4x128xf32>, vector<128x128xf32>, vector<4x128xf32> -> vector<4x128xf32>
    %51 = arith.cmpi slt, %0, %1 : vector<1x128xi32>
    %cst_42 = arith.constant 1.000000e+00 : f32
    %cst_43 = arith.constant 0.000000e+00 : f32
    %52 = vector.broadcast %cst_42 : f32 to vector<1x128xf32>
    %53 = vector.broadcast %cst_43 : f32 to vector<1x128xf32>
    %54 = arith.select %51, %52, %53 : vector<1x128xi1>, vector<1x128xf32>
    %cst_44 = arith.constant 1.000000e+00 : f32
    %55 = vector.broadcast %cst_44 : f32 to vector<1x128xf32>
    %56 = arith.subf %55, %54 : vector<1x128xf32>
    %57 = vector.broadcast %54 : vector<1x128xf32> to vector<32x128xf32>
    %58 = arith.mulf %24, %57 : vector<32x128xf32>
    %59 = vector.broadcast %56 : vector<1x128xf32> to vector<32x128xf32>
    %60 = arith.mulf %43, %59 : vector<32x128xf32>
    %61 = arith.addf %58, %60 : vector<32x128xf32>
    %62 = vector.broadcast %54 : vector<1x128xf32> to vector<32x128xf32>
    %63 = arith.mulf %28, %62 : vector<32x128xf32>
    %64 = vector.broadcast %56 : vector<1x128xf32> to vector<32x128xf32>
    %65 = arith.mulf %47, %64 : vector<32x128xf32>
    %66 = arith.addf %63, %65 : vector<32x128xf32>
    %67 = vector.broadcast %54 : vector<1x128xf32> to vector<4x128xf32>
    %68 = arith.mulf %25, %67 : vector<4x128xf32>
    %69 = vector.broadcast %56 : vector<1x128xf32> to vector<4x128xf32>
    %70 = arith.mulf %44, %69 : vector<4x128xf32>
    %71 = arith.addf %68, %70 : vector<4x128xf32>
    %72 = vector.broadcast %54 : vector<1x128xf32> to vector<4x128xf32>
    %73 = arith.mulf %26, %72 : vector<4x128xf32>
    %74 = vector.broadcast %56 : vector<1x128xf32> to vector<4x128xf32>
    %75 = arith.mulf %45, %74 : vector<4x128xf32>
    %76 = arith.addf %73, %75 : vector<4x128xf32>
    %77 = vector.broadcast %54 : vector<1x128xf32> to vector<4x128xf32>
    %78 = arith.mulf %27, %77 : vector<4x128xf32>
    %79 = vector.broadcast %56 : vector<1x128xf32> to vector<4x128xf32>
    %80 = arith.mulf %46, %79 : vector<4x128xf32>
    %81 = arith.addf %78, %80 : vector<4x128xf32>
    %82 = vector.broadcast %54 : vector<1x128xf32> to vector<4x128xf32>
    %83 = arith.mulf %29, %82 : vector<4x128xf32>
    %84 = vector.broadcast %56 : vector<1x128xf32> to vector<4x128xf32>
    %85 = arith.mulf %48, %84 : vector<4x128xf32>
    %86 = arith.addf %83, %85 : vector<4x128xf32>
    %87 = vector.broadcast %54 : vector<1x128xf32> to vector<4x128xf32>
    %88 = arith.mulf %30, %87 : vector<4x128xf32>
    %89 = vector.broadcast %56 : vector<1x128xf32> to vector<4x128xf32>
    %90 = arith.mulf %49, %89 : vector<4x128xf32>
    %91 = arith.addf %88, %90 : vector<4x128xf32>
    %92 = vector.broadcast %54 : vector<1x128xf32> to vector<4x128xf32>
    %93 = arith.mulf %31, %92 : vector<4x128xf32>
    %94 = vector.broadcast %56 : vector<1x128xf32> to vector<4x128xf32>
    %95 = arith.mulf %50, %94 : vector<4x128xf32>
    %96 = arith.addf %93, %95 : vector<4x128xf32>
    %c0_45 = arith.constant 0 : index
    %c0_46 = arith.constant 0 : index
    %97 = vector.load %arg1[%c0_45, %c0_46] : memref<36x128xbf16, #tpu.memory_space<vmem>>, vector<36x128xbf16>
    %98 = arith.extf %97 : vector<36x128xbf16> to vector<36x128xf32>
    %c0_47 = arith.constant 0 : index
    %c0_48 = arith.constant 0 : index
    %c0_49 = arith.constant 0 : index
    %99 = vector.load %arg2[%c0_47, %c0_48, %c0_49] : memref<3x2x128xbf16, #tpu.memory_space<vmem>>, vector<1x2x128xbf16>
    %100 = vector.shape_cast %99 : vector<1x2x128xbf16> to vector<2x128xbf16>
    %101 = arith.extf %100 : vector<2x128xbf16> to vector<2x128xf32>
    %c1_50 = arith.constant 1 : index
    %c0_51 = arith.constant 0 : index
    %c0_52 = arith.constant 0 : index
    %102 = vector.load %arg2[%c1_50, %c0_51, %c0_52] : memref<3x2x128xbf16, #tpu.memory_space<vmem>>, vector<1x2x128xbf16>
    %103 = vector.shape_cast %102 : vector<1x2x128xbf16> to vector<2x128xbf16>
    %104 = arith.extf %103 : vector<2x128xbf16> to vector<2x128xf32>
    %c2_53 = arith.constant 2 : index
    %c0_54 = arith.constant 0 : index
    %c0_55 = arith.constant 0 : index
    %105 = vector.load %arg2[%c2_53, %c0_54, %c0_55] : memref<3x2x128xbf16, #tpu.memory_space<vmem>>, vector<1x2x128xbf16>
    %106 = vector.shape_cast %105 : vector<1x2x128xbf16> to vector<2x128xbf16>
    %107 = arith.extf %106 : vector<2x128xbf16> to vector<2x128xf32>
    %c0_56 = arith.constant 0 : index
    %c0_57 = arith.constant 0 : index
    %108 = vector.load %arg13[%c0_56, %c0_57] : memref<32x32xf32, #tpu.memory_space<vmem>>, vector<32x32xf32>
    %c0_58 = arith.constant 0 : index
    %c0_59 = arith.constant 0 : index
    %109 = vector.load %arg14[%c0_58, %c0_59] : memref<32x36xf32, #tpu.memory_space<vmem>>, vector<32x36xf32>
    %c0_60 = arith.constant 0 : index
    %c0_61 = arith.constant 0 : index
    %110 = vector.load %arg15[%c0_60, %c0_61] : memref<32x32xf32, #tpu.memory_space<vmem>>, vector<32x32xf32>
    %c0_62 = arith.constant 0 : index
    %c0_63 = arith.constant 0 : index
    %111 = vector.load %arg10[%c0_62, %c0_63] : memref<10x4xf32, #tpu.memory_space<vmem>>, vector<10x4xf32>
    %c0_64 = arith.constant 0 : index
    %c0_65 = arith.constant 0 : index
    %112 = vector.load %arg11[%c0_64, %c0_65] : memref<10x2xf32, #tpu.memory_space<vmem>>, vector<10x2xf32>
    %c0_66 = arith.constant 0 : index
    %c0_67 = arith.constant 0 : index
    %113 = vector.load %arg12[%c0_66, %c0_67] : memref<10x4xf32, #tpu.memory_space<vmem>>, vector<10x4xf32>
    %c0_68 = arith.constant 0 : index
    %c0_69 = arith.constant 0 : index
    %114 = vector.load %arg16[%c0_68, %c0_69] : memref<32x10xf32, #tpu.memory_space<vmem>>, vector<32x10xf32>
    %c0_70 = arith.constant 0 : index
    %c0_71 = arith.constant 0 : index
    %115 = vector.load %arg17[%c0_70, %c0_71] : memref<32x1xf32, #tpu.memory_space<vmem>>, vector<32x1xf32>
    %c0_72 = arith.constant 0 : index
    %c0_73 = arith.constant 0 : index
    %116 = vector.load %arg18[%c0_72, %c0_73] : memref<4x10xf32, #tpu.memory_space<vmem>>, vector<4x10xf32>
    %cst_74 = arith.constant dense<0.000000e+00> : vector<10x128xf32>
    %117 = tpu.matmul %111, %71, %cst_74 {dimension_numbers = #tpu.dot_dimension_numbers<[1], [0], [0], [1], [0, 0, 1, 1], [], []>} : vector<10x4xf32>, vector<4x128xf32>, vector<10x128xf32> -> vector<10x128xf32>
    %cst_75 = arith.constant dense<0.000000e+00> : vector<10x128xf32>
    %118 = tpu.matmul %111, %76, %cst_75 {dimension_numbers = #tpu.dot_dimension_numbers<[1], [0], [0], [1], [0, 0, 1, 1], [], []>} : vector<10x4xf32>, vector<4x128xf32>, vector<10x128xf32> -> vector<10x128xf32>
    %cst_76 = arith.constant dense<0.000000e+00> : vector<10x128xf32>
    %119 = tpu.matmul %111, %81, %cst_76 {dimension_numbers = #tpu.dot_dimension_numbers<[1], [0], [0], [1], [0, 0, 1, 1], [], []>} : vector<10x4xf32>, vector<4x128xf32>, vector<10x128xf32> -> vector<10x128xf32>
    %cst_77 = arith.constant dense<0.000000e+00> : vector<10x128xf32>
    %120 = tpu.matmul %112, %101, %cst_77 {dimension_numbers = #tpu.dot_dimension_numbers<[1], [0], [0], [1], [0, 0, 1, 1], [], []>} : vector<10x2xf32>, vector<2x128xf32>, vector<10x128xf32> -> vector<10x128xf32>
    %121 = arith.addf %117, %120 : vector<10x128xf32>
    %cst_78 = arith.constant dense<0.000000e+00> : vector<10x128xf32>
    %122 = tpu.matmul %112, %104, %cst_78 {dimension_numbers = #tpu.dot_dimension_numbers<[1], [0], [0], [1], [0, 0, 1, 1], [], []>} : vector<10x2xf32>, vector<2x128xf32>, vector<10x128xf32> -> vector<10x128xf32>
    %123 = arith.addf %118, %122 : vector<10x128xf32>
    %cst_79 = arith.constant dense<0.000000e+00> : vector<10x128xf32>
    %124 = tpu.matmul %112, %107, %cst_79 {dimension_numbers = #tpu.dot_dimension_numbers<[1], [0], [0], [1], [0, 0, 1, 1], [], []>} : vector<10x2xf32>, vector<2x128xf32>, vector<10x128xf32> -> vector<10x128xf32>
    %125 = arith.addf %119, %124 : vector<10x128xf32>
    %cst_80 = arith.constant dense<0.000000e+00> : vector<10x128xf32>
    %126 = tpu.matmul %113, %86, %cst_80 {dimension_numbers = #tpu.dot_dimension_numbers<[1], [0], [0], [1], [0, 0, 1, 1], [], []>} : vector<10x4xf32>, vector<4x128xf32>, vector<10x128xf32> -> vector<10x128xf32>
    %127 = arith.addf %121, %126 : vector<10x128xf32>
    %cst_81 = arith.constant dense<0.000000e+00> : vector<10x128xf32>
    %128 = tpu.matmul %113, %91, %cst_81 {dimension_numbers = #tpu.dot_dimension_numbers<[1], [0], [0], [1], [0, 0, 1, 1], [], []>} : vector<10x4xf32>, vector<4x128xf32>, vector<10x128xf32> -> vector<10x128xf32>
    %129 = arith.addf %123, %128 : vector<10x128xf32>
    %cst_82 = arith.constant dense<0.000000e+00> : vector<10x128xf32>
    %130 = tpu.matmul %113, %96, %cst_82 {dimension_numbers = #tpu.dot_dimension_numbers<[1], [0], [0], [1], [0, 0, 1, 1], [], []>} : vector<10x4xf32>, vector<4x128xf32>, vector<10x128xf32> -> vector<10x128xf32>
    %131 = arith.addf %125, %130 : vector<10x128xf32>
    %132 = arith.mulf %127, %127 : vector<10x128xf32>
    %133 = arith.mulf %129, %129 : vector<10x128xf32>
    %134 = arith.addf %132, %133 : vector<10x128xf32>
    %135 = arith.mulf %131, %131 : vector<10x128xf32>
    %136 = arith.addf %134, %135 : vector<10x128xf32>
    %cst_83 = arith.constant 9.99999993E-9 : f32
    %137 = vector.broadcast %cst_83 : f32 to vector<10x128xf32>
    %138 = arith.maximumf %136, %137 : vector<10x128xf32>
    %139 = math.sqrt %138 : vector<10x128xf32>
    %cst_84 = arith.constant dense<0.000000e+00> : vector<32x128xf32>
    %140 = tpu.matmul %114, %139, %cst_84 {dimension_numbers = #tpu.dot_dimension_numbers<[1], [0], [0], [1], [0, 0, 1, 1], [], []>} : vector<32x10xf32>, vector<10x128xf32>, vector<32x128xf32> -> vector<32x128xf32>
    %141 = vector.broadcast %115 : vector<32x1xf32> to vector<32x128xf32>
    %142 = arith.addf %140, %141 : vector<32x128xf32>
    %cst_85 = arith.constant dense<0.000000e+00> : vector<32x128xf32>
    %143 = tpu.matmul %108, %61, %cst_85 {dimension_numbers = #tpu.dot_dimension_numbers<[1], [0], [0], [1], [0, 0, 1, 1], [], []>} : vector<32x32xf32>, vector<32x128xf32>, vector<32x128xf32> -> vector<32x128xf32>
    %144 = arith.addf %142, %143 : vector<32x128xf32>
    %cst_86 = arith.constant dense<0.000000e+00> : vector<32x128xf32>
    %145 = tpu.matmul %109, %98, %cst_86 {dimension_numbers = #tpu.dot_dimension_numbers<[1], [0], [0], [1], [0, 0, 1, 1], [], []>} : vector<32x36xf32>, vector<36x128xf32>, vector<32x128xf32> -> vector<32x128xf32>
    %146 = arith.addf %144, %145 : vector<32x128xf32>
    %cst_87 = arith.constant dense<0.000000e+00> : vector<32x128xf32>
    %147 = tpu.matmul %110, %66, %cst_87 {dimension_numbers = #tpu.dot_dimension_numbers<[1], [0], [0], [1], [0, 0, 1, 1], [], []>} : vector<32x32xf32>, vector<32x128xf32>, vector<32x128xf32> -> vector<32x128xf32>
    %148 = arith.addf %146, %147 : vector<32x128xf32>
    %cst_88 = arith.constant 0.000000e+00 : f32
    %149 = vector.broadcast %cst_88 : f32 to vector<32x128xf32>
    %150 = arith.maximumf %148, %149 : vector<32x128xf32>
    %cst_89 = arith.constant dense<0.000000e+00> : vector<4x128xf32>
    %151 = tpu.matmul %116, %127, %cst_89 {dimension_numbers = #tpu.dot_dimension_numbers<[1], [0], [0], [1], [0, 0, 1, 1], [], []>} : vector<4x10xf32>, vector<10x128xf32>, vector<4x128xf32> -> vector<4x128xf32>
    %cst_90 = arith.constant dense<0.000000e+00> : vector<4x128xf32>
    %152 = tpu.matmul %116, %129, %cst_90 {dimension_numbers = #tpu.dot_dimension_numbers<[1], [0], [0], [1], [0, 0, 1, 1], [], []>} : vector<4x10xf32>, vector<10x128xf32>, vector<4x128xf32> -> vector<4x128xf32>
    %cst_91 = arith.constant dense<0.000000e+00> : vector<4x128xf32>
    %153 = tpu.matmul %116, %131, %cst_91 {dimension_numbers = #tpu.dot_dimension_numbers<[1], [0], [0], [1], [0, 0, 1, 1], [], []>} : vector<4x10xf32>, vector<10x128xf32>, vector<4x128xf32> -> vector<4x128xf32>
    %154 = arith.mulf %151, %151 : vector<4x128xf32>
    %155 = arith.mulf %152, %152 : vector<4x128xf32>
    %156 = arith.addf %154, %155 : vector<4x128xf32>
    %157 = arith.mulf %153, %153 : vector<4x128xf32>
    %158 = arith.addf %156, %157 : vector<4x128xf32>
    %cst_92 = arith.constant 9.99999993E-9 : f32
    %159 = vector.broadcast %cst_92 : f32 to vector<4x128xf32>
    %160 = arith.maximumf %158, %159 : vector<4x128xf32>
    %161 = math.sqrt %160 : vector<4x128xf32>
    %162 = arith.negf %161 : vector<4x128xf32>
    %163 = math.exp %162 : vector<4x128xf32>
    %cst_93 = arith.constant 1.000000e+00 : f32
    %164 = vector.broadcast %cst_93 : f32 to vector<4x128xf32>
    %165 = arith.addf %164, %163 : vector<4x128xf32>
    %166 = arith.divf %164, %165 : vector<4x128xf32>
    %167 = arith.mulf %151, %166 : vector<4x128xf32>
    %168 = arith.mulf %152, %166 : vector<4x128xf32>
    %169 = arith.mulf %153, %166 : vector<4x128xf32>
    %c0_94 = arith.constant 0 : index
    %c0_95 = arith.constant 0 : index
    %170 = vector.load %arg20[%c0_94, %c0_95] : memref<32x32xf32, #tpu.memory_space<vmem>>, vector<32x32xf32>
    %c0_96 = arith.constant 0 : index
    %c0_97 = arith.constant 0 : index
    %171 = vector.load %arg19[%c0_96, %c0_97] : memref<4x4xf32, #tpu.memory_space<vmem>>, vector<4x4xf32>
    %c0_98 = arith.constant 0 : index
    %c0_99 = arith.constant 0 : index
    %172 = vector.load %arg21[%c0_98, %c0_99] : memref<32x4xf32, #tpu.memory_space<vmem>>, vector<32x4xf32>
    %c0_100 = arith.constant 0 : index
    %c0_101 = arith.constant 0 : index
    %173 = vector.load %arg22[%c0_100, %c0_101] : memref<32x1xf32, #tpu.memory_space<vmem>>, vector<32x1xf32>
    %c0_102 = arith.constant 0 : index
    %c0_103 = arith.constant 0 : index
    %174 = vector.load %arg23[%c0_102, %c0_103] : memref<4x4xf32, #tpu.memory_space<vmem>>, vector<4x4xf32>
    %cst_104 = arith.constant dense<0.000000e+00> : vector<4x128xf32>
    %175 = tpu.matmul %171, %167, %cst_104 {dimension_numbers = #tpu.dot_dimension_numbers<[1], [0], [0], [1], [0, 0, 1, 1], [], []>} : vector<4x4xf32>, vector<4x128xf32>, vector<4x128xf32> -> vector<4x128xf32>
    %cst_105 = arith.constant dense<0.000000e+00> : vector<4x128xf32>
    %176 = tpu.matmul %171, %168, %cst_105 {dimension_numbers = #tpu.dot_dimension_numbers<[1], [0], [0], [1], [0, 0, 1, 1], [], []>} : vector<4x4xf32>, vector<4x128xf32>, vector<4x128xf32> -> vector<4x128xf32>
    %cst_106 = arith.constant dense<0.000000e+00> : vector<4x128xf32>
    %177 = tpu.matmul %171, %169, %cst_106 {dimension_numbers = #tpu.dot_dimension_numbers<[1], [0], [0], [1], [0, 0, 1, 1], [], []>} : vector<4x4xf32>, vector<4x128xf32>, vector<4x128xf32> -> vector<4x128xf32>
    %178 = arith.mulf %175, %175 : vector<4x128xf32>
    %179 = arith.mulf %176, %176 : vector<4x128xf32>
    %180 = arith.addf %178, %179 : vector<4x128xf32>
    %181 = arith.mulf %177, %177 : vector<4x128xf32>
    %182 = arith.addf %180, %181 : vector<4x128xf32>
    %cst_107 = arith.constant 9.99999993E-9 : f32
    %183 = vector.broadcast %cst_107 : f32 to vector<4x128xf32>
    %184 = arith.maximumf %182, %183 : vector<4x128xf32>
    %185 = math.sqrt %184 : vector<4x128xf32>
    %cst_108 = arith.constant dense<0.000000e+00> : vector<32x128xf32>
    %186 = tpu.matmul %172, %185, %cst_108 {dimension_numbers = #tpu.dot_dimension_numbers<[1], [0], [0], [1], [0, 0, 1, 1], [], []>} : vector<32x4xf32>, vector<4x128xf32>, vector<32x128xf32> -> vector<32x128xf32>
    %187 = vector.broadcast %173 : vector<32x1xf32> to vector<32x128xf32>
    %188 = arith.addf %186, %187 : vector<32x128xf32>
    %cst_109 = arith.constant dense<0.000000e+00> : vector<32x128xf32>
    %189 = tpu.matmul %170, %150, %cst_109 {dimension_numbers = #tpu.dot_dimension_numbers<[1], [0], [0], [1], [0, 0, 1, 1], [], []>} : vector<32x32xf32>, vector<32x128xf32>, vector<32x128xf32> -> vector<32x128xf32>
    %190 = arith.addf %188, %189 : vector<32x128xf32>
    %cst_110 = arith.constant 0.000000e+00 : f32
    %191 = vector.broadcast %cst_110 : f32 to vector<32x128xf32>
    %192 = arith.maximumf %190, %191 : vector<32x128xf32>
    %cst_111 = arith.constant dense<0.000000e+00> : vector<4x128xf32>
    %193 = tpu.matmul %174, %175, %cst_111 {dimension_numbers = #tpu.dot_dimension_numbers<[1], [0], [0], [1], [0, 0, 1, 1], [], []>} : vector<4x4xf32>, vector<4x128xf32>, vector<4x128xf32> -> vector<4x128xf32>
    %cst_112 = arith.constant dense<0.000000e+00> : vector<4x128xf32>
    %194 = tpu.matmul %174, %176, %cst_112 {dimension_numbers = #tpu.dot_dimension_numbers<[1], [0], [0], [1], [0, 0, 1, 1], [], []>} : vector<4x4xf32>, vector<4x128xf32>, vector<4x128xf32> -> vector<4x128xf32>
    %cst_113 = arith.constant dense<0.000000e+00> : vector<4x128xf32>
    %195 = tpu.matmul %174, %177, %cst_113 {dimension_numbers = #tpu.dot_dimension_numbers<[1], [0], [0], [1], [0, 0, 1, 1], [], []>} : vector<4x4xf32>, vector<4x128xf32>, vector<4x128xf32> -> vector<4x128xf32>
    %196 = arith.mulf %193, %193 : vector<4x128xf32>
    %197 = arith.mulf %194, %194 : vector<4x128xf32>
    %198 = arith.addf %196, %197 : vector<4x128xf32>
    %199 = arith.mulf %195, %195 : vector<4x128xf32>
    %200 = arith.addf %198, %199 : vector<4x128xf32>
    %cst_114 = arith.constant 9.99999993E-9 : f32
    %201 = vector.broadcast %cst_114 : f32 to vector<4x128xf32>
    %202 = arith.maximumf %200, %201 : vector<4x128xf32>
    %203 = math.sqrt %202 : vector<4x128xf32>
    %204 = arith.negf %203 : vector<4x128xf32>
    %205 = math.exp %204 : vector<4x128xf32>
    %cst_115 = arith.constant 1.000000e+00 : f32
    %206 = vector.broadcast %cst_115 : f32 to vector<4x128xf32>
    %207 = arith.addf %206, %205 : vector<4x128xf32>
    %208 = arith.divf %206, %207 : vector<4x128xf32>
    %209 = arith.mulf %193, %208 : vector<4x128xf32>
    %210 = arith.mulf %194, %208 : vector<4x128xf32>
    %211 = arith.mulf %195, %208 : vector<4x128xf32>
    %c0_116 = arith.constant 0 : index
    %c0_117 = arith.constant 0 : index
    %212 = vector.load %arg25[%c0_116, %c0_117] : memref<32x32xf32, #tpu.memory_space<vmem>>, vector<32x32xf32>
    %c0_118 = arith.constant 0 : index
    %c0_119 = arith.constant 0 : index
    %213 = vector.load %arg24[%c0_118, %c0_119] : memref<4x4xf32, #tpu.memory_space<vmem>>, vector<4x4xf32>
    %c0_120 = arith.constant 0 : index
    %c0_121 = arith.constant 0 : index
    %214 = vector.load %arg26[%c0_120, %c0_121] : memref<32x4xf32, #tpu.memory_space<vmem>>, vector<32x4xf32>
    %c0_122 = arith.constant 0 : index
    %c0_123 = arith.constant 0 : index
    %215 = vector.load %arg27[%c0_122, %c0_123] : memref<32x1xf32, #tpu.memory_space<vmem>>, vector<32x1xf32>
    %c0_124 = arith.constant 0 : index
    %c0_125 = arith.constant 0 : index
    %216 = vector.load %arg28[%c0_124, %c0_125] : memref<4x4xf32, #tpu.memory_space<vmem>>, vector<4x4xf32>
    %cst_126 = arith.constant dense<0.000000e+00> : vector<4x128xf32>
    %217 = tpu.matmul %213, %209, %cst_126 {dimension_numbers = #tpu.dot_dimension_numbers<[1], [0], [0], [1], [0, 0, 1, 1], [], []>} : vector<4x4xf32>, vector<4x128xf32>, vector<4x128xf32> -> vector<4x128xf32>
    %cst_127 = arith.constant dense<0.000000e+00> : vector<4x128xf32>
    %218 = tpu.matmul %213, %210, %cst_127 {dimension_numbers = #tpu.dot_dimension_numbers<[1], [0], [0], [1], [0, 0, 1, 1], [], []>} : vector<4x4xf32>, vector<4x128xf32>, vector<4x128xf32> -> vector<4x128xf32>
    %cst_128 = arith.constant dense<0.000000e+00> : vector<4x128xf32>
    %219 = tpu.matmul %213, %211, %cst_128 {dimension_numbers = #tpu.dot_dimension_numbers<[1], [0], [0], [1], [0, 0, 1, 1], [], []>} : vector<4x4xf32>, vector<4x128xf32>, vector<4x128xf32> -> vector<4x128xf32>
    %220 = arith.mulf %217, %217 : vector<4x128xf32>
    %221 = arith.mulf %218, %218 : vector<4x128xf32>
    %222 = arith.addf %220, %221 : vector<4x128xf32>
    %223 = arith.mulf %219, %219 : vector<4x128xf32>
    %224 = arith.addf %222, %223 : vector<4x128xf32>
    %cst_129 = arith.constant 9.99999993E-9 : f32
    %225 = vector.broadcast %cst_129 : f32 to vector<4x128xf32>
    %226 = arith.maximumf %224, %225 : vector<4x128xf32>
    %227 = math.sqrt %226 : vector<4x128xf32>
    %cst_130 = arith.constant dense<0.000000e+00> : vector<32x128xf32>
    %228 = tpu.matmul %214, %227, %cst_130 {dimension_numbers = #tpu.dot_dimension_numbers<[1], [0], [0], [1], [0, 0, 1, 1], [], []>} : vector<32x4xf32>, vector<4x128xf32>, vector<32x128xf32> -> vector<32x128xf32>
    %229 = vector.broadcast %215 : vector<32x1xf32> to vector<32x128xf32>
    %230 = arith.addf %228, %229 : vector<32x128xf32>
    %cst_131 = arith.constant dense<0.000000e+00> : vector<32x128xf32>
    %231 = tpu.matmul %212, %192, %cst_131 {dimension_numbers = #tpu.dot_dimension_numbers<[1], [0], [0], [1], [0, 0, 1, 1], [], []>} : vector<32x32xf32>, vector<32x128xf32>, vector<32x128xf32> -> vector<32x128xf32>
    %232 = arith.addf %230, %231 : vector<32x128xf32>
    %cst_132 = arith.constant dense<0.000000e+00> : vector<4x128xf32>
    %233 = tpu.matmul %216, %217, %cst_132 {dimension_numbers = #tpu.dot_dimension_numbers<[1], [0], [0], [1], [0, 0, 1, 1], [], []>} : vector<4x4xf32>, vector<4x128xf32>, vector<4x128xf32> -> vector<4x128xf32>
    %cst_133 = arith.constant dense<0.000000e+00> : vector<4x128xf32>
    %234 = tpu.matmul %216, %218, %cst_133 {dimension_numbers = #tpu.dot_dimension_numbers<[1], [0], [0], [1], [0, 0, 1, 1], [], []>} : vector<4x4xf32>, vector<4x128xf32>, vector<4x128xf32> -> vector<4x128xf32>
    %cst_134 = arith.constant dense<0.000000e+00> : vector<4x128xf32>
    %235 = tpu.matmul %216, %219, %cst_134 {dimension_numbers = #tpu.dot_dimension_numbers<[1], [0], [0], [1], [0, 0, 1, 1], [], []>} : vector<4x4xf32>, vector<4x128xf32>, vector<4x128xf32> -> vector<4x128xf32>
    %c0_135 = arith.constant 0 : index
    %c0_136 = arith.constant 0 : index
    %236 = vector.load %arg5[%c0_135, %c0_136] : memref<1x128xf32, #tpu.memory_space<vmem>>, vector<1x128xf32>
    %237 = vector.broadcast %236 : vector<1x128xf32> to vector<32x128xf32>
    %238 = arith.mulf %232, %237 : vector<32x128xf32>
    %239 = arith.truncf %238 : vector<32x128xf32> to vector<32x128xbf16>
    %c0_137 = arith.constant 0 : index
    %c0_138 = arith.constant 0 : index
    %240 = vector.load %arg29[%c0_137, %c0_138] : memref<32x128xbf16, #tpu.memory_space<vmem>>, vector<32x128xbf16>
    tpu.vector_store %arg29[%c0_137, %c0_138], %239 {strides = array<i32>} : memref<32x128xbf16, #tpu.memory_space<vmem>>, vector<32x128xbf16>,
    %241 = vector.broadcast %236 : vector<1x128xf32> to vector<4x128xf32>
    %242 = arith.mulf %233, %241 : vector<4x128xf32>
    %243 = arith.truncf %242 : vector<4x128xf32> to vector<4x128xbf16>
    %c0_139 = arith.constant 0 : index
    %c0_140 = arith.constant 0 : index
    %c0_141 = arith.constant 0 : index
    %244 = vector.load %arg30[%c0_139, %c0_140, %c0_141] : memref<3x4x128xbf16, #tpu.memory_space<vmem>>, vector<1x4x128xbf16>
    %245 = vector.shape_cast %244 : vector<1x4x128xbf16> to vector<4x128xbf16>
    %246 = vector.shape_cast %243 : vector<4x128xbf16> to vector<1x4x128xbf16>
    tpu.vector_store %arg30[%c0_139, %c0_140, %c0_141], %246 {strides = array<i32>} : memref<3x4x128xbf16, #tpu.memory_space<vmem>>, vector<1x4x128xbf16>,
    %247 = vector.broadcast %236 : vector<1x128xf32> to vector<4x128xf32>
    %248 = arith.mulf %234, %247 : vector<4x128xf32>
    %249 = arith.truncf %248 : vector<4x128xf32> to vector<4x128xbf16>
    %c1_142 = arith.constant 1 : index
    %c0_143 = arith.constant 0 : index
    %c0_144 = arith.constant 0 : index
    %250 = vector.load %arg30[%c1_142, %c0_143, %c0_144] : memref<3x4x128xbf16, #tpu.memory_space<vmem>>, vector<1x4x128xbf16>
    %251 = vector.shape_cast %250 : vector<1x4x128xbf16> to vector<4x128xbf16>
    %252 = vector.shape_cast %249 : vector<4x128xbf16> to vector<1x4x128xbf16>
    tpu.vector_store %arg30[%c1_142, %c0_143, %c0_144], %252 {strides = array<i32>} : memref<3x4x128xbf16, #tpu.memory_space<vmem>>, vector<1x4x128xbf16>,
    %253 = vector.broadcast %236 : vector<1x128xf32> to vector<4x128xf32>
    %254 = arith.mulf %235, %253 : vector<4x128xf32>
    %255 = arith.truncf %254 : vector<4x128xf32> to vector<4x128xbf16>
    %c2_145 = arith.constant 2 : index
    %c0_146 = arith.constant 0 : index
    %c0_147 = arith.constant 0 : index
    %256 = vector.load %arg30[%c2_145, %c0_146, %c0_147] : memref<3x4x128xbf16, #tpu.memory_space<vmem>>, vector<1x4x128xbf16>
    %257 = vector.shape_cast %256 : vector<1x4x128xbf16> to vector<4x128xbf16>
    %258 = vector.shape_cast %255 : vector<4x128xbf16> to vector<1x4x128xbf16>
    tpu.vector_store %arg30[%c2_145, %c0_146, %c0_147], %258 {strides = array<i32>} : memref<3x4x128xbf16, #tpu.memory_space<vmem>>, vector<1x4x128xbf16>,
    return
  }
  func.func @transform_0(%arg0: i32) -> (i32, i32) {
    %c0_i32 = arith.constant 0 : i32
    %c0_i32_0 = arith.constant 0 : i32
    return %c0_i32, %arg0 : i32, i32
  }
  func.func @transform_1(%arg0: i32) -> (i32, i32, i32) {
    %c0_i32 = arith.constant 0 : i32
    %c0_i32_0 = arith.constant 0 : i32
    %c0_i32_1 = arith.constant 0 : i32
    return %c0_i32, %c0_i32_0, %arg0 : i32, i32, i32
  }
  func.func @transform_2(%arg0: i32) -> (i32, i32) {
    %c0_i32 = arith.constant 0 : i32
    %c0_i32_0 = arith.constant 0 : i32
    return %c0_i32, %arg0 : i32, i32
  }
  func.func @transform_3(%arg0: i32) -> (i32, i32) {
    %c0_i32 = arith.constant 0 : i32
    %c0_i32_0 = arith.constant 0 : i32
    return %c0_i32, %arg0 : i32, i32
  }
  func.func @transform_4(%arg0: i32) -> (i32, i32) {
    %c0_i32 = arith.constant 0 : i32
    %c0_i32_0 = arith.constant 0 : i32
    return %c0_i32, %arg0 : i32, i32
  }
  func.func @transform_5(%arg0: i32) -> (i32, i32) {
    %c0_i32 = arith.constant 0 : i32
    %c0_i32_0 = arith.constant 0 : i32
    %c0_i32_1 = arith.constant 0 : i32
    return %c0_i32, %c0_i32_0 : i32, i32
  }
  func.func @transform_6(%arg0: i32) -> (i32, i32, i32) {
    %c0_i32 = arith.constant 0 : i32
    %c0_i32_0 = arith.constant 0 : i32
    %c0_i32_1 = arith.constant 0 : i32
    %c0_i32_2 = arith.constant 0 : i32
    return %c0_i32, %c0_i32_0, %c0_i32_1 : i32, i32, i32
  }
  func.func @transform_7(%arg0: i32) -> (i32, i32) {
    %c0_i32 = arith.constant 0 : i32
    %c0_i32_0 = arith.constant 0 : i32
    %c0_i32_1 = arith.constant 0 : i32
    return %c0_i32, %c0_i32_0 : i32, i32
  }
  func.func @transform_8(%arg0: i32) -> (i32, i32, i32) {
    %c0_i32 = arith.constant 0 : i32
    %c0_i32_0 = arith.constant 0 : i32
    %c0_i32_1 = arith.constant 0 : i32
    %c0_i32_2 = arith.constant 0 : i32
    return %c0_i32, %c0_i32_0, %c0_i32_1 : i32, i32, i32
  }
  func.func @transform_9(%arg0: i32) -> (i32, i32) {
    %c0_i32 = arith.constant 0 : i32
    %c0_i32_0 = arith.constant 0 : i32
    %c0_i32_1 = arith.constant 0 : i32
    return %c0_i32, %c0_i32_0 : i32, i32
  }
  func.func @transform_10(%arg0: i32) -> (i32, i32) {
    %c0_i32 = arith.constant 0 : i32
    %c0_i32_0 = arith.constant 0 : i32
    %c0_i32_1 = arith.constant 0 : i32
    return %c0_i32, %c0_i32_0 : i32, i32
  }
  func.func @transform_11(%arg0: i32) -> (i32, i32) {
    %c0_i32 = arith.constant 0 : i32
    %c0_i32_0 = arith.constant 0 : i32
    %c0_i32_1 = arith.constant 0 : i32
    return %c0_i32, %c0_i32_0 : i32, i32
  }
  func.func @transform_12(%arg0: i32) -> (i32, i32) {
    %c0_i32 = arith.constant 0 : i32
    %c0_i32_0 = arith.constant 0 : i32
    %c0_i32_1 = arith.constant 0 : i32
    return %c0_i32, %c0_i32_0 : i32, i32
  }
  func.func @transform_13(%arg0: i32) -> (i32, i32) {
    %c0_i32 = arith.constant 0 : i32
    %c0_i32_0 = arith.constant 0 : i32
    %c0_i32_1 = arith.constant 0 : i32
    return %c0_i32, %c0_i32_0 : i32, i32
  }
  func.func @transform_14(%arg0: i32) -> (i32, i32) {
    %c0_i32 = arith.constant 0 : i32
    %c0_i32_0 = arith.constant 0 : i32
    %c0_i32_1 = arith.constant 0 : i32
    return %c0_i32, %c0_i32_0 : i32, i32
  }
  func.func @transform_15(%arg0: i32) -> (i32, i32) {
    %c0_i32 = arith.constant 0 : i32
    %c0_i32_0 = arith.constant 0 : i32
    %c0_i32_1 = arith.constant 0 : i32
    return %c0_i32, %c0_i32_0 : i32, i32
  }
  func.func @transform_16(%arg0: i32) -> (i32, i32) {
    %c0_i32 = arith.constant 0 : i32
    %c0_i32_0 = arith.constant 0 : i32
    %c0_i32_1 = arith.constant 0 : i32
    return %c0_i32, %c0_i32_0 : i32, i32
  }
  func.func @transform_17(%arg0: i32) -> (i32, i32) {
    %c0_i32 = arith.constant 0 : i32
    %c0_i32_0 = arith.constant 0 : i32
    %c0_i32_1 = arith.constant 0 : i32
    return %c0_i32, %c0_i32_0 : i32, i32
  }
  func.func @transform_18(%arg0: i32) -> (i32, i32) {
    %c0_i32 = arith.constant 0 : i32
    %c0_i32_0 = arith.constant 0 : i32
    %c0_i32_1 = arith.constant 0 : i32
    return %c0_i32, %c0_i32_0 : i32, i32
  }
  func.func @transform_19(%arg0: i32) -> (i32, i32) {
    %c0_i32 = arith.constant 0 : i32
    %c0_i32_0 = arith.constant 0 : i32
    %c0_i32_1 = arith.constant 0 : i32
    return %c0_i32, %c0_i32_0 : i32, i32
  }
  func.func @transform_20(%arg0: i32) -> (i32, i32) {
    %c0_i32 = arith.constant 0 : i32
    %c0_i32_0 = arith.constant 0 : i32
    %c0_i32_1 = arith.constant 0 : i32
    return %c0_i32, %c0_i32_0 : i32, i32
  }
  func.func @transform_21(%arg0: i32) -> (i32, i32) {
    %c0_i32 = arith.constant 0 : i32
    %c0_i32_0 = arith.constant 0 : i32
    %c0_i32_1 = arith.constant 0 : i32
    return %c0_i32, %c0_i32_0 : i32, i32
  }
  func.func @transform_22(%arg0: i32) -> (i32, i32) {
    %c0_i32 = arith.constant 0 : i32
    %c0_i32_0 = arith.constant 0 : i32
    %c0_i32_1 = arith.constant 0 : i32
    return %c0_i32, %c0_i32_0 : i32, i32
  }
  func.func @transform_23(%arg0: i32) -> (i32, i32) {
    %c0_i32 = arith.constant 0 : i32
    %c0_i32_0 = arith.constant 0 : i32
    %c0_i32_1 = arith.constant 0 : i32
    return %c0_i32, %c0_i32_0 : i32, i32
  }
  func.func @transform_24(%arg0: i32) -> (i32, i32) {
    %c0_i32 = arith.constant 0 : i32
    %c0_i32_0 = arith.constant 0 : i32
    %c0_i32_1 = arith.constant 0 : i32
    return %c0_i32, %c0_i32_0 : i32, i32
  }
  func.func @transform_25(%arg0: i32) -> (i32, i32) {
    %c0_i32 = arith.constant 0 : i32
    %c0_i32_0 = arith.constant 0 : i32
    %c0_i32_1 = arith.constant 0 : i32
    return %c0_i32, %c0_i32_0 : i32, i32
  }
  func.func @transform_26(%arg0: i32) -> (i32, i32) {
    %c0_i32 = arith.constant 0 : i32
    %c0_i32_0 = arith.constant 0 : i32
    %c0_i32_1 = arith.constant 0 : i32
    return %c0_i32, %c0_i32_0 : i32, i32
  }
  func.func @transform_27(%arg0: i32) -> (i32, i32) {
    %c0_i32 = arith.constant 0 : i32
    %c0_i32_0 = arith.constant 0 : i32
    %c0_i32_1 = arith.constant 0 : i32
    return %c0_i32, %c0_i32_0 : i32, i32
  }
  func.func @transform_28(%arg0: i32) -> (i32, i32) {
    %c0_i32 = arith.constant 0 : i32
    %c0_i32_0 = arith.constant 0 : i32
    return %c0_i32, %arg0 : i32, i32
  }
  func.func @transform_29(%arg0: i32) -> (i32, i32, i32) {
    %c0_i32 = arith.constant 0 : i32
    %c0_i32_0 = arith.constant 0 : i32
    %c0_i32_1 = arith.constant 0 : i32
    return %c0_i32, %c0_i32_0, %arg0 : i32, i32, i32
  }
}

</mosaic_0001>

<bundles_post_ra>
// kernel: cpd_forward.11
= control target key start
LH: loop header
LB: loop body
LE: loop exit
PB: predicated region body
PF: predicated region fallthrough
CT: control target
= control target key end

     0   :  { %vm62_vm0 = vcmask 1042432   ;;  %v1263_v0 = vmov 0.0   ;;  %vm1264_vm1 = vmmov 0   ;;  %vm58_vm2 = vcmask 23552   ;;  %s1472_s1 = inlined_call_operand.vmem [shape: bf16[3,3,128], index: 1, kind: input, shape index: {}]   ;;  %s1473_s2 = inlined_call_operand.vmem [shape: f32[4,3], index: 2, kind: input, shape index: {}]   ;;  %s1474_s0 = inlined_call_operand.vmem [shape: bf16[6,128], index: 0, kind: input, shape index: {}]   ;;  %s1475_s3 = inlined_call_operand.vmem [shape: f32[32,6], index: 3, kind: input, shape index: {}]   ;;  %s1476_s4 = inlined_call_operand.vmem [shape: f32[32,4], index: 4, kind: input, shape index: {}]   ;;  %s1477_s5 = inlined_call_operand.vmem [shape: f32[32,1], index: 5, kind: input, shape index: {}]   ;;  %s1478_s7 = inlined_call_operand.vmem [shape: f32[32,1], index: 7, kind: input, shape index: {}]   ;;  %s1479_s8 = inlined_call_operand.vmem [shape: f32[32,1], index: 8, kind: input, shape index: {}]   ;;  %s1480_s6 = inlined_call_operand.vmem [shape: f32[4,4], index: 6, kind: input, shape index: {}]   ;;  %s1481_s10 = inlined_call_operand.vmem [shape: bf16[3,4,128], index: 10, kind: output, shape index: {1}]   ;;  %s1482_s9 = inlined_call_operand.vmem [shape: bf16[32,128], index: 9, kind: output, shape index: {0}]  }
   0x1   :  { %1178 = vmatprep.subr.mxu0 %v1263_v0  ;;  %1183 = vmatprep.subr.mxu1 %v1263_v0  ;;  %v36_v1 = vld [vmem:[%s1472_s1] sm:$0x3]  ;;  %v1096_v2 = vld [vmem:[%s1472_s1 + $0x4] sm:$0x3]  ;;  %v1095_v3 = vld [vmem:[%s1472_s1 + $0x2] sm:$0x3] }
   0x2   :  { %v37_v4 = vunpack.c.l.bf16 %v36_v1  ;;  %1180 = vmatprep.mubr.msk.f32.mxu0 %vm1264_vm1, %v1263_v0  ;;  %v40_v5 = vunpack.c.l.bf16 %v1095_v3  ;;  %1185 = vmatprep.mubr.msk.f32.mxu1 %vm1264_vm1, %v1263_v0  ;;  %v48_v6 = vld [vmem:[%s1473_s2] sm:$0xf]  ;;  %v43_v7 = vunpack.c.l.bf16 %v1096_v2  ;;  %vm430_vm3 = vcmask 1045504   ;;  %v45_v11 = vld [vmem:[%s1475_s3 + $0x8] sm:$0xff]  ;;  %v46_v13 = vld [vmem:[%s1475_s3 + $0x10] sm:$0xff] }
   0x3   :  { %v34_v8 = vld [vmem:[%s1474_s0] sm:$0x7]  ;;  %vm417_vm4 = vcmask 48128   ;;  %vm315_vm5 = vcmask 31744   ;;  %v47_v14 = vld [vmem:[%s1475_s3 + $0x18] sm:$0xff]  ;;  %v1265_v15 = vmov 0  }
   0x4   :  { %1179 = vmatpush3.msk.msra.mxu0 %vm62_vm0, %v37_v4  ;;  %1184 = vmatpush3.msk.msra.mxu1 %vm62_vm0, %v40_v5  ;;  %v35_v9 = vunpack.c.l.bf16 %v34_v8  ;;  %v44_v10 = vld [vmem:[%s1475_s3] sm:$0xff]  ;;  %v56_v16 = vld [vmem:[%s1477_s5 + $0x18] sm:$0xff]  ;;  %v54_v17 = vld [vmem:[%s1477_s5 + $0x8] sm:$0xff]  ;;  %vm328_vm6 = vcmask 1043456   ;;  %vm753_vm9 = vcmask 261120  }
   0x5   :  { %1181 = vmatmul.mubr.msk.f32.vlgmr.msra.gmra.mxu0 %vm58_vm2, %v48_v6  ;;  %1186 = vmatmul.mubr.msk.f32.vlgmr.msra.gmra.mxu1 %vm58_vm2, %v48_v6  ;;  %v49_v12 = vld [vmem:[%s1476_s4] sm:$0xff]  ;;  %v55_v18 = vld [vmem:[%s1477_s5 + $0x10] sm:$0xff]  ;;  %v746_v21 = vld [vmem:[%s1478_s7 + $0x8] sm:$0xff] }
   0x6   :  { %1188 = vmatprep.subr.mxu0 %v1263_v0  ;;  %1190 = vmatprep.mubr.msk.f32.mxu0 %vm1264_vm1, %v1263_v0  ;;  %v53_v19 = vld [vmem:[%s1477_s5] sm:$0xff]  ;;  %v747_v22 = vld [vmem:[%s1478_s7 + $0x10] sm:$0xff]  ;;  %v748_v23 = vld [vmem:[%s1478_s7 + $0x18] sm:$0xff] }
   0x7   :  { %1189 = vmatpush3.msk.msra.mxu0 %vm62_vm0, %v43_v7  ;;  %1195 = vmatprep.mubr.msk.f32.mxu1 %vm315_vm5, %v49_v12  ;;  %v745_v20 = vld [vmem:[%s1478_s7] sm:$0xff]  ;;  %v750_v25 = vld [vmem:[%s1479_s8 + $0x8] sm:$0xff]  ;;  %v751_v26 = vld [vmem:[%s1479_s8 + $0x10] sm:$0xff] }
   0x8   :  { %1201 = vmatprep.subr.msk.mxu0 %vm430_vm3, %v35_v9  ;;  %1255 = vset.pattern.permute.xlu0 %v1265_v15  ;;  %v749_v24 = vld [vmem:[%s1479_s8] sm:$0xff]  ;;  %v752_v27 = vld [vmem:[%s1479_s8 + $0x18] sm:$0xff]  ;;  %v50_v46 = vld [vmem:[%s1476_s4 + $0x8] sm:$0xff] }
   0x9   :  { %1191 = vmatmul.mubr.msk.f32.vlgmr.msra.gmra.mxu0 %vm58_vm2, %v48_v6  ;;  %1256 = vset.pattern.permute.xlu1 %v1265_v15  ;;  %v57_v32 = vld [vmem:[%s1480_s6] sm:$0xf]  ;;  %v51_v47 = vld [vmem:[%s1476_s4 + $0x10] sm:$0xff]  ;;  %v52_v48 = vld [vmem:[%s1476_s4 + $0x18] sm:$0xff] }
   0xa   :  { %1202 = vmatpush3.msk.msra.mxu0 %vm430_vm3, %v35_v9  ;;  %1203 = vmatprep.mubr.msk.f32.mxu0 %vm417_vm4, %v44_v10 }
   0xb   :  { %1214 = vmatprep.subr.mxu0 %v1263_v0  ;;  %312 = vperm.xlu0 %1255, %v56_v16  }
   0xc   :  { %302 = vperm.xlu1 %1256, %v54_v17   ;;  %v1266_v17 = vmov 1.0  }
   0xd   :  { %1204 = vmatmul.mubr.msk.f32.vlgmr.msra.gmra.mxu0 %vm417_vm4, %v45_v11 }
   0xe   :  { %1206 = vmatprep.mubr.msk.f32.mxu0 %vm417_vm4, %v46_v13 }
   0xf   :  { %307 = vperm.xlu0 %1255, %v55_v18  }
  0x10   :  { %297 = vperm.xlu1 %1256, %v53_v19   ;;  %v828_v19 = vlaneseq }
  0x11   :  { %1207 = vmatmul.mubr.msk.f32.gmra.mxu0 %vm417_vm4, %v47_v14 }
  0x12   :  { %1216 = vmatprep.mubr.msk.f32.mxu0 %vm1264_vm1, %v1263_v0 }
  0x13   :  { %923 = vperm.xlu0 %1255, %v745_v20   ;;  %v829_v20 = vshrl.u32 %v828_v19, 7 }
  0x14   :  { %928 = vperm.xlu1 %1256, %v746_v21  }
  0x15   :  { %v830_v21 = vsub.s32 0, %v829_v20 }
  0x17   :  { %933 = vperm.xlu0 %1255, %v747_v22  }
  0x18   :  { %938 = vperm.xlu1 %1256, %v748_v23  }
  0x1b   :  { %947 = vperm.xlu0 %1255, %v749_v24  }
  0x1c   :  { %952 = vperm.xlu1 %1256, %v750_v25  }
  0x1f   :  { %957 = vperm.xlu0 %1255, %v751_v26  }
  0x20   :  { %962 = vperm.xlu1 %1256, %v752_v27  }
  0x86   :  { %v313_v55 = vpop.permute.xlu0 %312 }
  0x87   :  { %v303_v57 = vpop.permute.xlu1 %302 }
  0x8a   :  { %v308_v61 = vpop.permute.xlu0 %307 }
  0x8b   :  { %v298_v4 = vpop.permute.xlu1 %297 }
  0xc5   :  { %v132_v28 = vpop.f32.mrf.mxu0  ;;  %v205_v29 = vpop.f32.mrf.mxu1 }
  0xc6   :  { %v282_v30 = vmul.f32 %v132_v28, %v132_v28  ;;  %v283_v31 = vmul.f32 %v205_v29, %v205_v29  ;;  %1215 = vmatpush3.msk.msra.mxu0 %vm328_vm6, %v205_v29 }
  0xc7   :  { %v1182_v33 = vpop.f32.mrf.mxu0  ;;  %v1187_v34 = vpop.f32.mrf.mxu1  ;;  %1217 = vmatmul.mubr.msk.f32.vlgmr.msra.gmra.mxu0 %vm315_vm5, %v57_v32  ;;  %1224 = vmatprep.subr.mxu0 %v1263_v0 }
  0xc8   :  { %1232 = vmatprep.mubr.msk.f32.mxu0 %vm1264_vm1, %v1263_v0  ;;  %v284_v36 = vadd.f32 %v283_v31, %v282_v30 }
  0xc9   :  { %v278_v35 = vpop.f32.mrf.mxu0 }
  0xca   :  { %v285_v37 = vmul.f32 %v278_v35, %v278_v35 }
  0xcb   :  { %v1192_v38 = vpop.f32.mrf.mxu0 }
  0xcc   :  { %v286_v39 = vadd.f32 %v285_v37, %v284_v36 }
  0xcd   :  { %v1205_v49 = vpop.f32.mrf.mxu0 }
  0xce   :  { %v287_v40 = vmax.f32 %v286_v39, 1e-08 }
  0xcf   :  { %v500_v50 = vpop.f32.mrf.mxu0 }
  0xd0   :  { %1257 = vrsqrt.f32 %v287_v40  ;;  %vm290_vm7 = vcmp.eq.f32.partialorder %v287_v40, inf  ;;  %v293_v43 = vand.u32 2147483648, %v287_v40  ;;  %vm292_vm8 = vcmp.eq.f32.partialorder %v287_v40, 0.0 }
  0xd1   :  { %v1208_v51 = vpop.f32.mrf.mxu0 }
  0xd3   :  { %v510_v52 = vpop.f32.mrf.mxu0 }
  0xdd   :  { %v1258_v41 = vpop.eup %1257 }
  0xde   :  { %v289_v42 = vmul.f32 %v1258_v41, %v287_v40 }
  0xe0   :  { %v291_v44 = vsel %vm290_vm7, %v287_v40, %v289_v42 }
  0xe1   :  { %v294_v45 = vsel %vm292_vm8, %v293_v43, %v291_v44 }
  0xe2   :  { %1193 = vmatprep.subr.msk.mxu1 %vm328_vm6, %v294_v45 }
  0xe3   :  { %1194 = vmatpush3.msk.msra.mxu1 %vm328_vm6, %v294_v45 }
  0xe4   :  { %1196 = vmatmul.mubr.msk.f32.vlgmr.msra.gmra.mxu1 %vm315_vm5, %v50_v46  ;;  %1209 = vmatprep.subr.mxu1 %v1263_v0 }
  0xe5   :  { %1210 = vmatpush3.msk.msra.mxu1 %vm328_vm6, %v132_v28  ;;  %1198 = vmatprep.mubr.msk.f32.mxu1 %vm315_vm5, %v51_v47 }
  0xe6   :  { %1219 = vmatprep.subr.mxu1 %v1263_v0 }
  0xe8   :  { %1199 = vmatmul.mubr.msk.f32.gmra.mxu1 %vm315_vm5, %v52_v48  ;;  %v924_v48 = vpop.permute.xlu0 %923 }
  0xe9   :  { %1211 = vmatprep.mubr.msk.f32.mxu1 %vm1264_vm1, %v1263_v0 }
  0xec   :  { %1212 = vmatmul.mubr.msk.f32.vlgmr.msra.gmra.mxu1 %vm315_vm5, %v57_v32 }
  0xed   :  { %1220 = vmatpush3.msk.msra.mxu1 %vm328_vm6, %v278_v35  ;;  %1221 = vmatprep.mubr.msk.f32.mxu1 %vm1264_vm1, %v1263_v0 }
  0xee   :  { %1235 = vmatprep.subr.mxu1 %v1263_v0 }
  0xf0   :  { %1222 = vmatmul.mubr.msk.f32.vlgmr.msra.gmra.mxu1 %vm315_vm5, %v57_v32 }
  0xf1   :  { %1243 = vmatprep.mubr.msk.f32.mxu1 %vm1264_vm1, %v1263_v0 }
 0x187   :  { %v1439_v53 = vpop.f32.mrf.mxu0 }
 0x188   :  { %v970_v3 = vmul.f32 %v1439_v53, %v1439_v53 }
 0x189   :  { %v1218_v54 = vpop.f32.mrf.mxu0 }
 0x1a4   :  { %v1197_v56 = vpop.f32.mrf.mxu1 }
 0x1a5   :  { %v404_v63 = vadd.f32 %v1197_v56, %v303_v57 }
 0x1a6   :  { %v398_v58 = vpop.f32.mrf.mxu1 }
 0x1a7   :  { %v399_v6 = vadd.f32 %v398_v58, %v298_v4  ;;  %v520_v10 = vadd.f32 %v1205_v49, %v404_v63  ;;  %v929_v49 = vpop.permute.xlu1 %928 }
 0x1a8   :  { %v1200_v59 = vpop.f32.mrf.mxu1 }
 0x1a9   :  { %v414_v60 = vadd.f32 %v1200_v59, %v313_v55  ;;  %v519_v13 = vadd.f32 %v500_v50, %v399_v6  ;;  %v934_v50 = vpop.permute.xlu0 %933 }
 0x1aa   :  { %v408_v62 = vpop.f32.mrf.mxu1 }
 0x1ab   :  { %v409_v1 = vadd.f32 %v408_v62, %v308_v61  ;;  %v522_v2 = vadd.f32 %v1208_v51, %v414_v60  ;;  %v939_v51 = vpop.permute.xlu1 %938 }
 0x1ac   :  { %v595_v5 = vpop.f32.mrf.mxu1 }
 0x1ad   :  { %v521_v7 = vadd.f32 %v510_v52, %v409_v1  ;;  %v969_v8 = vmul.f32 %v595_v5, %v595_v5  ;;  %1225 = vmatpush3.msra.mxu0 %v522_v2 }
 0x1ae   :  { %v1213_v9 = vpop.f32.mrf.mxu1  ;;  %1226 = vmatprep.subr.mxu0 %v1263_v0 }
 0x1af   :  { %v971_v11 = vadd.f32 %v970_v3, %v969_v8  ;;  %1227 = vmatpush3.msra.mxu0 %v521_v7  ;;  %v953_v54 = vpop.permute.xlu1 %952 }
 0x1b0   :  { %v741_v12 = vpop.f32.mrf.mxu1  ;;  %1228 = vmatprep.subr.mxu0 %v1263_v0 }
 0x1b1   :  { %v972_v14 = vmul.f32 %v741_v12, %v741_v12  ;;  %1229 = vmatpush3.msra.mxu0 %v520_v10 }
 0x1b2   :  { %1230 = vmatprep.subr.mxu0 %v1263_v0  ;;  %v1223_v15 = vpop.f32.mrf.mxu1 }
 0x1b3   :  { %v973_v16 = vadd.f32 %v972_v14, %v971_v11  ;;  %1231 = vmatpush3.msra.mxu0 %v519_v13 }
 0x1b4   :  { %1233 = vmatmul.mubr.msk.f32.vlgmr.msra.gmra.mxu0 %vm753_vm9, %v1266_v17  ;;  %1246 = vmatprep.subr.mxu0 %v1263_v0 }
 0x1b5   :  { %v974_v18 = vmax.f32 %v973_v16, 1e-08  ;;  %1248 = vmatprep.mubr.msk.f32.mxu0 %vm1264_vm1, %v1263_v0 }
 0x1b7   :  { %1247 = vmatpush3.msk.msra.mxu0 %vm328_vm6, %v974_v18 }
 0x1b8   :  { %1249 = vmatmul.mubr.msk.f32.vlgmr.msra.gmra.mxu0 %vm315_vm5, %v1266_v17 }
 0x274   :  { %v823_v22 = vpop.f32.mrf.mxu0 }
 0x275   :  { %v827_v23 = vmul.f32 0.03125, %v823_v22 }
 0x276   :  { %v1234_v24 = vpop.f32.mrf.mxu0 }
 0x277   :  { %v831_v25 = vrot.slane %v827_v23, %v830_v21 }
 0x278   :  { %v1046_v26 = vpop.f32.mrf.mxu0 }
 0x279   :  { %v1050_v27 = vmul.f32 0.25, %v1046_v26  ;;  %v835_v28 = vsub.f32 %v522_v2, %v831_v25  ;;  %v834_v29 = vsub.f32 %v521_v7, %v831_v25  ;;  %v833_v32 = vsub.f32 %v520_v10, %v831_v25  ;;  %v963_v2 = vpop.permute.xlu1 %962 }
 0x27a   :  { %v1250_v30 = vpop.f32.mrf.mxu0  ;;  %v832_v34 = vsub.f32 %v519_v13, %v831_v25 }
 0x27b   :  { %1259 = vrsqrt.f32 %v1050_v27  ;;  %v839_v31 = vmul.f32 %v835_v28, %v835_v28  ;;  %v838_v33 = vmul.f32 %v834_v29, %v834_v29  ;;  %v837_v35 = vmul.f32 %v833_v32, %v833_v32 }
 0x27c   :  { %v836_v36 = vmul.f32 %v832_v34, %v832_v34 }
 0x27d   :  { %1236 = vmatpush3.msra.mxu1 %v839_v31 }
 0x27e   :  { %1237 = vmatprep.subr.mxu1 %v1263_v0 }
 0x27f   :  { %1238 = vmatpush3.msra.mxu1 %v838_v33 }
 0x280   :  { %1239 = vmatprep.subr.mxu1 %v1263_v0 }
 0x281   :  { %1240 = vmatpush3.msra.mxu1 %v837_v35 }
 0x282   :  { %1241 = vmatprep.subr.mxu1 %v1263_v0 }
 0x283   :  { %1242 = vmatpush3.msra.mxu1 %v836_v36 }
 0x284   :  { %1244 = vmatmul.mubr.msk.f32.vlgmr.msra.gmra.mxu1 %vm753_vm9, %v1266_v17 }
 0x288   :  { %v1260_v37 = vpop.eup %1259 }
 0x289   :  { %v1055_v38 = vrot.slane %v1260_v37, %v830_v21 }
 0x28b   :  { %v1056_v39 = vmul.f32 %v1055_v38, %v595_v5  ;;  %v1057_v40 = vmul.f32 %v1055_v38, %v1439_v53  ;;  %v1058_v41 = vmul.f32 %v1055_v38, %v741_v12  ;;  %v948_v53 = vpop.permute.xlu0 %947 }
 0x28d   :  { %v1079_v42 = vpack.c.bf16 %v1056_v39, %v1056_v39  ;;  %v1081_v43 = vpack.c.bf16 %v1057_v40, %v1057_v40  ;;  %v1084_v44 = vpack.c.bf16 %v1058_v41, %v1058_v41 }
 0x28f   :  { %1080 = vst [vmem:[%s1481_s10] sm:$0x3] %v1079_v42  ;;  %1127 = vst [vmem:[%s1481_s10 + $0x2] sm:$0x3] %v1081_v43  ;;  %v958_v1 = vpop.permute.xlu0 %957 }
 0x290   :  { %1128 = vst [vmem:[%s1481_s10 + $0x4] sm:$0x3] %v1084_v44 }
 0x344   :  { %v906_v0 = vpop.f32.mrf.mxu1 }
 0x345   :  { %v910_v45 = vmul.f32 0.03125, %v906_v0 }
 0x346   :  { %v1245_v46 = vpop.f32.mrf.mxu1 }
 0x347   :  { %v911_v47 = vadd.f32 1e-05, %v910_v45 }
 0x349   :  { %1261 = vrsqrt.f32 %v911_v47 }
 0x356   :  { %v1262_v52 = vpop.eup %1261 }
 0x357   :  { %v916_v55 = vrot.slane %v1262_v52, %v830_v21 }
 0x359   :  { %v917_v56 = vmul.f32 %v916_v55, %v832_v34  ;;  %v918_v57 = vmul.f32 %v916_v55, %v833_v32  ;;  %v919_v58 = vmul.f32 %v916_v55, %v834_v29  ;;  %v920_v59 = vmul.f32 %v916_v55, %v835_v28 }
 0x35b   :  { %v941_v60 = vmul.f32 %v924_v48, %v917_v56  ;;  %v942_v61 = vmul.f32 %v929_v49, %v918_v57  ;;  %v943_v62 = vmul.f32 %v934_v50, %v919_v58  ;;  %v944_v63 = vmul.f32 %v939_v51, %v920_v59 }
 0x35d   :  { %v965_v3 = vadd.f32 %v948_v53, %v941_v60  ;;  %v966_v4 = vadd.f32 %v953_v54, %v942_v61  ;;  %v967_v5 = vadd.f32 %v958_v1, %v943_v62  ;;  %v968_v6 = vadd.f32 %v963_v2, %v944_v63 }
 0x35f   :  { %v1136_v7 = vpack.c.bf16 %v966_v4, %v965_v3  ;;  %v1141_v8 = vpack.c.bf16 %v968_v6, %v967_v5 }
 0x361   :  { %1137 = vst [vmem:[%s1482_s9] sm:$0xff] %v1136_v7   ;;  %1143 = vst [vmem:[%s1482_s9 + $0x8] sm:$0xff] %v1141_v8  }

// kernel: cpd_forward.12
= control target key start
LH: loop header
LB: loop body
LE: loop exit
PB: predicated region body
PF: predicated region fallthrough
CT: control target
= control target key end

     0   :  { %vm62_vm0 = vcmask 1040384   ;;  %v1152_v0 = vmov 0.0   ;;  %vm1153_vm1 = vmmov 0   ;;  %vm58_vm2 = vcmask 7168   ;;  %s1320_s1 = inlined_call_operand.vmem [shape: bf16[3,1,128], index: 1, kind: input, shape index: {}]   ;;  %s1321_s2 = inlined_call_operand.vmem [shape: f32[2,1], index: 2, kind: input, shape index: {}]   ;;  %s1322_s0 = inlined_call_operand.vmem [shape: bf16[32,128], index: 0, kind: input, shape index: {}]   ;;  %s1323_s3 = inlined_call_operand.vmem [shape: f32[16,32], index: 3, kind: input, shape index: {}]   ;;  %s1324_s4 = inlined_call_operand.vmem [shape: f32[16,2], index: 4, kind: input, shape index: {}]   ;;  %s1325_s5 = inlined_call_operand.vmem [shape: f32[16,1], index: 5, kind: input, shape index: {}]   ;;  %s1326_s8 = inlined_call_operand.vmem [shape: f32[16,1], index: 8, kind: input, shape index: {}]   ;;  %s1327_s6 = inlined_call_operand.vmem [shape: f32[2,2], index: 6, kind: input, shape index: {}]   ;;  %s1328_s7 = inlined_call_operand.vmem [shape: f32[16,1], index: 7, kind: input, shape index: {}]   ;;  %s1329_s10 = inlined_call_operand.vmem [shape: bf16[3,2,128], index: 10, kind: output, shape index: {1}]   ;;  %s1330_s9 = inlined_call_operand.vmem [shape: bf16[16,128], index: 9, kind: output, shape index: {0}]  }
   0x1   :  { %1075 = vmatprep.subr.mxu0 %v1152_v0  ;;  %1080 = vmatprep.subr.mxu1 %v1152_v0  ;;  %v42_v1 = vld [vmem:[%s1320_s1] sm:$0x1]  ;;  %v1004_v2 = vld [vmem:[%s1320_s1 + $0x2] sm:$0x1]  ;;  %v1003_v3 = vld [vmem:[%s1320_s1 + $0x1] sm:$0x1] }
   0x2   :  { %v43_v4 = vunpack.c.l.bf16 %v42_v1  ;;  %1077 = vmatprep.mubr.msk.f32.mxu0 %vm1153_vm1, %v1152_v0  ;;  %v46_v5 = vunpack.c.l.bf16 %v1003_v3  ;;  %1082 = vmatprep.mubr.msk.f32.mxu1 %vm1153_vm1, %v1152_v0  ;;  %v52_v6 = vld [vmem:[%s1321_s2] sm:$0x3]  ;;  %v1045_v7 = vld [vmem:[%s1322_s0 + $0x8] sm:$0xff]   ;;  %v49_v8 = vunpack.c.l.bf16 %v1004_v2  ;;  %vm391_vm3 = vcmask 261120  }
   0x3   :  { %v1039_v9 = vunpack.c.h.bf16 %v1045_v7  ;;  %v1038_v10 = vunpack.c.l.bf16 %v1045_v7  ;;  %v1033_v11 = vld [vmem:[%s1322_s0] sm:$0xff]   ;;  %v51_v15 = vld [vmem:[%s1323_s3 + $0x8] sm:$0xff]  ;;  %vm305_vm4 = vcmask 15360   ;;  %v1154_v17 = vmov 0  }
   0x4   :  { %1076 = vmatpush3.msk.msra.mxu0 %vm62_vm0, %v43_v4  ;;  %1081 = vmatpush3.msk.msra.mxu1 %vm62_vm0, %v46_v5  ;;  %v1035_v12 = vunpack.c.h.bf16 %v1033_v11  ;;  %v1034_v13 = vunpack.c.l.bf16 %v1033_v11  ;;  %v50_v14 = vld [vmem:[%s1323_s3] sm:$0xff]  ;;  %v56_v18 = vld [vmem:[%s1325_s5 + $0x8] sm:$0xff]  ;;  %vm312_vm5 = vcmask 1041408   ;;  %vm701_vm8 = vcmask 130048  }
   0x5   :  { %1078 = vmatmul.mubr.msk.f32.vlgmr.msra.gmra.mxu0 %vm58_vm2, %v52_v6  ;;  %1083 = vmatmul.mubr.msk.f32.vlgmr.msra.gmra.mxu1 %vm58_vm2, %v52_v6  ;;  %v53_v16 = vld [vmem:[%s1324_s4] sm:$0xff]  ;;  %v54_v39 = vld [vmem:[%s1324_s4 + $0x8] sm:$0xff]  ;;  %v1155_v56 = vmov 1.0   ;;  %v776_v3 = vlaneseq }
   0x6   :  { %1085 = vmatprep.subr.mxu0 %v1152_v0  ;;  %1087 = vmatprep.mubr.msk.f32.mxu0 %vm1153_vm1, %v1152_v0  ;;  %v55_v19 = vld [vmem:[%s1325_s5] sm:$0xff]  ;;  %v698_v1 = vld [vmem:[%s1328_s7 + $0x8] sm:$0xff] }
   0x7   :  { %1086 = vmatpush3.msk.msra.mxu0 %vm62_vm0, %v49_v8  ;;  %1092 = vmatprep.mubr.msk.f32.mxu1 %vm305_vm4, %v53_v16  ;;  %v699_v20 = vld [vmem:[%s1326_s8] sm:$0xff]  ;;  %v700_v2 = vld [vmem:[%s1326_s8 + $0x8] sm:$0xff]  ;;  %v777_v4 = vshrl.u32 %v776_v3, 7 }
   0x8   :  { %1095 = vmatprep.subr.mxu0 %v1039_v9  ;;  %1144 = vset.pattern.permute.xlu0 %v1154_v17  ;;  %v57_v30 = vld [vmem:[%s1327_s6] sm:$0x3] }
   0x9   :  { %1088 = vmatmul.mubr.msk.f32.vlgmr.msra.gmra.mxu0 %vm58_vm2, %v52_v6  ;;  %1145 = vset.pattern.permute.xlu1 %v1154_v17  ;;  %v697_v63 = vld [vmem:[%s1328_s7] sm:$0xff]  ;;  %v778_v5 = vsub.s32 0, %v777_v4 }
   0xa   :  { %1096 = vmatpush3.msra.mxu0 %v1039_v9  ;;  %1103 = vmatprep.mubr.msk.f32.mxu0 %vm391_vm3, %v50_v14 }
   0xb   :  { %1097 = vmatprep.subr.mxu0 %v1038_v10  ;;  %302 = vperm.xlu0 %1144, %v56_v18  }
   0xc   :  { %1098 = vmatpush3.msra.mxu0 %v1038_v10  ;;  %865 = vperm.xlu1 %1145, %v697_v63  }
   0xd   :  { %1099 = vmatprep.subr.mxu0 %v1035_v12 }
   0xe   :  { %1100 = vmatpush3.msra.mxu0 %v1035_v12 }
   0xf   :  { %1101 = vmatprep.subr.mxu0 %v1034_v13  ;;  %297 = vperm.xlu0 %1144, %v55_v19  }
  0x10   :  { %1102 = vmatpush3.msra.mxu0 %v1034_v13  ;;  %870 = vperm.xlu1 %1145, %v698_v1  }
  0x11   :  { %1116 = vmatprep.subr.mxu0 %v1152_v0  ;;  %1104 = vmatmul.mubr.msk.f32.vlgmr.msra.gmra.mxu0 %vm391_vm3, %v51_v15 }
  0x12   :  { %1118 = vmatprep.mubr.msk.f32.mxu0 %vm1153_vm1, %v1152_v0 }
  0x13   :  { %877 = vperm.xlu0 %1144, %v699_v20  }
  0x14   :  { %882 = vperm.xlu1 %1145, %v700_v2  }
  0x86   :  { %v303_v44 = vpop.permute.xlu0 %302 }
  0x8a   :  { %v298_v47 = vpop.permute.xlu0 %297 }
  0xc5   :  { %v132_v21 = vpop.f32.mrf.mxu0  ;;  %v205_v22 = vpop.f32.mrf.mxu1 }
  0xc6   :  { %v282_v23 = vmul.f32 %v132_v21, %v132_v21  ;;  %v283_v24 = vmul.f32 %v205_v22, %v205_v22 }
  0xc7   :  { %v1079_v25 = vpop.f32.mrf.mxu0  ;;  %v1084_v26 = vpop.f32.mrf.mxu1 }
  0xc8   :  { %v284_v28 = vadd.f32 %v283_v24, %v282_v23 }
  0xc9   :  { %v278_v27 = vpop.f32.mrf.mxu0 }
  0xca   :  { %v285_v29 = vmul.f32 %v278_v27, %v278_v27  ;;  %1117 = vmatpush3.msk.msra.mxu0 %vm312_vm5, %v278_v27 }
  0xcb   :  { %v1089_v31 = vpop.f32.mrf.mxu0  ;;  %1119 = vmatmul.mubr.msk.f32.vlgmr.msra.gmra.mxu0 %vm305_vm4, %v57_v30  ;;  %1128 = vmatprep.subr.mxu0 %v1152_v0 }
  0xcc   :  { %v286_v32 = vadd.f32 %v285_v29, %v284_v28  ;;  %1132 = vmatprep.mubr.msk.f32.mxu0 %vm1153_vm1, %v1152_v0  ;;  %v866_v28 = vpop.permute.xlu1 %865 }
  0xce   :  { %v287_v33 = vmax.f32 %v286_v32, 1e-08 }
  0xd0   :  { %1146 = vrsqrt.f32 %v287_v33  ;;  %vm290_vm6 = vcmp.eq.f32.partialorder %v287_v33, inf  ;;  %v293_v36 = vand.u32 2147483648, %v287_v33  ;;  %vm292_vm7 = vcmp.eq.f32.partialorder %v287_v33, 0.0 }
  0xd1   :  { %v1105_v40 = vpop.f32.mrf.mxu0 }
  0xd3   :  { %v464_v41 = vpop.f32.mrf.mxu0 }
  0xdd   :  { %v1147_v34 = vpop.eup %1146 }
  0xde   :  { %v289_v35 = vmul.f32 %v1147_v34, %v287_v33 }
  0xe0   :  { %v291_v37 = vsel %vm290_vm6, %v287_v33, %v289_v35 }
  0xe1   :  { %v294_v38 = vsel %vm292_vm7, %v293_v36, %v291_v37  ;;  %v878_v36 = vpop.permute.xlu0 %877 }
  0xe2   :  { %1090 = vmatprep.subr.msk.mxu1 %vm312_vm5, %v294_v38 }
  0xe3   :  { %1091 = vmatpush3.msk.msra.mxu1 %vm312_vm5, %v294_v38 }
  0xe4   :  { %1093 = vmatmul.mubr.msk.f32.vlgmr.msra.gmra.mxu1 %vm305_vm4, %v54_v39  ;;  %1106 = vmatprep.subr.mxu1 %v1152_v0 }
  0xe5   :  { %1107 = vmatpush3.msk.msra.mxu1 %vm312_vm5, %v132_v21  ;;  %1108 = vmatprep.mubr.msk.f32.mxu1 %vm1153_vm1, %v1152_v0 }
  0xe6   :  { %1111 = vmatprep.subr.mxu1 %v1152_v0 }
  0xe8   :  { %1109 = vmatmul.mubr.msk.f32.vlgmr.msra.gmra.mxu1 %vm305_vm4, %v57_v30 }
  0xe9   :  { %1112 = vmatpush3.msk.msra.mxu1 %vm312_vm5, %v205_v22  ;;  %1113 = vmatprep.mubr.msk.f32.mxu1 %vm1153_vm1, %v1152_v0 }
  0xea   :  { %1121 = vmatprep.subr.mxu1 %v1152_v0 }
  0xec   :  { %1114 = vmatmul.mubr.msk.f32.vlgmr.msra.gmra.mxu1 %vm305_vm4, %v57_v30  ;;  %v871_v30 = vpop.permute.xlu1 %870 }
  0xed   :  { %1125 = vmatprep.mubr.msk.f32.mxu1 %vm1153_vm1, %v1152_v0 }
  0xf0   :  { %v883_v37 = vpop.permute.xlu1 %882 }
 0x18b   :  { %v693_v42 = vpop.f32.mrf.mxu0 }
 0x18c   :  { %v890_v58 = vmul.f32 %v693_v42, %v693_v42 }
 0x18d   :  { %v1120_v43 = vpop.f32.mrf.mxu0 }
 0x1a4   :  { %v1094_v45 = vpop.f32.mrf.mxu1 }
 0x1a5   :  { %v388_v46 = vadd.f32 %v1094_v45, %v303_v44 }
 0x1a6   :  { %v382_v48 = vpop.f32.mrf.mxu1 }
 0x1a7   :  { %v383_v49 = vadd.f32 %v382_v48, %v298_v47  ;;  %v474_v50 = vadd.f32 %v1105_v40, %v388_v46 }
 0x1a8   :  { %v547_v51 = vpop.f32.mrf.mxu1 }
 0x1a9   :  { %v473_v52 = vadd.f32 %v464_v41, %v383_v49  ;;  %1122 = vmatpush3.msra.mxu1 %v474_v50  ;;  %v887_v54 = vmul.f32 %v547_v51, %v547_v51 }
 0x1aa   :  { %v1110_v53 = vpop.f32.mrf.mxu1  ;;  %1123 = vmatprep.subr.mxu1 %v1152_v0 }
 0x1ab   :  { %1124 = vmatpush3.msra.mxu1 %v473_v52 }
 0x1ac   :  { %v620_v55 = vpop.f32.mrf.mxu1  ;;  %1126 = vmatmul.mubr.msk.f32.vlgmr.msra.gmra.mxu1 %vm701_vm8, %v1155_v56  ;;  %1135 = vmatprep.subr.mxu1 %v1152_v0 }
 0x1ad   :  { %v888_v57 = vmul.f32 %v620_v55, %v620_v55  ;;  %1137 = vmatprep.mubr.msk.f32.mxu1 %vm1153_vm1, %v1152_v0 }
 0x1ae   :  { %v1115_v59 = vpop.f32.mrf.mxu1 }
 0x1af   :  { %v889_v60 = vadd.f32 %v888_v57, %v887_v54 }
 0x1b1   :  { %v891_v61 = vadd.f32 %v890_v58, %v889_v60 }
 0x1b3   :  { %v892_v62 = vmax.f32 %v891_v61, 1e-08 }
 0x1b5   :  { %1136 = vmatpush3.msk.msra.mxu1 %vm312_vm5, %v892_v62 }
 0x1b6   :  { %1138 = vmatmul.mubr.msk.f32.vlgmr.msra.gmra.mxu1 %vm305_vm4, %v1155_v56 }
 0x26c   :  { %v771_v6 = vpop.f32.mrf.mxu1 }
 0x26d   :  { %v775_v7 = vmul.f32 0.0625, %v771_v6 }
 0x26e   :  { %v1127_v8 = vpop.f32.mrf.mxu1 }
 0x26f   :  { %v779_v9 = vrot.slane %v775_v7, %v778_v5 }
 0x271   :  { %v780_v10 = vsub.f32 %v473_v52, %v779_v9  ;;  %v781_v11 = vsub.f32 %v474_v50, %v779_v9 }
 0x273   :  { %v783_v12 = vmul.f32 %v781_v11, %v781_v11  ;;  %v782_v13 = vmul.f32 %v780_v10, %v780_v10 }
 0x275   :  { %1129 = vmatpush3.msra.mxu0 %v783_v12 }
 0x276   :  { %1130 = vmatprep.subr.mxu0 %v1152_v0  ;;  %v964_v14 = vpop.f32.mrf.mxu1 }
 0x277   :  { %v968_v15 = vmul.f32 0.5, %v964_v14  ;;  %1131 = vmatpush3.msra.mxu0 %v782_v13 }
 0x278   :  { %1133 = vmatmul.mubr.msk.f32.vlgmr.msra.gmra.mxu0 %vm701_vm8, %v1155_v56  ;;  %v1139_v16 = vpop.f32.mrf.mxu1 }
 0x279   :  { %1148 = vrsqrt.f32 %v968_v15 }
 0x286   :  { %v1149_v17 = vpop.eup %1148 }
 0x287   :  { %v973_v18 = vrot.slane %v1149_v17, %v778_v5 }
 0x289   :  { %v974_v19 = vmul.f32 %v973_v18, %v547_v51  ;;  %v975_v20 = vmul.f32 %v973_v18, %v620_v55  ;;  %v976_v21 = vmul.f32 %v973_v18, %v693_v42 }
 0x28b   :  { %v987_v22 = vpack.c.bf16 %v974_v19, %v974_v19  ;;  %v989_v23 = vpack.c.bf16 %v975_v20, %v975_v20  ;;  %v992_v24 = vpack.c.bf16 %v976_v21, %v976_v21 }
 0x28d   :  { %988 = vst [vmem:[%s1329_s10] sm:$0x1] %v987_v22  ;;  %1028 = vst [vmem:[%s1329_s10 + $0x1] sm:$0x1] %v989_v23 }
 0x28e   :  { %1029 = vst [vmem:[%s1329_s10 + $0x2] sm:$0x1] %v992_v24 }
 0x338   :  { %v850_v0 = vpop.f32.mrf.mxu0 }
 0x339   :  { %v854_v25 = vmul.f32 0.0625, %v850_v0 }
 0x33a   :  { %v1134_v26 = vpop.f32.mrf.mxu0 }
 0x33b   :  { %v855_v27 = vadd.f32 1e-05, %v854_v25 }
 0x33d   :  { %1150 = vrsqrt.f32 %v855_v27 }
 0x34a   :  { %v1151_v29 = vpop.eup %1150 }
 0x34b   :  { %v860_v31 = vrot.slane %v1151_v29, %v778_v5 }
 0x34d   :  { %v861_v32 = vmul.f32 %v860_v31, %v780_v10  ;;  %v862_v33 = vmul.f32 %v860_v31, %v781_v11 }
 0x34f   :  { %v873_v34 = vmul.f32 %v866_v28, %v861_v32  ;;  %v874_v35 = vmul.f32 %v871_v30, %v862_v33 }
 0x351   :  { %v885_v38 = vadd.f32 %v878_v36, %v873_v34  ;;  %v886_v39 = vadd.f32 %v883_v37, %v874_v35 }
 0x353   :  { %v1043_v40 = vpack.c.bf16 %v886_v39, %v885_v38 }
 0x355   :  { %1044 = vst [vmem:[%s1330_s9] sm:$0xff] %v1043_v40  }

// kernel: cpd_forward.13
= control target key start
LH: loop header
LB: loop body
LE: loop exit
PB: predicated region body
PF: predicated region fallthrough
CT: control target
= control target key end

     0   :  { %v87_v0 = vlaneseq  ;;  %v4760_v1 = vmov 0.0   ;;  %vm6221_vm0 = vmmov 0   ;;  %v4762_v12 = vmov 1.0   ;;  %s6183_s2 = inlined_call_operand.vmem [shape: s32[1,128], index: 2, kind: input, shape index: {}]   ;;  %s6184_s5 = inlined_call_operand.vmem [shape: bf16[32,128], index: 5, kind: input, shape index: {}]   ;;  %s6185_s6 = inlined_call_operand.vmem [shape: bf16[3,4,128], index: 6, kind: input, shape index: {}]   ;;  %s6186_s3 = inlined_call_operand.vmem [shape: s32[1,128], index: 3, kind: input, shape index: {}]   ;;  %s6187_s7 = inlined_call_operand.vmem [shape: f32[10,4], index: 7, kind: input, shape index: {}]   ;;  %s6188_s1 = inlined_call_operand.vmem [shape: bf16[3,2,128], index: 1, kind: input, shape index: {}]   ;;  %s6189_s8 = inlined_call_operand.vmem [shape: f32[10,2], index: 8, kind: input, shape index: {}]   ;;  %s6190_s9 = inlined_call_operand.vmem [shape: f32[10,4], index: 9, kind: input, shape index: {}]   ;;  %s6191_s10 = inlined_call_operand.vmem [shape: f32[32,32], index: 10, kind: input, shape index: {}]   ;;  %s6192_s12 = inlined_call_operand.vmem [shape: f32[32,32], index: 12, kind: input, shape index: {}]   ;;  %s6193_s13 = inlined_call_operand.vmem [shape: f32[32,10], index: 13, kind: input, shape index: {}]   ;;  %s6194_s14 = inlined_call_operand.vmem [shape: f32[32,1], index: 14, kind: input, shape index: {}]   ;;  %s6195_s15 = inlined_call_operand.vmem [shape: f32[4,10], index: 15, kind: input, shape index: {}]   ;;  %s6196_s0 = inlined_call_operand.vmem [shape: bf16[16,128], index: 0, kind: input, shape index: {}]   ;;  %s6197_s11 = inlined_call_operand.vmem [shape: f32[32,16], index: 11, kind: input, shape index: {}]   ;;  %s6198_s19 = inlined_call_operand.vmem [shape: f32[32,1], index: 19, kind: input, shape index: {}]   ;;  %s6199_s24 = inlined_call_operand.vmem [shape: f32[32,1], index: 24, kind: input, shape index: {}]   ;;  %s6200_s16 = inlined_call_operand.vmem [shape: f32[4,4], index: 16, kind: input, shape index: {}]   ;;  %s6201_s17 = inlined_call_operand.vmem [shape: f32[32,32], index: 17, kind: input, shape index: {}]   ;;  %s6202_s18 = inlined_call_operand.vmem [shape: f32[32,4], index: 18, kind: input, shape index: {}]   ;;  %s6203_s20 = inlined_call_operand.vmem [shape: f32[4,4], index: 20, kind: input, shape index: {}]   ;;  %s6204_s21 = inlined_call_operand.vmem [shape: f32[4,4], index: 21, kind: input, shape index: {}]   ;;  %s6205_s22 = inlined_call_operand.vmem [shape: f32[32,32], index: 22, kind: input, shape index: {}]   ;;  %s6206_s23 = inlined_call_operand.vmem [shape: f32[32,4], index: 23, kind: input, shape index: {}]   ;;  %s6207_s25 = inlined_call_operand.vmem [shape: f32[4,4], index: 25, kind: input, shape index: {}]   ;;  %s6208_s4 = inlined_call_operand.vmem [shape: f32[1,128], index: 4, kind: input, shape index: {}]   ;;  %s6209_s27 = inlined_call_operand.vmem [shape: bf16[3,4,128], index: 27, kind: output, shape index: {1}]   ;;  %s6210_s26 = inlined_call_operand.vmem [shape: bf16[32,128], index: 26, kind: output, shape index: {0}]  }
   0x1   :  { %6225 = sst [smem:[#allocation2_spill]] %s6183_s2  ;;  %4268 = vmatprep.subr.mxu1 %v4760_v1  ;;  %4300 = vmatprep.mubr.msk.f32.mxu1 %vm6221_vm0, %v4760_v1  ;;  %v6298_v61 = vmov 0 }
   0x2   :  { %6226 = sst [smem:[#allocation3_spill]] %s6184_s5  ;;  %v4912_v3 = vshrl.u32 %v87_v0, 7 }
   0x3   :  { %6227 = sst [smem:[#allocation4_spill]] %s6185_s6 }
   0x4   :  { %6228 = sst [smem:[#allocation5_spill]] %s6186_s3  ;;  %v4921_v6 = vadd.s32 120, %v4912_v3  ;;  %v4924_v7 = vadd.s32 112, %v4912_v3  ;;  %v4927_v8 = vadd.s32 104, %v4912_v3  ;;  %v4944_v11 = vadd.s32 96, %v4912_v3 }
   0x5   :  { %6229 = sst [smem:[#allocation6_spill]] %s6187_s7  ;;  %v4963_v14 = vadd.s32 88, %v4912_v3  ;;  %v4982_v16 = vadd.s32 80, %v4912_v3  ;;  %v5001_v18 = vadd.s32 72, %v4912_v3  ;;  %v5020_v20 = vadd.s32 64, %v4912_v3 }
   0x6   :  { %6230 = sst [smem:[#allocation7_spill]] %s6188_s1  ;;  %v5039_v22 = vadd.s32 56, %v4912_v3  ;;  %v5058_v24 = vadd.s32 48, %v4912_v3  ;;  %v5077_v26 = vadd.s32 40, %v4912_v3  ;;  %v5096_v28 = vadd.s32 32, %v4912_v3 }
   0x7   :  { %6231 = sst [smem:[#allocation8_spill]] %s6189_s8  ;;  %v5115_v30 = vadd.s32 24, %v4912_v3  ;;  %v5134_v32 = vadd.s32 16, %v4912_v3  ;;  %v5153_v34 = vadd.s32 8, %v4912_v3 }
   0x8   :  { %6232 = sst [smem:[#allocation9_spill]] %s6190_s9 }
   0x9   :  { %6233 = sst [smem:[#allocation10_spill]] %s6191_s10 }
   0xa   :  { %6234 = sst [smem:[#allocation11_spill]] %s6192_s12 }
   0xb   :  { %6235 = sst [smem:[#allocation12_spill]] %s6193_s13 }
   0xc   :  { %6236 = sst [smem:[#allocation13_spill]] %s6194_s14 }
   0xd   :  { %s6237_s10 = sld [smem:[#allocation3_spill]] }
   0xe   :  { %s6238_s1 = sld [smem:[#allocation2_spill]] }
   0xf   :  { %s6269_s13 = sld [smem:[#allocation4_spill]] }
  0x10   :  { %s6309_s8 = sld [smem:[#allocation8_spill]] }
  0x11   :  { %s6310_s28 = sld [smem:[#allocation9_spill]] }
  0x12   :  { %s6311_s14 = sld [smem:[#allocation10_spill]] }
  0x13   :  { %v4908_v2 = vld [vmem:[%s6237_s10] sm:$0xff]   ;;  %v5313_v41 = vld [vmem:[%s6237_s10 + $0x8] sm:$0xff]   ;;  %s6272_s10 = sld [smem:[#allocation5_spill]] }
  0x14   :  { %v3952_v4 = vunpack.c.l.bf16 %v4908_v2  ;;  %v4918_v5 = vld [vmem:[%s6238_s1] ss:$0 sm:$0xff]  ;;  %v3953_v39 = vunpack.c.h.bf16 %v4908_v2  ;;  %v3956_v42 = vunpack.c.l.bf16 %v5313_v41  ;;  %v3957_v43 = vunpack.c.h.bf16 %v5313_v41  ;;  %s6307_s1 = sld [smem:[#allocation6_spill]] }
  0x15   :  { %vm4933_vm1 = vcmp.eq.s32.totalorder %v4921_v6, %v4918_v5  ;;  %vm4939_vm2 = vcmp.eq.s32.totalorder %v4924_v7, %v4918_v5  ;;  %vm4958_vm3 = vcmp.eq.s32.totalorder %v4927_v8, %v4918_v5  ;;  %vm4977_vm4 = vcmp.eq.s32.totalorder %v4944_v11, %v4918_v5  ;;  %v5190_v37 = vld [vmem:[%s6269_s13] sm:$0x3]  ;;  %v5351_v44 = vld [vmem:[%s6269_s13 + $0x2] sm:$0x3]  ;;  %v5361_v45 = vld [vmem:[%s6269_s13 + $0x4] sm:$0x3] }
  0x16   :  { %4262 = vmatprep.mubr.f32.mxu0 %v3952_v4  ;;  %4230 = vmatprep.subr.msk.mxu0 %vm4933_vm1, %v4762_v12  ;;  %vm4996_vm5 = vcmp.eq.s32.totalorder %v4963_v14, %v4918_v5  ;;  %vm5015_vm6 = vcmp.eq.s32.totalorder %v4982_v16, %v4918_v5  ;;  %vm5034_vm7 = vcmp.eq.s32.totalorder %v5001_v18, %v4918_v5  ;;  %v185_v40 = vunpack.c.l.bf16 %v5190_v37  ;;  %s6308_s13 = sld [smem:[#allocation7_spill]] }
  0x17   :  { %4269 = vmatpush3.msk.msra.mxu1 %vm4933_vm1, %v4762_v12  ;;  %4231 = vmatpush3.msk.msra.mxu0 %vm4933_vm1, %v4762_v12  ;;  %vm5053_vm8 = vcmp.eq.s32.totalorder %v5020_v20, %v4918_v5  ;;  %vm5072_vm9 = vcmp.eq.s32.totalorder %v5039_v22, %v4918_v5  ;;  %vm5091_vm10 = vcmp.eq.s32.totalorder %v5058_v24, %v4918_v5  ;;  %v188_v47 = vunpack.c.l.bf16 %v5351_v44  ;;  %s6312_s2 = sld [smem:[#allocation11_spill]] }
  0x18   :  { %4270 = vmatprep.subr.mxu1 %v4760_v1  ;;  %4232 = vmatprep.subr.msk.mxu0 %vm4939_vm2, %v4762_v12  ;;  %vm5110_vm11 = vcmp.eq.s32.totalorder %v5077_v26, %v4918_v5  ;;  %vm5129_vm12 = vcmp.eq.s32.totalorder %v5096_v28, %v4918_v5  ;;  %vm5148_vm13 = vcmp.eq.s32.totalorder %v5115_v30, %v4918_v5  ;;  %v191_v48 = vunpack.c.l.bf16 %v5361_v45  ;;  %v794_v33 = vld [vmem:[%s6311_s14] sm:$0xff]  ;;  %v795_v35 = vld [vmem:[%s6311_s14 + $0x8] sm:$0xff]  ;;  %v796_v36 = vld [vmem:[%s6311_s14 + $0x10] sm:$0xff]  ;;  %s6314_s30 = sld [smem:[#allocation13_spill]] }
  0x19   :  { %4271 = vmatpush3.msk.msra.mxu1 %vm4939_vm2, %v4762_v12  ;;  %4233 = vmatpush3.msk.msra.mxu0 %vm4939_vm2, %v4762_v12  ;;  %vm5167_vm14 = vcmp.eq.s32.totalorder %v5134_v32, %v4918_v5  ;;  %vm5183_vm15 = vcmp.eq.s32.totalorder %v5153_v34, %v4918_v5  ;;  %vm5204_vm0 = vcmp.eq.s32.totalorder %v4912_v3, %v4918_v5  ;;  %v5374_v46 = vld [vmem:[%s6272_s10] ss:$0 sm:$0xff]  ;;  %v797_v37 = vld [vmem:[%s6311_s14 + $0x18] sm:$0xff] }
  0x1a   :  { %4272 = vmatprep.subr.mxu1 %v4760_v1  ;;  %4234 = vmatprep.subr.msk.mxu0 %vm4958_vm3, %v4762_v12  ;;  %v806_v2 = vld [vmem:[%s6307_s1] sm:$0xff]  ;;  %v807_v13 = vld [vmem:[%s6307_s1 + $0x8] sm:$0x3] }
  0x1b   :  { %4273 = vmatpush3.msk.msra.mxu1 %vm4958_vm3, %v4762_v12  ;;  %4235 = vmatpush3.msk.msra.mxu0 %vm4958_vm3, %v4762_v12 }
  0x1c   :  { %4274 = vmatprep.subr.mxu1 %v4760_v1  ;;  %4236 = vmatprep.subr.msk.mxu0 %vm4977_vm4, %v4762_v12  ;;  %v3844_v9 = vld [vmem:[%s6308_s13 + $0x2] sm:$0x1] }
  0x1d   :  { %4275 = vmatpush3.msk.msra.mxu1 %vm4977_vm4, %v4762_v12  ;;  %4237 = vmatpush3.msk.msra.mxu0 %vm4977_vm4, %v4762_v12  ;;  %v793_v10 = vunpack.c.l.bf16 %v3844_v9  ;;  %v802_v38 = vld [vmem:[%s6312_s2] sm:$0xff]  ;;  %v804_v41 = vld [vmem:[%s6312_s2 + $0x10] sm:$0xff] }
  0x1e   :  { %4276 = vmatprep.subr.mxu1 %v4760_v1  ;;  %4238 = vmatprep.subr.msk.mxu0 %vm4996_vm5, %v4762_v12  ;;  %v817_v44 = vld [vmem:[%s6314_s30 + $0x8] sm:$0xff]  ;;  %v819_v45 = vld [vmem:[%s6314_s30 + $0x18] sm:$0xff] }
  0x1f   :  { %4277 = vmatpush3.msk.msra.mxu1 %vm4996_vm5, %v4762_v12  ;;  %4239 = vmatpush3.msk.msra.mxu0 %vm4996_vm5, %v4762_v12 }
  0x20   :  { %4278 = vmatprep.subr.mxu1 %v4760_v1  ;;  %4240 = vmatprep.subr.msk.mxu0 %vm5015_vm6, %v4762_v12 }
  0x21   :  { %4279 = vmatpush3.msk.msra.mxu1 %vm5015_vm6, %v4762_v12  ;;  %4241 = vmatpush3.msk.msra.mxu0 %vm5015_vm6, %v4762_v12 }
  0x22   :  { %4280 = vmatprep.subr.mxu1 %v4760_v1  ;;  %4242 = vmatprep.subr.msk.mxu0 %vm5034_vm7, %v4762_v12 }
  0x23   :  { %4281 = vmatpush3.msk.msra.mxu1 %vm5034_vm7, %v4762_v12  ;;  %4243 = vmatpush3.msk.msra.mxu0 %vm5034_vm7, %v4762_v12 }
  0x24   :  { %4282 = vmatprep.subr.mxu1 %v4760_v1  ;;  %4244 = vmatprep.subr.msk.mxu0 %vm5053_vm8, %v4762_v12 }
  0x25   :  { %4283 = vmatpush3.msk.msra.mxu1 %vm5053_vm8, %v4762_v12  ;;  %4245 = vmatpush3.msk.msra.mxu0 %vm5053_vm8, %v4762_v12 }
  0x26   :  { %4284 = vmatprep.subr.mxu1 %v4760_v1  ;;  %4246 = vmatprep.subr.msk.mxu0 %vm5072_vm9, %v4762_v12 }
  0x27   :  { %4285 = vmatpush3.msk.msra.mxu1 %vm5072_vm9, %v4762_v12  ;;  %4247 = vmatpush3.msk.msra.mxu0 %vm5072_vm9, %v4762_v12 }
  0x28   :  { %4286 = vmatprep.subr.mxu1 %v4760_v1  ;;  %4248 = vmatprep.subr.msk.mxu0 %vm5091_vm10, %v4762_v12 }
  0x29   :  { %4287 = vmatpush3.msk.msra.mxu1 %vm5091_vm10, %v4762_v12  ;;  %4249 = vmatpush3.msk.msra.mxu0 %vm5091_vm10, %v4762_v12 }
  0x2a   :  { %4288 = vmatprep.subr.mxu1 %v4760_v1  ;;  %4250 = vmatprep.subr.msk.mxu0 %vm5110_vm11, %v4762_v12 }
  0x2b   :  { %4289 = vmatpush3.msk.msra.mxu1 %vm5110_vm11, %v4762_v12  ;;  %4251 = vmatpush3.msk.msra.mxu0 %vm5110_vm11, %v4762_v12 }
  0x2c   :  { %4290 = vmatprep.subr.mxu1 %v4760_v1  ;;  %4252 = vmatprep.subr.msk.mxu0 %vm5129_vm12, %v4762_v12 }
  0x2d   :  { %4291 = vmatpush3.msk.msra.mxu1 %vm5129_vm12, %v4762_v12  ;;  %4253 = vmatpush3.msk.msra.mxu0 %vm5129_vm12, %v4762_v12 }
  0x2e   :  { %4292 = vmatprep.subr.mxu1 %v4760_v1  ;;  %4254 = vmatprep.subr.msk.mxu0 %vm5148_vm13, %v4762_v12 }
  0x2f   :  { %4293 = vmatpush3.msk.msra.mxu1 %vm5148_vm13, %v4762_v12  ;;  %4255 = vmatpush3.msk.msra.mxu0 %vm5148_vm13, %v4762_v12 }
  0x30   :  { %4294 = vmatprep.subr.mxu1 %v4760_v1  ;;  %4256 = vmatprep.subr.msk.mxu0 %vm5167_vm14, %v4762_v12 }
  0x31   :  { %4295 = vmatpush3.msk.msra.mxu1 %vm5167_vm14, %v4762_v12  ;;  %4257 = vmatpush3.msk.msra.mxu0 %vm5167_vm14, %v4762_v12 }
  0x32   :  { %4296 = vmatprep.subr.mxu1 %v4760_v1  ;;  %4258 = vmatprep.subr.msk.mxu0 %vm5183_vm15, %v4762_v12 }
  0x33   :  { %4297 = vmatpush3.msk.msra.mxu1 %vm5183_vm15, %v4762_v12  ;;  %4259 = vmatpush3.msk.msra.mxu0 %vm5183_vm15, %v4762_v12 }
  0x34   :  { %4298 = vmatprep.subr.mxu1 %v4760_v1  ;;  %4260 = vmatprep.subr.msk.mxu0 %vm5204_vm0, %v4762_v12 }
  0x35   :  { %4299 = vmatpush3.msk.msra.mxu1 %vm5204_vm0, %v4762_v12  ;;  %4261 = vmatpush3.msk.msra.mxu0 %vm5204_vm0, %v4762_v12 }
  0x36   :  { %4338 = vmatprep.subr.mxu1 %v4760_v1  ;;  %4263 = vmatmul.mubr.f32.vlgmr.msra.gmra.mxu0 %v3953_v39 }
  0x37   :  { %4301 = vmatmul.mubr.f32.vlgmr.msra.gmra.mxu1 %v185_v40  ;;  %4303 = vmatprep.subr.mxu0 %v4760_v1 }
  0x38   :  { %4339 = vmatpush3.msk.msra.mxu1 %vm4933_vm1, %v4762_v12  ;;  %4304 = vmatpush3.msk.msra.mxu0 %vm4933_vm1, %v4762_v12  ;;  %vm6273_vm1 = vmmov 0  }
  0x39   :  { %4340 = vmatprep.subr.mxu1 %v4760_v1  ;;  %4305 = vmatprep.subr.mxu0 %v4760_v1 }
  0x3a   :  { %4341 = vmatpush3.msk.msra.mxu1 %vm4939_vm2, %v4762_v12  ;;  %4306 = vmatpush3.msk.msra.mxu0 %vm4939_vm2, %v4762_v12  ;;  %vm5393_vm2 = vcmp.eq.s32.totalorder %v4921_v6, %v5374_v46  ;;  %v3843_v6 = vld [vmem:[%s6308_s13 + $0x1] sm:$0x1] }
  0x3b   :  { %4342 = vmatprep.subr.mxu1 %v4760_v1  ;;  %4307 = vmatprep.subr.mxu0 %v4760_v1 }
  0x3c   :  { %4343 = vmatpush3.msk.msra.mxu1 %vm4958_vm3, %v4762_v12  ;;  %4308 = vmatpush3.msk.msra.mxu0 %vm4958_vm3, %v4762_v12  ;;  %vm5422_vm3 = vcmp.eq.s32.totalorder %v4927_v8, %v5374_v46  ;;  %v790_v8 = vunpack.c.l.bf16 %v3843_v6 }
  0x3d   :  { %4344 = vmatprep.subr.mxu1 %v4760_v1  ;;  %4309 = vmatprep.subr.mxu0 %v4760_v1 }
  0x3e   :  { %4345 = vmatpush3.msk.msra.mxu1 %vm4977_vm4, %v4762_v12  ;;  %4310 = vmatpush3.msk.msra.mxu0 %vm4977_vm4, %v4762_v12  ;;  %vm5438_vm4 = vcmp.eq.s32.totalorder %v4944_v11, %v5374_v46  ;;  %v810_v11 = vld [vmem:[%s6310_s28] sm:$0xff] }
  0x3f   :  { %4346 = vmatprep.subr.mxu1 %v4760_v1  ;;  %4311 = vmatprep.subr.mxu0 %v4760_v1 }
  0x40   :  { %4347 = vmatpush3.msk.msra.mxu1 %vm4996_vm5, %v4762_v12  ;;  %4312 = vmatpush3.msk.msra.mxu0 %vm4996_vm5, %v4762_v12  ;;  %vm5454_vm5 = vcmp.eq.s32.totalorder %v4963_v14, %v5374_v46 }
  0x41   :  { %4348 = vmatprep.subr.mxu1 %v4760_v1  ;;  %4313 = vmatprep.subr.mxu0 %v4760_v1 }
  0x42   :  { %4349 = vmatpush3.msk.msra.mxu1 %vm5015_vm6, %v4762_v12  ;;  %4314 = vmatpush3.msk.msra.mxu0 %vm5015_vm6, %v4762_v12  ;;  %vm5470_vm6 = vcmp.eq.s32.totalorder %v4982_v16, %v5374_v46 }
  0x43   :  { %4350 = vmatprep.subr.mxu1 %v4760_v1  ;;  %4315 = vmatprep.subr.mxu0 %v4760_v1 }
  0x44   :  { %4351 = vmatpush3.msk.msra.mxu1 %vm5034_vm7, %v4762_v12  ;;  %4316 = vmatpush3.msk.msra.mxu0 %vm5034_vm7, %v4762_v12  ;;  %vm5486_vm7 = vcmp.eq.s32.totalorder %v5001_v18, %v5374_v46 }
  0x45   :  { %4352 = vmatprep.subr.mxu1 %v4760_v1  ;;  %4317 = vmatprep.subr.mxu0 %v4760_v1 }
  0x46   :  { %4353 = vmatpush3.msk.msra.mxu1 %vm5053_vm8, %v4762_v12  ;;  %4318 = vmatpush3.msk.msra.mxu0 %vm5053_vm8, %v4762_v12  ;;  %vm5502_vm8 = vcmp.eq.s32.totalorder %v5020_v20, %v5374_v46 }
  0x47   :  { %4354 = vmatprep.subr.mxu1 %v4760_v1  ;;  %4319 = vmatprep.subr.mxu0 %v4760_v1 }
  0x48   :  { %4355 = vmatpush3.msk.msra.mxu1 %vm5072_vm9, %v4762_v12  ;;  %4320 = vmatpush3.msk.msra.mxu0 %vm5072_vm9, %v4762_v12  ;;  %vm5518_vm9 = vcmp.eq.s32.totalorder %v5039_v22, %v5374_v46 }
  0x49   :  { %4356 = vmatprep.subr.mxu1 %v4760_v1  ;;  %4321 = vmatprep.subr.mxu0 %v4760_v1 }
  0x4a   :  { %4357 = vmatpush3.msk.msra.mxu1 %vm5091_vm10, %v4762_v12  ;;  %4322 = vmatpush3.msk.msra.mxu0 %vm5091_vm10, %v4762_v12  ;;  %vm5534_vm10 = vcmp.eq.s32.totalorder %v5058_v24, %v5374_v46  ;;  %v811_v24 = vld [vmem:[%s6310_s28 + $0x8] sm:$0x3] }
  0x4b   :  { %4358 = vmatprep.subr.mxu1 %v4760_v1  ;;  %4323 = vmatprep.subr.mxu0 %v4760_v1 }
  0x4c   :  { %4359 = vmatpush3.msk.msra.mxu1 %vm5110_vm11, %v4762_v12  ;;  %4324 = vmatpush3.msk.msra.mxu0 %vm5110_vm11, %v4762_v12  ;;  %vm5550_vm11 = vcmp.eq.s32.totalorder %v5077_v26, %v5374_v46 }
  0x4d   :  { %4360 = vmatprep.subr.mxu1 %v4760_v1  ;;  %4325 = vmatprep.subr.mxu0 %v4760_v1 }
  0x4e   :  { %4361 = vmatpush3.msk.msra.mxu1 %vm5129_vm12, %v4762_v12  ;;  %4326 = vmatpush3.msk.msra.mxu0 %vm5129_vm12, %v4762_v12  ;;  %vm5566_vm12 = vcmp.eq.s32.totalorder %v5096_v28, %v5374_v46 }
  0x4f   :  { %4362 = vmatprep.subr.mxu1 %v4760_v1  ;;  %4327 = vmatprep.subr.mxu0 %v4760_v1 }
  0x50   :  { %4363 = vmatpush3.msk.msra.mxu1 %vm5148_vm13, %v4762_v12  ;;  %4328 = vmatpush3.msk.msra.mxu0 %vm5148_vm13, %v4762_v12  ;;  %vm5582_vm13 = vcmp.eq.s32.totalorder %v5115_v30, %v5374_v46 }
  0x51   :  { %4364 = vmatprep.subr.mxu1 %v4760_v1  ;;  %4265 = vmatprep.mubr.f32.mxu0 %v3956_v42  ;;  %v6299_v61 = vsel %vm5582_vm13, 4294967295, %v6298_v61 }
  0x52   :  { %4329 = vmatprep.subr.mxu0 %v4760_v1  ;;  %4365 = vmatpush3.msk.msra.mxu1 %vm5167_vm14, %v4762_v12 }
  0x53   :  { %4266 = vmatmul.mubr.f32.gmra.mxu0 %v3957_v43  ;;  %4366 = vmatprep.subr.mxu1 %v4760_v1 }
  0x54   :  { %4330 = vmatpush3.msk.msra.mxu0 %vm5167_vm14, %v4762_v12  ;;  %4367 = vmatpush3.msk.msra.mxu1 %vm5183_vm15, %v4762_v12  ;;  %vm5598_vm14 = vcmp.eq.s32.totalorder %v5134_v32, %v5374_v46 }
  0x55   :  { %4331 = vmatprep.subr.mxu0 %v4760_v1  ;;  %4368 = vmatprep.subr.mxu1 %v4760_v1 }
  0x56   :  { %4332 = vmatpush3.msk.msra.mxu0 %vm5183_vm15, %v4762_v12  ;;  %4369 = vmatpush3.msk.msra.mxu1 %vm5204_vm0, %v4762_v12  ;;  %vm5614_vm15 = vcmp.eq.s32.totalorder %v5153_v34, %v5374_v46 }
  0x57   :  { %4333 = vmatprep.subr.mxu0 %v4760_v1  ;;  %4335 = vmatprep.mubr.msk.f32.mxu0 %vm6273_vm1, %v4760_v1 }
  0x58   :  { %4334 = vmatpush3.msk.msra.mxu0 %vm5204_vm0, %v4762_v12  ;;  %4370 = vmatprep.mubr.msk.f32.mxu1 %vm6273_vm1, %v4760_v1  ;;  %vm5406_vm0 = vcmp.eq.s32.totalorder %v4924_v7, %v5374_v46  ;;  %v809_v7 = vld [vmem:[%s6309_s8 + $0x8] sm:$0x3] }
  0x59   :  { %4411 = vmatprep.subr.mxu1 %v4760_v1  ;;  %4336 = vmatmul.mubr.f32.vlgmr.msra.gmra.mxu0 %v188_v47 }
  0x5a   :  { %4371 = vmatmul.mubr.f32.vlgmr.msra.gmra.mxu1 %v191_v48  ;;  %4373 = vmatprep.subr.msk.mxu0 %vm5393_vm2, %v4762_v12 }
  0x5b   :  { %4412 = vmatpush3.msk.msra.mxu1 %vm5393_vm2, %v4762_v12  ;;  %4374 = vmatpush3.msk.msra.mxu0 %vm5393_vm2, %v4762_v12 }
  0x5c   :  { %4413 = vmatprep.subr.mxu1 %v4760_v1  ;;  %4375 = vmatprep.subr.msk.mxu0 %vm5406_vm0, %v4762_v12 }
  0x5d   :  { %4414 = vmatpush3.msk.msra.mxu1 %vm5406_vm0, %v4762_v12  ;;  %4376 = vmatpush3.msk.msra.mxu0 %vm5406_vm0, %v4762_v12 }
  0x5e   :  { %4415 = vmatprep.subr.mxu1 %v4760_v1  ;;  %4377 = vmatprep.subr.msk.mxu0 %vm5422_vm3, %v4762_v12 }
  0x5f   :  { %4416 = vmatpush3.msk.msra.mxu1 %vm5422_vm3, %v4762_v12  ;;  %4378 = vmatpush3.msk.msra.mxu0 %vm5422_vm3, %v4762_v12 }
  0x60   :  { %4417 = vmatprep.subr.mxu1 %v4760_v1  ;;  %4379 = vmatprep.subr.msk.mxu0 %vm5438_vm4, %v4762_v12 }
  0x61   :  { %4418 = vmatpush3.msk.msra.mxu1 %vm5438_vm4, %v4762_v12  ;;  %4380 = vmatpush3.msk.msra.mxu0 %vm5438_vm4, %v4762_v12 }
  0x62   :  { %4419 = vmatprep.subr.mxu1 %v4760_v1  ;;  %4381 = vmatprep.subr.msk.mxu0 %vm5454_vm5, %v4762_v12 }
  0x63   :  { %4420 = vmatpush3.msk.msra.mxu1 %vm5454_vm5, %v4762_v12  ;;  %4382 = vmatpush3.msk.msra.mxu0 %vm5454_vm5, %v4762_v12 }
  0x64   :  { %4421 = vmatprep.subr.mxu1 %v4760_v1  ;;  %4383 = vmatprep.subr.msk.mxu0 %vm5470_vm6, %v4762_v12 }
  0x65   :  { %4422 = vmatpush3.msk.msra.mxu1 %vm5470_vm6, %v4762_v12  ;;  %4384 = vmatpush3.msk.msra.mxu0 %vm5470_vm6, %v4762_v12 }
  0x66   :  { %4423 = vmatprep.subr.mxu1 %v4760_v1  ;;  %4385 = vmatprep.subr.msk.mxu0 %vm5486_vm7, %v4762_v12 }
  0x67   :  { %4424 = vmatpush3.msk.msra.mxu1 %vm5486_vm7, %v4762_v12  ;;  %4386 = vmatpush3.msk.msra.mxu0 %vm5486_vm7, %v4762_v12 }
  0x68   :  { %4425 = vmatprep.subr.mxu1 %v4760_v1  ;;  %4387 = vmatprep.subr.msk.mxu0 %vm5502_vm8, %v4762_v12 }
  0x69   :  { %4426 = vmatpush3.msk.msra.mxu1 %vm5502_vm8, %v4762_v12  ;;  %4388 = vmatpush3.msk.msra.mxu0 %vm5502_vm8, %v4762_v12 }
  0x6a   :  { %4427 = vmatprep.subr.mxu1 %v4760_v1  ;;  %4389 = vmatprep.subr.msk.mxu0 %vm5518_vm9, %v4762_v12 }
  0x6b   :  { %4428 = vmatpush3.msk.msra.mxu1 %vm5518_vm9, %v4762_v12  ;;  %4390 = vmatpush3.msk.msra.mxu0 %vm5518_vm9, %v4762_v12 }
  0x6c   :  { %4429 = vmatprep.subr.mxu1 %v4760_v1  ;;  %4391 = vmatprep.subr.msk.mxu0 %vm5534_vm10, %v4762_v12 }
  0x6d   :  { %4430 = vmatpush3.msk.msra.mxu1 %vm5534_vm10, %v4762_v12  ;;  %4392 = vmatpush3.msk.msra.mxu0 %vm5534_vm10, %v4762_v12 }
  0x6e   :  { %4431 = vmatprep.subr.mxu1 %v4760_v1  ;;  %4393 = vmatprep.subr.msk.mxu0 %vm5550_vm11, %v4762_v12 }
  0x6f   :  { %4432 = vmatpush3.msk.msra.mxu1 %vm5550_vm11, %v4762_v12  ;;  %4394 = vmatpush3.msk.msra.mxu0 %vm5550_vm11, %v4762_v12 }
  0x70   :  { %4433 = vmatprep.subr.mxu1 %v4760_v1  ;;  %4395 = vmatprep.subr.msk.mxu0 %vm5566_vm12, %v4762_v12 }
  0x71   :  { %4434 = vmatpush3.msk.msra.mxu1 %vm5566_vm12, %v4762_v12  ;;  %4396 = vmatpush3.msk.msra.mxu0 %vm5566_vm12, %v4762_v12 }
  0x72   :  { %4435 = vmatprep.subr.mxu1 %v4760_v1  ;;  %4397 = vmatprep.subr.msk.mxu0 %vm5582_vm13, %v4762_v12 }
  0x73   :  { %4436 = vmatpush3.msk.msra.mxu1 %vm5582_vm13, %v4762_v12  ;;  %4398 = vmatpush3.msk.msra.mxu0 %vm5582_vm13, %v4762_v12  ;;  %vm5630_vm13 = vcmp.eq.s32.totalorder %v4912_v3, %v5374_v46  ;;  %v786_v3 = vld [vmem:[%s6308_s13] sm:$0x1] }
  0x74   :  { %4437 = vmatprep.subr.mxu1 %v4760_v1  ;;  %4399 = vmatprep.subr.msk.mxu0 %vm5598_vm14, %v4762_v12  ;;  %v787_v5 = vunpack.c.l.bf16 %v786_v3  ;;  %v816_v46 = vld [vmem:[%s6314_s30] sm:$0xff] }
  0x75   :  { %4438 = vmatpush3.msk.msra.mxu1 %vm5598_vm14, %v4762_v12  ;;  %4400 = vmatpush3.msk.msra.mxu0 %vm5598_vm14, %v4762_v12 }
  0x76   :  { %4439 = vmatprep.subr.mxu1 %v4760_v1  ;;  %4401 = vmatprep.subr.msk.mxu0 %vm5614_vm15, %v4762_v12 }
  0x77   :  { %4440 = vmatpush3.msk.msra.mxu1 %vm5614_vm15, %v4762_v12  ;;  %4402 = vmatpush3.msk.msra.mxu0 %vm5614_vm15, %v4762_v12 }
  0x78   :  { %4441 = vmatprep.subr.mxu1 %v4760_v1  ;;  %4403 = vmatprep.subr.msk.mxu0 %vm5630_vm13, %v4762_v12 }
  0x79   :  { %4442 = vmatpush3.msk.msra.mxu1 %vm5630_vm13, %v4762_v12  ;;  %4404 = vmatpush3.msk.msra.mxu0 %vm5630_vm13, %v4762_v12 }
  0x7a   :  { %4405 = vmatprep.mubr.f32.mxu0 %v3952_v4  ;;  %4443 = vmatprep.mubr.msk.f32.mxu1 %vm6273_vm1, %v4760_v1  ;;  %v808_v4 = vld [vmem:[%s6309_s8] sm:$0xff]  ;;  %s6313_s8 = sld [smem:[#allocation12_spill]] }
  0x7b   :  { %4481 = vmatprep.subr.mxu1 %v4760_v1  ;;  %4406 = vmatmul.mubr.f32.vlgmr.msra.gmra.mxu0 %v3953_v39  ;;  %v803_v39 = vld [vmem:[%s6312_s2 + $0x8] sm:$0xff] }
  0x7c   :  { %4444 = vmatmul.mubr.f32.vlgmr.msra.gmra.mxu1 %v185_v40  ;;  %4446 = vmatprep.subr.mxu0 %v4760_v1 }
  0x7d   :  { %4482 = vmatpush3.msk.msra.mxu1 %vm5393_vm2, %v4762_v12  ;;  %4447 = vmatpush3.msk.msra.mxu0 %vm5393_vm2, %v4762_v12  ;;  %vm6306_vm2 = vnez %v6299_v61 }
  0x7e   :  { %4483 = vmatprep.subr.mxu1 %v4760_v1  ;;  %4448 = vmatprep.subr.mxu0 %v4760_v1 }
  0x7f   :  { %4484 = vmatpush3.msk.msra.mxu1 %vm5406_vm0, %v4762_v12  ;;  %4449 = vmatpush3.msk.msra.mxu0 %vm5406_vm0, %v4762_v12  ;;  %vm907_vm0 = vcmask 31744  }
  0x80   :  { %4485 = vmatprep.subr.mxu1 %v4760_v1  ;;  %4450 = vmatprep.subr.mxu0 %v4760_v1  ;;  %v812_v40 = vld [vmem:[%s6313_s8] sm:$0xff] }
  0x81   :  { %4486 = vmatpush3.msk.msra.mxu1 %vm5422_vm3, %v4762_v12  ;;  %4451 = vmatpush3.msk.msra.mxu0 %vm5422_vm3, %v4762_v12  ;;  %vm821_vm3 = vcmask 15360  }
  0x82   :  { %4487 = vmatprep.subr.mxu1 %v4760_v1  ;;  %4452 = vmatprep.subr.mxu0 %v4760_v1 }
  0x83   :  { %4488 = vmatpush3.msk.msra.mxu1 %vm5438_vm4, %v4762_v12  ;;  %4453 = vmatpush3.msk.msra.mxu0 %vm5438_vm4, %v4762_v12  ;;  %vm828_vm4 = vcmask 1041408  }
  0x84   :  { %4489 = vmatprep.subr.mxu1 %v4760_v1  ;;  %4454 = vmatprep.subr.mxu0 %v4760_v1 }
  0x85   :  { %4490 = vmatpush3.msk.msra.mxu1 %vm5454_vm5, %v4762_v12  ;;  %4455 = vmatpush3.msk.msra.mxu0 %vm5454_vm5, %v4762_v12  ;;  %vm914_vm5 = vcmask 1043456  }
  0x86   :  { %4491 = vmatprep.subr.mxu1 %v4760_v1  ;;  %4456 = vmatprep.subr.mxu0 %v4760_v1 }
  0x87   :  { %4492 = vmatpush3.msk.msra.mxu1 %vm5470_vm6, %v4762_v12  ;;  %4457 = vmatpush3.msk.msra.mxu0 %vm5470_vm6, %v4762_v12  ;;  %vm1698_vm6 = vcmask 261120  }
  0x88   :  { %4493 = vmatprep.subr.mxu1 %v4760_v1  ;;  %4458 = vmatprep.subr.mxu0 %v4760_v1 }
  0x89   :  { %4494 = vmatpush3.msk.msra.mxu1 %vm5486_vm7, %v4762_v12  ;;  %4459 = vmatpush3.msk.msra.mxu0 %vm5486_vm7, %v4762_v12  ;;  %vm1597_vm7 = vcmask 80896  }
  0x8a   :  { %4495 = vmatprep.subr.mxu1 %v4760_v1  ;;  %4460 = vmatprep.subr.mxu0 %v4760_v1 }
  0x8b   :  { %4496 = vmatpush3.msk.msra.mxu1 %vm5502_vm8, %v4762_v12  ;;  %4461 = vmatpush3.msk.msra.mxu0 %vm5502_vm8, %v4762_v12 }
  0x8c   :  { %4497 = vmatprep.subr.mxu1 %v4760_v1  ;;  %4462 = vmatprep.subr.mxu0 %v4760_v1 }
  0x8d   :  { %4498 = vmatpush3.msk.msra.mxu1 %vm5518_vm9, %v4762_v12  ;;  %4463 = vmatpush3.msk.msra.mxu0 %vm5518_vm9, %v4762_v12 }
  0x8e   :  { %4499 = vmatprep.subr.mxu1 %v4760_v1  ;;  %4464 = vmatprep.subr.mxu0 %v4760_v1 }
  0x8f   :  { %4500 = vmatpush3.msk.msra.mxu1 %vm5534_vm10, %v4762_v12  ;;  %4465 = vmatpush3.msk.msra.mxu0 %vm5534_vm10, %v4762_v12 }
  0x90   :  { %4501 = vmatprep.subr.mxu1 %v4760_v1  ;;  %4466 = vmatprep.subr.mxu0 %v4760_v1 }
  0x91   :  { %4502 = vmatpush3.msk.msra.mxu1 %vm5550_vm11, %v4762_v12  ;;  %4467 = vmatpush3.msk.msra.mxu0 %vm5550_vm11, %v4762_v12 }
  0x92   :  { %4503 = vmatprep.subr.mxu1 %v4760_v1  ;;  %4468 = vmatprep.subr.mxu0 %v4760_v1 }
  0x93   :  { %4504 = vmatpush3.msk.msra.mxu1 %vm5566_vm12, %v4762_v12  ;;  %4469 = vmatpush3.msk.msra.mxu0 %vm5566_vm12, %v4762_v12  ;;  %vm1800_vm12 = vcmask 130048  }
  0x94   :  { %4505 = vmatprep.subr.mxu1 %v4760_v1  ;;  %4470 = vmatprep.subr.mxu0 %v4760_v1 }
  0x95   :  { %4506 = vmatpush3.msk.msra.mxu1 %vm6306_vm2, %v4762_v12  ;;  %4408 = vmatprep.mubr.f32.mxu0 %v3956_v42  ;;  %v805_v42 = vld [vmem:[%s6312_s2 + $0x18] sm:$0xff] }
  0x96   :  { %4471 = vmatpush3.msk.msra.mxu0 %vm6306_vm2, %v4762_v12  ;;  %4507 = vmatprep.subr.mxu1 %v4760_v1 }
  0x97   :  { %4409 = vmatmul.mubr.f32.gmra.mxu0 %v3957_v43  ;;  %4472 = vmatprep.subr.mxu0 %v4760_v1  ;;  %v4763_v43 = vmov 0  }
  0x98   :  { %4508 = vmatpush3.msk.msra.mxu1 %vm5598_vm14, %v4762_v12  ;;  %4473 = vmatpush3.msk.msra.mxu0 %vm5598_vm14, %v4762_v12 }
  0x99   :  { %4509 = vmatprep.subr.mxu1 %v4760_v1  ;;  %4474 = vmatprep.subr.mxu0 %v4760_v1 }
  0x9a   :  { %4510 = vmatpush3.msk.msra.mxu1 %vm5614_vm15, %v4762_v12  ;;  %4475 = vmatpush3.msk.msra.mxu0 %vm5614_vm15, %v4762_v12 }
  0x9b   :  { %4511 = vmatprep.subr.mxu1 %v4760_v1  ;;  %4476 = vmatprep.subr.mxu0 %v4760_v1 }
  0x9c   :  { %4512 = vmatpush3.msk.msra.mxu1 %vm5630_vm13, %v4762_v12  ;;  %4513 = vmatprep.mubr.msk.f32.mxu1 %vm6273_vm1, %v4760_v1 }
  0x9d   :  { %4477 = vmatpush3.msk.msra.mxu0 %vm5630_vm13, %v4762_v12  ;;  %4478 = vmatprep.mubr.msk.f32.mxu0 %vm6273_vm1, %v4760_v1 }
  0x9e   :  { %4514 = vmatmul.mubr.f32.vlgmr.msra.gmra.mxu1 %v191_v48  ;;  %4479 = vmatmul.mubr.f32.vlgmr.msra.gmra.mxu0 %v188_v47  ;;  %v818_v47 = vld [vmem:[%s6314_s30 + $0x10] sm:$0xff] }
  0x9f   :  { %4523 = vmatprep.mubr.msk.f32.mxu1 %vm907_vm0, %v806_v2  ;;  %4518 = vmatprep.mubr.msk.f32.mxu0 %vm821_vm3, %v808_v4 }
  0xa0   :  { %4516 = vmatprep.subr.msk.mxu0 %vm828_vm4, %v787_v5  ;;  %4739 = vset.pattern.permute.xlu1 %v4763_v43 }
  0xa1   :  { %4517 = vmatpush3.msk.msra.mxu0 %vm828_vm4, %v787_v5  ;;  %4738 = vset.pattern.permute.xlu0 %v4763_v43  ;;  %v815_v43 = vld [vmem:[%s6313_s8 + $0x18] sm:$0xff] }
  0xa2   :  { %4519 = vmatmul.mubr.msk.f32.vlgmr.msra.gmra.mxu0 %vm821_vm3, %v809_v7  ;;  %4526 = vmatprep.subr.msk.mxu0 %vm828_vm4, %v790_v8 }
  0xa3   :  { %4527 = vmatpush3.msk.msra.mxu0 %vm828_vm4, %v790_v8  ;;  %4528 = vmatprep.mubr.msk.f32.mxu0 %vm821_vm3, %v808_v4 }
  0xa4   :  { %4536 = vmatprep.subr.msk.mxu0 %vm828_vm4, %v793_v10  ;;  %1584 = vperm.xlu1 %4739, %v817_v44   ;;  %v798_v44 = vld [vmem:[%s6197_s11] sm:$0xff] }
  0xa5   :  { %1594 = vperm.xlu0 %4738, %v819_v45   ;;  %v799_v45 = vld [vmem:[%s6197_s11 + $0x8] sm:$0xff] }
  0xa6   :  { %4529 = vmatmul.mubr.msk.f32.vlgmr.msra.gmra.mxu0 %vm821_vm3, %v809_v7 }
  0xa7   :  { %4538 = vmatprep.mubr.msk.f32.mxu0 %vm821_vm3, %v808_v4  ;;  %4537 = vmatpush3.msk.msra.mxu0 %vm828_vm4, %v793_v10 }
  0xa8   :  { %1579 = vperm.xlu1 %4739, %v816_v46   ;;  %v800_v46 = vld [vmem:[%s6197_s11 + $0x10] sm:$0xff] }
  0xa9   :  { %1589 = vperm.xlu0 %4738, %v818_v47   ;;  %v801_v47 = vld [vmem:[%s6197_s11 + $0x18] sm:$0xff] }
  0xaa   :  { %4539 = vmatmul.mubr.msk.f32.vlgmr.msra.gmra.mxu0 %vm821_vm3, %v809_v7 }
  0xab   :  { %4548 = vmatprep.mubr.msk.f32.mxu0 %vm907_vm0, %v810_v11 }
  0xf6   :  { %v4264_v15 = vpop.f32.mrf.mxu0 }
  0xf7   :  { %v343_v12 = vpop.f32.mrf.mxu1 }
  0xf8   :  { %4521 = vmatprep.subr.msk.mxu1 %vm914_vm5, %v343_v12  ;;  %v258_v16 = vpop.f32.mrf.mxu0 }
  0xf9   :  { %v4302_v14 = vpop.f32.mrf.mxu1  ;;  %4522 = vmatpush3.msk.msra.mxu1 %vm914_vm5, %v343_v12 }
  0xfa   :  { %4524 = vmatmul.mubr.msk.f32.vlgmr.msra.gmra.mxu1 %vm907_vm0, %v807_v13 }
  0xfb   :  { %4533 = vmatprep.mubr.msk.f32.mxu1 %vm907_vm0, %v806_v2 }
 0x113   :  { %v4267_v17 = vpop.f32.mrf.mxu0 }
 0x115   :  { %v268_v18 = vpop.f32.mrf.mxu0 }
 0x119   :  { %v413_v19 = vpop.f32.mrf.mxu0 }
 0x11a   :  { %v483_v20 = vpop.f32.mrf.mxu1  ;;  %4531 = vmatprep.subr.msk.mxu1 %vm914_vm5, %v413_v19 }
 0x11b   :  { %v4337_v21 = vpop.f32.mrf.mxu0  ;;  %4532 = vmatpush3.msk.msra.mxu1 %vm914_vm5, %v413_v19 }
 0x11c   :  { %v4372_v22 = vpop.f32.mrf.mxu1  ;;  %4541 = vmatprep.subr.msk.mxu1 %vm914_vm5, %v483_v20  ;;  %4534 = vmatmul.mubr.msk.f32.vlgmr.msra.gmra.mxu1 %vm907_vm0, %v807_v13 }
 0x11d   :  { %4542 = vmatpush3.msk.msra.mxu1 %vm914_vm5, %v483_v20  ;;  %4543 = vmatprep.mubr.msk.f32.mxu1 %vm907_vm0, %v806_v2 }
 0x120   :  { %4544 = vmatmul.mubr.msk.f32.vlgmr.msra.gmra.mxu1 %vm907_vm0, %v807_v13 }
 0x121   :  { %4553 = vmatprep.mubr.msk.f32.mxu1 %vm907_vm0, %v810_v11 }
 0x13b   :  { %v4407_v26 = vpop.f32.mrf.mxu0 }
 0x13c   :  { %v638_v23 = vpop.f32.mrf.mxu1 }
 0x13d   :  { %4546 = vmatprep.subr.msk.mxu0 %vm914_vm5, %v638_v23  ;;  %v553_v27 = vpop.f32.mrf.mxu0 }
 0x13e   :  { %v4445_v25 = vpop.f32.mrf.mxu1  ;;  %4547 = vmatpush3.msk.msra.mxu0 %vm914_vm5, %v638_v23 }
 0x13f   :  { %4549 = vmatmul.mubr.msk.f32.vlgmr.msra.gmra.mxu0 %vm907_vm0, %v811_v24 }
 0x140   :  { %4558 = vmatprep.mubr.msk.f32.mxu0 %vm907_vm0, %v810_v11 }
 0x157   :  { %v4410_v28 = vpop.f32.mrf.mxu0 }
 0x159   :  { %v563_v29 = vpop.f32.mrf.mxu0 }
 0x15e   :  { %v778_v30 = vpop.f32.mrf.mxu1  ;;  %v708_v31 = vpop.f32.mrf.mxu0 }
 0x15f   :  { %4556 = vmatprep.subr.msk.mxu0 %vm914_vm5, %v778_v30  ;;  %4551 = vmatprep.subr.msk.mxu1 %vm914_vm5, %v708_v31 }
 0x160   :  { %4557 = vmatpush3.msk.msra.mxu0 %vm914_vm5, %v778_v30  ;;  %v4515_v32 = vpop.f32.mrf.mxu1  ;;  %v4480_v34 = vpop.f32.mrf.mxu0  ;;  %4552 = vmatpush3.msk.msra.mxu1 %vm914_vm5, %v708_v31 }
 0x161   :  { %4559 = vmatmul.mubr.msk.f32.vlgmr.msra.gmra.mxu0 %vm907_vm0, %v811_v24  ;;  %4571 = vmatprep.subr.mxu0 %v4267_v17  ;;  %v3959_v32 = vld [vmem:[%s6196_s0] sm:$0xff]  }
 0x162   :  { %4554 = vmatmul.mubr.msk.f32.vlgmr.msra.gmra.mxu1 %vm907_vm0, %v811_v24  ;;  %4572 = vmatpush3.msra.mxu0 %v4267_v17  ;;  %v4520_v48 = vpop.f32.mrf.mxu0 }
 0x163   :  { %4579 = vmatprep.mubr.msk.f32.mxu0 %vm1698_vm6, %v794_v33  ;;  %4573 = vmatprep.subr.mxu0 %v268_v18 }
 0x164   :  { %4574 = vmatpush3.msra.mxu0 %v268_v18  ;;  %4565 = vmatprep.mubr.msk.f32.mxu1 %vm1597_vm7, %v812_v40  ;;  %v898_v49 = vpop.f32.mrf.mxu0  ;;  %v5934_v18 = vld [vmem:[%s6195_s15] sm:$0xf]  ;;  %v813_v40 = vld [vmem:[%s6313_s8 + $0x8] sm:$0xff] }
 0x165   :  { %4575 = vmatprep.subr.mxu0 %v4264_v15 }
 0x166   :  { %4576 = vmatpush3.msra.mxu0 %v4264_v15  ;;  %v4530_v50 = vpop.f32.mrf.mxu0 }
 0x167   :  { %4577 = vmatprep.subr.mxu0 %v258_v16 }
 0x168   :  { %4578 = vmatpush3.msra.mxu0 %v258_v16  ;;  %v1062_v52 = vpop.f32.mrf.mxu0 }
 0x169   :  { %4595 = vmatprep.subr.mxu0 %v4410_v28  ;;  %4580 = vmatmul.mubr.msk.f32.vlgmr.msra.gmra.mxu0 %vm1698_vm6, %v795_v35 }
 0x16a   :  { %4596 = vmatpush3.msra.mxu0 %v4410_v28  ;;  %4582 = vmatprep.mubr.msk.f32.mxu0 %vm1698_vm6, %v796_v36  ;;  %v4540_v54 = vpop.f32.mrf.mxu0 }
 0x16b   :  { %4597 = vmatprep.subr.mxu0 %v563_v29 }
 0x16c   :  { %4598 = vmatpush3.msra.mxu0 %v563_v29  ;;  %v1218_v56 = vpop.f32.mrf.mxu0 }
 0x16d   :  { %4599 = vmatprep.subr.mxu0 %v4407_v26  ;;  %4583 = vmatmul.mubr.msk.f32.gmra.mxu0 %vm1698_vm6, %v797_v37 }
 0x16e   :  { %4600 = vmatpush3.msra.mxu0 %v4407_v26  ;;  %4603 = vmatprep.mubr.msk.f32.mxu0 %vm1698_vm6, %v802_v38  ;;  %v3961_v38 = vunpack.c.h.bf16 %v3959_v32 }
 0x16f   :  { %4601 = vmatprep.subr.mxu0 %v553_v27 }
 0x170   :  { %4602 = vmatpush3.msra.mxu0 %v553_v27 }
 0x171   :  { %4623 = vmatprep.subr.mxu0 %v4760_v1  ;;  %4604 = vmatmul.mubr.msk.f32.vlgmr.msra.gmra.mxu0 %vm1698_vm6, %v803_v39 }
 0x172   :  { %4606 = vmatprep.mubr.msk.f32.mxu0 %vm1698_vm6, %v804_v41  ;;  %v814_v41 = vld [vmem:[%s6313_s8 + $0x10] sm:$0xff] }
 0x175   :  { %4607 = vmatmul.mubr.msk.f32.gmra.mxu0 %vm1698_vm6, %v805_v42  ;;  %v3960_v42 = vunpack.c.l.bf16 %v3959_v32 }
 0x176   :  { %4627 = vmatprep.mubr.msk.f32.mxu0 %vm6273_vm1, %v4760_v1 }
 0x1ba   :  { %v4525_v51 = vpop.f32.mrf.mxu1 }
 0x1bb   :  { %v990_v60 = vadd.f32 %v4525_v51, %v4520_v48 }
 0x1bc   :  { %v984_v53 = vpop.f32.mrf.mxu1 }
 0x1bd   :  { %v985_v61 = vadd.f32 %v984_v53, %v898_v49 }
 0x1dc   :  { %v4535_v55 = vpop.f32.mrf.mxu1 }
 0x1dd   :  { %v1146_v3 = vadd.f32 %v4535_v55, %v4530_v50  ;;  %v2263_v55 = vld [vmem:[%s6198_s19 + $0x18] sm:$0xff] }
 0x1de   :  { %v1140_v57 = vpop.f32.mrf.mxu1  ;;  %2517 = vperm.xlu0 %4738, %v2263_v55  }
 0x1df   :  { %v1141_v9 = vadd.f32 %v1140_v57, %v1062_v52  ;;  %v2261_v57 = vld [vmem:[%s6198_s19 + $0x8] sm:$0xff] }
 0x1e0   :  { %v4545_v59 = vpop.f32.mrf.mxu1 }
 0x1e1   :  { %v1302_v0 = vadd.f32 %v4545_v59, %v4540_v54 }
 0x1e2   :  { %v1296_v63 = vpop.f32.mrf.mxu1  ;;  %2507 = vperm.xlu0 %4738, %v2261_v57  }
 0x1e3   :  { %v1297_v6 = vadd.f32 %v1296_v63, %v1218_v56  ;;  %v2262_v56 = vld [vmem:[%s6198_s19 + $0x10] sm:$0xff] }
 0x1e4   :  { %2512 = vperm.xlu1 %4739, %v2262_v56  }
 0x1ff   :  { %v4550_v58 = vpop.f32.mrf.mxu0 }
 0x200   :  { %v5915_v2 = vadd.f32 %v4550_v58, %v990_v60  ;;  %v2260_v58 = vld [vmem:[%s6198_s19] sm:$0xff] }
 0x201   :  { %v1380_v62 = vpop.f32.mrf.mxu0  ;;  %2502 = vperm.xlu1 %4739, %v2260_v58  }
 0x202   :  { %v5917_v5 = vadd.f32 %v1380_v62, %v985_v61  ;;  %v1552_v14 = vmul.f32 %v5915_v2, %v5915_v2  ;;  %v2978_v61 = vld [vmem:[%s6199_s24] sm:$0xff]  ;;  %v2979_v62 = vld [vmem:[%s6199_s24 + $0x8] sm:$0xff] }
 0x203   :  { %3220 = vperm.xlu0 %4738, %v2978_v61   ;;  %v2253_v61 = vld [vmem:[%s6201_s17 + $0x10] sm:$0xff] }
 0x204   :  { %v1551_v17 = vmul.f32 %v5917_v5, %v5917_v5 }
 0x205   :  { %3225 = vperm.xlu1 %4739, %v2979_v62   ;;  %v2254_v62 = vld [vmem:[%s6201_s17 + $0x18] sm:$0xff] }
 0x221   :  { %v4560_v4 = vpop.f32.mrf.mxu0 }
 0x222   :  { %v1550_v7 = vadd.f32 %v4560_v4, %v1302_v0  ;;  %v4555_v8 = vpop.f32.mrf.mxu1  ;;  %v2980_v0 = vld [vmem:[%s6199_s24 + $0x10] sm:$0xff] }
 0x223   :  { %v5919_v10 = vadd.f32 %v4555_v8, %v1146_v3  ;;  %v1540_v11 = vpop.f32.mrf.mxu0  ;;  %3230 = vperm.xlu0 %4738, %v2980_v0   ;;  %v1585_v3 = vpop.permute.xlu1 %1584 }
 0x224   :  { %v1549_v12 = vadd.f32 %v1540_v11, %v1297_v6  ;;  %v1460_v13 = vpop.f32.mrf.mxu1  ;;  %4624 = vmatpush3.msk.msra.mxu0 %vm828_vm4, %v1550_v7  ;;  %v1558_v19 = vmul.f32 %v1550_v7, %v1550_v7 }
 0x225   :  { %v1554_v15 = vmul.f32 %v5919_v10, %v5919_v10  ;;  %v5926_v16 = vadd.f32 %v1460_v13, %v1141_v9  ;;  %4625 = vmatprep.subr.mxu0 %v4760_v1 }
 0x226   :  { %4626 = vmatpush3.msra.mxu0 %v1549_v12  ;;  %v1557_v23 = vmul.f32 %v1549_v12, %v1549_v12 }
 0x227   :  { %v1556_v20 = vadd.f32 %v1554_v15, %v1552_v14  ;;  %v1553_v21 = vmul.f32 %v5926_v16, %v5926_v16  ;;  %4628 = vmatmul.mubr.msk.f32.vlgmr.msra.gmra.mxu0 %vm1597_vm7, %v5934_v18  ;;  %4635 = vmatprep.subr.mxu0 %v4760_v1  ;;  %v1580_v6 = vpop.permute.xlu1 %1579 }
 0x228   :  { %4637 = vmatprep.mubr.msk.f32.mxu0 %vm6273_vm1, %v4760_v1 }
 0x229   :  { %v1560_v22 = vadd.f32 %v1558_v19, %v1556_v20  ;;  %v1555_v24 = vadd.f32 %v1553_v21, %v1551_v17  ;;  %v4581_v48 = vpop.f32.mrf.mxu0 }
 0x22b   :  { %v1562_v25 = vmax.f32 %v1560_v22, 1e-08  ;;  %v1559_v26 = vadd.f32 %v1557_v23, %v1555_v24  ;;  %v1777_v49 = vpop.f32.mrf.mxu0 }
 0x22d   :  { %v1561_v27 = vmax.f32 %v1559_v26, 1e-08  ;;  %4740 = vrsqrt.f32 %v1562_v25  ;;  %vm1572_vm8 = vcmp.eq.f32.partialorder %v1562_v25, inf  ;;  %v1575_v31 = vand.u32 2147483648, %v1562_v25  ;;  %v4584_v50 = vpop.f32.mrf.mxu0 }
 0x22e   :  { %vm1574_vm9 = vcmp.eq.f32.partialorder %v1562_v25, 0.0 }
 0x22f   :  { %4742 = vrsqrt.f32 %v1561_v27  ;;  %vm1565_vm10 = vcmp.eq.f32.partialorder %v1561_v27, inf  ;;  %v1568_v36 = vand.u32 2147483648, %v1561_v27  ;;  %vm1567_vm11 = vcmp.eq.f32.partialorder %v1561_v27, 0.0  ;;  %v1787_v51 = vpop.f32.mrf.mxu0 }
 0x231   :  { %v5993_v52 = vpop.f32.mrf.mxu0 }
 0x233   :  { %v5995_v53 = vpop.f32.mrf.mxu0 }
 0x235   :  { %v5997_v54 = vpop.f32.mrf.mxu0 }
 0x237   :  { %v1990_v59 = vpop.f32.mrf.mxu0 }
 0x23a   :  { %v4741_v28 = vpop.eup %4740 }
 0x23b   :  { %v1571_v29 = vmul.f32 %v4741_v28, %v1562_v25 }
 0x23c   :  { %v4743_v30 = vpop.eup %4742 }
 0x23d   :  { %v1573_v33 = vsel %vm1572_vm8, %v1562_v25, %v1571_v29  ;;  %v1564_v34 = vmul.f32 %v4743_v30, %v1561_v27 }
 0x23e   :  { %v1576_v35 = vsel %vm1574_vm9, %v1575_v31, %v1573_v33 }
 0x23f   :  { %4561 = vmatprep.subr.msk.mxu1 %vm828_vm4, %v1576_v35  ;;  %v1566_v37 = vsel %vm1565_vm10, %v1561_v27, %v1564_v34 }
 0x240   :  { %4562 = vmatpush3.msk.msra.mxu1 %vm828_vm4, %v1576_v35  ;;  %v1569_v39 = vsel %vm1567_vm11, %v1568_v36, %v1566_v37 }
 0x241   :  { %4563 = vmatprep.subr.mxu1 %v1569_v39 }
 0x242   :  { %4564 = vmatpush3.msra.mxu1 %v1569_v39 }
 0x243   :  { %4566 = vmatmul.mubr.msk.f32.vlgmr.msra.gmra.mxu1 %vm1597_vm7, %v813_v40  ;;  %4585 = vmatprep.subr.mxu1 %v3961_v38 }
 0x244   :  { %4568 = vmatprep.mubr.msk.f32.mxu1 %vm1597_vm7, %v814_v41  ;;  %4586 = vmatpush3.msra.mxu1 %v3961_v38 }
 0x245   :  { %4587 = vmatprep.subr.mxu1 %v3960_v42 }
 0x246   :  { %4588 = vmatpush3.msra.mxu1 %v3960_v42 }
 0x247   :  { %4569 = vmatmul.mubr.msk.f32.gmra.mxu1 %vm1597_vm7, %v815_v43  ;;  %4609 = vmatprep.subr.mxu1 %v4760_v1 }
 0x248   :  { %4589 = vmatprep.mubr.msk.f32.mxu1 %vm1800_vm12, %v798_v44 }
 0x24b   :  { %4590 = vmatmul.mubr.msk.f32.vlgmr.msra.gmra.mxu1 %vm1800_vm12, %v799_v45 }
 0x24c   :  { %4610 = vmatpush3.msk.msra.mxu1 %vm828_vm4, %v5915_v2  ;;  %4592 = vmatprep.mubr.msk.f32.mxu1 %vm1800_vm12, %v800_v46  ;;  %v2981_v2 = vld [vmem:[%s6199_s24 + $0x18] sm:$0xff] }
 0x24d   :  { %4611 = vmatprep.subr.mxu1 %v4760_v1  ;;  %3235 = vperm.xlu1 %4739, %v2981_v2  }
 0x24e   :  { %4612 = vmatpush3.msra.mxu1 %v5917_v5  ;;  %v1595_v5 = vpop.permute.xlu0 %1594 }
 0x24f   :  { %4593 = vmatmul.mubr.msk.f32.gmra.mxu1 %vm1800_vm12, %v801_v47  ;;  %4616 = vmatprep.subr.mxu1 %v4760_v1 }
 0x250   :  { %4613 = vmatprep.mubr.msk.f32.mxu1 %vm6273_vm1, %v4760_v1 }
 0x252   :  { %v1590_v11 = vpop.permute.xlu0 %1589 }
 0x253   :  { %4614 = vmatmul.mubr.msk.f32.vlgmr.msra.gmra.mxu1 %vm1597_vm7, %v5934_v18 }
 0x254   :  { %4617 = vmatpush3.msk.msra.mxu1 %vm828_vm4, %v5919_v10  ;;  %4620 = vmatprep.mubr.msk.f32.mxu1 %vm6273_vm1, %v4760_v1 }
 0x255   :  { %4618 = vmatprep.subr.mxu1 %v4760_v1 }
 0x256   :  { %4619 = vmatpush3.msra.mxu1 %v5926_v16 }
 0x257   :  { %4621 = vmatmul.mubr.msk.f32.vlgmr.msra.gmra.mxu1 %vm1597_vm7, %v5934_v18  ;;  %4630 = vmatprep.subr.mxu1 %v4760_v1 }
 0x258   :  { %4632 = vmatprep.mubr.msk.f32.mxu1 %vm6273_vm1, %v4760_v1 }
 0x2e7   :  { %v6011_v60 = vpop.f32.mrf.mxu0 }
 0x2e8   :  { %v2232_v33 = vmul.f32 %v6011_v60, %v6011_v60 }
 0x2e9   :  { %v4629_v63 = vpop.f32.mrf.mxu0 }
 0x303   :  { %v4567_v4 = vpop.f32.mrf.mxu1 }
 0x304   :  { %v1685_v8 = vadd.f32 %v4567_v4, %v1585_v3 }
 0x305   :  { %v1679_v7 = vpop.f32.mrf.mxu1 }
 0x306   :  { %v1680_v10 = vadd.f32 %v1679_v7, %v1580_v6  ;;  %v1797_v13 = vadd.f32 %v4581_v48, %v1685_v8 }
 0x307   :  { %v4570_v9 = vpop.f32.mrf.mxu1 }
 0x308   :  { %v1695_v14 = vadd.f32 %v4570_v9, %v1595_v5  ;;  %v1796_v16 = vadd.f32 %v1777_v49, %v1680_v10  ;;  %v2264_v9 = vld [vmem:[%s6203_s20] sm:$0xf] }
 0x309   :  { %v1689_v12 = vpop.f32.mrf.mxu1 }
 0x30a   :  { %v1690_v17 = vadd.f32 %v1689_v12, %v1590_v11  ;;  %v1799_v20 = vadd.f32 %v4584_v50, %v1695_v14  ;;  %v2255_v50 = vld [vmem:[%s6200_s16] sm:$0xf] }
 0x30b   :  { %v4591_v15 = vpop.f32.mrf.mxu1 }
 0x30c   :  { %v1899_v18 = vadd.f32 %v4591_v15, %v1797_v13  ;;  %v1798_v23 = vadd.f32 %v1787_v51, %v1690_v17 }
 0x30d   :  { %v1879_v19 = vpop.f32.mrf.mxu1 }
 0x30e   :  { %v1898_v21 = vadd.f32 %v1879_v19, %v1796_v16  ;;  %v2258_v19 = vld [vmem:[%s6202_s18 + $0x10] sm:$0xff] }
 0x30f   :  { %v4594_v22 = vpop.f32.mrf.mxu1 }
 0x310   :  { %v1901_v24 = vadd.f32 %v4594_v22, %v1799_v20  ;;  %v1999_v56 = vadd.f32 %v5995_v53, %v1898_v21  ;;  %v2252_v53 = vld [vmem:[%s6201_s17 + $0x8] sm:$0xff]  ;;  %v2259_v20 = vld [vmem:[%s6202_s18 + $0x18] sm:$0xff] }
 0x311   :  { %v1889_v25 = vpop.f32.mrf.mxu1 }
 0x312   :  { %v1900_v26 = vadd.f32 %v1889_v25, %v1798_v23  ;;  %v2002_v47 = vadd.f32 %v5997_v54, %v1901_v24  ;;  %v2000_v54 = vadd.f32 %v5993_v52, %v1899_v18  ;;  %v2251_v52 = vld [vmem:[%s6201_s17] sm:$0xff]  ;;  %v2257_v18 = vld [vmem:[%s6202_s18 + $0x8] sm:$0xff] }
 0x313   :  { %v2079_v27 = vpop.f32.mrf.mxu1 }
 0x314   :  { %v2001_v28 = vadd.f32 %v1990_v59, %v1900_v26  ;;  %v2229_v31 = vmul.f32 %v2079_v27, %v2079_v27  ;;  %v2006_v55 = vmax.f32 %v2002_v47, 0.0  ;;  %v2004_v58 = vmax.f32 %v2000_v54, 0.0 }
 0x315   :  { %v4615_v29 = vpop.f32.mrf.mxu1  ;;  %v2003_v59 = vmax.f32 %v1999_v56, 0.0 }
 0x316   :  { %v2005_v57 = vmax.f32 %v2001_v28, 0.0 }
 0x317   :  { %v2152_v30 = vpop.f32.mrf.mxu1 }
 0x318   :  { %v2230_v32 = vmul.f32 %v2152_v30, %v2152_v30 }
 0x319   :  { %v4622_v34 = vpop.f32.mrf.mxu1 }
 0x31a   :  { %v2231_v35 = vadd.f32 %v2230_v32, %v2229_v31 }
 0x31c   :  { %v2233_v36 = vadd.f32 %v2232_v33, %v2231_v35 }
 0x31e   :  { %v2234_v37 = vmax.f32 %v2233_v36, 1e-08 }
 0x320   :  { %4744 = vrsqrt.f32 %v2234_v37  ;;  %vm2237_vm13 = vcmp.eq.f32.partialorder %v2234_v37, inf  ;;  %v2240_v40 = vand.u32 2147483648, %v2234_v37  ;;  %vm2239_vm14 = vcmp.eq.f32.partialorder %v2234_v37, 0.0 }
 0x32d   :  { %v4745_v38 = vpop.eup %4744 }
 0x32e   :  { %v2236_v39 = vmul.f32 %v4745_v38, %v2234_v37 }
 0x330   :  { %v2238_v41 = vsel %vm2237_vm13, %v2234_v37, %v2236_v39 }
 0x331   :  { %v2241_v42 = vsel %vm2239_vm14, %v2240_v40, %v2238_v41 }
 0x332   :  { %v3895_v43 = vmul.f32 -1.442695, %v2241_v42 }
 0x334   :  { %4746 = vpow2.f32 %v3895_v43 }
 0x341   :  { %v4747_v44 = vpop.eup %4746 }
 0x342   :  { %v2245_v45 = vadd.f32 1.0, %v4747_v44 }
 0x344   :  { %4748 = vrcp.f32 %v2245_v45 }
 0x351   :  { %v4749_v46 = vpop.eup %4748 }
 0x352   :  { %v2248_v48 = vmul.f32 %v4749_v46, %v2079_v27  ;;  %v2249_v49 = vmul.f32 %v4749_v46, %v2152_v30  ;;  %v2250_v51 = vmul.f32 %v4749_v46, %v6011_v60  ;;  %v2256_v60 = vld [vmem:[%s6202_s18] sm:$0xff]  ;;  %v2513_v30 = vpop.permute.xlu1 %2512 }
 0x354   :  { %4631 = vmatpush3.msk.msra.mxu1 %vm914_vm5, %v2248_v48  ;;  %4636 = vmatpush3.msk.msra.mxu0 %vm914_vm5, %v2249_v49 }
 0x355   :  { %4633 = vmatmul.mubr.msk.f32.vlgmr.msra.gmra.mxu1 %vm907_vm0, %v2255_v50  ;;  %4638 = vmatmul.mubr.msk.f32.vlgmr.msra.gmra.mxu0 %vm907_vm0, %v2255_v50 }
 0x356   :  { %4640 = vmatprep.subr.mxu1 %v4760_v1  ;;  %4642 = vmatprep.mubr.msk.f32.mxu1 %vm6273_vm1, %v4760_v1 }
 0x357   :  { %4641 = vmatpush3.msk.msra.mxu1 %vm914_vm5, %v2250_v51  ;;  %4647 = vmatprep.mubr.msk.f32.mxu0 %vm907_vm0, %v2256_v60 }
 0x358   :  { %4653 = vmatprep.subr.mxu1 %v2006_v55 }
 0x359   :  { %4643 = vmatmul.mubr.msk.f32.vlgmr.msra.gmra.mxu1 %vm907_vm0, %v2255_v50 }
 0x35a   :  { %4654 = vmatpush3.msra.mxu1 %v2006_v55  ;;  %4661 = vmatprep.mubr.msk.f32.mxu1 %vm1698_vm6, %v2251_v52  ;;  %v2518_v55 = vpop.permute.xlu0 %2517 }
 0x35b   :  { %4655 = vmatprep.subr.mxu1 %v2005_v57 }
 0x35c   :  { %4656 = vmatpush3.msra.mxu1 %v2005_v57 }
 0x35d   :  { %4657 = vmatprep.subr.mxu1 %v2004_v58 }
 0x35e   :  { %4658 = vmatpush3.msra.mxu1 %v2004_v58  ;;  %v2508_v57 = vpop.permute.xlu0 %2507 }
 0x35f   :  { %4659 = vmatprep.subr.mxu1 %v2003_v59 }
 0x360   :  { %4660 = vmatpush3.msra.mxu1 %v2003_v59 }
 0x361   :  { %4677 = vmatprep.subr.mxu1 %v4760_v1  ;;  %4662 = vmatmul.mubr.msk.f32.vlgmr.msra.gmra.mxu1 %vm1698_vm6, %v2252_v53  ;;  %v2973_v53 = vld [vmem:[%s6204_s21] sm:$0xf] }
 0x362   :  { %4664 = vmatprep.mubr.msk.f32.mxu1 %vm1698_vm6, %v2253_v61  ;;  %v2503_v61 = vpop.permute.xlu1 %2502 }
 0x365   :  { %4665 = vmatmul.mubr.msk.f32.gmra.mxu1 %vm1698_vm6, %v2254_v62 }
 0x366   :  { %4679 = vmatprep.mubr.msk.f32.mxu1 %vm6273_vm1, %v4760_v1 }
 0x415   :  { %v2337_v63 = vpop.f32.mrf.mxu1  ;;  %v2410_v0 = vpop.f32.mrf.mxu0 }
 0x416   :  { %v2487_v2 = vmul.f32 %v2337_v63, %v2337_v63  ;;  %v2488_v3 = vmul.f32 %v2410_v0, %v2410_v0 }
 0x417   :  { %v4634_v4 = vpop.f32.mrf.mxu1  ;;  %v4639_v5 = vpop.f32.mrf.mxu0 }
 0x418   :  { %v2489_v7 = vadd.f32 %v2488_v3, %v2487_v2 }
 0x419   :  { %v2483_v6 = vpop.f32.mrf.mxu1 }
 0x41a   :  { %v2490_v8 = vmul.f32 %v2483_v6, %v2483_v6  ;;  %4678 = vmatpush3.msk.msra.mxu1 %vm914_vm5, %v2483_v6 }
 0x41b   :  { %v4644_v10 = vpop.f32.mrf.mxu1  ;;  %4680 = vmatmul.mubr.msk.f32.vlgmr.msra.gmra.mxu1 %vm907_vm0, %v2264_v9  ;;  %4687 = vmatprep.subr.mxu1 %v4760_v1 }
 0x41c   :  { %v2491_v11 = vadd.f32 %v2490_v8, %v2489_v7  ;;  %4689 = vmatprep.mubr.msk.f32.mxu1 %vm6273_vm1, %v4760_v1  ;;  %v2969_v7 = vld [vmem:[%s6205_s22] sm:$0xff]  ;;  %v2970_v8 = vld [vmem:[%s6205_s22 + $0x8] sm:$0xff]  ;;  %v2971_v10 = vld [vmem:[%s6205_s22 + $0x10] sm:$0xff] }
 0x41e   :  { %v2492_v12 = vmax.f32 %v2491_v11, 1e-08  ;;  %v2972_v11 = vld [vmem:[%s6205_s22 + $0x18] sm:$0xff] }
 0x420   :  { %4750 = vrsqrt.f32 %v2492_v12  ;;  %vm2495_vm15 = vcmp.eq.f32.partialorder %v2492_v12, inf  ;;  %v2498_v15 = vand.u32 2147483648, %v2492_v12  ;;  %vm2497_vm2 = vcmp.eq.f32.partialorder %v2492_v12, 0.0 }
 0x421   :  { %v4663_v21 = vpop.f32.mrf.mxu1 }
 0x423   :  { %v2698_v22 = vpop.f32.mrf.mxu1 }
 0x425   :  { %v4666_v23 = vpop.f32.mrf.mxu1 }
 0x427   :  { %v2708_v24 = vpop.f32.mrf.mxu1 }
 0x42d   :  { %v4751_v13 = vpop.eup %4750 }
 0x42e   :  { %v2494_v14 = vmul.f32 %v4751_v13, %v2492_v12 }
 0x430   :  { %v2496_v16 = vsel %vm2495_vm15, %v2492_v12, %v2494_v14 }
 0x431   :  { %v2499_v17 = vsel %vm2497_vm2, %v2498_v15, %v2496_v16 }
 0x432   :  { %4645 = vmatprep.subr.msk.mxu0 %vm914_vm5, %v2499_v17 }
 0x433   :  { %4646 = vmatpush3.msk.msra.mxu0 %vm914_vm5, %v2499_v17 }
 0x434   :  { %4648 = vmatmul.mubr.msk.f32.vlgmr.msra.gmra.mxu0 %vm907_vm0, %v2257_v18  ;;  %4667 = vmatprep.subr.mxu0 %v4760_v1 }
 0x435   :  { %4668 = vmatpush3.msk.msra.mxu0 %vm914_vm5, %v2337_v63  ;;  %4650 = vmatprep.mubr.msk.f32.mxu0 %vm907_vm0, %v2258_v19 }
 0x436   :  { %4672 = vmatprep.subr.mxu0 %v4760_v1 }
 0x438   :  { %4651 = vmatmul.mubr.msk.f32.gmra.mxu0 %vm907_vm0, %v2259_v20 }
 0x439   :  { %4669 = vmatprep.mubr.msk.f32.mxu0 %vm6273_vm1, %v4760_v1 }
 0x43c   :  { %4670 = vmatmul.mubr.msk.f32.vlgmr.msra.gmra.mxu0 %vm907_vm0, %v2264_v9 }
 0x43d   :  { %4673 = vmatpush3.msk.msra.mxu0 %vm914_vm5, %v2410_v0  ;;  %4674 = vmatprep.mubr.msk.f32.mxu0 %vm6273_vm1, %v4760_v1 }
 0x43e   :  { %4682 = vmatprep.subr.mxu0 %v4760_v1 }
 0x440   :  { %4675 = vmatmul.mubr.msk.f32.vlgmr.msra.gmra.mxu0 %vm907_vm0, %v2264_v9  ;;  %v2974_v9 = vld [vmem:[%s6206_s23] sm:$0xff] }
 0x441   :  { %4684 = vmatprep.mubr.msk.f32.mxu0 %vm6273_vm1, %v4760_v1 }
 0x4db   :  { %v2943_v25 = vpop.f32.mrf.mxu1 }
 0x4dc   :  { %v2950_v39 = vmul.f32 %v2943_v25, %v2943_v25 }
 0x4dd   :  { %v4681_v26 = vpop.f32.mrf.mxu1 }
 0x4f4   :  { %v4649_v27 = vpop.f32.mrf.mxu0 }
 0x4f5   :  { %v2607_v60 = vadd.f32 %v4649_v27, %v2508_v57 }
 0x4f6   :  { %v2601_v28 = vpop.f32.mrf.mxu0 }
 0x4f7   :  { %v2602_v62 = vadd.f32 %v2601_v28, %v2503_v61  ;;  %v2718_v2 = vadd.f32 %v4663_v21, %v2607_v60  ;;  %v2982_v21 = vld [vmem:[%s6207_s25] sm:$0xf] }
 0x4f8   :  { %v4652_v29 = vpop.f32.mrf.mxu0 }
 0x4f9   :  { %v2617_v54 = vadd.f32 %v4652_v29, %v2518_v55  ;;  %v2717_v3 = vadd.f32 %v2698_v22, %v2602_v62  ;;  %v2722_v5 = vmax.f32 %v2718_v2, 0.0 }
 0x4fa   :  { %v2611_v31 = vpop.f32.mrf.mxu0 }
 0x4fb   :  { %v2612_v32 = vadd.f32 %v2611_v31, %v2513_v30  ;;  %v2720_v58 = vadd.f32 %v4666_v23, %v2617_v54  ;;  %v2721_v6 = vmax.f32 %v2717_v3, 0.0  ;;  %v2975_v30 = vld [vmem:[%s6206_s23 + $0x8] sm:$0xff]  ;;  %v2976_v31 = vld [vmem:[%s6206_s23 + $0x10] sm:$0xff] }
 0x4fc   :  { %v2797_v33 = vpop.f32.mrf.mxu0 }
 0x4fd   :  { %v2719_v34 = vadd.f32 %v2708_v24, %v2612_v32  ;;  %v2947_v37 = vmul.f32 %v2797_v33, %v2797_v33  ;;  %v2724_v0 = vmax.f32 %v2720_v58, 0.0  ;;  %v2977_v32 = vld [vmem:[%s6206_s23 + $0x18] sm:$0xff] }
 0x4fe   :  { %v4671_v35 = vpop.f32.mrf.mxu0 }
 0x4ff   :  { %v2723_v4 = vmax.f32 %v2719_v34, 0.0 }
 0x500   :  { %v2870_v36 = vpop.f32.mrf.mxu0 }
 0x501   :  { %v2948_v38 = vmul.f32 %v2870_v36, %v2870_v36 }
 0x502   :  { %v4676_v40 = vpop.f32.mrf.mxu0 }
 0x503   :  { %v2949_v41 = vadd.f32 %v2948_v38, %v2947_v37  ;;  %v3939_v37 = vld [vmem:[%s6208_s4] ss:$0 sm:$0xff] }
 0x505   :  { %v2951_v42 = vadd.f32 %v2950_v39, %v2949_v41 }
 0x507   :  { %v2952_v43 = vmax.f32 %v2951_v42, 1e-08  ;;  %v3226_v42 = vpop.permute.xlu1 %3225 }
 0x509   :  { %4752 = vrsqrt.f32 %v2952_v43  ;;  %vm2955_vm3 = vcmp.eq.f32.partialorder %v2952_v43, inf  ;;  %v2958_v46 = vand.u32 2147483648, %v2952_v43  ;;  %vm2957_vm4 = vcmp.eq.f32.partialorder %v2952_v43, 0.0 }
 0x516   :  { %v4753_v44 = vpop.eup %4752 }
 0x517   :  { %v2954_v45 = vmul.f32 %v4753_v44, %v2952_v43 }
 0x519   :  { %v2956_v47 = vsel %vm2955_vm3, %v2952_v43, %v2954_v45 }
 0x51a   :  { %v2959_v48 = vsel %vm2957_vm4, %v2958_v46, %v2956_v47 }
 0x51b   :  { %v3917_v49 = vmul.f32 -1.442695, %v2959_v48  ;;  %v3236_v48 = vpop.permute.xlu1 %3235 }
 0x51d   :  { %4754 = vpow2.f32 %v3917_v49 }
 0x52a   :  { %v4755_v50 = vpop.eup %4754 }
 0x52b   :  { %v2963_v51 = vadd.f32 1.0, %v4755_v50 }
 0x52d   :  { %4756 = vrcp.f32 %v2963_v51 }
 0x53a   :  { %v4757_v56 = vpop.eup %4756 }
 0x53b   :  { %v2966_v59 = vmul.f32 %v4757_v56, %v2797_v33  ;;  %v2967_v52 = vmul.f32 %v4757_v56, %v2870_v36  ;;  %v2968_v63 = vmul.f32 %v4757_v56, %v2943_v25 }
 0x53d   :  { %4683 = vmatpush3.msk.msra.mxu0 %vm914_vm5, %v2966_v59  ;;  %4688 = vmatpush3.msk.msra.mxu1 %vm914_vm5, %v2967_v52 }
 0x53e   :  { %4685 = vmatmul.mubr.msk.f32.vlgmr.msra.gmra.mxu0 %vm907_vm0, %v2973_v53  ;;  %4690 = vmatmul.mubr.msk.f32.vlgmr.msra.gmra.mxu1 %vm907_vm0, %v2973_v53 }
 0x53f   :  { %4692 = vmatprep.subr.mxu0 %v4760_v1  ;;  %4694 = vmatprep.mubr.msk.f32.mxu0 %vm6273_vm1, %v4760_v1 }
 0x540   :  { %4693 = vmatpush3.msk.msra.mxu0 %vm914_vm5, %v2968_v63  ;;  %4699 = vmatprep.mubr.msk.f32.mxu1 %vm907_vm0, %v2974_v9 }
 0x541   :  { %4705 = vmatprep.subr.mxu0 %v2724_v0 }
 0x542   :  { %4695 = vmatmul.mubr.msk.f32.vlgmr.msra.gmra.mxu0 %vm907_vm0, %v2973_v53 }
 0x543   :  { %4706 = vmatpush3.msra.mxu0 %v2724_v0  ;;  %4713 = vmatprep.mubr.msk.f32.mxu0 %vm1698_vm6, %v2969_v7 }
 0x544   :  { %4707 = vmatprep.subr.mxu0 %v2723_v4 }
 0x545   :  { %4708 = vmatpush3.msra.mxu0 %v2723_v4 }
 0x546   :  { %4709 = vmatprep.subr.mxu0 %v2722_v5 }
 0x547   :  { %4710 = vmatpush3.msra.mxu0 %v2722_v5 }
 0x548   :  { %4711 = vmatprep.subr.mxu0 %v2721_v6 }
 0x549   :  { %4712 = vmatpush3.msra.mxu0 %v2721_v6 }
 0x54a   :  { %4729 = vmatprep.subr.mxu0 %v4760_v1  ;;  %4714 = vmatmul.mubr.msk.f32.vlgmr.msra.gmra.mxu0 %vm1698_vm6, %v2970_v8 }
 0x54b   :  { %4716 = vmatprep.mubr.msk.f32.mxu0 %vm1698_vm6, %v2971_v10 }
 0x54e   :  { %4717 = vmatmul.mubr.msk.f32.gmra.mxu0 %vm1698_vm6, %v2972_v11 }
 0x54f   :  { %4731 = vmatprep.mubr.msk.f32.mxu0 %vm6273_vm1, %v4760_v1 }
 0x5fe   :  { %v3055_v12 = vpop.f32.mrf.mxu0  ;;  %v3128_v13 = vpop.f32.mrf.mxu1 }
 0x5ff   :  { %v3205_v14 = vmul.f32 %v3055_v12, %v3055_v12  ;;  %v3206_v15 = vmul.f32 %v3128_v13, %v3128_v13 }
 0x600   :  { %v4686_v16 = vpop.f32.mrf.mxu0  ;;  %v4691_v17 = vpop.f32.mrf.mxu1 }
 0x601   :  { %v3207_v19 = vadd.f32 %v3206_v15, %v3205_v14 }
 0x602   :  { %v3201_v18 = vpop.f32.mrf.mxu0 }
 0x603   :  { %v3208_v20 = vmul.f32 %v3201_v18, %v3201_v18  ;;  %4730 = vmatpush3.msk.msra.mxu0 %vm914_vm5, %v3201_v18 }
 0x604   :  { %v4696_v22 = vpop.f32.mrf.mxu0  ;;  %4732 = vmatmul.mubr.msk.f32.vlgmr.msra.gmra.mxu0 %vm907_vm0, %v2982_v21 }
 0x605   :  { %v3209_v23 = vadd.f32 %v3208_v20, %v3207_v19 }
 0x607   :  { %v3210_v24 = vmax.f32 %v3209_v23, 1e-08 }
 0x609   :  { %4758 = vrsqrt.f32 %v3210_v24  ;;  %vm3213_vm6 = vcmp.eq.f32.partialorder %v3210_v24, inf  ;;  %v3216_v27 = vand.u32 2147483648, %v3210_v24  ;;  %vm3215_vm7 = vcmp.eq.f32.partialorder %v3210_v24, 0.0 }
 0x60a   :  { %v4715_v33 = vpop.f32.mrf.mxu0 }
 0x60c   :  { %v3416_v34 = vpop.f32.mrf.mxu0 }
 0x60e   :  { %v4718_v35 = vpop.f32.mrf.mxu0 }
 0x610   :  { %v3426_v36 = vpop.f32.mrf.mxu0 }
 0x616   :  { %v4759_v25 = vpop.eup %4758 }
 0x617   :  { %v3212_v26 = vmul.f32 %v4759_v25, %v3210_v24 }
 0x619   :  { %v3214_v28 = vsel %vm3213_vm6, %v3210_v24, %v3212_v26 }
 0x61a   :  { %v3217_v29 = vsel %vm3215_vm7, %v3216_v27, %v3214_v28 }
 0x61b   :  { %4697 = vmatprep.subr.msk.mxu1 %vm914_vm5, %v3217_v29 }
 0x61c   :  { %4698 = vmatpush3.msk.msra.mxu1 %vm914_vm5, %v3217_v29 }
 0x61d   :  { %4700 = vmatmul.mubr.msk.f32.vlgmr.msra.gmra.mxu1 %vm907_vm0, %v2975_v30  ;;  %4719 = vmatprep.subr.mxu1 %v4760_v1 }
 0x61e   :  { %4720 = vmatpush3.msk.msra.mxu1 %vm914_vm5, %v3055_v12  ;;  %4702 = vmatprep.mubr.msk.f32.mxu1 %vm907_vm0, %v2976_v31 }
 0x61f   :  { %4724 = vmatprep.subr.mxu1 %v4760_v1 }
 0x621   :  { %4703 = vmatmul.mubr.msk.f32.gmra.mxu1 %vm907_vm0, %v2977_v32 }
 0x622   :  { %4721 = vmatprep.mubr.msk.f32.mxu1 %vm6273_vm1, %v4760_v1 }
 0x625   :  { %4722 = vmatmul.mubr.msk.f32.vlgmr.msra.gmra.mxu1 %vm907_vm0, %v2982_v21 }
 0x626   :  { %4725 = vmatpush3.msk.msra.mxu1 %vm914_vm5, %v3128_v13  ;;  %4726 = vmatprep.mubr.msk.f32.mxu1 %vm6273_vm1, %v4760_v1  ;;  %v3221_v1 = vpop.permute.xlu0 %3220 }
 0x629   :  { %4727 = vmatmul.mubr.msk.f32.vlgmr.msra.gmra.mxu1 %vm907_vm0, %v2982_v21 }
 0x62a   :  { %v3231_v55 = vpop.permute.xlu0 %3230 }
 0x6c4   :  { %v3657_v38 = vpop.f32.mrf.mxu0 }
 0x6c5   :  { %v3699_v39 = vmul.f32 %v3939_v37, %v3657_v38 }
 0x6c6   :  { %v4733_v40 = vpop.f32.mrf.mxu0 }
 0x6c7   :  { %v3700_v41 = vpack.c.bf16 %v3699_v39, %v3699_v39 }
 0x6c9   :  { %3945 = vst [vmem:[%s6209_s27 + $0x4] sm:$0x3] %v3700_v41 }
 0x6dd   :  { %v4701_v43 = vpop.f32.mrf.mxu1 }
 0x6de   :  { %v3325_v44 = vadd.f32 %v4701_v43, %v3226_v42 }
 0x6df   :  { %v3319_v45 = vpop.f32.mrf.mxu1 }
 0x6e0   :  { %v3320_v46 = vadd.f32 %v3319_v45, %v3221_v1  ;;  %v3436_v47 = vadd.f32 %v4715_v33, %v3325_v44 }
 0x6e1   :  { %v4704_v49 = vpop.f32.mrf.mxu1 }
 0x6e2   :  { %v3335_v50 = vadd.f32 %v4704_v49, %v3236_v48  ;;  %v3435_v51 = vadd.f32 %v3416_v34, %v3320_v46  ;;  %v3669_v56 = vmul.f32 %v3939_v37, %v3436_v47 }
 0x6e3   :  { %v3329_v54 = vpop.f32.mrf.mxu1 }
 0x6e4   :  { %v3668_v57 = vmul.f32 %v3939_v37, %v3435_v51  ;;  %v3330_v58 = vadd.f32 %v3329_v54, %v3231_v55  ;;  %v3438_v59 = vadd.f32 %v4718_v35, %v3335_v50 }
 0x6e5   :  { %v3511_v52 = vpop.f32.mrf.mxu1 }
 0x6e6   :  { %v3965_v53 = vpack.c.bf16 %v3669_v56, %v3668_v57  ;;  %v3437_v60 = vadd.f32 %v3426_v36, %v3330_v58  ;;  %v3692_v61 = vmul.f32 %v3939_v37, %v3511_v52  ;;  %v3671_v63 = vmul.f32 %v3939_v37, %v3438_v59 }
 0x6e7   :  { %v4723_v62 = vpop.f32.mrf.mxu1 }
 0x6e8   :  { %3966 = vst [vmem:[%s6210_s26] sm:$0xff] %v3965_v53   ;;  %v3670_v0 = vmul.f32 %v3939_v37, %v3437_v60  ;;  %v3693_v2 = vpack.c.bf16 %v3692_v61, %v3692_v61 }
 0x6e9   :  { %v3584_v3 = vpop.f32.mrf.mxu1 }
 0x6ea   :  { %v3970_v4 = vpack.c.bf16 %v3671_v63, %v3670_v0  ;;  %3694 = vst [vmem:[%s6209_s27] sm:$0x3] %v3693_v2  ;;  %v3695_v5 = vmul.f32 %v3939_v37, %v3584_v3 }
 0x6eb   :  { %v4728_v6 = vpop.f32.mrf.mxu1 }
 0x6ec   :  { %3973 = vst [vmem:[%s6210_s26 + $0x8] sm:$0xff] %v3970_v4   ;;  %v3696_v7 = vpack.c.bf16 %v3695_v5, %v3695_v5 }
 0x6ee   :  { %3944 = vst [vmem:[%s6209_s27 + $0x2] sm:$0x3] %v3696_v7 }

// kernel: cpd_forward.21
= control target key start
LH: loop header
LB: loop body
LE: loop exit
PB: predicated region body
PF: predicated region fallthrough
CT: control target
= control target key end

     0   :  { %v584_v0 = vmov 0.0   ;;  %vm53_vm0 = vcmask 1043456   ;;  %vm585_vm1 = vmmov 0   ;;  %vm49_vm2 = vcmask 31744   ;;  %s712_s1 = inlined_call_operand.vmem [shape: bf16[3,4,128], index: 1, kind: input, shape index: {}]   ;;  %s713_s2 = inlined_call_operand.vmem [shape: f32[4,4], index: 2, kind: input, shape index: {}]   ;;  %s714_s0 = inlined_call_operand.vmem [shape: bf16[32,128], index: 0, kind: input, shape index: {}]   ;;  %s715_s3 = inlined_call_operand.vmem [shape: f32[20,32], index: 3, kind: input, shape index: {}]   ;;  %s716_s5 = inlined_call_operand.vmem [shape: f32[20,1], index: 5, kind: input, shape index: {}]   ;;  %s717_s4 = inlined_call_operand.vmem [shape: f32[20,4], index: 4, kind: input, shape index: {}]   ;;  %s718_s6 = inlined_call_operand.vmem [shape: f32[20,128], index: 6, kind: output, shape index: {}]  }
   0x1   :  { %534 = vmatprep.subr.mxu1 %v584_v0  ;;  %v31_v1 = vld [vmem:[%s712_s1] sm:$0x3]  ;;  %v493_v2 = vld [vmem:[%s712_s1 + $0x2] sm:$0x3]  ;;  %536 = vmatprep.mubr.msk.f32.mxu1 %vm585_vm1, %v584_v0  ;;  %v494_v6 = vld [vmem:[%s712_s1 + $0x4] sm:$0x3] }
   0x2   :  { %v32_v3 = vunpack.c.l.bf16 %v31_v1  ;;  %v35_v4 = vunpack.c.l.bf16 %v493_v2  ;;  %v42_v5 = vld [vmem:[%s713_s2] sm:$0xf]  ;;  %544 = vmatprep.subr.mxu0 %v584_v0  ;;  %546 = vmatprep.mubr.msk.f32.mxu0 %vm585_vm1, %v584_v0  ;;  %v38_v7 = vunpack.c.l.bf16 %v494_v6  ;;  %v516_v8 = vld [vmem:[%s714_s0 + $0x8] sm:$0xff]   ;;  %vm393_vm3 = vcmask 261120   ;;  %v41_v16 = vld [vmem:[%s715_s3 + $0x10] sm:$0xf] }
   0x3   :  { %v515_v9 = vunpack.c.h.bf16 %v516_v8  ;;  %v514_v10 = vunpack.c.l.bf16 %v516_v8  ;;  %v509_v11 = vld [vmem:[%s714_s0] sm:$0xff]   ;;  %v40_v15 = vld [vmem:[%s715_s3 + $0x8] sm:$0xff]  ;;  %v586_v17 = vmov 0   ;;  %v48_v19 = vld [vmem:[%s716_s5 + $0x10] sm:$0xf] }
   0x4   :  { %535 = vmatpush3.msk.msra.mxu1 %vm53_vm0, %v32_v3  ;;  %545 = vmatpush3.msk.msra.mxu0 %vm53_vm0, %v38_v7  ;;  %v511_v12 = vunpack.c.h.bf16 %v509_v11  ;;  %v510_v13 = vunpack.c.l.bf16 %v509_v11  ;;  %v39_v14 = vld [vmem:[%s715_s3] sm:$0xff]  ;;  %v47_v20 = vld [vmem:[%s716_s5 + $0x8] sm:$0xff]  ;;  %v45_v40 = vld [vmem:[%s717_s4 + $0x10] sm:$0xf] }
   0x5   :  { %537 = vmatmul.mubr.msk.f32.vlgmr.msra.gmra.mxu1 %vm49_vm2, %v42_v5  ;;  %539 = vmatprep.subr.mxu1 %v584_v0  ;;  %v46_v18 = vld [vmem:[%s716_s5] sm:$0xff]  ;;  %v44_v39 = vld [vmem:[%s717_s4 + $0x8] sm:$0xff] }
   0x6   :  { %540 = vmatpush3.msk.msra.mxu1 %vm53_vm0, %v35_v4  ;;  %541 = vmatprep.mubr.msk.f32.mxu1 %vm585_vm1, %v584_v0  ;;  %v43_v37 = vld [vmem:[%s717_s4] sm:$0xff] }
   0x7   :  { %549 = vmatprep.subr.mxu1 %v584_v0  ;;  %547 = vmatmul.mubr.msk.f32.vlgmr.msra.gmra.mxu0 %vm49_vm2, %v42_v5 }
   0x8   :  { %560 = vmatprep.subr.mxu0 %v584_v0  ;;  %568 = vmatprep.mubr.msk.f32.mxu0 %vm585_vm1, %v584_v0 }
   0x9   :  { %542 = vmatmul.mubr.msk.f32.vlgmr.msra.gmra.mxu1 %vm49_vm2, %v42_v5  ;;  %561 = vmatpush3.msra.mxu0 %v515_v9 }
   0xa   :  { %551 = vmatprep.mubr.msk.f32.mxu1 %vm585_vm1, %v584_v0  ;;  %562 = vmatprep.subr.mxu0 %v584_v0 }
   0xb   :  { %563 = vmatpush3.msra.mxu0 %v514_v10  ;;  %580 = vset.pattern.permute.xlu0 %v586_v17 }
   0xc   :  { %564 = vmatprep.subr.mxu0 %v584_v0  ;;  %581 = vset.pattern.permute.xlu1 %v586_v17 }
   0xd   :  { %565 = vmatpush3.msra.mxu0 %v511_v12  ;;  %288 = vperm.xlu0 %580, %v46_v18  }
   0xe   :  { %566 = vmatprep.subr.mxu0 %v584_v0  ;;  %298 = vperm.xlu1 %581, %v48_v19  }
   0xf   :  { %567 = vmatpush3.msra.mxu0 %v510_v13 }
  0x10   :  { %569 = vmatmul.mubr.msk.f32.vlgmr.msra.gmra.mxu0 %vm393_vm3, %v39_v14 }
  0x11   :  { %571 = vmatprep.mubr.msk.f32.mxu0 %vm585_vm1, %v584_v0  ;;  %293 = vperm.xlu0 %580, %v47_v20  }
  0x14   :  { %572 = vmatmul.mubr.msk.f32.gmra.mxu0 %vm393_vm3, %v40_v15 }
  0x15   :  { %574 = vmatprep.mubr.msk.f32.mxu0 %vm585_vm1, %v584_v0 }
  0x18   :  { %575 = vmatmul.mubr.msk.f32.gmra.mxu0 %vm393_vm3, %v41_v16 }
  0x88   :  { %v289_v47 = vpop.permute.xlu0 %288 }
  0x89   :  { %v299_v56 = vpop.permute.xlu1 %298 }
  0x8c   :  { %v294_v51 = vpop.permute.xlu0 %293 }
  0xc5   :  { %v123_v21 = vpop.f32.mrf.mxu1 }
  0xc6   :  { %v273_v25 = vmul.f32 %v123_v21, %v123_v21 }
  0xc7   :  { %v538_v22 = vpop.f32.mrf.mxu1  ;;  %v269_v23 = vpop.f32.mrf.mxu0 }
  0xc8   :  { %v276_v27 = vmul.f32 %v269_v23, %v269_v23 }
  0xc9   :  { %v196_v24 = vpop.f32.mrf.mxu1  ;;  %v548_v28 = vpop.f32.mrf.mxu0 }
  0xca   :  { %v274_v26 = vmul.f32 %v196_v24, %v196_v24 }
  0xcb   :  { %v543_v29 = vpop.f32.mrf.mxu1 }
  0xcc   :  { %v275_v30 = vadd.f32 %v274_v26, %v273_v25 }
  0xce   :  { %v277_v31 = vadd.f32 %v276_v27, %v275_v30 }
  0xd0   :  { %v278_v32 = vmax.f32 %v277_v31, 1e-08  ;;  %v469_v41 = vpop.f32.mrf.mxu0 }
  0xd2   :  { %582 = vrsqrt.f32 %v278_v32  ;;  %vm281_vm4 = vcmp.eq.f32.partialorder %v278_v32, inf  ;;  %v284_v35 = vand.u32 2147483648, %v278_v32  ;;  %vm283_vm5 = vcmp.eq.f32.partialorder %v278_v32, 0.0  ;;  %v570_v42 = vpop.f32.mrf.mxu0 }
  0xd4   :  { %v474_v43 = vpop.f32.mrf.mxu0 }
  0xd6   :  { %v573_v44 = vpop.f32.mrf.mxu0 }
  0xd8   :  { %v479_v45 = vpop.f32.mrf.mxu0 }
  0xda   :  { %v576_v46 = vpop.f32.mrf.mxu0 }
  0xdf   :  { %v583_v33 = vpop.eup %582 }
  0xe0   :  { %v280_v34 = vmul.f32 %v583_v33, %v278_v32 }
  0xe2   :  { %v282_v36 = vsel %vm281_vm4, %v278_v32, %v280_v34 }
  0xe3   :  { %v285_v38 = vsel %vm283_vm5, %v284_v35, %v282_v36 }
  0xe4   :  { %550 = vmatpush3.msk.msra.mxu1 %vm53_vm0, %v285_v38 }
  0xe5   :  { %552 = vmatmul.mubr.msk.f32.vlgmr.msra.gmra.mxu1 %vm49_vm2, %v43_v37 }
  0xe6   :  { %554 = vmatprep.mubr.msk.f32.mxu1 %vm585_vm1, %v584_v0 }
  0xe9   :  { %555 = vmatmul.mubr.msk.f32.gmra.mxu1 %vm49_vm2, %v44_v39 }
  0xea   :  { %557 = vmatprep.mubr.msk.f32.mxu1 %vm585_vm1, %v584_v0 }
  0xed   :  { %558 = vmatmul.mubr.msk.f32.gmra.mxu1 %vm49_vm2, %v45_v40 }
 0x1a5   :  { %v379_v48 = vpop.f32.mrf.mxu1 }
 0x1a6   :  { %v380_v49 = vadd.f32 %v379_v48, %v289_v47 }
 0x1a7   :  { %v553_v50 = vpop.f32.mrf.mxu1 }
 0x1a8   :  { %v483_v52 = vadd.f32 %v469_v41, %v380_v49 }
 0x1a9   :  { %v384_v53 = vpop.f32.mrf.mxu1 }
 0x1aa   :  { %486 = vst [vmem:[%s718_s6] sm:$0xff] %v483_v52  ;;  %v385_v54 = vadd.f32 %v384_v53, %v294_v51 }
 0x1ab   :  { %v556_v55 = vpop.f32.mrf.mxu1 }
 0x1ac   :  { %v484_v57 = vadd.f32 %v474_v43, %v385_v54 }
 0x1ad   :  { %v389_v58 = vpop.f32.mrf.mxu1 }
 0x1ae   :  { %487 = vst [vmem:[%s718_s6 + $0x8] sm:$0xff] %v484_v57  ;;  %v390_v59 = vadd.f32 %v389_v58, %v299_v56 }
 0x1af   :  { %v559_v60 = vpop.f32.mrf.mxu1 }
 0x1b0   :  { %v485_v61 = vadd.f32 %v479_v45, %v390_v59 }
 0x1b2   :  { %488 = vst [vmem:[%s718_s6 + $0x10] sm:$0xf] %v485_v61 }

// kernel: cpd_forward.14
= control target key start
LH: loop header
LB: loop body
LE: loop exit
PB: predicated region body
PF: predicated region fallthrough
CT: control target
= control target key end

     0   :  { %v2921_v0 = vmov 0.0   ;;  %vm2922_vm0 = vmmov 0   ;;  %v84_v2 = vlaneseq  ;;  %vm127_vm1 = vcmask 261120   ;;  %s3599_s4 = inlined_call_operand.vmem [shape: f32[1,128], index: 4, kind: input, shape index: {}]   ;;  %s3600_s2 = inlined_call_operand.vmem [shape: bf16[32,128], index: 2, kind: input, shape index: {}]   ;;  %s3601_s3 = inlined_call_operand.vmem [shape: bf16[3,4,128], index: 3, kind: input, shape index: {}]   ;;  %s3602_s0 = inlined_call_operand.vmem [shape: bf16[32,128], index: 0, kind: input, shape index: {}]   ;;  %s3603_s1 = inlined_call_operand.vmem [shape: bf16[3,4,128], index: 1, kind: input, shape index: {}]   ;;  %s3604_s5 = inlined_call_operand.vmem [shape: f32[32,1], index: 5, kind: input, shape index: {}]   ;;  %s3605_s6 = inlined_call_operand.vmem [shape: f32[32,1], index: 6, kind: input, shape index: {}]   ;;  %s3606_s10 = inlined_call_operand.vmem [shape: f32[128,1], index: 10, kind: input, shape index: {}]   ;;  %s3607_s15 = inlined_call_operand.vmem [shape: f32[32,1], index: 15, kind: input, shape index: {}]   ;;  %s3608_s17 = inlined_call_operand.vmem [shape: f32[32,1], index: 17, kind: input, shape index: {}]   ;;  %s3609_s18 = inlined_call_operand.vmem [shape: f32[32,1], index: 18, kind: input, shape index: {}]   ;;  %s3610_s7 = inlined_call_operand.vmem [shape: f32[8,4], index: 7, kind: input, shape index: {}]   ;;  %s3611_s8 = inlined_call_operand.vmem [shape: f32[128,32], index: 8, kind: input, shape index: {}]   ;;  %s3612_s9 = inlined_call_operand.vmem [shape: f32[128,8], index: 9, kind: input, shape index: {}]   ;;  %s3613_s11 = inlined_call_operand.vmem [shape: f32[8,8], index: 11, kind: input, shape index: {}]   ;;  %s3614_s12 = inlined_call_operand.vmem [shape: f32[8,8], index: 12, kind: input, shape index: {}]   ;;  %s3615_s14 = inlined_call_operand.vmem [shape: f32[32,8], index: 14, kind: input, shape index: {}]   ;;  %s3616_s13 = inlined_call_operand.vmem [shape: f32[32,128], index: 13, kind: input, shape index: {}]   ;;  %s3617_s16 = inlined_call_operand.vmem [shape: f32[4,8], index: 16, kind: input, shape index: {}]   ;;  %s3618_s20 = inlined_call_operand.vmem [shape: bf16[3,4,128], index: 20, kind: output, shape index: {1}]   ;;  %s3619_s19 = inlined_call_operand.vmem [shape: bf16[32,128], index: 19, kind: output, shape index: {0}]  }
   0x1   :  { %3624 = sst [smem:[#allocation2_spill]] %s3599_s4  ;;  %2677 = vmatprep.subr.mxu0 %v2921_v0  ;;  %2685 = vmatprep.mubr.msk.f32.mxu0 %vm2922_vm0, %v2921_v0  ;;  %vm352_vm2 = vcmask 1043456   ;;  %v2923_v50 = vmov 1.0   ;;  %vm349_vm3 = vcmask 31744   ;;  %v2924_v52 = vmov 0   ;;  %v122_v53 = vld [vmem:[%s3604_s5 + $0x18] sm:$0xff] }
   0x2   :  { %3625 = sst [smem:[#allocation3_spill]] %s3600_s2  ;;  %2688 = vmatprep.subr.mxu1 %v2921_v0  ;;  %2696 = vmatprep.mubr.msk.f32.mxu1 %vm2922_vm0, %v2921_v0  ;;  %v85_v3 = vshrl.u32 %v84_v2, 7  ;;  %v126_v54 = vld [vmem:[%s3605_s6 + $0x18] sm:$0xff]  ;;  %v121_v55 = vld [vmem:[%s3604_s5 + $0x10] sm:$0xff]  ;;  %v120_v56 = vld [vmem:[%s3604_s5 + $0x8] sm:$0xff]  ;;  %vm800_vm4 = vcmask 64512  }
   0x3   :  { %3626 = sst [smem:[#allocation4_spill]] %s3601_s3  ;;  %2899 = vset.pattern.permute.xlu0 %v2924_v52  ;;  %2900 = vset.pattern.permute.xlu1 %v2924_v52  ;;  %v125_v57 = vld [vmem:[%s3605_s6 + $0x10] sm:$0xff]  ;;  %v119_v58 = vld [vmem:[%s3604_s5] sm:$0xff]  ;;  %v124_v59 = vld [vmem:[%s3605_s6 + $0x8] sm:$0xff] }
   0x4   :  { %3627 = sst [smem:[#allocation5_spill]] %s3602_s0  ;;  %v3048_v7 = vsub.s32 0, %v85_v3  ;;  %312 = vperm.xlu0 %2899, %v122_v53   ;;  %336 = vperm.xlu1 %2900, %v126_v54   ;;  %v123_v60 = vld [vmem:[%s3605_s6] sm:$0xff]  ;;  %v483_v61 = vld [vmem:[%s3606_s10 + $0x78] sm:$0xff]  ;;  %v482_v62 = vld [vmem:[%s3606_s10 + $0x70] sm:$0xff] }
   0x5   :  { %3628 = sst [smem:[#allocation6_spill]] %s3603_s1  ;;  %v481_v63 = vld [vmem:[%s3606_s10 + $0x68] sm:$0xff]  ;;  %v479_v2 = vld [vmem:[%s3606_s10 + $0x58] sm:$0xff]  ;;  %v478_v3 = vld [vmem:[%s3606_s10 + $0x50] sm:$0xff] }
   0x6   :  { %s3629_s23 = sld [smem:[#allocation2_spill]] }
   0x7   :  { %s3630_s25 = sld [smem:[#allocation3_spill]] }
   0x8   :  { %s3631_s1 = sld [smem:[#allocation4_spill]]  ;;  %307 = vperm.xlu0 %2899, %v121_v55   ;;  %302 = vperm.xlu1 %2900, %v120_v56  }
   0xc   :  { %v64_v1 = vld [vmem:[%s3629_s23] sm:$0x1]  ;;  %s3632_s23 = sld [smem:[#allocation5_spill]]  ;;  %331 = vperm.xlu0 %2899, %v125_v57   ;;  %297 = vperm.xlu1 %2900, %v119_v58  }
   0xd   :  { %2901 = vrcp.f32 %v64_v1  ;;  %v2547_v4 = vld [vmem:[%s3630_s25] sm:$0xff]   ;;  %v2565_v5 = vld [vmem:[%s3630_s25 + $0x8] sm:$0xff]   ;;  %s3633_s25 = sld [smem:[#allocation6_spill]] }
   0xe   :  { %v99_v6 = vld [vmem:[%s3631_s1] sm:$0x3]  ;;  %v2465_v8 = vld [vmem:[%s3631_s1 + $0x2] sm:$0x3]  ;;  %v2467_v9 = vld [vmem:[%s3631_s1 + $0x4] sm:$0x3]  ;;  %v2552_v11 = vunpack.c.l.bf16 %v2565_v5  ;;  %v2553_v12 = vunpack.c.h.bf16 %v2565_v5  ;;  %v2549_v13 = vunpack.c.h.bf16 %v2547_v4  ;;  %v2548_v25 = vunpack.c.l.bf16 %v2547_v4 }
   0xf   :  { %v100_v19 = vunpack.c.l.bf16 %v99_v6  ;;  %v108_v20 = vunpack.c.l.bf16 %v2465_v8  ;;  %v116_v21 = vunpack.c.l.bf16 %v2467_v9  ;;  %v480_v1 = vld [vmem:[%s3606_s10 + $0x60] sm:$0xff]  ;;  %v477_v4 = vld [vmem:[%s3606_s10 + $0x48] sm:$0xff]  ;;  %v475_v6 = vld [vmem:[%s3606_s10 + $0x38] sm:$0xff] }
  0x10   :  { %326 = vperm.xlu0 %2899, %v124_v59   ;;  %321 = vperm.xlu1 %2900, %v123_v60   ;;  %v476_v5 = vld [vmem:[%s3606_s10 + $0x40] sm:$0xff]  ;;  %v474_v8 = vld [vmem:[%s3606_s10 + $0x30] sm:$0xff]  ;;  %v473_v9 = vld [vmem:[%s3606_s10 + $0x28] sm:$0xff] }
  0x12   :  { %v2564_v10 = vld [vmem:[%s3632_s23 + $0x8] sm:$0xff]   ;;  %v2539_v18 = vld [vmem:[%s3632_s23] sm:$0xff]  }
  0x13   :  { %v97_v14 = vld [vmem:[%s3633_s25] sm:$0x3]  ;;  %v2464_v15 = vld [vmem:[%s3633_s25 + $0x2] sm:$0x3]  ;;  %v2466_v16 = vld [vmem:[%s3633_s25 + $0x4] sm:$0x3]  ;;  %v2544_v22 = vunpack.c.l.bf16 %v2564_v10  ;;  %v2545_v23 = vunpack.c.h.bf16 %v2564_v10  ;;  %v2541_v31 = vunpack.c.h.bf16 %v2539_v18  ;;  %v2540_v38 = vunpack.c.l.bf16 %v2539_v18 }
  0x14   :  { %v98_v26 = vunpack.c.l.bf16 %v97_v14  ;;  %v105_v27 = vunpack.c.l.bf16 %v2464_v15  ;;  %v113_v28 = vunpack.c.l.bf16 %v2466_v16  ;;  %797 = vperm.xlu0 %2899, %v483_v61   ;;  %792 = vperm.xlu1 %2900, %v482_v62   ;;  %v472_v10 = vld [vmem:[%s3606_s10 + $0x20] sm:$0xff]  ;;  %v1466_v15 = vld [vmem:[%s3607_s15 + $0x18] sm:$0xff]  ;;  %v1465_v16 = vld [vmem:[%s3607_s15 + $0x10] sm:$0xff] }
  0x15   :  { %v468_v14 = vld [vmem:[%s3606_s10] sm:$0xff] }
  0x16   :  { %v1463_v18 = vld [vmem:[%s3607_s15] sm:$0xff] }
  0x18   :  { %787 = vperm.xlu0 %2899, %v481_v63   ;;  %782 = vperm.xlu1 %2900, %v480_v1  }
  0x1a   :  { %v2902_v17 = vpop.eup %2901 }
  0x1b   :  { %v87_v24 = vrot.slane %v2902_v17, %v3048_v7  ;;  %v1464_v17 = vld [vmem:[%s3607_s15 + $0x8] sm:$0xff] }
  0x1c   :  { %777 = vperm.xlu0 %2899, %v479_v2   ;;  %772 = vperm.xlu1 %2900, %v478_v3  }
  0x1d   :  { %v92_v29 = vmul.f32 %v2553_v12, %v87_v24  ;;  %v91_v30 = vmul.f32 %v2552_v11, %v87_v24  ;;  %v90_v32 = vmul.f32 %v2549_v13, %v87_v24  ;;  %v101_v33 = vmul.f32 %v100_v19, %v87_v24  ;;  %v471_v11 = vld [vmem:[%s3606_s10 + $0x18] sm:$0xff]  ;;  %v470_v12 = vld [vmem:[%s3606_s10 + $0x10] sm:$0xff]  ;;  %v469_v13 = vld [vmem:[%s3606_s10 + $0x8] sm:$0xff] }
  0x1e   :  { %v109_v34 = vmul.f32 %v108_v20, %v87_v24  ;;  %v117_v35 = vmul.f32 %v116_v21, %v87_v24  ;;  %v89_v39 = vmul.f32 %v2548_v25, %v87_v24  ;;  %v2120_v19 = vld [vmem:[%s3608_s17] sm:$0xff]  ;;  %v2121_v20 = vld [vmem:[%s3608_s17 + $0x8] sm:$0xff]  ;;  %v2122_v21 = vld [vmem:[%s3608_s17 + $0x10] sm:$0xff] }
  0x1f   :  { %v3072_v36 = vadd.f32 %v2545_v23, %v92_v29  ;;  %v3074_v37 = vadd.f32 %v2544_v22, %v91_v30  ;;  %v3076_v40 = vadd.f32 %v101_v33, %v98_v26  ;;  %v3083_v43 = vadd.f32 %v2541_v31, %v90_v32  ;;  %v2123_v22 = vld [vmem:[%s3608_s17 + $0x18] sm:$0xff]  ;;  %v2124_v23 = vld [vmem:[%s3609_s18] sm:$0xff]  ;;  %v2125_v24 = vld [vmem:[%s3609_s18 + $0x8] sm:$0xff] }
  0x20   :  { %v3078_v41 = vadd.f32 %v109_v34, %v105_v27  ;;  %v3080_v42 = vadd.f32 %v117_v35, %v113_v28  ;;  %v3093_v47 = vadd.f32 %v2540_v38, %v89_v39  ;;  %767 = vperm.xlu0 %2899, %v477_v4   ;;  %762 = vperm.xlu1 %2900, %v476_v5   ;;  %v2126_v25 = vld [vmem:[%s3609_s18 + $0x10] sm:$0xff]  ;;  %v2127_v26 = vld [vmem:[%s3609_s18 + $0x18] sm:$0xff] }
  0x21   :  { %2678 = vmatpush3.msra.mxu0 %v3072_v36  ;;  %v343_v44 = vmul.f32 %v3076_v40, %v3076_v40 }
  0x22   :  { %2679 = vmatprep.subr.mxu0 %v2921_v0  ;;  %v344_v45 = vmul.f32 %v3078_v41, %v3078_v41  ;;  %v346_v46 = vmul.f32 %v3080_v42, %v3080_v42 }
  0x23   :  { %2680 = vmatpush3.msra.mxu0 %v3074_v37 }
  0x24   :  { %2681 = vmatprep.subr.mxu0 %v2921_v0  ;;  %v345_v48 = vadd.f32 %v344_v45, %v343_v44  ;;  %757 = vperm.xlu0 %2899, %v475_v6  }
  0x25   :  { %2682 = vmatpush3.msra.mxu0 %v3083_v43  ;;  %752 = vperm.xlu1 %2900, %v474_v8  }
  0x26   :  { %2683 = vmatprep.subr.mxu0 %v2921_v0  ;;  %v347_v49 = vadd.f32 %v346_v46, %v345_v48 }
  0x27   :  { %2684 = vmatpush3.msra.mxu0 %v3093_v47 }
  0x28   :  { %2686 = vmatmul.mubr.msk.f32.vlgmr.msra.gmra.mxu0 %vm127_vm1, %v2923_v50  ;;  %2699 = vmatprep.subr.mxu0 %v2921_v0  ;;  %v348_v51 = vmax.f32 %v347_v49, 1e-08  ;;  %v451_v49 = vld [vmem:[%s3610_s7] sm:$0xff] }
  0x29   :  { %2701 = vmatprep.mubr.msk.f32.mxu0 %vm2922_vm0, %v2921_v0  ;;  %747 = vperm.xlu0 %2899, %v473_v9  }
  0x2a   :  { %2700 = vmatpush3.msk.msra.mxu0 %vm352_vm2, %v348_v51  ;;  %742 = vperm.xlu1 %2900, %v472_v10  }
  0x2b   :  { %2709 = vmatprep.subr.mxu0 %v2921_v0 }
  0x2c   :  { %2702 = vmatmul.mubr.msk.f32.vlgmr.msra.gmra.mxu0 %vm349_vm3, %v2923_v50 }
  0x2d   :  { %2711 = vmatprep.mubr.msk.f32.mxu0 %vm2922_vm0, %v2921_v0  ;;  %737 = vperm.xlu0 %2899, %v471_v11  }
  0x2e   :  { %732 = vperm.xlu1 %2900, %v470_v12  }
  0x31   :  { %727 = vperm.xlu0 %2899, %v469_v13  }
  0x32   :  { %722 = vperm.xlu1 %2900, %v468_v14  }
  0x35   :  { %1711 = vperm.xlu0 %2899, %v1466_v15  }
  0x36   :  { %1706 = vperm.xlu1 %2900, %v1465_v16  }
  0x39   :  { %1701 = vperm.xlu0 %2899, %v1464_v17  }
  0x3a   :  { %1696 = vperm.xlu1 %2900, %v1463_v18  }
  0x3d   :  { %2294 = vperm.xlu0 %2899, %v2120_v19  }
  0x3e   :  { %2299 = vperm.xlu1 %2900, %v2121_v20  }
  0x41   :  { %2304 = vperm.xlu0 %2899, %v2122_v21  }
  0x42   :  { %2309 = vperm.xlu1 %2900, %v2123_v22  }
  0x45   :  { %2318 = vperm.xlu0 %2899, %v2124_v23  }
  0x46   :  { %2323 = vperm.xlu1 %2900, %v2125_v24  }
  0x49   :  { %2328 = vperm.xlu0 %2899, %v2126_v25  }
  0x4a   :  { %2333 = vperm.xlu1 %2900, %v2127_v26  }
  0x7f   :  { %v313_v55 = vpop.permute.xlu0 %312  ;;  %v337_v58 = vpop.permute.xlu1 %336 }
  0x83   :  { %v308_v3 = vpop.permute.xlu0 %307  ;;  %v303_v8 = vpop.permute.xlu1 %302 }
  0x87   :  { %v332_v14 = vpop.permute.xlu0 %331  ;;  %v298_v18 = vpop.permute.xlu1 %297 }
  0x8b   :  { %v327_v23 = vpop.permute.xlu0 %326  ;;  %v322_v25 = vpop.permute.xlu1 %321 }
  0xe8   :  { %v197_v27 = vpop.f32.mrf.mxu0 }
  0xe9   :  { %v201_v28 = vmul.f32 0.03125, %v197_v27  ;;  %v436_v27 = vld [vmem:[%s3611_s8 + $0x8] sm:$0xff] }
  0xea   :  { %v2687_v29 = vpop.f32.mrf.mxu0 }
  0xeb   :  { %v205_v30 = vrot.slane %v201_v28, %v3048_v7  ;;  %v437_v28 = vld [vmem:[%s3611_s8 + $0x10] sm:$0xff] }
  0xec   :  { %v422_v31 = vpop.f32.mrf.mxu0 }
  0xed   :  { %v426_v32 = vmul.f32 0.25, %v422_v31  ;;  %v3220_v33 = vsub.f32 %v3072_v36, %v205_v30  ;;  %v3223_v34 = vsub.f32 %v3074_v37, %v205_v30  ;;  %v3228_v39 = vsub.f32 %v3083_v43, %v205_v30 }
  0xee   :  { %v2703_v35 = vpop.f32.mrf.mxu0  ;;  %v3233_v45 = vsub.f32 %v3093_v47, %v205_v30 }
  0xef   :  { %2903 = vrsqrt.f32 %v426_v32  ;;  %v213_v38 = vmul.f32 %v3220_v33, %v3220_v33  ;;  %v212_v44 = vmul.f32 %v3223_v34, %v3223_v34  ;;  %v211_v36 = vmul.f32 %v3228_v39, %v3228_v39  ;;  %v438_v32 = vld [vmem:[%s3611_s8 + $0x18] sm:$0xff] }
  0xf0   :  { %v210_v37 = vmul.f32 %v3233_v45, %v3233_v45 }
  0xf1   :  { %2689 = vmatpush3.msra.mxu1 %v213_v38  ;;  %v453_v38 = vld [vmem:[%s3612_s9 + $0x8] sm:$0xff] }
  0xf2   :  { %2690 = vmatprep.subr.mxu1 %v2921_v0 }
  0xf3   :  { %2691 = vmatpush3.msra.mxu1 %v212_v44  ;;  %v440_v44 = vld [vmem:[%s3611_s8 + $0x28] sm:$0xff] }
  0xf4   :  { %2692 = vmatprep.subr.mxu1 %v2921_v0 }
  0xf5   :  { %2693 = vmatpush3.msra.mxu1 %v211_v36  ;;  %v455_v36 = vld [vmem:[%s3612_s9 + $0x18] sm:$0xff] }
  0xf6   :  { %2694 = vmatprep.subr.mxu1 %v2921_v0 }
  0xf7   :  { %2695 = vmatpush3.msra.mxu1 %v210_v37  ;;  %v456_v37 = vld [vmem:[%s3612_s9 + $0x20] sm:$0xff] }
  0xf8   :  { %2697 = vmatmul.mubr.msk.f32.vlgmr.msra.gmra.mxu1 %vm127_vm1, %v2923_v50  ;;  %2704 = vmatprep.subr.mxu1 %v2921_v0 }
  0xf9   :  { %2706 = vmatprep.mubr.msk.f32.mxu1 %vm2922_vm0, %v2921_v0 }
  0xfc   :  { %v2904_v43 = vpop.eup %2903 }
  0xfd   :  { %v431_v46 = vrot.slane %v2904_v43, %v3048_v7  ;;  %v442_v43 = vld [vmem:[%s3611_s8 + $0x38] sm:$0xff] }
  0xff   :  { %v3249_v47 = vmul.f32 %v431_v46, %v3076_v40  ;;  %v3252_v48 = vmul.f32 %v431_v46, %v3078_v41  ;;  %v3264_v40 = vmul.f32 %v431_v46, %v3080_v42  ;;  %v435_v41 = vld [vmem:[%s3611_s8] sm:$0xff] }
 0x100   :  { %v452_v42 = vld [vmem:[%s3612_s9] sm:$0xff] }
 0x101   :  { %2705 = vmatpush3.msk.msra.mxu1 %vm352_vm2, %v3249_v47  ;;  %2710 = vmatpush3.msk.msra.mxu0 %vm352_vm2, %v3252_v48  ;;  %v443_v46 = vld [vmem:[%s3611_s8 + $0x40] sm:$0xff] }
 0x102   :  { %2707 = vmatmul.mubr.msk.f32.vlgmr.msra.gmra.mxu1 %vm349_vm3, %v451_v49  ;;  %2712 = vmatmul.mubr.msk.f32.vlgmr.msra.gmra.mxu0 %vm349_vm3, %v451_v49 }
 0x103   :  { %2714 = vmatprep.subr.mxu1 %v2921_v0  ;;  %2716 = vmatprep.mubr.msk.f32.mxu1 %vm2922_vm0, %v2921_v0 }
 0x104   :  { %2715 = vmatpush3.msk.msra.mxu1 %vm352_vm2, %v3264_v40  ;;  %2721 = vmatprep.mubr.msk.f32.mxu0 %vm800_vm4, %v452_v42  ;;  %v444_v42 = vld [vmem:[%s3611_s8 + $0x48] sm:$0xff] }
 0x106   :  { %2717 = vmatmul.mubr.msk.f32.vlgmr.msra.gmra.mxu1 %vm349_vm3, %v451_v49  ;;  %v457_v49 = vld [vmem:[%s3612_s9 + $0x28] sm:$0xff] }
 0x107   :  { %2753 = vmatprep.mubr.msk.f32.mxu1 %vm127_vm1, %v435_v41  ;;  %v458_v41 = vld [vmem:[%s3612_s9 + $0x30] sm:$0xff] }
 0x1b8   :  { %v280_v51 = vpop.f32.mrf.mxu1 }
 0x1b9   :  { %v284_v52 = vmul.f32 0.03125, %v280_v51  ;;  %v445_v51 = vld [vmem:[%s3611_s8 + $0x50] sm:$0xff] }
 0x1ba   :  { %v2698_v53 = vpop.f32.mrf.mxu1 }
 0x1bb   :  { %v285_v54 = vadd.f32 1e-05, %v284_v52  ;;  %v459_v52 = vld [vmem:[%s3612_s9 + $0x38] sm:$0xff]  ;;  %v460_v53 = vld [vmem:[%s3612_s9 + $0x40] sm:$0xff] }
 0x1bd   :  { %2905 = vrsqrt.f32 %v285_v54  ;;  %v446_v54 = vld [vmem:[%s3611_s8 + $0x58] sm:$0xff] }
 0x1c2   :  { %v3280_v56 = vpop.f32.mrf.mxu1  ;;  %v3282_v57 = vpop.f32.mrf.mxu0 }
 0x1c3   :  { %v707_v59 = vmul.f32 %v3280_v56, %v3280_v56  ;;  %v708_v60 = vmul.f32 %v3282_v57, %v3282_v57 }
 0x1c4   :  { %v2708_v61 = vpop.f32.mrf.mxu1  ;;  %v2713_v62 = vpop.f32.mrf.mxu0 }
 0x1c5   :  { %v709_v1 = vadd.f32 %v708_v60, %v707_v59  ;;  %v448_v59 = vld [vmem:[%s3611_s8 + $0x68] sm:$0xff]  ;;  %v449_v60 = vld [vmem:[%s3611_s8 + $0x70] sm:$0xff]  ;;  %v463_v61 = vld [vmem:[%s3612_s9 + $0x58] sm:$0xff] }
 0x1c6   :  { %v703_v63 = vpop.f32.mrf.mxu1  ;;  %v464_v62 = vld [vmem:[%s3612_s9 + $0x60] sm:$0xff] }
 0x1c7   :  { %v710_v2 = vmul.f32 %v703_v63, %v703_v63 }
 0x1c8   :  { %v2718_v4 = vpop.f32.mrf.mxu1 }
 0x1c9   :  { %v711_v5 = vadd.f32 %v710_v2, %v709_v1  ;;  %v465_v1 = vld [vmem:[%s3612_s9 + $0x68] sm:$0xff]  ;;  %v466_v2 = vld [vmem:[%s3612_s9 + $0x70] sm:$0xff]  ;;  %v484_v4 = vld [vmem:[%s3613_s11] sm:$0xff] }
 0x1ca   :  { %v2906_v6 = vpop.eup %2905 }
 0x1cb   :  { %v290_v9 = vrot.slane %v2906_v6, %v3048_v7  ;;  %v712_v10 = vmax.f32 %v711_v5, 1e-08  ;;  %v3452_v5 = vpop.permute.xlu0 %797  ;;  %v3454_v6 = vpop.permute.xlu1 %792 }
 0x1cd   :  { %2907 = vrsqrt.f32 %v712_v10  ;;  %v294_v11 = vmul.f32 %v290_v9, %v3220_v33  ;;  %v293_v12 = vmul.f32 %v290_v9, %v3223_v34  ;;  %v292_v13 = vmul.f32 %v290_v9, %v3228_v39  ;;  %v439_v34 = vld [vmem:[%s3611_s8 + $0x20] sm:$0xff]  ;;  %v454_v39 = vld [vmem:[%s3612_s9 + $0x10] sm:$0xff] }
 0x1ce   :  { %v291_v17 = vmul.f32 %v290_v9, %v3233_v45  ;;  %vm715_vm5 = vcmp.eq.f32.partialorder %v712_v10, inf  ;;  %v718_v31 = vand.u32 2147483648, %v712_v10  ;;  %vm717_vm6 = vcmp.eq.f32.partialorder %v712_v10, 0.0  ;;  %v441_v45 = vld [vmem:[%s3611_s8 + $0x30] sm:$0xff] }
 0x1cf   :  { %v318_v15 = vmul.f32 %v313_v55, %v294_v11  ;;  %v317_v16 = vmul.f32 %v308_v3, %v293_v12  ;;  %v316_v20 = vmul.f32 %v303_v8, %v292_v13  ;;  %v447_v55 = vld [vmem:[%s3611_s8 + $0x60] sm:$0xff]  ;;  %v467_v3 = vld [vmem:[%s3612_s9 + $0x78] sm:$0xff]  ;;  %v3456_v8 = vpop.permute.xlu0 %787  ;;  %v3458_v9 = vpop.permute.xlu1 %782 }
 0x1d0   :  { %v315_v22 = vmul.f32 %v298_v18, %v291_v17 }
 0x1d1   :  { %v3293_v19 = vadd.f32 %v337_v58, %v318_v15  ;;  %v3296_v21 = vadd.f32 %v332_v14, %v317_v16  ;;  %v3300_v24 = vadd.f32 %v327_v23, %v316_v20  ;;  %v462_v58 = vld [vmem:[%s3612_s9 + $0x50] sm:$0xff] }
 0x1d2   :  { %v3304_v26 = vadd.f32 %v322_v25, %v315_v22 }
 0x1d3   :  { %2745 = vmatprep.subr.mxu1 %v3293_v19 }
 0x1d4   :  { %2746 = vmatpush3.msra.mxu1 %v3293_v19 }
 0x1d5   :  { %2747 = vmatprep.subr.mxu1 %v3296_v21 }
 0x1d6   :  { %2748 = vmatpush3.msra.mxu1 %v3296_v21 }
 0x1d7   :  { %2749 = vmatprep.subr.mxu1 %v3300_v24 }
 0x1d8   :  { %2750 = vmatpush3.msra.mxu1 %v3300_v24 }
 0x1d9   :  { %2751 = vmatprep.subr.mxu1 %v3304_v26 }
 0x1da   :  { %v2908_v29 = vpop.eup %2907  ;;  %2752 = vmatpush3.msra.mxu1 %v3304_v26 }
 0x1db   :  { %2787 = vmatprep.subr.mxu1 %v2921_v0  ;;  %2754 = vmatmul.mubr.msk.f32.vlgmr.msra.gmra.mxu1 %vm127_vm1, %v436_v27  ;;  %v714_v30 = vmul.f32 %v2908_v29, %v712_v10 }
 0x1dc   :  { %2788 = vmatpush3.msra.mxu1 %v703_v63  ;;  %2756 = vmatprep.mubr.msk.f32.mxu1 %vm127_vm1, %v437_v28  ;;  %v450_v63 = vld [vmem:[%s3611_s8 + $0x78] sm:$0xff] }
 0x1dd   :  { %v716_v33 = vsel %vm715_vm5, %v712_v10, %v714_v30  ;;  %2797 = vmatprep.subr.mxu1 %v2921_v0  ;;  %v778_v10 = vpop.permute.xlu0 %777 }
 0x1de   :  { %v719_v35 = vsel %vm717_vm6, %v718_v31, %v716_v33 }
 0x1df   :  { %2719 = vmatprep.subr.mxu0 %v719_v35  ;;  %2757 = vmatmul.mubr.msk.f32.gmra.mxu1 %vm127_vm1, %v438_v32 }
 0x1e0   :  { %2720 = vmatpush3.msra.mxu0 %v719_v35  ;;  %2759 = vmatprep.mubr.msk.f32.mxu1 %vm127_vm1, %v439_v34 }
 0x1e1   :  { %2722 = vmatmul.mubr.msk.f32.vlgmr.msra.gmra.mxu0 %vm800_vm4, %v453_v38  ;;  %2777 = vmatprep.subr.mxu0 %v2921_v0  ;;  %v768_v11 = vpop.permute.xlu0 %767 }
 0x1e2   :  { %2778 = vmatpush3.msra.mxu0 %v3280_v56  ;;  %2724 = vmatprep.mubr.msk.f32.mxu0 %vm800_vm4, %v454_v39  ;;  %v461_v56 = vld [vmem:[%s3612_s9 + $0x48] sm:$0xff] }
 0x1e3   :  { %2760 = vmatmul.mubr.msk.f32.gmra.mxu1 %vm127_vm1, %v440_v44  ;;  %2782 = vmatprep.subr.mxu0 %v2921_v0 }
 0x1e4   :  { %2762 = vmatprep.mubr.msk.f32.mxu1 %vm127_vm1, %v441_v45 }
 0x1e5   :  { %2725 = vmatmul.mubr.msk.f32.gmra.mxu0 %vm800_vm4, %v455_v36  ;;  %v758_v13 = vpop.permute.xlu0 %757 }
 0x1e6   :  { %2727 = vmatprep.mubr.msk.f32.mxu0 %vm800_vm4, %v456_v37 }
 0x1e7   :  { %2763 = vmatmul.mubr.msk.f32.gmra.mxu1 %vm127_vm1, %v442_v43 }
 0x1e8   :  { %2765 = vmatprep.mubr.msk.f32.mxu1 %vm127_vm1, %v443_v46 }
 0x1e9   :  { %2728 = vmatmul.mubr.msk.f32.gmra.mxu0 %vm800_vm4, %v457_v49  ;;  %v748_v15 = vpop.permute.xlu0 %747 }
 0x1ea   :  { %2730 = vmatprep.mubr.msk.f32.mxu0 %vm800_vm4, %v458_v41 }
 0x1eb   :  { %2766 = vmatmul.mubr.msk.f32.gmra.mxu1 %vm127_vm1, %v444_v42 }
 0x1ec   :  { %2768 = vmatprep.mubr.msk.f32.mxu1 %vm127_vm1, %v445_v51 }
 0x1ed   :  { %2731 = vmatmul.mubr.msk.f32.gmra.mxu0 %vm800_vm4, %v459_v52  ;;  %v738_v17 = vpop.permute.xlu0 %737 }
 0x1ee   :  { %2733 = vmatprep.mubr.msk.f32.mxu0 %vm800_vm4, %v460_v53 }
 0x1ef   :  { %2769 = vmatmul.mubr.msk.f32.gmra.mxu1 %vm127_vm1, %v446_v54 }
 0x1f0   :  { %2771 = vmatprep.mubr.msk.f32.mxu1 %vm127_vm1, %v447_v55 }
 0x1f1   :  { %2734 = vmatmul.mubr.msk.f32.gmra.mxu0 %vm800_vm4, %v461_v56  ;;  %v728_v25 = vpop.permute.xlu0 %727 }
 0x1f2   :  { %2736 = vmatprep.mubr.msk.f32.mxu0 %vm800_vm4, %v462_v58 }
 0x1f3   :  { %2772 = vmatmul.mubr.msk.f32.gmra.mxu1 %vm127_vm1, %v448_v59 }
 0x1f4   :  { %2774 = vmatprep.mubr.msk.f32.mxu1 %vm127_vm1, %v449_v60 }
 0x1f5   :  { %2737 = vmatmul.mubr.msk.f32.gmra.mxu0 %vm800_vm4, %v463_v61 }
 0x1f6   :  { %2739 = vmatprep.mubr.msk.f32.mxu0 %vm800_vm4, %v464_v62 }
 0x1f7   :  { %2775 = vmatmul.mubr.msk.f32.gmra.mxu1 %vm127_vm1, %v450_v63 }
 0x1f8   :  { %2789 = vmatprep.mubr.msk.f32.mxu1 %vm2922_vm0, %v2921_v0 }
 0x1f9   :  { %2740 = vmatmul.mubr.msk.f32.gmra.mxu0 %vm800_vm4, %v465_v1 }
 0x1fa   :  { %2742 = vmatprep.mubr.msk.f32.mxu0 %vm800_vm4, %v466_v2 }
 0x1fb   :  { %2790 = vmatmul.mubr.msk.f32.vlgmr.msra.gmra.mxu1 %vm800_vm4, %v484_v4 }
 0x1fc   :  { %2799 = vmatprep.mubr.msk.f32.mxu1 %vm2922_vm0, %v2921_v0 }
 0x1fd   :  { %2743 = vmatmul.mubr.msk.f32.gmra.mxu0 %vm800_vm4, %v467_v3 }
 0x1fe   :  { %2779 = vmatprep.mubr.msk.f32.mxu0 %vm2922_vm0, %v2921_v0 }
 0x201   :  { %2780 = vmatmul.mubr.msk.f32.vlgmr.msra.gmra.mxu0 %vm800_vm4, %v484_v4 }
 0x202   :  { %2783 = vmatpush3.msra.mxu0 %v3282_v57  ;;  %2784 = vmatprep.mubr.msk.f32.mxu0 %vm2922_vm0, %v2921_v0  ;;  %v773_v57 = vpop.permute.xlu1 %772 }
 0x203   :  { %2792 = vmatprep.subr.mxu0 %v2921_v0 }
 0x205   :  { %2785 = vmatmul.mubr.msk.f32.vlgmr.msra.gmra.mxu0 %vm800_vm4, %v484_v4 }
 0x206   :  { %2794 = vmatprep.mubr.msk.f32.mxu0 %vm2922_vm0, %v2921_v0  ;;  %v763_v12 = vpop.permute.xlu1 %762 }
 0x20a   :  { %v753_v14 = vpop.permute.xlu1 %752 }
 0x20e   :  { %v743_v16 = vpop.permute.xlu1 %742 }
 0x212   :  { %v733_v20 = vpop.permute.xlu1 %732 }
 0x216   :  { %v723_v29 = vpop.permute.xlu1 %722 }
 0x29b   :  { %v2755_v18 = vpop.f32.mrf.mxu1 }
 0x29d   :  { %v1108_v22 = vpop.f32.mrf.mxu1 }
 0x29f   :  { %v2758_v23 = vpop.f32.mrf.mxu1 }
 0x2a1   :  { %v2723_v27 = vpop.f32.mrf.mxu0  ;;  %v1118_v28 = vpop.f32.mrf.mxu1 }
 0x2a2   :  { %v921_v30 = vadd.f32 %v2723_v27, %v728_v25 }
 0x2a3   :  { %v915_v31 = vpop.f32.mrf.mxu0  ;;  %v2761_v32 = vpop.f32.mrf.mxu1 }
 0x2a4   :  { %v916_v33 = vadd.f32 %v915_v31, %v723_v29  ;;  %v3460_v34 = vadd.f32 %v2755_v18, %v921_v30 }
 0x2a5   :  { %v2726_v35 = vpop.f32.mrf.mxu0  ;;  %v1128_v38 = vpop.f32.mrf.mxu1 }
 0x2a6   :  { %v931_v39 = vadd.f32 %v2726_v35, %v738_v17  ;;  %v3462_v44 = vadd.f32 %v1108_v22, %v916_v33 }
 0x2a7   :  { %v925_v45 = vpop.f32.mrf.mxu0  ;;  %v2764_v36 = vpop.f32.mrf.mxu1 }
 0x2a8   :  { %v926_v37 = vadd.f32 %v925_v45, %v733_v20  ;;  %v3464_v43 = vadd.f32 %v2758_v23, %v931_v39 }
 0x2a9   :  { %v2729_v46 = vpop.f32.mrf.mxu0  ;;  %v1138_v49 = vpop.f32.mrf.mxu1 }
 0x2aa   :  { %v941_v41 = vadd.f32 %v2729_v46, %v748_v15  ;;  %v3466_v42 = vadd.f32 %v1118_v28, %v926_v37 }
 0x2ab   :  { %v935_v51 = vpop.f32.mrf.mxu0  ;;  %v2767_v52 = vpop.f32.mrf.mxu1 }
 0x2ac   :  { %v936_v53 = vadd.f32 %v935_v51, %v743_v16  ;;  %v3468_v54 = vadd.f32 %v2761_v32, %v941_v41 }
 0x2ad   :  { %v2732_v55 = vpop.f32.mrf.mxu0  ;;  %v1148_v56 = vpop.f32.mrf.mxu1 }
 0x2ae   :  { %v951_v58 = vadd.f32 %v2732_v55, %v758_v13  ;;  %v3470_v59 = vadd.f32 %v1128_v38, %v936_v53 }
 0x2af   :  { %v945_v60 = vpop.f32.mrf.mxu0  ;;  %v2770_v61 = vpop.f32.mrf.mxu1 }
 0x2b0   :  { %v946_v62 = vadd.f32 %v945_v60, %v753_v14  ;;  %v3472_v63 = vadd.f32 %v2764_v36, %v951_v58 }
 0x2b1   :  { %v2735_v1 = vpop.f32.mrf.mxu0  ;;  %v1158_v2 = vpop.f32.mrf.mxu1 }
 0x2b2   :  { %v961_v3 = vadd.f32 %v2735_v1, %v768_v11  ;;  %v3474_v4 = vadd.f32 %v1138_v49, %v946_v62 }
 0x2b3   :  { %v955_v15 = vpop.f32.mrf.mxu0  ;;  %v2773_v17 = vpop.f32.mrf.mxu1 }
 0x2b4   :  { %v956_v16 = vadd.f32 %v955_v15, %v763_v12  ;;  %v3476_v18 = vadd.f32 %v2767_v52, %v961_v3 }
 0x2b5   :  { %v2738_v20 = vpop.f32.mrf.mxu0  ;;  %v1168_v22 = vpop.f32.mrf.mxu1 }
 0x2b6   :  { %v971_v13 = vadd.f32 %v2738_v20, %v778_v10  ;;  %v3478_v23 = vadd.f32 %v1148_v56, %v956_v16  ;;  %v1458_v20 = vld [vmem:[%s3614_s12] sm:$0xff] }
 0x2b7   :  { %v965_v25 = vpop.f32.mrf.mxu0  ;;  %v2776_v27 = vpop.f32.mrf.mxu1 }
 0x2b8   :  { %v966_v14 = vadd.f32 %v965_v25, %v773_v57  ;;  %v3480_v28 = vadd.f32 %v2770_v61, %v971_v13 }
 0x2b9   :  { %v2741_v29 = vpop.f32.mrf.mxu0  ;;  %v1178_v30 = vpop.f32.mrf.mxu1 }
 0x2ba   :  { %v981_v11 = vadd.f32 %v2741_v29, %v3456_v8  ;;  %v3483_v31 = vadd.f32 %v1158_v2, %v966_v14  ;;  %v1214_v29 = vmax.f32 %v3480_v28, 0.0  ;;  %v1209_v28 = vmax.f32 %v3474_v4, 0.0 }
 0x2bb   :  { %v975_v32 = vpop.f32.mrf.mxu0  ;;  %v1428_v12 = vpop.f32.mrf.mxu1  ;;  %v1204_v4 = vmax.f32 %v3460_v34, 0.0  ;;  %v1455_v34 = vld [vmem:[%s3616_s13 + $0x8] sm:$0xff] }
 0x2bc   :  { %v976_v33 = vadd.f32 %v975_v32, %v3458_v9  ;;  %v1200_v35 = vadd.f32 %v2773_v17, %v981_v11  ;;  %v1435_v53 = vmul.f32 %v1428_v12, %v1428_v12  ;;  %v1212_v11 = vmax.f32 %v3476_v18, 0.0 }
 0x2bd   :  { %v2744_v38 = vpop.f32.mrf.mxu0  ;;  %v2791_v10 = vpop.f32.mrf.mxu1  ;;  %v1211_v32 = vmax.f32 %v3478_v23, 0.0  ;;  %v1207_v18 = vmax.f32 %v3470_v59, 0.0  ;;  %v1206_v23 = vmax.f32 %v3464_v43, 0.0  ;;  %v1459_v43 = vld [vmem:[%s3615_s14] sm:$0xff]  ;;  %v1457_v59 = vld [vmem:[%s3616_s13 + $0x18] sm:$0xff] }
 0x2be   :  { %v991_v39 = vadd.f32 %v2744_v38, %v3452_v5  ;;  %v1199_v45 = vadd.f32 %v1168_v22, %v976_v33 }
 0x2bf   :  { %v985_v36 = vpop.f32.mrf.mxu0 }
 0x2c0   :  { %v986_v57 = vadd.f32 %v985_v36, %v3454_v6  ;;  %v1202_v37 = vadd.f32 %v2776_v27, %v991_v39  ;;  %v1216_v27 = vmax.f32 %v1200_v35, 0.0  ;;  %v1215_v14 = vmax.f32 %v1199_v45, 0.0 }
 0x2c1   :  { %v1288_v46 = vpop.f32.mrf.mxu0 }
 0x2c2   :  { %v1201_v49 = vadd.f32 %v1178_v30, %v986_v57  ;;  %v1432_v51 = vmul.f32 %v1288_v46, %v1288_v46  ;;  %v1218_v13 = vmax.f32 %v1202_v37, 0.0  ;;  %v1213_v30 = vmax.f32 %v3483_v31, 0.0 }
 0x2c3   :  { %v2781_v41 = vpop.f32.mrf.mxu0  ;;  %v1208_v31 = vmax.f32 %v3468_v54, 0.0  ;;  %v1203_v54 = vmax.f32 %v3462_v44, 0.0  ;;  %v1456_v44 = vld [vmem:[%s3616_s13 + $0x10] sm:$0xff] }
 0x2c4   :  { %v1217_v25 = vmax.f32 %v1201_v49, 0.0 }
 0x2c5   :  { %v1358_v8 = vpop.f32.mrf.mxu0 }
 0x2c6   :  { %v1433_v52 = vmul.f32 %v1358_v8, %v1358_v8 }
 0x2c7   :  { %v2786_v55 = vpop.f32.mrf.mxu0 }
 0x2c8   :  { %v1434_v56 = vadd.f32 %v1433_v52, %v1432_v51 }
 0x2ca   :  { %v1436_v9 = vadd.f32 %v1435_v53, %v1434_v56  ;;  %v1460_v56 = vld [vmem:[%s3615_s14 + $0x8] sm:$0xff] }
 0x2cc   :  { %v1437_v58 = vmax.f32 %v1436_v9, 1e-08  ;;  %v1461_v9 = vld [vmem:[%s3615_s14 + $0x10] sm:$0xff] }
 0x2ce   :  { %2909 = vrsqrt.f32 %v1437_v58  ;;  %vm1440_vm7 = vcmp.eq.f32.partialorder %v1437_v58, inf  ;;  %v1443_v5 = vand.u32 2147483648, %v1437_v58  ;;  %vm1442_vm8 = vcmp.eq.f32.partialorder %v1437_v58, 0.0 }
 0x2db   :  { %v2910_v60 = vpop.eup %2909 }
 0x2dc   :  { %v1439_v61 = vmul.f32 %v2910_v60, %v1437_v58  ;;  %v1467_v60 = vld [vmem:[%s3617_s16] sm:$0xf] }
 0x2de   :  { %v1441_v62 = vsel %vm1440_vm7, %v1437_v58, %v1439_v61  ;;  %v1462_v58 = vld [vmem:[%s3615_s14 + $0x18] sm:$0xff] }
 0x2df   :  { %v1444_v6 = vsel %vm1442_vm8, %v1443_v5, %v1441_v62  ;;  %v1712_v5 = vpop.permute.xlu0 %1711  ;;  %v1707_v62 = vpop.permute.xlu1 %1706 }
 0x2e0   :  { %v2513_v1 = vmul.f32 -1.442695, %v1444_v6 }
 0x2e2   :  { %2911 = vpow2.f32 %v2513_v1 }
 0x2ef   :  { %v2912_v2 = vpop.eup %2911 }
 0x2f0   :  { %v1448_v3 = vadd.f32 1.0, %v2912_v2 }
 0x2f2   :  { %2913 = vrcp.f32 %v1448_v3  ;;  %v1702_v3 = vpop.permute.xlu0 %1701 }
 0x2ff   :  { %v2914_v15 = vpop.eup %2913 }
 0x300   :  { %v1451_v17 = vmul.f32 %v2914_v15, %v1288_v46  ;;  %v1452_v16 = vmul.f32 %v2914_v15, %v1358_v8  ;;  %v1453_v22 = vmul.f32 %v2914_v15, %v1428_v12  ;;  %v1210_v12 = vmax.f32 %v3472_v63, 0.0 }
 0x301   :  { %v1205_v63 = vmax.f32 %v3466_v42, 0.0  ;;  %v1454_v42 = vld [vmem:[%s3616_s13] sm:$0xff] }
 0x302   :  { %2793 = vmatpush3.msra.mxu0 %v1451_v17  ;;  %2798 = vmatpush3.msra.mxu1 %v1452_v16 }
 0x303   :  { %2795 = vmatmul.mubr.msk.f32.vlgmr.msra.gmra.mxu0 %vm800_vm4, %v1458_v20  ;;  %2800 = vmatmul.mubr.msk.f32.vlgmr.msra.gmra.mxu1 %vm800_vm4, %v1458_v20 }
 0x304   :  { %2802 = vmatprep.subr.mxu0 %v2921_v0  ;;  %2804 = vmatprep.mubr.msk.f32.mxu0 %vm2922_vm0, %v2921_v0 }
 0x305   :  { %2803 = vmatpush3.msra.mxu0 %v1453_v22  ;;  %2809 = vmatprep.mubr.msk.f32.mxu1 %vm800_vm4, %v1459_v43  ;;  %v1697_v22 = vpop.permute.xlu1 %1696 }
 0x306   :  { %2815 = vmatprep.subr.mxu0 %v1218_v13 }
 0x307   :  { %2805 = vmatmul.mubr.msk.f32.vlgmr.msra.gmra.mxu0 %vm800_vm4, %v1458_v20 }
 0x308   :  { %2816 = vmatpush3.msra.mxu0 %v1218_v13  ;;  %2847 = vmatprep.mubr.f32.mxu0 %v1454_v42 }
 0x309   :  { %2817 = vmatprep.subr.mxu0 %v1217_v25 }
 0x30a   :  { %2818 = vmatpush3.msra.mxu0 %v1217_v25 }
 0x30b   :  { %2819 = vmatprep.subr.mxu0 %v1216_v27 }
 0x30c   :  { %2820 = vmatpush3.msra.mxu0 %v1216_v27 }
 0x30d   :  { %2821 = vmatprep.subr.mxu0 %v1215_v14 }
 0x30e   :  { %2822 = vmatpush3.msra.mxu0 %v1215_v14 }
 0x30f   :  { %2823 = vmatprep.subr.mxu0 %v1214_v29 }
 0x310   :  { %2824 = vmatpush3.msra.mxu0 %v1214_v29 }
 0x311   :  { %2825 = vmatprep.subr.mxu0 %v1213_v30 }
 0x312   :  { %2826 = vmatpush3.msra.mxu0 %v1213_v30 }
 0x313   :  { %2827 = vmatprep.subr.mxu0 %v1212_v11 }
 0x314   :  { %2828 = vmatpush3.msra.mxu0 %v1212_v11 }
 0x315   :  { %2829 = vmatprep.subr.mxu0 %v1211_v32 }
 0x316   :  { %2830 = vmatpush3.msra.mxu0 %v1211_v32 }
 0x317   :  { %2831 = vmatprep.subr.mxu0 %v1210_v12 }
 0x318   :  { %2832 = vmatpush3.msra.mxu0 %v1210_v12 }
 0x319   :  { %2833 = vmatprep.subr.mxu0 %v1209_v28 }
 0x31a   :  { %2834 = vmatpush3.msra.mxu0 %v1209_v28 }
 0x31b   :  { %2835 = vmatprep.subr.mxu0 %v1208_v31 }
 0x31c   :  { %2836 = vmatpush3.msra.mxu0 %v1208_v31 }
 0x31d   :  { %2837 = vmatprep.subr.mxu0 %v1207_v18 }
 0x31e   :  { %2838 = vmatpush3.msra.mxu0 %v1207_v18 }
 0x31f   :  { %2839 = vmatprep.subr.mxu0 %v1206_v23 }
 0x320   :  { %2840 = vmatpush3.msra.mxu0 %v1206_v23 }
 0x321   :  { %2841 = vmatprep.subr.mxu0 %v1205_v63 }
 0x322   :  { %2842 = vmatpush3.msra.mxu0 %v1205_v63 }
 0x323   :  { %2843 = vmatprep.subr.mxu0 %v1204_v4 }
 0x324   :  { %2844 = vmatpush3.msra.mxu0 %v1204_v4 }
 0x325   :  { %2845 = vmatprep.subr.mxu0 %v1203_v54 }
 0x326   :  { %2846 = vmatpush3.msra.mxu0 %v1203_v54 }
 0x327   :  { %2848 = vmatmul.mubr.f32.vlgmr.msra.gmra.mxu0 %v1455_v34 }
 0x328   :  { %2850 = vmatprep.mubr.f32.mxu0 %v1456_v44 }
 0x32b   :  { %2851 = vmatmul.mubr.f32.gmra.mxu0 %v1457_v59 }
 0x3c3   :  { %v1537_v33 = vpop.f32.mrf.mxu0  ;;  %v1607_v35 = vpop.f32.mrf.mxu1 }
 0x3c4   :  { %v1681_v38 = vmul.f32 %v1537_v33, %v1537_v33  ;;  %v1682_v10 = vmul.f32 %v1607_v35, %v1607_v35 }
 0x3c5   :  { %v2796_v39 = vpop.f32.mrf.mxu0  ;;  %v2801_v45 = vpop.f32.mrf.mxu1 }
 0x3c6   :  { %v1683_v57 = vadd.f32 %v1682_v10, %v1681_v38 }
 0x3c7   :  { %v1677_v36 = vpop.f32.mrf.mxu0 }
 0x3c8   :  { %v1684_v37 = vmul.f32 %v1677_v36, %v1677_v36 }
 0x3c9   :  { %v2806_v46 = vpop.f32.mrf.mxu0 }
 0x3ca   :  { %v1685_v49 = vadd.f32 %v1684_v37, %v1683_v57 }
 0x3cc   :  { %v1686_v41 = vmax.f32 %v1685_v49, 1e-08 }
 0x3ce   :  { %2915 = vrsqrt.f32 %v1686_v41  ;;  %vm1689_vm9 = vcmp.eq.f32.partialorder %v1686_v41, inf  ;;  %v1692_v52 = vand.u32 2147483648, %v1686_v41  ;;  %vm1691_vm10 = vcmp.eq.f32.partialorder %v1686_v41, 0.0 }
 0x3db   :  { %v2916_v8 = vpop.eup %2915 }
 0x3dc   :  { %v1688_v51 = vmul.f32 %v2916_v8, %v1686_v41 }
 0x3de   :  { %v1690_v53 = vsel %vm1689_vm9, %v1686_v41, %v1688_v51 }
 0x3df   :  { %v1693_v55 = vsel %vm1691_vm10, %v1692_v52, %v1690_v53 }
 0x3e0   :  { %2807 = vmatprep.subr.mxu1 %v1693_v55 }
 0x3e1   :  { %2808 = vmatpush3.msra.mxu1 %v1693_v55  ;;  %v2295_v55 = vpop.permute.xlu0 %2294 }
 0x3e2   :  { %2810 = vmatmul.mubr.msk.f32.vlgmr.msra.gmra.mxu1 %vm800_vm4, %v1460_v56  ;;  %2853 = vmatprep.subr.mxu1 %v2921_v0 }
 0x3e3   :  { %2854 = vmatpush3.msra.mxu1 %v1537_v33  ;;  %2812 = vmatprep.mubr.msk.f32.mxu1 %vm800_vm4, %v1461_v9  ;;  %v2300_v9 = vpop.permute.xlu1 %2299 }
 0x3e4   :  { %2858 = vmatprep.subr.mxu1 %v2921_v0 }
 0x3e6   :  { %2813 = vmatmul.mubr.msk.f32.gmra.mxu1 %vm800_vm4, %v1462_v58 }
 0x3e7   :  { %2855 = vmatprep.mubr.msk.f32.mxu1 %vm2922_vm0, %v2921_v0  ;;  %v2849_v61 = vpop.f32.mrf.mxu0 }
 0x3e9   :  { %v1877_v1 = vpop.f32.mrf.mxu0 }
 0x3ea   :  { %2856 = vmatmul.mubr.msk.f32.vlgmr.msra.gmra.mxu1 %vm800_vm4, %v1467_v60 }
 0x3eb   :  { %2859 = vmatpush3.msra.mxu1 %v1607_v35  ;;  %2860 = vmatprep.mubr.msk.f32.mxu1 %vm2922_vm0, %v2921_v0  ;;  %v2852_v17 = vpop.f32.mrf.mxu0 }
 0x3ec   :  { %2863 = vmatprep.subr.mxu1 %v2921_v0 }
 0x3ed   :  { %v1887_v29 = vpop.f32.mrf.mxu0 }
 0x3ee   :  { %2861 = vmatmul.mubr.msk.f32.vlgmr.msra.gmra.mxu1 %vm800_vm4, %v1467_v60 }
 0x3ef   :  { %2864 = vmatpush3.msra.mxu1 %v1677_v36  ;;  %2865 = vmatprep.mubr.msk.f32.mxu1 %vm2922_vm0, %v2921_v0 }
 0x3f0   :  { %2868 = vmatprep.subr.mxu1 %v2921_v0 }
 0x3f2   :  { %2866 = vmatmul.mubr.msk.f32.vlgmr.msra.gmra.mxu1 %vm800_vm4, %v1467_v60  ;;  %v2305_v60 = vpop.permute.xlu0 %2304 }
 0x3f3   :  { %2876 = vmatprep.mubr.msk.f32.mxu1 %vm2922_vm0, %v2921_v0 }
 0x4a2   :  { %v2811_v6 = vpop.f32.mrf.mxu1 }
 0x4a3   :  { %v1798_v16 = vadd.f32 %v2811_v6, %v1702_v3 }
 0x4a4   :  { %v1792_v2 = vpop.f32.mrf.mxu1 }
 0x4a5   :  { %v1793_v25 = vadd.f32 %v1792_v2, %v1697_v22  ;;  %v1897_v11 = vadd.f32 %v2849_v61, %v1798_v16  ;;  %v2310_v61 = vpop.permute.xlu1 %2309 }
 0x4a6   :  { %v2814_v15 = vpop.f32.mrf.mxu1 }
 0x4a7   :  { %v1808_v20 = vadd.f32 %v2814_v15, %v1712_v5  ;;  %v1896_v31 = vadd.f32 %v1877_v1, %v1793_v25  ;;  %v2114_v63 = vadd.f32 %v1897_v11, %v3300_v24 }
 0x4a8   :  { %v1802_v13 = vpop.f32.mrf.mxu1 }
 0x4a9   :  { %v1803_v27 = vadd.f32 %v1802_v13, %v1707_v62  ;;  %v1899_v14 = vadd.f32 %v2852_v17, %v1808_v20  ;;  %v2113_v54 = vadd.f32 %v1896_v31, %v3304_v26  ;;  %v2319_v62 = vpop.permute.xlu0 %2318  ;;  %v2324_v6 = vpop.permute.xlu1 %2323 }
 0x4aa   :  { %v1969_v30 = vpop.f32.mrf.mxu1 }
 0x4ab   :  { %v2116_v32 = vadd.f32 %v1899_v14, %v3293_v19  ;;  %v1898_v12 = vadd.f32 %v1887_v29, %v1803_v27  ;;  %v2117_v26 = vadd.f32 %v1969_v30, %v3249_v47 }
 0x4ac   :  { %v2857_v28 = vpop.f32.mrf.mxu1 }
 0x4ad   :  { %v2115_v18 = vadd.f32 %v1898_v12, %v3296_v21  ;;  %2869 = vmatpush3.msra.mxu1 %v2116_v32  ;;  %v2340_v10 = vmul.f32 %v2117_v26, %v2117_v26  ;;  %v2329_v25 = vpop.permute.xlu0 %2328  ;;  %v2334_v27 = vpop.permute.xlu1 %2333 }
 0x4ae   :  { %v2039_v23 = vpop.f32.mrf.mxu1  ;;  %2870 = vmatprep.subr.mxu1 %v2921_v0 }
 0x4af   :  { %2871 = vmatpush3.msra.mxu1 %v2115_v18  ;;  %v2118_v24 = vadd.f32 %v2039_v23, %v3252_v48 }
 0x4b0   :  { %v2862_v4 = vpop.f32.mrf.mxu1  ;;  %2872 = vmatprep.subr.mxu1 %v2921_v0 }
 0x4b1   :  { %2873 = vmatpush3.msra.mxu1 %v2114_v63  ;;  %v2341_v33 = vmul.f32 %v2118_v24, %v2118_v24 }
 0x4b2   :  { %v2109_v43 = vpop.f32.mrf.mxu1  ;;  %2874 = vmatprep.subr.mxu1 %v2921_v0 }
 0x4b3   :  { %2875 = vmatpush3.msra.mxu1 %v2113_v54  ;;  %v2119_v44 = vadd.f32 %v2109_v43, %v3264_v40  ;;  %v2342_v57 = vadd.f32 %v2341_v33, %v2340_v10 }
 0x4b4   :  { %2877 = vmatmul.mubr.msk.f32.vlgmr.msra.gmra.mxu1 %vm127_vm1, %v2923_v50  ;;  %v2867_v19 = vpop.f32.mrf.mxu1  ;;  %2879 = vmatprep.subr.mxu1 %v2921_v0 }
 0x4b5   :  { %2887 = vmatprep.mubr.msk.f32.mxu1 %vm2922_vm0, %v2921_v0  ;;  %v2343_v39 = vmul.f32 %v2119_v44, %v2119_v44 }
 0x4b7   :  { %v2344_v48 = vadd.f32 %v2343_v39, %v2342_v57 }
 0x4b9   :  { %v2345_v49 = vmax.f32 %v2344_v48, 1e-08 }
 0x574   :  { %v2194_v21 = vpop.f32.mrf.mxu1 }
 0x575   :  { %v2198_v42 = vmul.f32 0.03125, %v2194_v21 }
 0x576   :  { %v2878_v34 = vpop.f32.mrf.mxu1 }
 0x577   :  { %v2202_v59 = vrot.slane %v2198_v42, %v3048_v7 }
 0x579   :  { %v2206_v35 = vsub.f32 %v2116_v32, %v2202_v59  ;;  %v2205_v38 = vsub.f32 %v2115_v18, %v2202_v59  ;;  %v2204_v36 = vsub.f32 %v2114_v63, %v2202_v59  ;;  %v2203_v46 = vsub.f32 %v2113_v54, %v2202_v59 }
 0x57b   :  { %v2210_v45 = vmul.f32 %v2206_v35, %v2206_v35  ;;  %v2209_v37 = vmul.f32 %v2205_v38, %v2205_v38  ;;  %v2208_v47 = vmul.f32 %v2204_v36, %v2204_v36  ;;  %v2207_v40 = vmul.f32 %v2203_v46, %v2203_v46 }
 0x57d   :  { %2880 = vmatpush3.msra.mxu1 %v2210_v45 }
 0x57e   :  { %2881 = vmatprep.subr.mxu1 %v2921_v0 }
 0x57f   :  { %2882 = vmatpush3.msra.mxu1 %v2209_v37 }
 0x580   :  { %2883 = vmatprep.subr.mxu1 %v2921_v0 }
 0x581   :  { %2884 = vmatpush3.msra.mxu1 %v2208_v47 }
 0x582   :  { %2885 = vmatprep.subr.mxu1 %v2921_v0 }
 0x583   :  { %2886 = vmatpush3.msra.mxu1 %v2207_v40 }
 0x584   :  { %2888 = vmatmul.mubr.msk.f32.vlgmr.msra.gmra.mxu1 %vm127_vm1, %v2923_v50  ;;  %2890 = vmatprep.subr.mxu1 %v2921_v0 }
 0x585   :  { %2891 = vmatpush3.msk.msra.mxu1 %vm352_vm2, %v2345_v49  ;;  %2892 = vmatprep.mubr.msk.f32.mxu1 %vm2922_vm0, %v2921_v0 }
 0x588   :  { %2893 = vmatmul.mubr.msk.f32.vlgmr.msra.gmra.mxu1 %vm349_vm3, %v2923_v50 }
 0x644   :  { %v2277_v41 = vpop.f32.mrf.mxu1 }
 0x645   :  { %v2281_v8 = vmul.f32 0.03125, %v2277_v41 }
 0x646   :  { %v2889_v51 = vpop.f32.mrf.mxu1 }
 0x647   :  { %v2282_v52 = vadd.f32 1e-05, %v2281_v8 }
 0x648   :  { %v2415_v53 = vpop.f32.mrf.mxu1 }
 0x649   :  { %2917 = vrsqrt.f32 %v2282_v52  ;;  %v2419_v56 = vmul.f32 0.25, %v2415_v53 }
 0x64a   :  { %v2894_v58 = vpop.f32.mrf.mxu1 }
 0x64b   :  { %2919 = vrsqrt.f32 %v2419_v56 }
 0x656   :  { %v2918_v5 = vpop.eup %2917 }
 0x657   :  { %v2287_v0 = vrot.slane %v2918_v5, %v3048_v7 }
 0x658   :  { %v2920_v1 = vpop.eup %2919 }
 0x659   :  { %v2288_v50 = vmul.f32 %v2287_v0, %v2203_v46  ;;  %v2289_v2 = vmul.f32 %v2287_v0, %v2204_v36  ;;  %v2290_v3 = vmul.f32 %v2287_v0, %v2205_v38  ;;  %v2291_v15 = vmul.f32 %v2287_v0, %v2206_v35 }
 0x65a   :  { %v2424_v17 = vrot.slane %v2920_v1, %v3048_v7 }
 0x65b   :  { %v2312_v16 = vmul.f32 %v2295_v55, %v2288_v50  ;;  %v2313_v20 = vmul.f32 %v2300_v9, %v2289_v2  ;;  %v2314_v22 = vmul.f32 %v2305_v60, %v2290_v3  ;;  %v2315_v13 = vmul.f32 %v2310_v61, %v2291_v15 }
 0x65c   :  { %v2425_v14 = vmul.f32 %v2424_v17, %v2117_v26  ;;  %v2426_v29 = vmul.f32 %v2424_v17, %v2118_v24  ;;  %v2427_v30 = vmul.f32 %v2424_v17, %v2119_v44 }
 0x65d   :  { %v2336_v11 = vadd.f32 %v2319_v62, %v2312_v16  ;;  %v2337_v32 = vadd.f32 %v2324_v6, %v2313_v20  ;;  %v2338_v12 = vadd.f32 %v2329_v25, %v2314_v22  ;;  %v2339_v28 = vadd.f32 %v2334_v27, %v2315_v13 }
 0x65e   :  { %v2448_v31 = vpack.c.bf16 %v2425_v14, %v2425_v14  ;;  %v2450_v18 = vpack.c.bf16 %v2426_v29, %v2426_v29  ;;  %v2453_v23 = vpack.c.bf16 %v2427_v30, %v2427_v30 }
 0x65f   :  { %v2557_v63 = vpack.c.bf16 %v2337_v32, %v2336_v11  ;;  %v2562_v4 = vpack.c.bf16 %v2339_v28, %v2338_v12 }
 0x660   :  { %2449 = vst [vmem:[%s3618_s20] sm:$0x3] %v2448_v31  ;;  %2532 = vst [vmem:[%s3618_s20 + $0x2] sm:$0x3] %v2450_v18 }
 0x661   :  { %2533 = vst [vmem:[%s3618_s20 + $0x4] sm:$0x3] %v2453_v23  ;;  %2558 = vst [vmem:[%s3619_s19] sm:$0xff] %v2557_v63  }
 0x662   :  { %2566 = vst [vmem:[%s3619_s19 + $0x8] sm:$0xff] %v2562_v4  }

// kernel: cpd_forward.17
= control target key start
LH: loop header
LB: loop body
LE: loop exit
PB: predicated region body
PF: predicated region fallthrough
CT: control target
= control target key end

     0   :  { %v123_v0 = vlaneseq  ;;  %v6110_v1 = vmov 0.0   ;;  %s6111_s3 = smov 2   ;;  %vm8108_vm0 = vmmov 0   ;;  %v8177_v8 = vmov 0  ;;  %s6114_s7 = smov 5   ;;  %s8107_s0 = inlined_call_operand.smem [shape: u32[30], index: -1, kind: input, shape index: {}] }
   0x1   :  { %5293 = vmatprep.subr.mxu1 %v6110_v1  ;;  %s6152_s6 = sld [smem:[%s8107_s0 + %s6111_s3]]   ;;  %5325 = vmatprep.mubr.msk.f32.mxu1 %vm8108_vm0, %v6110_v1  ;;  %v8179_v9 = vmov 0  ;;  %v6113_v11 = vmov 1.0   ;;  %v8181_v12 = vmov 0  ;;  %v8183_v14 = vmov 0  ;;  %s6115_s11 = smov 6  }
   0x2   :  { %v6156_v2 = vshrl.u32 %v123_v0, 7  ;;  %v8185_v16 = vmov 0  ;;  %v8187_v18 = vmov 0  ;;  %v8189_v20 = vmov 0  ;;  %s6347_s10 = sld [smem:[%s8107_s0 + %s6114_s7]]   ;;  %s6116_s15 = smov 3  }
   0x3   :  { %v8191_v22 = vmov 0  ;;  %v8193_v24 = vmov 0  ;;  %v8195_v26 = vmov 0  ;;  %v8197_v28 = vmov 0  ;;  %s6371_s14 = sld [smem:[%s8107_s0 + %s6115_s11]]   ;;  %s6117_s19 = smov 7  }
   0x4   :  { %v142_v3 = vsub.s32 0, %v6156_v2  ;;  %v6160_v4 = vadd.s32 120, %v6156_v2  ;;  %v6163_v5 = vadd.s32 112, %v6156_v2  ;;  %v6169_v7 = vadd.s32 104, %v6156_v2  ;;  %s6562_s18 = sld [smem:[%s8107_s0 + %s6116_s15]]   ;;  %s6118_s23 = smov 8  }
   0x5   :  { %v6184_v10 = vadd.s32 96, %v6156_v2  ;;  %v6203_v13 = vadd.s32 88, %v6156_v2  ;;  %v6222_v15 = vadd.s32 80, %v6156_v2  ;;  %v6241_v17 = vadd.s32 72, %v6156_v2  ;;  %s7145_s22 = sld [smem:[%s8107_s0 + %s6117_s19]]   ;;  %s6119_s27 = smov 9  }
   0x6   :  { %v6260_v19 = vadd.s32 64, %v6156_v2  ;;  %v6279_v21 = vadd.s32 56, %v6156_v2  ;;  %v6298_v23 = vadd.s32 48, %v6156_v2  ;;  %v6317_v25 = vadd.s32 40, %v6156_v2  ;;  %s7154_s26 = sld [smem:[%s8107_s0 + %s6118_s23]]   ;;  %s6120_s1 = smov 1  }
   0x7   :  { %v6166_v6 = vld [vmem:[%s6152_s6] ss:$0 sm:$0xff]  ;;  %v6336_v27 = vadd.s32 32, %v6156_v2  ;;  %v6360_v29 = vadd.s32 24, %v6156_v2  ;;  %v8199_v30 = vmov 0  ;;  %v6384_v31 = vadd.s32 16, %v6156_v2  ;;  %s7703_s30 = sld [smem:[%s8107_s0 + %s6119_s27]]  }
   0x8   :  { %vm6173_vm1 = vcmp.eq.s32.totalorder %v6160_v4, %v6166_v6  ;;  %vm6179_vm2 = vcmp.eq.s32.totalorder %v6163_v5, %v6166_v6  ;;  %vm6198_vm3 = vcmp.eq.s32.totalorder %v6169_v7, %v6166_v6  ;;  %vm6217_vm4 = vcmp.eq.s32.totalorder %v6184_v10, %v6166_v6  ;;  %v6428_v35 = vld [vmem:[%s6347_s10] sm:$0xff]   ;;  %v6573_v42 = vld [vmem:[%s6347_s10 + $0x8] sm:$0xff]   ;;  %s4419_s4 = sld [smem:[%s8107_s0 + %s6120_s1]]   ;;  %s6121_s5 = smov 10  }
   0x9   :  { %v8178_v8 = vsel %vm6173_vm1, 4294967295, %v8177_v8  ;;  %v8180_v9 = vsel %vm6179_vm2, 4294967295, %v8179_v9  ;;  %5255 = vmatprep.subr.msk.mxu0 %vm6173_vm1, %v6113_v11  ;;  %5294 = vmatpush3.msk.msra.mxu1 %vm6173_vm1, %v6113_v11  ;;  %v8182_v12 = vsel %vm6198_vm3, 4294967295, %v8181_v12  ;;  %v8184_v14 = vsel %vm6217_vm4, 4294967295, %v8183_v14  ;;  %v6447_v37 = vld [vmem:[%s6371_s14] sm:$0x3]  ;;  %s4428_s9 = sld [smem:[%s8107_s0 + %s6121_s5]]  }
   0xa   :  { %5256 = vmatpush3.msk.msra.mxu0 %vm6173_vm1, %v6113_v11  ;;  %5295 = vmatprep.subr.mxu1 %v6110_v1  ;;  %vm6236_vm5 = vcmp.eq.s32.totalorder %v6203_v13, %v6166_v6  ;;  %vm6255_vm6 = vcmp.eq.s32.totalorder %v6222_v15, %v6166_v6  ;;  %vm6274_vm7 = vcmp.eq.s32.totalorder %v6241_v17, %v6166_v6  ;;  %v8201_v32 = vmov 0  ;;  %v6602_v45 = vld [vmem:[%s6562_s18] ss:$0 sm:$0xff]  ;;  %v6612_v46 = vld [vmem:[%s6371_s14 + $0x2] sm:$0x3]  ;;  %s6122_s10 = smov 11   ;;  %s1_s5 = sld [smem:[%s8107_s0]]  }
   0xb   :  { %5257 = vmatprep.subr.msk.mxu0 %vm6179_vm2, %v6113_v11  ;;  %5296 = vmatpush3.msk.msra.mxu1 %vm6179_vm2, %v6113_v11  ;;  %v8186_v16 = vsel %vm6236_vm5, 4294967295, %v8185_v16  ;;  %v8188_v18 = vsel %vm6255_vm6, 4294967295, %v8187_v18  ;;  %v8190_v20 = vsel %vm6274_vm7, 4294967295, %v8189_v20  ;;  %vm6293_vm8 = vcmp.eq.s32.totalorder %v6260_v19, %v6166_v6  ;;  %v6618_v47 = vld [vmem:[%s6371_s14 + $0x4] sm:$0x3]  ;;  %s7747_s13 = sld [smem:[%s8107_s0 + %s6122_s10]]   ;;  %s6124_s17 = smov 14  }
   0xc   :  { %5258 = vmatpush3.msk.msra.mxu0 %vm6179_vm2, %v6113_v11  ;;  %5297 = vmatprep.subr.mxu1 %v6110_v1  ;;  %v8192_v22 = vsel %vm6293_vm8, 4294967295, %v8191_v22  ;;  %vm6312_vm9 = vcmp.eq.s32.totalorder %v6279_v21, %v6166_v6  ;;  %vm6331_vm10 = vcmp.eq.s32.totalorder %v6298_v23, %v6166_v6  ;;  %vm6355_vm11 = vcmp.eq.s32.totalorder %v6317_v25, %v6166_v6  ;;  %s4432_s20 = sld [smem:[%s8107_s0 + %s6124_s17]]   ;;  %s6125_s21 = smov 15  }
   0xd   :  { %5259 = vmatprep.subr.msk.mxu0 %vm6198_vm3, %v6113_v11  ;;  %5298 = vmatpush3.msk.msra.mxu1 %vm6198_vm3, %v6113_v11  ;;  %v8194_v24 = vsel %vm6312_vm9, 4294967295, %v8193_v24  ;;  %v8196_v26 = vsel %vm6331_vm10, 4294967295, %v8195_v26  ;;  %v8198_v28 = vsel %vm6355_vm11, 4294967295, %v8197_v28  ;;  %vm6379_vm12 = vcmp.eq.s32.totalorder %v6336_v27, %v6166_v6  ;;  %s7877_s24 = sld [smem:[%s8107_s0 + %s6125_s21]]   ;;  %s6127_s25 = smov 16  }
   0xe   :  { %5260 = vmatpush3.msk.msra.mxu0 %vm6198_vm3, %v6113_v11  ;;  %5299 = vmatprep.subr.mxu1 %v6110_v1  ;;  %v8200_v30 = vsel %vm6379_vm12, 4294967295, %v8199_v30  ;;  %vm6398_vm13 = vcmp.eq.s32.totalorder %v6360_v29, %v6166_v6  ;;  %v6403_v33 = vadd.s32 8, %v6156_v2  ;;  %vm6417_vm14 = vcmp.eq.s32.totalorder %v6384_v31, %v6166_v6  ;;  %s4434_s28 = sld [smem:[%s8107_s0 + %s6127_s25]]   ;;  %s6128_s29 = smov 17  }
   0xf   :  { %5261 = vmatprep.subr.msk.mxu0 %vm6217_vm4, %v6113_v11  ;;  %5300 = vmatpush3.msk.msra.mxu1 %vm6217_vm4, %v6113_v11  ;;  %v8202_v32 = vsel %vm6398_vm13, 4294967295, %v8201_v32  ;;  %v8203_v34 = vmov 0  ;;  %v8205_v36 = vmov 0  ;;  %vm6455_vm0 = vcmp.eq.s32.totalorder %v6156_v2, %v6166_v6  ;;  %s4435_s2 = sld [smem:[%s8107_s0 + %s6128_s29]]   ;;  %s6129_s7 = smov 13  }
  0x10   :  { %5262 = vmatpush3.msk.msra.mxu0 %vm6217_vm4, %v6113_v11  ;;  %5301 = vmatprep.subr.mxu1 %v6110_v1  ;;  %v8204_v34 = vsel %vm6417_vm14, 4294967295, %v8203_v34  ;;  %vm6436_vm15 = vcmp.eq.s32.totalorder %v6403_v33, %v6166_v6  ;;  %v8207_v38 = vmov 0  ;;  %v4818_v39 = vunpack.c.l.bf16 %v6428_v35  ;;  %v7200_v6 = vld [vmem:[%s7154_s26] sm:$0x3]  ;;  %s7922_s10 = sld [smem:[%s8107_s0 + %s6129_s7]]   ;;  %s6130_s11 = smov 21  }
  0x11   :  { %5263 = vmatprep.subr.msk.mxu0 %vm6236_vm5, %v6113_v11  ;;  %5302 = vmatpush3.msk.msra.mxu1 %vm6236_vm5, %v6113_v11  ;;  %v8206_v36 = vsel %vm6436_vm15, 4294967295, %v8205_v36  ;;  %v8208_v38 = vsel %vm6455_vm0, 4294967295, %v8207_v38  ;;  %v4819_v40 = vunpack.c.h.bf16 %v6428_v35  ;;  %v221_v41 = vunpack.c.l.bf16 %v6447_v37  ;;  %s6131_s14 = smov 26  }
  0x12   :  { %5264 = vmatpush3.msk.msra.mxu0 %vm6236_vm5, %v6113_v11  ;;  %5303 = vmatprep.subr.mxu1 %v6110_v1  ;;  %v4822_v43 = vunpack.c.l.bf16 %v6573_v42  ;;  %v4823_v44 = vunpack.c.h.bf16 %v6573_v42  ;;  %v224_v48 = vunpack.c.l.bf16 %v6612_v46  ;;  %v227_v49 = vunpack.c.l.bf16 %v6618_v47  ;;  %v6106_v47 = vld [vmem:[%s6152_s6] sm:$0x1]  ;;  %s6123_s6 = smov 12   ;;  %s4444_s17 = sld [smem:[%s8107_s0 + %s6131_s14]]  }
  0x13   :  { %5265 = vmatprep.subr.msk.mxu0 %vm6255_vm6, %v6113_v11  ;;  %5304 = vmatpush3.msk.msra.mxu1 %vm6255_vm6, %v6113_v11  ;;  %v8210_v50 = vmov 0  ;;  %v8212_v51 = vmov 0  ;;  %v8214_v52 = vmov 0  ;;  %v8216_v53 = vmov 0  ;;  %s7830_s16 = sld [smem:[%s8107_s0 + %s6123_s6]]  }
  0x14   :  { %5266 = vmatpush3.msk.msra.mxu0 %vm6255_vm6, %v6113_v11  ;;  %5305 = vmatprep.subr.mxu1 %v6110_v1  ;;  %v8218_v54 = vmov 0  ;;  %v8220_v55 = vmov 0  ;;  %v8222_v56 = vmov 0  ;;  %v8224_v57 = vmov 0  ;;  %s4439_s6 = sld [smem:[%s8107_s0 + %s6130_s11]]  }
  0x15   :  { %5267 = vmatprep.subr.msk.mxu0 %vm6274_vm7, %v6113_v11  ;;  %5306 = vmatpush3.msk.msra.mxu1 %vm6274_vm7, %v6113_v11  ;;  %v8226_v58 = vmov 0  ;;  %v8228_v59 = vmov 0  ;;  %v8230_v60 = vmov 0  ;;  %v8232_v61 = vmov 0 }
  0x16   :  { %5268 = vmatpush3.msk.msra.mxu0 %vm6274_vm7, %v6113_v11  ;;  %5307 = vmatprep.subr.mxu1 %v6110_v1  ;;  %v8234_v62 = vmov 0  ;;  %v8236_v63 = vmov 0  ;;  %v8238_v0 = vmov 0 }
  0x17   :  { %5269 = vmatprep.subr.msk.mxu0 %vm6293_vm8, %v6113_v11  ;;  %5308 = vmatpush3.msk.msra.mxu1 %vm6293_vm8, %v6113_v11 }
  0x18   :  { %5270 = vmatpush3.msk.msra.mxu0 %vm6293_vm8, %v6113_v11  ;;  %5309 = vmatprep.subr.mxu1 %v6110_v1 }
  0x19   :  { %5271 = vmatprep.subr.msk.mxu0 %vm6312_vm9, %v6113_v11  ;;  %5310 = vmatpush3.msk.msra.mxu1 %vm6312_vm9, %v6113_v11 }
  0x1a   :  { %5272 = vmatpush3.msk.msra.mxu0 %vm6312_vm9, %v6113_v11  ;;  %5311 = vmatprep.subr.mxu1 %v6110_v1 }
  0x1b   :  { %5273 = vmatprep.subr.msk.mxu0 %vm6331_vm10, %v6113_v11  ;;  %5312 = vmatpush3.msk.msra.mxu1 %vm6331_vm10, %v6113_v11 }
  0x1c   :  { %5274 = vmatpush3.msk.msra.mxu0 %vm6331_vm10, %v6113_v11  ;;  %5313 = vmatprep.subr.mxu1 %v6110_v1 }
  0x1d   :  { %5275 = vmatprep.subr.msk.mxu0 %vm6355_vm11, %v6113_v11  ;;  %5314 = vmatpush3.msk.msra.mxu1 %vm6355_vm11, %v6113_v11 }
  0x1e   :  { %5276 = vmatpush3.msk.msra.mxu0 %vm6355_vm11, %v6113_v11  ;;  %5315 = vmatprep.subr.mxu1 %v6110_v1 }
  0x1f   :  { %5277 = vmatprep.subr.msk.mxu0 %vm6379_vm12, %v6113_v11  ;;  %5316 = vmatpush3.msk.msra.mxu1 %vm6379_vm12, %v6113_v11 }
  0x20   :  { %5278 = vmatpush3.msk.msra.mxu0 %vm6379_vm12, %v6113_v11  ;;  %5317 = vmatprep.subr.mxu1 %v6110_v1 }
  0x21   :  { %5279 = vmatprep.subr.msk.mxu0 %vm6398_vm13, %v6113_v11  ;;  %5318 = vmatpush3.msk.msra.mxu1 %vm6398_vm13, %v6113_v11 }
  0x22   :  { %5280 = vmatpush3.msk.msra.mxu0 %vm6398_vm13, %v6113_v11  ;;  %5319 = vmatprep.subr.mxu1 %v6110_v1 }
  0x23   :  { %5281 = vmatprep.subr.msk.mxu0 %vm6417_vm14, %v6113_v11  ;;  %5320 = vmatpush3.msk.msra.mxu1 %vm6417_vm14, %v6113_v11 }
  0x24   :  { %5282 = vmatpush3.msk.msra.mxu0 %vm6417_vm14, %v6113_v11  ;;  %5321 = vmatprep.subr.mxu1 %v6110_v1 }
  0x25   :  { %5283 = vmatprep.subr.msk.mxu0 %vm6436_vm15, %v6113_v11  ;;  %5322 = vmatpush3.msk.msra.mxu1 %vm6436_vm15, %v6113_v11 }
  0x26   :  { %5284 = vmatpush3.msk.msra.mxu0 %vm6436_vm15, %v6113_v11  ;;  %5323 = vmatprep.subr.mxu1 %v6110_v1 }
  0x27   :  { %5285 = vmatprep.subr.msk.mxu0 %vm6455_vm0, %v6113_v11  ;;  %5324 = vmatpush3.msk.msra.mxu1 %vm6455_vm0, %v6113_v11 }
  0x28   :  { %5286 = vmatpush3.msk.msra.mxu0 %vm6455_vm0, %v6113_v11  ;;  %5287 = vmatprep.mubr.f32.mxu0 %v4818_v39 }
  0x29   :  { %5363 = vmatprep.subr.mxu1 %v6110_v1  ;;  %5288 = vmatmul.mubr.f32.vlgmr.msra.gmra.mxu0 %v4819_v40 }
  0x2a   :  { %5326 = vmatmul.mubr.f32.vlgmr.msra.gmra.mxu1 %v221_v41  ;;  %5328 = vmatprep.subr.mxu0 %v6110_v1 }
  0x2b   :  { %5364 = vmatpush3.msk.msra.mxu1 %vm6173_vm1, %v6113_v11  ;;  %5329 = vmatpush3.msk.msra.mxu0 %vm6173_vm1, %v6113_v11  ;;  %vm6864_vm1 = vcmp.eq.s32.totalorder %v6403_v33, %v6602_v45 }
  0x2c   :  { %5365 = vmatprep.subr.mxu1 %v6110_v1  ;;  %5330 = vmatprep.subr.mxu0 %v6110_v1  ;;  %v8239_v0 = vsel %vm6864_vm1, 4294967295, %v8238_v0 }
  0x2d   :  { %5366 = vmatpush3.msk.msra.mxu1 %vm6179_vm2, %v6113_v11  ;;  %5331 = vmatpush3.msk.msra.mxu0 %vm6179_vm2, %v6113_v11  ;;  %vm6848_vm2 = vcmp.eq.s32.totalorder %v6384_v31, %v6602_v45  ;;  %v1514_v31 = vld [vmem:[%s4428_s9 + $0x8] sm:$0x3] }
  0x2e   :  { %5367 = vmatprep.subr.mxu1 %v6110_v1  ;;  %5332 = vmatprep.subr.mxu0 %v6110_v1  ;;  %v8237_v63 = vsel %vm6848_vm2, 4294967295, %v8236_v63 }
  0x2f   :  { %5368 = vmatpush3.msk.msra.mxu1 %vm6198_vm3, %v6113_v11  ;;  %5333 = vmatpush3.msk.msra.mxu0 %vm6198_vm3, %v6113_v11  ;;  %vm6832_vm3 = vcmp.eq.s32.totalorder %v6360_v29, %v6602_v45 }
  0x30   :  { %5369 = vmatprep.subr.mxu1 %v6110_v1  ;;  %5334 = vmatprep.subr.mxu0 %v6110_v1  ;;  %v8235_v62 = vsel %vm6832_vm3, 4294967295, %v8234_v62 }
  0x31   :  { %5370 = vmatpush3.msk.msra.mxu1 %vm6217_vm4, %v6113_v11  ;;  %5335 = vmatpush3.msk.msra.mxu0 %vm6217_vm4, %v6113_v11  ;;  %vm6816_vm4 = vcmp.eq.s32.totalorder %v6336_v27, %v6602_v45 }
  0x32   :  { %5371 = vmatprep.subr.mxu1 %v6110_v1  ;;  %5336 = vmatprep.subr.mxu0 %v6110_v1  ;;  %v8233_v61 = vsel %vm6816_vm4, 4294967295, %v8232_v61 }
  0x33   :  { %5372 = vmatpush3.msk.msra.mxu1 %vm6236_vm5, %v6113_v11  ;;  %5337 = vmatpush3.msk.msra.mxu0 %vm6236_vm5, %v6113_v11  ;;  %vm6800_vm5 = vcmp.eq.s32.totalorder %v6317_v25, %v6602_v45 }
  0x34   :  { %5373 = vmatprep.subr.mxu1 %v6110_v1  ;;  %5338 = vmatprep.subr.mxu0 %v6110_v1  ;;  %v8231_v60 = vsel %vm6800_vm5, 4294967295, %v8230_v60 }
  0x35   :  { %5374 = vmatpush3.msk.msra.mxu1 %vm6255_vm6, %v6113_v11  ;;  %5339 = vmatpush3.msk.msra.mxu0 %vm6255_vm6, %v6113_v11  ;;  %vm6784_vm6 = vcmp.eq.s32.totalorder %v6298_v23, %v6602_v45 }
  0x36   :  { %5375 = vmatprep.subr.mxu1 %v6110_v1  ;;  %5340 = vmatprep.subr.mxu0 %v6110_v1  ;;  %v8229_v59 = vsel %vm6784_vm6, 4294967295, %v8228_v59 }
  0x37   :  { %5376 = vmatpush3.msk.msra.mxu1 %vm6274_vm7, %v6113_v11  ;;  %5341 = vmatpush3.msk.msra.mxu0 %vm6274_vm7, %v6113_v11  ;;  %vm6768_vm7 = vcmp.eq.s32.totalorder %v6279_v21, %v6602_v45 }
  0x38   :  { %5377 = vmatprep.subr.mxu1 %v6110_v1  ;;  %5342 = vmatprep.subr.mxu0 %v6110_v1  ;;  %v8227_v58 = vsel %vm6768_vm7, 4294967295, %v8226_v58 }
  0x39   :  { %5378 = vmatpush3.msk.msra.mxu1 %vm6293_vm8, %v6113_v11  ;;  %5343 = vmatpush3.msk.msra.mxu0 %vm6293_vm8, %v6113_v11  ;;  %vm6752_vm8 = vcmp.eq.s32.totalorder %v6260_v19, %v6602_v45 }
  0x3a   :  { %5379 = vmatprep.subr.mxu1 %v6110_v1  ;;  %5344 = vmatprep.subr.mxu0 %v6110_v1  ;;  %v8225_v57 = vsel %vm6752_vm8, 4294967295, %v8224_v57 }
  0x3b   :  { %5380 = vmatpush3.msk.msra.mxu1 %vm6312_vm9, %v6113_v11  ;;  %5345 = vmatpush3.msk.msra.mxu0 %vm6312_vm9, %v6113_v11  ;;  %vm6736_vm9 = vcmp.eq.s32.totalorder %v6241_v17, %v6602_v45 }
  0x3c   :  { %5381 = vmatprep.subr.mxu1 %v6110_v1  ;;  %5346 = vmatprep.subr.mxu0 %v6110_v1  ;;  %v8223_v56 = vsel %vm6736_vm9, 4294967295, %v8222_v56 }
  0x3d   :  { %5382 = vmatpush3.msk.msra.mxu1 %vm6331_vm10, %v6113_v11  ;;  %5347 = vmatpush3.msk.msra.mxu0 %vm6331_vm10, %v6113_v11  ;;  %vm6720_vm10 = vcmp.eq.s32.totalorder %v6222_v15, %v6602_v45  ;;  %v7226_v15 = vld [vmem:[%s7145_s22 + $0x8] sm:$0xff]  }
  0x3e   :  { %5383 = vmatprep.subr.mxu1 %v6110_v1  ;;  %5348 = vmatprep.subr.mxu0 %v6110_v1  ;;  %v8221_v55 = vsel %vm6720_vm10, 4294967295, %v8220_v55  ;;  %v4830_v17 = vunpack.c.l.bf16 %v7226_v15  ;;  %v4831_v19 = vunpack.c.h.bf16 %v7226_v15 }
  0x3f   :  { %5384 = vmatpush3.msk.msra.mxu1 %vm6355_vm11, %v6113_v11  ;;  %5349 = vmatpush3.msk.msra.mxu0 %vm6355_vm11, %v6113_v11  ;;  %vm6704_vm11 = vcmp.eq.s32.totalorder %v6203_v13, %v6602_v45 }
  0x40   :  { %5385 = vmatprep.subr.mxu1 %v6110_v1  ;;  %5350 = vmatprep.subr.mxu0 %v6110_v1  ;;  %v8219_v54 = vsel %vm6704_vm11, 4294967295, %v8218_v54 }
  0x41   :  { %5386 = vmatpush3.msk.msra.mxu1 %vm6379_vm12, %v6113_v11  ;;  %5351 = vmatpush3.msk.msra.mxu0 %vm6379_vm12, %v6113_v11  ;;  %vm6688_vm12 = vcmp.eq.s32.totalorder %v6184_v10, %v6602_v45  ;;  %v827_v10 = vunpack.c.l.bf16 %v7200_v6 }
  0x42   :  { %5387 = vmatprep.subr.mxu1 %v6110_v1  ;;  %5352 = vmatprep.subr.mxu0 %v6110_v1  ;;  %v8217_v53 = vsel %vm6688_vm12, 4294967295, %v8216_v53 }
  0x43   :  { %5388 = vmatpush3.msk.msra.mxu1 %vm6398_vm13, %v6113_v11  ;;  %5353 = vmatpush3.msk.msra.mxu0 %vm6398_vm13, %v6113_v11  ;;  %vm6641_vm13 = vcmp.eq.s32.totalorder %v6160_v4, %v6602_v45  ;;  %v8240_v4 = vmov 0 }
  0x44   :  { %5389 = vmatprep.subr.mxu1 %v6110_v1  ;;  %5290 = vmatprep.mubr.f32.mxu0 %v4822_v43  ;;  %v8211_v50 = vsel %vm6641_vm13, 4294967295, %v8210_v50 }
  0x45   :  { %5354 = vmatprep.subr.mxu0 %v6110_v1  ;;  %5390 = vmatpush3.msk.msra.mxu1 %vm6417_vm14, %v6113_v11 }
  0x46   :  { %5291 = vmatmul.mubr.f32.gmra.mxu0 %v4823_v44  ;;  %5391 = vmatprep.subr.mxu1 %v6110_v1 }
  0x47   :  { %5355 = vmatpush3.msk.msra.mxu0 %vm6417_vm14, %v6113_v11  ;;  %5392 = vmatpush3.msk.msra.mxu1 %vm6436_vm15, %v6113_v11  ;;  %vm8209_vm14 = vmmov 0  }
  0x48   :  { %5356 = vmatprep.subr.mxu0 %v6110_v1  ;;  %5393 = vmatprep.subr.mxu1 %v6110_v1 }
  0x49   :  { %5357 = vmatpush3.msk.msra.mxu0 %vm6436_vm15, %v6113_v11  ;;  %5394 = vmatpush3.msk.msra.mxu1 %vm6455_vm0, %v6113_v11  ;;  %vm6655_vm15 = vcmp.eq.s32.totalorder %v6163_v5, %v6602_v45  ;;  %v7193_v5 = vld [vmem:[%s7145_s22] sm:$0xff]   ;;  %s6133_s22 = smov 19  }
  0x4a   :  { %5358 = vmatprep.subr.mxu0 %v6110_v1  ;;  %5360 = vmatprep.mubr.msk.f32.mxu0 %vm8209_vm14, %v6110_v1  ;;  %v8213_v51 = vsel %vm6655_vm15, 4294967295, %v8212_v51  ;;  %v4827_v13 = vunpack.c.h.bf16 %v7193_v5  ;;  %s4437_s25 = sld [smem:[%s8107_s0 + %s6133_s22]]  }
  0x4b   :  { %5359 = vmatpush3.msk.msra.mxu0 %vm6455_vm0, %v6113_v11  ;;  %5395 = vmatprep.mubr.msk.f32.mxu1 %vm8209_vm14, %v6110_v1  ;;  %vm6672_vm0 = vcmp.eq.s32.totalorder %v6169_v7, %v6602_v45  ;;  %v4826_v7 = vunpack.c.l.bf16 %v7193_v5 }
  0x4c   :  { %5436 = vmatprep.subr.mxu1 %v6110_v1  ;;  %5361 = vmatmul.mubr.f32.vlgmr.msra.gmra.mxu0 %v224_v48  ;;  %v8215_v52 = vsel %vm6672_vm0, 4294967295, %v8214_v52 }
  0x4d   :  { %5396 = vmatmul.mubr.f32.vlgmr.msra.gmra.mxu1 %v227_v49  ;;  %5398 = vmatprep.subr.msk.mxu0 %vm6641_vm13, %v6113_v11 }
  0x4e   :  { %5437 = vmatpush3.msk.msra.mxu1 %vm6641_vm13, %v6113_v11  ;;  %5399 = vmatpush3.msk.msra.mxu0 %vm6641_vm13, %v6113_v11 }
  0x4f   :  { %5438 = vmatprep.subr.mxu1 %v6110_v1  ;;  %5400 = vmatprep.subr.msk.mxu0 %vm6655_vm15, %v6113_v11 }
  0x50   :  { %5439 = vmatpush3.msk.msra.mxu1 %vm6655_vm15, %v6113_v11  ;;  %5401 = vmatpush3.msk.msra.mxu0 %vm6655_vm15, %v6113_v11 }
  0x51   :  { %5440 = vmatprep.subr.mxu1 %v6110_v1  ;;  %5402 = vmatprep.subr.msk.mxu0 %vm6672_vm0, %v6113_v11 }
  0x52   :  { %5441 = vmatpush3.msk.msra.mxu1 %vm6672_vm0, %v6113_v11  ;;  %5403 = vmatpush3.msk.msra.mxu0 %vm6672_vm0, %v6113_v11 }
  0x53   :  { %5442 = vmatprep.subr.mxu1 %v6110_v1  ;;  %5404 = vmatprep.subr.msk.mxu0 %vm6688_vm12, %v6113_v11 }
  0x54   :  { %5443 = vmatpush3.msk.msra.mxu1 %vm6688_vm12, %v6113_v11  ;;  %5405 = vmatpush3.msk.msra.mxu0 %vm6688_vm12, %v6113_v11 }
  0x55   :  { %5444 = vmatprep.subr.mxu1 %v6110_v1  ;;  %5406 = vmatprep.subr.msk.mxu0 %vm6704_vm11, %v6113_v11 }
  0x56   :  { %5445 = vmatpush3.msk.msra.mxu1 %vm6704_vm11, %v6113_v11  ;;  %5407 = vmatpush3.msk.msra.mxu0 %vm6704_vm11, %v6113_v11 }
  0x57   :  { %5446 = vmatprep.subr.mxu1 %v6110_v1  ;;  %5408 = vmatprep.subr.msk.mxu0 %vm6720_vm10, %v6113_v11 }
  0x58   :  { %5447 = vmatpush3.msk.msra.mxu1 %vm6720_vm10, %v6113_v11  ;;  %5409 = vmatpush3.msk.msra.mxu0 %vm6720_vm10, %v6113_v11 }
  0x59   :  { %5448 = vmatprep.subr.mxu1 %v6110_v1  ;;  %5410 = vmatprep.subr.msk.mxu0 %vm6736_vm9, %v6113_v11 }
  0x5a   :  { %5449 = vmatpush3.msk.msra.mxu1 %vm6736_vm9, %v6113_v11  ;;  %5411 = vmatpush3.msk.msra.mxu0 %vm6736_vm9, %v6113_v11 }
  0x5b   :  { %5450 = vmatprep.subr.mxu1 %v6110_v1  ;;  %5412 = vmatprep.subr.msk.mxu0 %vm6752_vm8, %v6113_v11 }
  0x5c   :  { %5451 = vmatpush3.msk.msra.mxu1 %vm6752_vm8, %v6113_v11  ;;  %5413 = vmatpush3.msk.msra.mxu0 %vm6752_vm8, %v6113_v11 }
  0x5d   :  { %5452 = vmatprep.subr.mxu1 %v6110_v1  ;;  %5414 = vmatprep.subr.msk.mxu0 %vm6768_vm7, %v6113_v11 }
  0x5e   :  { %5453 = vmatpush3.msk.msra.mxu1 %vm6768_vm7, %v6113_v11  ;;  %5415 = vmatpush3.msk.msra.mxu0 %vm6768_vm7, %v6113_v11 }
  0x5f   :  { %5454 = vmatprep.subr.mxu1 %v6110_v1  ;;  %5416 = vmatprep.subr.msk.mxu0 %vm6784_vm6, %v6113_v11 }
  0x60   :  { %5455 = vmatpush3.msk.msra.mxu1 %vm6784_vm6, %v6113_v11  ;;  %5417 = vmatpush3.msk.msra.mxu0 %vm6784_vm6, %v6113_v11 }
  0x61   :  { %5456 = vmatprep.subr.mxu1 %v6110_v1  ;;  %5418 = vmatprep.subr.msk.mxu0 %vm6800_vm5, %v6113_v11 }
  0x62   :  { %5457 = vmatpush3.msk.msra.mxu1 %vm6800_vm5, %v6113_v11  ;;  %5419 = vmatpush3.msk.msra.mxu0 %vm6800_vm5, %v6113_v11 }
  0x63   :  { %5458 = vmatprep.subr.mxu1 %v6110_v1  ;;  %5420 = vmatprep.subr.msk.mxu0 %vm6816_vm4, %v6113_v11 }
  0x64   :  { %5459 = vmatpush3.msk.msra.mxu1 %vm6816_vm4, %v6113_v11  ;;  %5421 = vmatpush3.msk.msra.mxu0 %vm6816_vm4, %v6113_v11 }
  0x65   :  { %5460 = vmatprep.subr.mxu1 %v6110_v1  ;;  %5422 = vmatprep.subr.msk.mxu0 %vm6832_vm3, %v6113_v11 }
  0x66   :  { %5461 = vmatpush3.msk.msra.mxu1 %vm6832_vm3, %v6113_v11  ;;  %5423 = vmatpush3.msk.msra.mxu0 %vm6832_vm3, %v6113_v11  ;;  %vm6880_vm3 = vcmp.eq.s32.totalorder %v6156_v2, %v6602_v45 }
  0x67   :  { %5462 = vmatprep.subr.mxu1 %v6110_v1  ;;  %5424 = vmatprep.subr.msk.mxu0 %vm6848_vm2, %v6113_v11  ;;  %v8241_v4 = vsel %vm6880_vm3, 4294967295, %v8240_v4 }
  0x68   :  { %5463 = vmatpush3.msk.msra.mxu1 %vm6848_vm2, %v6113_v11  ;;  %5425 = vmatpush3.msk.msra.mxu0 %vm6848_vm2, %v6113_v11 }
  0x69   :  { %5464 = vmatprep.subr.mxu1 %v6110_v1  ;;  %5426 = vmatprep.subr.msk.mxu0 %vm6864_vm1, %v6113_v11 }
  0x6a   :  { %5465 = vmatpush3.msk.msra.mxu1 %vm6864_vm1, %v6113_v11  ;;  %5427 = vmatpush3.msk.msra.mxu0 %vm6864_vm1, %v6113_v11 }
  0x6b   :  { %5466 = vmatprep.subr.mxu1 %v6110_v1  ;;  %5428 = vmatprep.subr.msk.mxu0 %vm6880_vm3, %v6113_v11 }
  0x6c   :  { %5467 = vmatpush3.msk.msra.mxu1 %vm6880_vm3, %v6113_v11  ;;  %5429 = vmatpush3.msk.msra.mxu0 %vm6880_vm3, %v6113_v11 }
  0x6d   :  { %5430 = vmatprep.mubr.f32.mxu0 %v4818_v39  ;;  %5468 = vmatprep.mubr.msk.f32.mxu1 %vm8209_vm14, %v6110_v1 }
  0x6e   :  { %5506 = vmatprep.subr.mxu1 %v6110_v1  ;;  %5431 = vmatmul.mubr.f32.vlgmr.msra.gmra.mxu0 %v4819_v40  ;;  %v7754_v40 = vld [vmem:[%s7747_s13] sm:$0xff] }
  0x6f   :  { %5469 = vmatmul.mubr.f32.vlgmr.msra.gmra.mxu1 %v221_v41  ;;  %5471 = vmatprep.subr.mxu0 %v6110_v1 }
  0x70   :  { %5507 = vmatpush3.msk.msra.mxu1 %vm6641_vm13, %v6113_v11  ;;  %5472 = vmatpush3.msk.msra.mxu0 %vm6641_vm13, %v6113_v11  ;;  %vm8257_vm13 = vnez %v8206_v36  ;;  %v4709_v36 = vld [vmem:[%s4419_s4 + $0x2] sm:$0x1] }
  0x71   :  { %5508 = vmatprep.subr.mxu1 %v6110_v1  ;;  %5473 = vmatprep.subr.mxu0 %v6110_v1  ;;  %v1498_v37 = vunpack.c.l.bf16 %v4709_v36 }
  0x72   :  { %5509 = vmatpush3.msk.msra.mxu1 %vm6655_vm15, %v6113_v11  ;;  %5474 = vmatpush3.msk.msra.mxu0 %vm6655_vm15, %v6113_v11  ;;  %vm8256_vm15 = vnez %v8204_v34 }
  0x73   :  { %5510 = vmatprep.subr.mxu1 %v6110_v1  ;;  %5475 = vmatprep.subr.mxu0 %v6110_v1 }
  0x74   :  { %5511 = vmatpush3.msk.msra.mxu1 %vm6672_vm0, %v6113_v11  ;;  %5476 = vmatpush3.msk.msra.mxu0 %vm6672_vm0, %v6113_v11  ;;  %vm8255_vm0 = vnez %v8202_v32 }
  0x75   :  { %5512 = vmatprep.subr.mxu1 %v6110_v1  ;;  %5477 = vmatprep.subr.mxu0 %v6110_v1 }
  0x76   :  { %5513 = vmatpush3.msk.msra.mxu1 %vm6688_vm12, %v6113_v11  ;;  %5478 = vmatpush3.msk.msra.mxu0 %vm6688_vm12, %v6113_v11  ;;  %vm8254_vm12 = vnez %v8200_v30  ;;  %v1513_v30 = vld [vmem:[%s4428_s9] sm:$0xff]  ;;  %s6137_s9 = smov 24  }
  0x77   :  { %5514 = vmatprep.subr.mxu1 %v6110_v1  ;;  %5479 = vmatprep.subr.mxu0 %v6110_v1  ;;  %s4442_s12 = sld [smem:[%s8107_s0 + %s6137_s9]]  }
  0x78   :  { %5515 = vmatpush3.msk.msra.mxu1 %vm6704_vm11, %v6113_v11  ;;  %5480 = vmatpush3.msk.msra.mxu0 %vm6704_vm11, %v6113_v11  ;;  %vm8253_vm11 = vnez %v8198_v28  ;;  %v7720_v28 = vld [vmem:[%s7703_s30] sm:$0xff] }
  0x79   :  { %5516 = vmatprep.subr.mxu1 %v6110_v1  ;;  %5481 = vmatprep.subr.mxu0 %v6110_v1 }
  0x7a   :  { %5517 = vmatpush3.msk.msra.mxu1 %vm6720_vm10, %v6113_v11  ;;  %5482 = vmatpush3.msk.msra.mxu0 %vm6720_vm10, %v6113_v11  ;;  %vm8252_vm10 = vnez %v8196_v26 }
  0x7b   :  { %5518 = vmatprep.subr.mxu1 %v6110_v1  ;;  %5483 = vmatprep.subr.mxu0 %v6110_v1 }
  0x7c   :  { %5519 = vmatpush3.msk.msra.mxu1 %vm6736_vm9, %v6113_v11  ;;  %5484 = vmatpush3.msk.msra.mxu0 %vm6736_vm9, %v6113_v11  ;;  %vm8251_vm9 = vnez %v8194_v24 }
  0x7d   :  { %5520 = vmatprep.subr.mxu1 %v6110_v1  ;;  %5485 = vmatprep.subr.mxu0 %v6110_v1 }
  0x7e   :  { %5521 = vmatpush3.msk.msra.mxu1 %vm6752_vm8, %v6113_v11  ;;  %5486 = vmatpush3.msk.msra.mxu0 %vm6752_vm8, %v6113_v11  ;;  %vm8250_vm8 = vnez %v8192_v22 }
  0x7f   :  { %5522 = vmatprep.subr.mxu1 %v6110_v1  ;;  %5487 = vmatprep.subr.mxu0 %v6110_v1 }
  0x80   :  { %5523 = vmatpush3.msk.msra.mxu1 %vm6768_vm7, %v6113_v11  ;;  %5488 = vmatpush3.msk.msra.mxu0 %vm6768_vm7, %v6113_v11  ;;  %vm8249_vm7 = vnez %v8190_v20 }
  0x81   :  { %5524 = vmatprep.subr.mxu1 %v6110_v1  ;;  %5489 = vmatprep.subr.mxu0 %v6110_v1 }
  0x82   :  { %5525 = vmatpush3.msk.msra.mxu1 %vm6784_vm6, %v6113_v11  ;;  %5490 = vmatpush3.msk.msra.mxu0 %vm6784_vm6, %v6113_v11  ;;  %vm8242_vm6 = vnez %v8235_v62 }
  0x83   :  { %5526 = vmatprep.subr.mxu1 %v6110_v1  ;;  %5491 = vmatprep.subr.mxu0 %v6110_v1 }
  0x84   :  { %5527 = vmatpush3.msk.msra.mxu1 %vm6800_vm5, %v6113_v11  ;;  %5492 = vmatpush3.msk.msra.mxu0 %vm6800_vm5, %v6113_v11  ;;  %vm8248_vm5 = vnez %v8188_v18 }
  0x85   :  { %5528 = vmatprep.subr.mxu1 %v6110_v1  ;;  %5493 = vmatprep.subr.mxu0 %v6110_v1 }
  0x86   :  { %5529 = vmatpush3.msk.msra.mxu1 %vm6816_vm4, %v6113_v11  ;;  %5494 = vmatpush3.msk.msra.mxu0 %vm6816_vm4, %v6113_v11  ;;  %vm8247_vm4 = vnez %v8186_v16 }
  0x87   :  { %5530 = vmatprep.subr.mxu1 %v6110_v1  ;;  %5495 = vmatprep.subr.mxu0 %v6110_v1 }
  0x88   :  { %5531 = vmatpush3.msk.msra.mxu1 %vm8242_vm6, %v6113_v11  ;;  %5496 = vmatpush3.msk.msra.mxu0 %vm8242_vm6, %v6113_v11  ;;  %vm8246_vm6 = vnez %v8184_v14 }
  0x89   :  { %5532 = vmatprep.subr.mxu1 %v6110_v1  ;;  %5433 = vmatprep.mubr.f32.mxu0 %v4822_v43 }
  0x8a   :  { %5497 = vmatprep.subr.mxu0 %v6110_v1  ;;  %5533 = vmatpush3.msk.msra.mxu1 %vm6848_vm2, %v6113_v11 }
  0x8b   :  { %5434 = vmatmul.mubr.f32.gmra.mxu0 %v4823_v44  ;;  %5534 = vmatprep.subr.mxu1 %v6110_v1 }
  0x8c   :  { %5498 = vmatpush3.msk.msra.mxu0 %vm6848_vm2, %v6113_v11  ;;  %5535 = vmatpush3.msk.msra.mxu1 %vm6864_vm1, %v6113_v11  ;;  %vm8245_vm2 = vnez %v8182_v12 }
  0x8d   :  { %5499 = vmatprep.subr.mxu0 %v6110_v1  ;;  %5536 = vmatprep.subr.mxu1 %v6110_v1 }
  0x8e   :  { %5500 = vmatpush3.msk.msra.mxu0 %vm6864_vm1, %v6113_v11  ;;  %5537 = vmatpush3.msk.msra.mxu1 %vm6880_vm3, %v6113_v11  ;;  %vm8243_vm1 = vnez %v8178_v8  ;;  %v7355_v8 = vld [vmem:[%s7154_s26 + $0x4] sm:$0x3] }
  0x8f   :  { %5501 = vmatprep.subr.mxu0 %v6110_v1  ;;  %5503 = vmatprep.mubr.msk.f32.mxu0 %vm8209_vm14, %v6110_v1  ;;  %v833_v12 = vunpack.c.l.bf16 %v7355_v8 }
  0x90   :  { %5502 = vmatpush3.msk.msra.mxu0 %vm6880_vm3, %v6113_v11  ;;  %5538 = vmatprep.mubr.msk.f32.mxu1 %vm8209_vm14, %v6110_v1  ;;  %vm8244_vm3 = vnez %v8180_v9  ;;  %v7364_v9 = vld [vmem:[%s7154_s26 + $0x2] sm:$0x3]  ;;  %s6134_s26 = smov 20  }
  0x91   :  { %5579 = vmatprep.subr.mxu1 %v6110_v1  ;;  %5504 = vmatmul.mubr.f32.vlgmr.msra.gmra.mxu0 %v224_v48  ;;  %v830_v14 = vunpack.c.l.bf16 %v7364_v9  ;;  %v6107_v48 = vld [vmem:[%s6562_s18] sm:$0x1]  ;;  %s6132_s18 = smov 18   ;;  %s8004_s29 = sld [smem:[%s8107_s0 + %s6134_s26]]  }
  0x92   :  { %5539 = vmatmul.mubr.f32.vlgmr.msra.gmra.mxu1 %v227_v49  ;;  %5541 = vmatprep.subr.msk.mxu0 %vm8243_vm1, %v6113_v11  ;;  %s4436_s21 = sld [smem:[%s8107_s0 + %s6132_s18]]  }
  0x93   :  { %5580 = vmatpush3.msk.msra.mxu1 %vm8243_vm1, %v6113_v11  ;;  %5542 = vmatpush3.msk.msra.mxu0 %vm8243_vm1, %v6113_v11 }
  0x94   :  { %5581 = vmatprep.subr.mxu1 %v6110_v1  ;;  %5543 = vmatprep.subr.msk.mxu0 %vm8244_vm3, %v6113_v11 }
  0x95   :  { %5582 = vmatpush3.msk.msra.mxu1 %vm8244_vm3, %v6113_v11  ;;  %5544 = vmatpush3.msk.msra.mxu0 %vm8244_vm3, %v6113_v11 }
  0x96   :  { %5583 = vmatprep.subr.mxu1 %v6110_v1  ;;  %5545 = vmatprep.subr.msk.mxu0 %vm8245_vm2, %v6113_v11 }
  0x97   :  { %5584 = vmatpush3.msk.msra.mxu1 %vm8245_vm2, %v6113_v11  ;;  %5546 = vmatpush3.msk.msra.mxu0 %vm8245_vm2, %v6113_v11 }
  0x98   :  { %5585 = vmatprep.subr.mxu1 %v6110_v1  ;;  %5547 = vmatprep.subr.msk.mxu0 %vm8246_vm6, %v6113_v11 }
  0x99   :  { %5586 = vmatpush3.msk.msra.mxu1 %vm8246_vm6, %v6113_v11  ;;  %5548 = vmatpush3.msk.msra.mxu0 %vm8246_vm6, %v6113_v11 }
  0x9a   :  { %5587 = vmatprep.subr.mxu1 %v6110_v1  ;;  %5549 = vmatprep.subr.msk.mxu0 %vm8247_vm4, %v6113_v11 }
  0x9b   :  { %5588 = vmatpush3.msk.msra.mxu1 %vm8247_vm4, %v6113_v11  ;;  %5550 = vmatpush3.msk.msra.mxu0 %vm8247_vm4, %v6113_v11 }
  0x9c   :  { %5589 = vmatprep.subr.mxu1 %v6110_v1  ;;  %5551 = vmatprep.subr.msk.mxu0 %vm8248_vm5, %v6113_v11 }
  0x9d   :  { %5590 = vmatpush3.msk.msra.mxu1 %vm8248_vm5, %v6113_v11  ;;  %5552 = vmatpush3.msk.msra.mxu0 %vm8248_vm5, %v6113_v11 }
  0x9e   :  { %5591 = vmatprep.subr.mxu1 %v6110_v1  ;;  %5553 = vmatprep.subr.msk.mxu0 %vm8249_vm7, %v6113_v11 }
  0x9f   :  { %5592 = vmatpush3.msk.msra.mxu1 %vm8249_vm7, %v6113_v11  ;;  %5554 = vmatpush3.msk.msra.mxu0 %vm8249_vm7, %v6113_v11 }
  0xa0   :  { %5593 = vmatprep.subr.mxu1 %v6110_v1  ;;  %5555 = vmatprep.subr.msk.mxu0 %vm8250_vm8, %v6113_v11 }
  0xa1   :  { %5594 = vmatpush3.msk.msra.mxu1 %vm8250_vm8, %v6113_v11  ;;  %5556 = vmatpush3.msk.msra.mxu0 %vm8250_vm8, %v6113_v11 }
  0xa2   :  { %5595 = vmatprep.subr.mxu1 %v6110_v1  ;;  %5557 = vmatprep.subr.msk.mxu0 %vm8251_vm9, %v6113_v11 }
  0xa3   :  { %5596 = vmatpush3.msk.msra.mxu1 %vm8251_vm9, %v6113_v11  ;;  %5558 = vmatpush3.msk.msra.mxu0 %vm8251_vm9, %v6113_v11 }
  0xa4   :  { %5597 = vmatprep.subr.mxu1 %v6110_v1  ;;  %5559 = vmatprep.subr.msk.mxu0 %vm8252_vm10, %v6113_v11 }
  0xa5   :  { %5598 = vmatpush3.msk.msra.mxu1 %vm8252_vm10, %v6113_v11  ;;  %5560 = vmatpush3.msk.msra.mxu0 %vm8252_vm10, %v6113_v11 }
  0xa6   :  { %5599 = vmatprep.subr.mxu1 %v6110_v1  ;;  %5561 = vmatprep.subr.msk.mxu0 %vm8253_vm11, %v6113_v11 }
  0xa7   :  { %5600 = vmatpush3.msk.msra.mxu1 %vm8253_vm11, %v6113_v11  ;;  %5562 = vmatpush3.msk.msra.mxu0 %vm8253_vm11, %v6113_v11 }
  0xa8   :  { %5601 = vmatprep.subr.mxu1 %v6110_v1  ;;  %5563 = vmatprep.subr.msk.mxu0 %vm8254_vm12, %v6113_v11 }
  0xa9   :  { %5602 = vmatpush3.msk.msra.mxu1 %vm8254_vm12, %v6113_v11  ;;  %5564 = vmatpush3.msk.msra.mxu0 %vm8254_vm12, %v6113_v11 }
  0xaa   :  { %5603 = vmatprep.subr.mxu1 %v6110_v1  ;;  %5565 = vmatprep.subr.msk.mxu0 %vm8255_vm0, %v6113_v11 }
  0xab   :  { %5604 = vmatpush3.msk.msra.mxu1 %vm8255_vm0, %v6113_v11  ;;  %5566 = vmatpush3.msk.msra.mxu0 %vm8255_vm0, %v6113_v11 }
  0xac   :  { %5605 = vmatprep.subr.mxu1 %v6110_v1  ;;  %5567 = vmatprep.subr.msk.mxu0 %vm8256_vm15, %v6113_v11 }
  0xad   :  { %5606 = vmatpush3.msk.msra.mxu1 %vm8256_vm15, %v6113_v11  ;;  %5568 = vmatpush3.msk.msra.mxu0 %vm8256_vm15, %v6113_v11  ;;  %vm8258_vm15 = vnez %v8208_v38 }
  0xae   :  { %5607 = vmatprep.subr.mxu1 %v6110_v1  ;;  %5569 = vmatprep.subr.msk.mxu0 %vm8257_vm13, %v6113_v11 }
  0xaf   :  { %5608 = vmatpush3.msk.msra.mxu1 %vm8257_vm13, %v6113_v11  ;;  %5570 = vmatpush3.msk.msra.mxu0 %vm8257_vm13, %v6113_v11 }
  0xb0   :  { %5609 = vmatprep.subr.mxu1 %v6110_v1  ;;  %5571 = vmatprep.subr.msk.mxu0 %vm8258_vm15, %v6113_v11 }
  0xb1   :  { %5610 = vmatpush3.msk.msra.mxu1 %vm8258_vm15, %v6113_v11  ;;  %5611 = vmatprep.mubr.msk.f32.mxu1 %vm8209_vm14, %v6110_v1 }
  0xb2   :  { %5572 = vmatpush3.msk.msra.mxu0 %vm8258_vm15, %v6113_v11  ;;  %5573 = vmatprep.mubr.f32.mxu0 %v4826_v7 }
  0xb3   :  { %5612 = vmatmul.mubr.f32.vlgmr.msra.gmra.mxu1 %v827_v10  ;;  %5649 = vmatprep.subr.mxu1 %v6110_v1 }
  0xb4   :  { %5574 = vmatmul.mubr.f32.vlgmr.msra.gmra.mxu0 %v4827_v13  ;;  %5614 = vmatprep.subr.mxu0 %v6110_v1 }
  0xb5   :  { %5650 = vmatpush3.msk.msra.mxu1 %vm8243_vm1, %v6113_v11  ;;  %5615 = vmatpush3.msk.msra.mxu0 %vm8243_vm1, %v6113_v11  ;;  %vm8259_vm1 = vnez %v8204_v34  ;;  %v4708_v34 = vld [vmem:[%s4419_s4 + $0x1] sm:$0x1] }
  0xb6   :  { %5651 = vmatprep.subr.mxu1 %v6110_v1  ;;  %5616 = vmatprep.subr.mxu0 %v6110_v1  ;;  %v1495_v35 = vunpack.c.l.bf16 %v4708_v34 }
  0xb7   :  { %5652 = vmatpush3.msk.msra.mxu1 %vm8244_vm3, %v6113_v11  ;;  %5576 = vmatprep.mubr.f32.mxu0 %v4830_v17 }
  0xb8   :  { %5617 = vmatpush3.msk.msra.mxu0 %vm8244_vm3, %v6113_v11  ;;  %5653 = vmatprep.subr.mxu1 %v6110_v1  ;;  %vm8262_vm3 = vnez %v8215_v52 }
  0xb9   :  { %5577 = vmatmul.mubr.f32.gmra.mxu0 %v4831_v19  ;;  %5618 = vmatprep.subr.mxu0 %v6110_v1 }
  0xba   :  { %5654 = vmatpush3.msk.msra.mxu1 %vm8245_vm2, %v6113_v11  ;;  %5619 = vmatpush3.msk.msra.mxu0 %vm8245_vm2, %v6113_v11  ;;  %vm8261_vm2 = vnez %v8213_v51 }
  0xbb   :  { %5655 = vmatprep.subr.mxu1 %v6110_v1  ;;  %5620 = vmatprep.subr.mxu0 %v6110_v1 }
  0xbc   :  { %5656 = vmatpush3.msk.msra.mxu1 %vm8246_vm6, %v6113_v11  ;;  %5621 = vmatpush3.msk.msra.mxu0 %vm8246_vm6, %v6113_v11  ;;  %vm8265_vm6 = vnez %v8221_v55 }
  0xbd   :  { %5657 = vmatprep.subr.mxu1 %v6110_v1  ;;  %5622 = vmatprep.subr.mxu0 %v6110_v1 }
  0xbe   :  { %5658 = vmatpush3.msk.msra.mxu1 %vm8247_vm4, %v6113_v11  ;;  %5623 = vmatpush3.msk.msra.mxu0 %vm8247_vm4, %v6113_v11  ;;  %vm8263_vm4 = vnez %v8217_v53 }
  0xbf   :  { %5659 = vmatprep.subr.mxu1 %v6110_v1  ;;  %5624 = vmatprep.subr.mxu0 %v6110_v1 }
  0xc0   :  { %5660 = vmatpush3.msk.msra.mxu1 %vm8248_vm5, %v6113_v11  ;;  %5625 = vmatpush3.msk.msra.mxu0 %vm8248_vm5, %v6113_v11  ;;  %vm8264_vm5 = vnez %v8219_v54 }
  0xc1   :  { %5661 = vmatprep.subr.mxu1 %v6110_v1  ;;  %5626 = vmatprep.subr.mxu0 %v6110_v1 }
  0xc2   :  { %5662 = vmatpush3.msk.msra.mxu1 %vm8249_vm7, %v6113_v11  ;;  %5627 = vmatpush3.msk.msra.mxu0 %vm8249_vm7, %v6113_v11  ;;  %vm8266_vm7 = vnez %v8223_v56 }
  0xc3   :  { %5663 = vmatprep.subr.mxu1 %v6110_v1  ;;  %5628 = vmatprep.subr.mxu0 %v6110_v1 }
  0xc4   :  { %5664 = vmatpush3.msk.msra.mxu1 %vm8250_vm8, %v6113_v11  ;;  %5629 = vmatpush3.msk.msra.mxu0 %vm8250_vm8, %v6113_v11  ;;  %vm8267_vm8 = vnez %v8225_v57 }
  0xc5   :  { %5665 = vmatprep.subr.mxu1 %v6110_v1  ;;  %5630 = vmatprep.subr.mxu0 %v6110_v1 }
  0xc6   :  { %5666 = vmatpush3.msk.msra.mxu1 %vm8251_vm9, %v6113_v11  ;;  %5631 = vmatpush3.msk.msra.mxu0 %vm8251_vm9, %v6113_v11  ;;  %vm8268_vm9 = vnez %v8227_v58 }
  0xc7   :  { %5667 = vmatprep.subr.mxu1 %v6110_v1  ;;  %5632 = vmatprep.subr.mxu0 %v6110_v1 }
  0xc8   :  { %5668 = vmatpush3.msk.msra.mxu1 %vm8252_vm10, %v6113_v11  ;;  %5633 = vmatpush3.msk.msra.mxu0 %vm8252_vm10, %v6113_v11  ;;  %vm8269_vm10 = vnez %v8229_v59 }
  0xc9   :  { %5669 = vmatprep.subr.mxu1 %v6110_v1  ;;  %5634 = vmatprep.subr.mxu0 %v6110_v1 }
  0xca   :  { %5670 = vmatpush3.msk.msra.mxu1 %vm8253_vm11, %v6113_v11  ;;  %5635 = vmatpush3.msk.msra.mxu0 %vm8253_vm11, %v6113_v11  ;;  %vm8270_vm11 = vnez %v8231_v60 }
  0xcb   :  { %5671 = vmatprep.subr.mxu1 %v6110_v1  ;;  %5636 = vmatprep.subr.mxu0 %v6110_v1 }
  0xcc   :  { %5672 = vmatpush3.msk.msra.mxu1 %vm8254_vm12, %v6113_v11  ;;  %5637 = vmatpush3.msk.msra.mxu0 %vm8254_vm12, %v6113_v11  ;;  %vm8271_vm12 = vnez %v8233_v61 }
  0xcd   :  { %5673 = vmatprep.subr.mxu1 %v6110_v1  ;;  %5638 = vmatprep.subr.mxu0 %v6110_v1 }
  0xce   :  { %5674 = vmatpush3.msk.msra.mxu1 %vm8255_vm0, %v6113_v11  ;;  %5639 = vmatpush3.msk.msra.mxu0 %vm8255_vm0, %v6113_v11  ;;  %vm8260_vm0 = vnez %v8211_v50 }
  0xcf   :  { %5675 = vmatprep.subr.mxu1 %v6110_v1  ;;  %5640 = vmatprep.subr.mxu0 %v6110_v1 }
  0xd0   :  { %5676 = vmatpush3.msk.msra.mxu1 %vm8259_vm1, %v6113_v11  ;;  %5641 = vmatpush3.msk.msra.mxu0 %vm8259_vm1, %v6113_v11  ;;  %vm8274_vm1 = vnez %v8239_v0 }
  0xd1   :  { %5677 = vmatprep.subr.mxu1 %v6110_v1  ;;  %5642 = vmatprep.subr.mxu0 %v6110_v1 }
  0xd2   :  { %5678 = vmatpush3.msk.msra.mxu1 %vm8257_vm13, %v6113_v11  ;;  %5643 = vmatpush3.msk.msra.mxu0 %vm8257_vm13, %v6113_v11  ;;  %vm8272_vm13 = vnez %v8235_v62 }
  0xd3   :  { %5679 = vmatprep.subr.mxu1 %v6110_v1  ;;  %5644 = vmatprep.subr.mxu0 %v6110_v1 }
  0xd4   :  { %5680 = vmatpush3.msk.msra.mxu1 %vm8258_vm15, %v6113_v11  ;;  %5681 = vmatprep.mubr.msk.f32.mxu1 %vm8209_vm14, %v6110_v1 }
  0xd5   :  { %5645 = vmatpush3.msk.msra.mxu0 %vm8258_vm15, %v6113_v11  ;;  %5646 = vmatprep.mubr.msk.f32.mxu0 %vm8209_vm14, %v6110_v1  ;;  %vm8273_vm15 = vnez %v8237_v63  ;;  %v1512_v63 = vld [vmem:[%s7703_s30 + $0x8] sm:$0x3]  ;;  %s6135_s30 = smov 22  }
  0xd6   :  { %5682 = vmatmul.mubr.f32.vlgmr.msra.gmra.mxu1 %v833_v12  ;;  %5722 = vmatprep.subr.mxu1 %v6110_v1  ;;  %s4440_s3 = sld [smem:[%s8107_s0 + %s6135_s30]]  }
  0xd7   :  { %5647 = vmatmul.mubr.f32.vlgmr.msra.gmra.mxu0 %v830_v14  ;;  %5684 = vmatprep.subr.msk.mxu0 %vm8260_vm0, %v6113_v11 }
  0xd8   :  { %5723 = vmatpush3.msk.msra.mxu1 %vm8260_vm0, %v6113_v11  ;;  %5685 = vmatpush3.msk.msra.mxu0 %vm8260_vm0, %v6113_v11 }
  0xd9   :  { %5724 = vmatprep.subr.mxu1 %v6110_v1  ;;  %5686 = vmatprep.subr.msk.mxu0 %vm8261_vm2, %v6113_v11 }
  0xda   :  { %5725 = vmatpush3.msk.msra.mxu1 %vm8261_vm2, %v6113_v11  ;;  %5687 = vmatpush3.msk.msra.mxu0 %vm8261_vm2, %v6113_v11 }
  0xdb   :  { %5726 = vmatprep.subr.mxu1 %v6110_v1  ;;  %5688 = vmatprep.subr.msk.mxu0 %vm8262_vm3, %v6113_v11 }
  0xdc   :  { %5727 = vmatpush3.msk.msra.mxu1 %vm8262_vm3, %v6113_v11  ;;  %5689 = vmatpush3.msk.msra.mxu0 %vm8262_vm3, %v6113_v11 }
  0xdd   :  { %5728 = vmatprep.subr.mxu1 %v6110_v1  ;;  %5690 = vmatprep.subr.msk.mxu0 %vm8263_vm4, %v6113_v11 }
  0xde   :  { %5729 = vmatpush3.msk.msra.mxu1 %vm8263_vm4, %v6113_v11  ;;  %5691 = vmatpush3.msk.msra.mxu0 %vm8263_vm4, %v6113_v11 }
  0xdf   :  { %5730 = vmatprep.subr.mxu1 %v6110_v1  ;;  %5692 = vmatprep.subr.msk.mxu0 %vm8264_vm5, %v6113_v11 }
  0xe0   :  { %5731 = vmatpush3.msk.msra.mxu1 %vm8264_vm5, %v6113_v11  ;;  %5693 = vmatpush3.msk.msra.mxu0 %vm8264_vm5, %v6113_v11 }
  0xe1   :  { %5732 = vmatprep.subr.mxu1 %v6110_v1  ;;  %5694 = vmatprep.subr.msk.mxu0 %vm8265_vm6, %v6113_v11 }
  0xe2   :  { %5733 = vmatpush3.msk.msra.mxu1 %vm8265_vm6, %v6113_v11  ;;  %5695 = vmatpush3.msk.msra.mxu0 %vm8265_vm6, %v6113_v11 }
  0xe3   :  { %5734 = vmatprep.subr.mxu1 %v6110_v1  ;;  %5696 = vmatprep.subr.msk.mxu0 %vm8266_vm7, %v6113_v11 }
  0xe4   :  { %5735 = vmatpush3.msk.msra.mxu1 %vm8266_vm7, %v6113_v11  ;;  %5697 = vmatpush3.msk.msra.mxu0 %vm8266_vm7, %v6113_v11 }
  0xe5   :  { %5736 = vmatprep.subr.mxu1 %v6110_v1  ;;  %5698 = vmatprep.subr.msk.mxu0 %vm8267_vm8, %v6113_v11 }
  0xe6   :  { %5737 = vmatpush3.msk.msra.mxu1 %vm8267_vm8, %v6113_v11  ;;  %5699 = vmatpush3.msk.msra.mxu0 %vm8267_vm8, %v6113_v11 }
  0xe7   :  { %5738 = vmatprep.subr.mxu1 %v6110_v1  ;;  %5700 = vmatprep.subr.msk.mxu0 %vm8268_vm9, %v6113_v11 }
  0xe8   :  { %5739 = vmatpush3.msk.msra.mxu1 %vm8268_vm9, %v6113_v11  ;;  %5701 = vmatpush3.msk.msra.mxu0 %vm8268_vm9, %v6113_v11 }
  0xe9   :  { %5740 = vmatprep.subr.mxu1 %v6110_v1  ;;  %5702 = vmatprep.subr.msk.mxu0 %vm8269_vm10, %v6113_v11  ;;  %v7590_v20 = vpop.f32.mrf.mxu0 }
  0xea   :  { %5741 = vmatpush3.msk.msra.mxu1 %vm8269_vm10, %v6113_v11  ;;  %5703 = vmatpush3.msk.msra.mxu0 %vm8269_vm10, %v6113_v11  ;;  %v7492_v16 = vpop.f32.mrf.mxu1 }
  0xeb   :  { %5742 = vmatprep.subr.mxu1 %v6110_v1  ;;  %5704 = vmatprep.subr.msk.mxu0 %vm8270_vm11, %v6113_v11  ;;  %v7608_v21 = vpop.f32.mrf.mxu0 }
  0xec   :  { %5743 = vmatpush3.msk.msra.mxu1 %vm8270_vm11, %v6113_v11  ;;  %5705 = vmatpush3.msk.msra.mxu0 %vm8270_vm11, %v6113_v11  ;;  %v5327_v18 = vpop.f32.mrf.mxu1 }
  0xed   :  { %5744 = vmatprep.subr.mxu1 %v6110_v1  ;;  %5706 = vmatprep.subr.msk.mxu0 %vm8271_vm12, %v6113_v11 }
  0xee   :  { %5745 = vmatpush3.msk.msra.mxu1 %vm8271_vm12, %v6113_v11  ;;  %5707 = vmatpush3.msk.msra.mxu0 %vm8271_vm12, %v6113_v11 }
  0xef   :  { %5746 = vmatprep.subr.mxu1 %v6110_v1  ;;  %5708 = vmatprep.subr.msk.mxu0 %vm8272_vm13, %v6113_v11 }
  0xf0   :  { %5747 = vmatpush3.msk.msra.mxu1 %vm8272_vm13, %v6113_v11  ;;  %5709 = vmatpush3.msk.msra.mxu0 %vm8272_vm13, %v6113_v11  ;;  %vm8275_vm13 = vnez %v8241_v4 }
  0xf1   :  { %5748 = vmatprep.subr.mxu1 %v6110_v1  ;;  %5710 = vmatprep.subr.msk.mxu0 %vm8273_vm15, %v6113_v11 }
  0xf2   :  { %5749 = vmatpush3.msk.msra.mxu1 %vm8273_vm15, %v6113_v11  ;;  %5711 = vmatpush3.msk.msra.mxu0 %vm8273_vm15, %v6113_v11 }
  0xf3   :  { %5750 = vmatprep.subr.mxu1 %v6110_v1  ;;  %5712 = vmatprep.subr.msk.mxu0 %vm8274_vm1, %v6113_v11 }
  0xf4   :  { %5751 = vmatpush3.msk.msra.mxu1 %vm8274_vm1, %v6113_v11  ;;  %5713 = vmatpush3.msk.msra.mxu0 %vm8274_vm1, %v6113_v11 }
  0xf5   :  { %5752 = vmatprep.subr.mxu1 %v6110_v1  ;;  %5714 = vmatprep.subr.msk.mxu0 %vm8275_vm13, %v6113_v11 }
  0xf6   :  { %5753 = vmatpush3.msk.msra.mxu1 %vm8275_vm13, %v6113_v11  ;;  %5754 = vmatprep.mubr.msk.f32.mxu1 %vm8209_vm14, %v6110_v1 }
  0xf7   :  { %5715 = vmatpush3.msk.msra.mxu0 %vm8275_vm13, %v6113_v11  ;;  %5716 = vmatprep.mubr.f32.mxu0 %v4826_v7 }
  0xf8   :  { %5755 = vmatmul.mubr.f32.vlgmr.msra.gmra.mxu1 %v827_v10  ;;  %5792 = vmatprep.subr.mxu1 %v6110_v1 }
  0xf9   :  { %5717 = vmatmul.mubr.f32.vlgmr.msra.gmra.mxu0 %v4827_v13  ;;  %5757 = vmatprep.subr.mxu0 %v6110_v1 }
  0xfa   :  { %5793 = vmatpush3.msk.msra.mxu1 %vm8260_vm0, %v6113_v11  ;;  %5758 = vmatpush3.msk.msra.mxu0 %vm8260_vm0, %v6113_v11  ;;  %vm8276_vm0 = vnez %v8235_v62 }
  0xfb   :  { %5794 = vmatprep.subr.mxu1 %v6110_v1  ;;  %5759 = vmatprep.subr.mxu0 %v6110_v1 }
  0xfc   :  { %5795 = vmatpush3.msk.msra.mxu1 %vm8261_vm2, %v6113_v11  ;;  %5719 = vmatprep.mubr.f32.mxu0 %v4830_v17 }
  0xfd   :  { %5760 = vmatpush3.msk.msra.mxu0 %vm8261_vm2, %v6113_v11  ;;  %5796 = vmatprep.subr.mxu1 %v6110_v1  ;;  %vm1612_vm2 = vcmask 31744  }
  0xfe   :  { %5720 = vmatmul.mubr.f32.gmra.mxu0 %v4831_v19  ;;  %5761 = vmatprep.subr.mxu0 %v6110_v1 }
  0xff   :  { %5797 = vmatpush3.msk.msra.mxu1 %vm8262_vm3, %v6113_v11  ;;  %5762 = vmatpush3.msk.msra.mxu0 %vm8262_vm3, %v6113_v11  ;;  %vm1526_vm3 = vcmask 15360  }
 0x100   :  { %5798 = vmatprep.subr.mxu1 %v6110_v1  ;;  %5763 = vmatprep.subr.mxu0 %v6110_v1 }
 0x101   :  { %5799 = vmatpush3.msk.msra.mxu1 %vm8263_vm4, %v6113_v11  ;;  %5764 = vmatpush3.msk.msra.mxu0 %vm8263_vm4, %v6113_v11  ;;  %vm1533_vm4 = vcmask 1041408  }
 0x102   :  { %5800 = vmatprep.subr.mxu1 %v6110_v1  ;;  %5765 = vmatprep.subr.mxu0 %v6110_v1 }
 0x103   :  { %5801 = vmatpush3.msk.msra.mxu1 %vm8264_vm5, %v6113_v11  ;;  %5766 = vmatpush3.msk.msra.mxu0 %vm8264_vm5, %v6113_v11  ;;  %vm1424_vm5 = vcmp.lt.s32.totalorder %v6106_v47, %v6107_v48 }
 0x104   :  { %5802 = vmatprep.subr.mxu1 %v6110_v1  ;;  %5767 = vmatprep.subr.mxu0 %v6110_v1  ;;  %v1425_v49 = vsel %vm1424_vm5, 1.0, %v6110_v1 }
 0x105   :  { %5803 = vmatpush3.msk.msra.mxu1 %vm8265_vm6, %v6113_v11  ;;  %5768 = vmatpush3.msk.msra.mxu0 %vm8265_vm6, %v6113_v11  ;;  %v1426_v50 = vsub.f32 1.0, %v1425_v49  ;;  %v7775_v52 = vrot.slane %v1425_v49, %v142_v3  ;;  %vm1619_vm6 = vcmask 1043456  }
 0x106   :  { %5804 = vmatprep.subr.mxu1 %v6110_v1  ;;  %5769 = vmatprep.subr.mxu0 %v6110_v1  ;;  %v7620_v22 = vpop.f32.mrf.mxu0 }
 0x107   :  { %5805 = vmatpush3.msk.msra.mxu1 %vm8266_vm7, %v6113_v11  ;;  %5770 = vmatpush3.msk.msra.mxu0 %vm8266_vm7, %v6113_v11  ;;  %v7771_v51 = vrot.slane %v1426_v50, %v142_v3  ;;  %v1463_v54 = vmul.f32 %v7775_v52, %v7492_v16  ;;  %v1434_v57 = vmul.f32 %v7590_v20, %v7775_v52  ;;  %vm2403_vm7 = vcmask 261120   ;;  %v1500_v50 = vld [vmem:[%s7830_s16 + $0x8] sm:$0xff] }
 0x108   :  { %5806 = vmatprep.subr.mxu1 %v6110_v1  ;;  %5771 = vmatprep.subr.mxu0 %v6110_v1  ;;  %v7630_v23 = vpop.f32.mrf.mxu0  ;;  %v1433_v2 = vmul.f32 %v7775_v52, %v7608_v21  ;;  %v1436_v5 = vmul.f32 %v7620_v22, %v7775_v52 }
 0x109   :  { %5807 = vmatpush3.msk.msra.mxu1 %vm8267_vm8, %v6113_v11  ;;  %5772 = vmatpush3.msk.msra.mxu0 %vm8267_vm8, %v6113_v11  ;;  %v1435_v10 = vmul.f32 %v7775_v52, %v7630_v23  ;;  %vm2302_vm8 = vcmask 80896  }
 0x10a   :  { %5808 = vmatprep.subr.mxu1 %v6110_v1  ;;  %5773 = vmatprep.subr.mxu0 %v6110_v1 }
 0x10b   :  { %5809 = vmatpush3.msk.msra.mxu1 %vm8268_vm9, %v6113_v11  ;;  %5774 = vmatpush3.msk.msra.mxu0 %vm8268_vm9, %v6113_v11 }
 0x10c   :  { %5810 = vmatprep.subr.mxu1 %v6110_v1  ;;  %5775 = vmatprep.subr.mxu0 %v6110_v1  ;;  %v7648_v24 = vpop.f32.mrf.mxu0 }
 0x10d   :  { %5811 = vmatpush3.msk.msra.mxu1 %vm8269_vm10, %v6113_v11  ;;  %5776 = vmatpush3.msk.msra.mxu0 %vm8269_vm10, %v6113_v11  ;;  %v7656_v25 = vpop.f32.mrf.mxu1  ;;  %v1466_v9 = vmul.f32 %v7775_v52, %v7648_v24 }
 0x10e   :  { %5812 = vmatprep.subr.mxu1 %v6110_v1  ;;  %5777 = vmatprep.subr.mxu0 %v6110_v1  ;;  %v5362_v26 = vpop.f32.mrf.mxu0  ;;  %v1469_v20 = vmul.f32 %v7775_v52, %v7656_v25 }
 0x10f   :  { %5813 = vmatpush3.msk.msra.mxu1 %vm8270_vm11, %v6113_v11  ;;  %5778 = vmatpush3.msk.msra.mxu0 %vm8270_vm11, %v6113_v11  ;;  %v5397_v27 = vpop.f32.mrf.mxu1 }
 0x110   :  { %5814 = vmatprep.subr.mxu1 %v6110_v1  ;;  %5779 = vmatprep.subr.mxu0 %v6110_v1 }
 0x111   :  { %5815 = vmatpush3.msk.msra.mxu1 %vm8271_vm12, %v6113_v11  ;;  %5780 = vmatpush3.msk.msra.mxu0 %vm8271_vm12, %v6113_v11 }
 0x112   :  { %5816 = vmatprep.subr.mxu1 %v6110_v1  ;;  %5781 = vmatprep.subr.mxu0 %v6110_v1 }
 0x113   :  { %5817 = vmatpush3.msk.msra.mxu1 %vm8276_vm0, %v6113_v11  ;;  %5782 = vmatpush3.msk.msra.mxu0 %vm8276_vm0, %v6113_v11 }
 0x114   :  { %5818 = vmatprep.subr.mxu1 %v6110_v1  ;;  %5783 = vmatprep.subr.mxu0 %v6110_v1 }
 0x115   :  { %5819 = vmatpush3.msk.msra.mxu1 %vm8273_vm15, %v6113_v11  ;;  %5784 = vmatpush3.msk.msra.mxu0 %vm8273_vm15, %v6113_v11 }
 0x116   :  { %5820 = vmatprep.subr.mxu1 %v6110_v1  ;;  %5785 = vmatprep.subr.mxu0 %v6110_v1 }
 0x117   :  { %5821 = vmatpush3.msk.msra.mxu1 %vm8274_vm1, %v6113_v11  ;;  %5786 = vmatpush3.msk.msra.mxu0 %vm8274_vm1, %v6113_v11 }
 0x118   :  { %5822 = vmatprep.subr.mxu1 %v6110_v1  ;;  %5787 = vmatprep.subr.mxu0 %v6110_v1 }
 0x119   :  { %5823 = vmatpush3.msk.msra.mxu1 %vm8275_vm13, %v6113_v11  ;;  %5824 = vmatprep.mubr.msk.f32.mxu1 %vm8209_vm14, %v6110_v1 }
 0x11a   :  { %5788 = vmatpush3.msk.msra.mxu0 %vm8275_vm13, %v6113_v11  ;;  %5789 = vmatprep.mubr.msk.f32.mxu0 %vm8209_vm14, %v6110_v1  ;;  %v1491_v11 = vld [vmem:[%s4419_s4] sm:$0x1]  ;;  %vm2505_vm13 = vcmask 293888   ;;  %s6136_s4 = smov 23  }
 0x11b   :  { %5825 = vmatmul.mubr.f32.vlgmr.msra.gmra.mxu1 %v833_v12  ;;  %5790 = vmatmul.mubr.f32.vlgmr.msra.gmra.mxu0 %v830_v14  ;;  %v1492_v29 = vunpack.c.l.bf16 %v1491_v11  ;;  %v1516_v11 = vld [vmem:[%s7747_s13 + $0x8] sm:$0x3]  ;;  %s4441_s8 = sld [smem:[%s8107_s0 + %s6136_s4]]   ;;  %s6138_s13 = smov 25  }
 0x11c   :  { %5834 = vmatprep.mubr.msk.f32.mxu1 %vm1612_vm2, %v7720_v28  ;;  %5829 = vmatprep.mubr.msk.f32.mxu0 %vm1526_vm3, %v1513_v30  ;;  %s8062_s15 = sld [smem:[%s8107_s0 + %s6138_s13]]  }
 0x11d   :  { %5827 = vmatprep.subr.msk.mxu0 %vm1533_vm4, %v1492_v29 }
 0x11e   :  { %5828 = vmatpush3.msk.msra.mxu0 %vm1533_vm4, %v1492_v29 }
 0x11f   :  { %5830 = vmatmul.mubr.msk.f32.vlgmr.msra.gmra.mxu0 %vm1526_vm3, %v1514_v31  ;;  %5837 = vmatprep.subr.msk.mxu0 %vm1533_vm4, %v1495_v35 }
 0x120   :  { %5839 = vmatprep.mubr.msk.f32.mxu0 %vm1526_vm3, %v1513_v30  ;;  %5838 = vmatpush3.msk.msra.mxu0 %vm1533_vm4, %v1495_v35 }
 0x121   :  { %5847 = vmatprep.subr.msk.mxu0 %vm1533_vm4, %v1498_v37 }
 0x123   :  { %5840 = vmatmul.mubr.msk.f32.vlgmr.msra.gmra.mxu0 %vm1526_vm3, %v1514_v31 }
 0x124   :  { %5849 = vmatprep.mubr.msk.f32.mxu0 %vm1526_vm3, %v1513_v30  ;;  %5848 = vmatpush3.msk.msra.mxu0 %vm1533_vm4, %v1498_v37 }
 0x127   :  { %5850 = vmatmul.mubr.msk.f32.vlgmr.msra.gmra.mxu0 %vm1526_vm3, %v1514_v31 }
 0x128   :  { %5859 = vmatprep.mubr.msk.f32.mxu0 %vm1612_vm2, %v7754_v40 }
 0x12e   :  { %v7749_v38 = vpop.f32.mrf.mxu0 }
 0x12f   :  { %v7735_v32 = vpop.f32.mrf.mxu1 }
 0x130   :  { %v7751_v39 = vpop.f32.mrf.mxu0  ;;  %v1472_v24 = vmul.f32 %v7775_v52, %v7735_v32 }
 0x131   :  { %v5470_v33 = vpop.f32.mrf.mxu1 }
 0x14b   :  { %v7756_v41 = vpop.f32.mrf.mxu0 }
 0x14c   :  { %v1454_v48 = vmul.f32 %v7756_v41, %v7775_v52  ;;  %v1452_v41 = vmul.f32 %v7749_v38, %v7775_v52  ;;  %v1501_v38 = vld [vmem:[%s7830_s16 + $0x10] sm:$0xff] }
 0x14d   :  { %v7760_v42 = vpop.f32.mrf.mxu0 }
 0x151   :  { %v7762_v43 = vpop.f32.mrf.mxu0 }
 0x152   :  { %v7764_v44 = vpop.f32.mrf.mxu1  ;;  %v1475_v34 = vmul.f32 %v7775_v52, %v7762_v43  ;;  %v1499_v43 = vld [vmem:[%s7830_s16] sm:$0xff] }
 0x153   :  { %v5505_v45 = vpop.f32.mrf.mxu0  ;;  %v1478_v35 = vmul.f32 %v7775_v52, %v7764_v44 }
 0x154   :  { %v5540_v46 = vpop.f32.mrf.mxu1 }
 0x173   :  { %v985_v53 = vpop.f32.mrf.mxu1 }
 0x174   :  { %v1464_v55 = vmul.f32 %v7771_v51, %v985_v53  ;;  %v5575_v56 = vpop.f32.mrf.mxu0  ;;  %v1453_v53 = vmul.f32 %v7775_v52, %v7760_v42  ;;  %v1451_v42 = vmul.f32 %v7775_v52, %v7751_v39  ;;  %v1507_v39 = vld [vmem:[%s4432_s20] sm:$0xff]  ;;  %v1508_v52 = vld [vmem:[%s4432_s20 + $0x8] sm:$0xff] }
 0x175   :  { %v1444_v58 = vmul.f32 %v5575_v56, %v7771_v51  ;;  %v5613_v59 = vpop.f32.mrf.mxu1 }
 0x176   :  { %v1465_v60 = vadd.f32 %v1464_v55, %v1463_v54  ;;  %v900_v61 = vpop.f32.mrf.mxu0 }
 0x177   :  { %v7785_v3 = vadd.f32 %v1444_v58, %v1434_v57  ;;  %v1443_v62 = vmul.f32 %v7771_v51, %v900_v61  ;;  %v1509_v61 = vld [vmem:[%s4432_s20 + $0x10] sm:$0xff] }
 0x178   :  { %5832 = vmatprep.subr.msk.mxu1 %vm1619_vm6, %v1465_v60 }
 0x179   :  { %v7790_v0 = vadd.f32 %v1443_v62, %v1433_v2  ;;  %v5578_v4 = vpop.f32.mrf.mxu0  ;;  %5833 = vmatpush3.msk.msra.mxu1 %vm1619_vm6, %v1465_v60  ;;  %v1517_v60 = vld [vmem:[%s7877_s24] sm:$0xff]  ;;  %v1510_v2 = vld [vmem:[%s4432_s20 + $0x18] sm:$0xff]  ;;  %v1522_v62 = vld [vmem:[%s4434_s28 + $0x8] sm:$0xff]  ;;  %s6140_s20 = smov 4  }
 0x17a   :  { %v1446_v6 = vmul.f32 %v5578_v4, %v7771_v51  ;;  %5835 = vmatmul.mubr.msk.f32.vlgmr.msra.gmra.mxu1 %vm1612_vm2, %v1512_v63  ;;  %v1523_v4 = vld [vmem:[%s4434_s28 + $0x10] sm:$0xff]  ;;  %s4422_s23 = sld [smem:[%s8107_s0 + %s6140_s20]]  }
 0x17b   :  { %v910_v7 = vpop.f32.mrf.mxu0  ;;  %5844 = vmatprep.mubr.msk.f32.mxu1 %vm1612_vm2, %v7720_v28 }
 0x17c   :  { %v1450_v13 = vadd.f32 %v1446_v6, %v1436_v5  ;;  %v1445_v15 = vmul.f32 %v7771_v51, %v910_v7 }
 0x17e   :  { %v1449_v17 = vadd.f32 %v1445_v15, %v1435_v10 }
 0x196   :  { %v1125_v19 = vpop.f32.mrf.mxu1 }
 0x197   :  { %v1055_v8 = vpop.f32.mrf.mxu0  ;;  %v1470_v12 = vmul.f32 %v7771_v51, %v1125_v19 }
 0x198   :  { %v1467_v14 = vmul.f32 %v7771_v51, %v1055_v8  ;;  %v5683_v16 = vpop.f32.mrf.mxu1 }
 0x199   :  { %v5648_v18 = vpop.f32.mrf.mxu0  ;;  %v1471_v22 = vadd.f32 %v1470_v12, %v1469_v20 }
 0x19a   :  { %v1468_v21 = vadd.f32 %v1467_v14, %v1466_v9 }
 0x19c   :  { %5842 = vmatprep.subr.msk.mxu1 %vm1619_vm6, %v1468_v21 }
 0x19d   :  { %5843 = vmatpush3.msk.msra.mxu1 %vm1619_vm6, %v1468_v21 }
 0x19e   :  { %5852 = vmatprep.subr.msk.mxu1 %vm1619_vm6, %v1471_v22  ;;  %5845 = vmatmul.mubr.msk.f32.vlgmr.msra.gmra.mxu1 %vm1612_vm2, %v1512_v63 }
 0x19f   :  { %5853 = vmatpush3.msk.msra.mxu1 %vm1619_vm6, %v1471_v22  ;;  %5854 = vmatprep.mubr.msk.f32.mxu1 %vm1612_vm2, %v7720_v28 }
 0x1a2   :  { %5855 = vmatmul.mubr.msk.f32.vlgmr.msra.gmra.mxu1 %vm1612_vm2, %v1512_v63  ;;  %v1524_v63 = vld [vmem:[%s4434_s28 + $0x18] sm:$0xff] }
 0x1a3   :  { %5864 = vmatprep.mubr.msk.f32.mxu1 %vm1612_vm2, %v7754_v40 }
 0x1b8   :  { %v1280_v23 = vpop.f32.mrf.mxu1 }
 0x1b9   :  { %v1473_v25 = vmul.f32 %v7771_v51, %v1280_v23  ;;  %v5718_v28 = vpop.f32.mrf.mxu0 }
 0x1ba   :  { %v5756_v26 = vpop.f32.mrf.mxu1  ;;  %v1456_v54 = vmul.f32 %v5718_v28, %v7771_v51 }
 0x1bb   :  { %v1474_v27 = vadd.f32 %v1473_v25, %v1472_v24  ;;  %v1195_v29 = vpop.f32.mrf.mxu0 }
 0x1bc   :  { %v1455_v56 = vmul.f32 %v7771_v51, %v1195_v29  ;;  %v1460_v58 = vadd.f32 %v1456_v54, %v1452_v41 }
 0x1bd   :  { %5857 = vmatprep.subr.msk.mxu0 %vm1619_vm6, %v1474_v27 }
 0x1be   :  { %5858 = vmatpush3.msk.msra.mxu0 %vm1619_vm6, %v1474_v27  ;;  %v5721_v30 = vpop.f32.mrf.mxu0  ;;  %v1459_v59 = vadd.f32 %v1455_v56, %v1451_v42 }
 0x1bf   :  { %5860 = vmatmul.mubr.msk.f32.vlgmr.msra.gmra.mxu0 %vm1612_vm2, %v1516_v11  ;;  %v1458_v44 = vmul.f32 %v5721_v30, %v7771_v51 }
 0x1c0   :  { %5869 = vmatprep.mubr.msk.f32.mxu0 %vm1612_vm2, %v7754_v40  ;;  %v1205_v31 = vpop.f32.mrf.mxu0 }
 0x1c1   :  { %v1457_v49 = vmul.f32 %v7771_v51, %v1205_v31  ;;  %v1462_v55 = vadd.f32 %v1458_v44, %v1454_v48 }
 0x1c3   :  { %v1461_v57 = vadd.f32 %v1457_v49, %v1453_v53 }
 0x1db   :  { %v1420_v32 = vpop.f32.mrf.mxu1  ;;  %v1350_v33 = vpop.f32.mrf.mxu0 }
 0x1dc   :  { %v1479_v36 = vmul.f32 %v7771_v51, %v1420_v32  ;;  %v1476_v37 = vmul.f32 %v7771_v51, %v1350_v33  ;;  %v1502_v51 = vld [vmem:[%s7830_s16 + $0x18] sm:$0xff]  ;;  %s6139_s16 = smov 27  }
 0x1dd   :  { %v5791_v40 = vpop.f32.mrf.mxu0  ;;  %v5826_v45 = vpop.f32.mrf.mxu1  ;;  %s4445_s19 = sld [smem:[%s8107_s0 + %s6139_s16]]  }
 0x1de   :  { %v1480_v46 = vadd.f32 %v1479_v36, %v1478_v35  ;;  %v1477_v47 = vadd.f32 %v1476_v37, %v1475_v34  ;;  %v7907_v40 = vld [vmem:[%s4435_s2] sm:$0xf] }
 0x1df   :  { %v5831_v5 = vpop.f32.mrf.mxu0 }
 0x1e0   :  { %5867 = vmatprep.subr.msk.mxu0 %vm1619_vm6, %v1480_v46  ;;  %5862 = vmatprep.subr.msk.mxu1 %vm1619_vm6, %v1477_v47 }
 0x1e1   :  { %5868 = vmatpush3.msk.msra.mxu0 %vm1619_vm6, %v1480_v46  ;;  %5863 = vmatpush3.msk.msra.mxu1 %vm1619_vm6, %v1477_v47  ;;  %v1603_v6 = vpop.f32.mrf.mxu0 }
 0x1e2   :  { %5870 = vmatmul.mubr.msk.f32.vlgmr.msra.gmra.mxu0 %vm1612_vm2, %v1516_v11  ;;  %5882 = vmatprep.subr.mxu0 %v1450_v13 }
 0x1e3   :  { %5865 = vmatmul.mubr.msk.f32.vlgmr.msra.gmra.mxu1 %vm1612_vm2, %v1516_v11  ;;  %5883 = vmatpush3.msra.mxu0 %v1450_v13  ;;  %v5841_v7 = vpop.f32.mrf.mxu0 }
 0x1e4   :  { %5884 = vmatprep.subr.mxu0 %v1449_v17  ;;  %5890 = vmatprep.mubr.msk.f32.mxu0 %vm2403_vm7, %v1499_v43 }
 0x1e5   :  { %5885 = vmatpush3.msra.mxu0 %v1449_v17  ;;  %5876 = vmatprep.mubr.msk.f32.mxu1 %vm2302_vm8, %v1517_v60  ;;  %v1767_v13 = vpop.f32.mrf.mxu0 }
 0x1e6   :  { %5886 = vmatprep.subr.mxu0 %v7785_v3 }
 0x1e7   :  { %5887 = vmatpush3.msra.mxu0 %v7785_v3  ;;  %v6126_v3 = vmov 0   ;;  %v5851_v17 = vpop.f32.mrf.mxu0 }
 0x1e8   :  { %5888 = vmatprep.subr.mxu0 %v7790_v0  ;;  %6085 = vset.pattern.permute.xlu1 %v6126_v3 }
 0x1e9   :  { %5889 = vmatpush3.msra.mxu0 %v7790_v0  ;;  %6084 = vset.pattern.permute.xlu0 %v6126_v3  ;;  %v1521_v0 = vld [vmem:[%s4434_s28] sm:$0xff]  ;;  %v1923_v8 = vpop.f32.mrf.mxu0  ;;  %v1519_v3 = vld [vmem:[%s7877_s24 + $0x10] sm:$0xff]  ;;  %s6142_s28 = smov 28  }
 0x1ea   :  { %5912 = vmatprep.subr.mxu0 %v1462_v55  ;;  %5891 = vmatmul.mubr.msk.f32.vlgmr.msra.gmra.mxu0 %vm2403_vm7, %v1500_v50  ;;  %s4446_s1 = sld [smem:[%s8107_s0 + %s6142_s28]]  }
 0x1eb   :  { %5913 = vmatpush3.msra.mxu0 %v1462_v55  ;;  %5893 = vmatprep.mubr.msk.f32.mxu0 %vm2403_vm7, %v1501_v38 }
 0x1ec   :  { %5914 = vmatprep.subr.mxu0 %v1461_v57  ;;  %2289 = vperm.xlu1 %6085, %v1522_v62   ;;  %v4833_v62 = vld [vmem:[%s1_s5] sm:$0xff]  }
 0x1ed   :  { %5915 = vmatpush3.msra.mxu0 %v1461_v57  ;;  %2299 = vperm.xlu0 %6084, %v1524_v63   ;;  %v1485_v57 = vld [vmem:[%s1_s5 + $0x10] sm:$0x3] }
 0x1ee   :  { %5916 = vmatprep.subr.mxu0 %v1460_v58  ;;  %5894 = vmatmul.mubr.msk.f32.gmra.mxu0 %vm2403_vm7, %v1502_v51  ;;  %v4852_v51 = vld [vmem:[%s1_s5 + $0x8] sm:$0xff]  }
 0x1ef   :  { %5917 = vmatpush3.msra.mxu0 %v1460_v58  ;;  %5920 = vmatprep.mubr.msk.f32.mxu0 %vm2403_vm7, %v1507_v39  ;;  %v4838_v63 = vunpack.c.l.bf16 %v4852_v51 }
 0x1f0   :  { %5918 = vmatprep.subr.mxu0 %v1459_v59  ;;  %2284 = vperm.xlu1 %6085, %v1521_v0   ;;  %v1520_v0 = vld [vmem:[%s7877_s24 + $0x18] sm:$0xff] }
 0x1f1   :  { %5919 = vmatpush3.msra.mxu0 %v1459_v59  ;;  %2294 = vperm.xlu0 %6084, %v1523_v4   ;;  %v4835_v4 = vunpack.c.h.bf16 %v4833_v62 }
 0x1f2   :  { %5940 = vmatprep.subr.mxu0 %v6110_v1  ;;  %5921 = vmatmul.mubr.msk.f32.vlgmr.msra.gmra.mxu0 %vm2403_vm7, %v1508_v52  ;;  %v1490_v52 = vunpack.c.l.bf16 %v1485_v57 }
 0x1f3   :  { %5923 = vmatprep.mubr.msk.f32.mxu0 %vm2403_vm7, %v1509_v61  ;;  %v1518_v61 = vld [vmem:[%s7877_s24 + $0x8] sm:$0xff]  ;;  %s6141_s24 = smov 29  }
 0x1f4   :  { %s8099_s27 = sld [smem:[%s8107_s0 + %s6141_s24]]  }
 0x1f6   :  { %5924 = vmatmul.mubr.msk.f32.gmra.mxu0 %vm2403_vm7, %v1510_v2  ;;  %v4839_v2 = vunpack.c.h.bf16 %v4852_v51 }
 0x1f7   :  { %5944 = vmatprep.mubr.msk.f32.mxu0 %vm8209_vm14, %v6110_v1 }
 0x23a   :  { %v5836_v10 = vpop.f32.mrf.mxu1 }
 0x23b   :  { %v1695_v16 = vadd.f32 %v5836_v10, %v5831_v5  ;;  %v1503_v5 = vld [vmem:[%s7922_s10] sm:$0xff]  ;;  %v1505_v10 = vld [vmem:[%s7922_s10 + $0x10] sm:$0xff] }
 0x23c   :  { %v1689_v15 = vpop.f32.mrf.mxu1 }
 0x23d   :  { %v1690_v18 = vadd.f32 %v1689_v15, %v1603_v6  ;;  %v4834_v6 = vunpack.c.l.bf16 %v4833_v62 }
 0x25e   :  { %v5846_v19 = vpop.f32.mrf.mxu1 }
 0x25f   :  { %v1851_v24 = vadd.f32 %v5846_v19, %v5841_v7  ;;  %v1504_v7 = vld [vmem:[%s7922_s10 + $0x8] sm:$0xff] }
 0x260   :  { %v1845_v9 = vpop.f32.mrf.mxu1 }
 0x261   :  { %v1846_v29 = vadd.f32 %v1845_v9, %v1767_v13  ;;  %v1506_v13 = vld [vmem:[%s7922_s10 + $0x18] sm:$0xff] }
 0x262   :  { %v5856_v14 = vpop.f32.mrf.mxu1 }
 0x263   :  { %v2007_v22 = vadd.f32 %v5856_v14, %v5851_v17 }
 0x264   :  { %v2001_v21 = vpop.f32.mrf.mxu1 }
 0x265   :  { %v2002_v27 = vadd.f32 %v2001_v21, %v1923_v8  ;;  %v2971_v21 = vld [vmem:[%s4439_s6 + $0x18] sm:$0xff] }
 0x266   :  { %3225 = vperm.xlu0 %6084, %v2971_v21  }
 0x27f   :  { %v5861_v12 = vpop.f32.mrf.mxu0 }
 0x280   :  { %v7891_v23 = vadd.f32 %v5861_v12, %v1695_v16 }
 0x281   :  { %v2085_v20 = vpop.f32.mrf.mxu0 }
 0x282   :  { %v7893_v26 = vadd.f32 %v2085_v20, %v1690_v18  ;;  %v2257_v34 = vmul.f32 %v7891_v23, %v7891_v23 }
 0x284   :  { %v2256_v37 = vmul.f32 %v7893_v26, %v7893_v26 }
 0x2a2   :  { %v5871_v25 = vpop.f32.mrf.mxu0 }
 0x2a3   :  { %v2255_v11 = vadd.f32 %v5871_v25, %v2007_v22  ;;  %v5866_v28 = vpop.f32.mrf.mxu1  ;;  %v2970_v22 = vld [vmem:[%s4439_s6 + $0x10] sm:$0xff]  ;;  %v3686_v25 = vld [vmem:[%s4444_s17] sm:$0xff] }
 0x2a4   :  { %v7895_v30 = vadd.f32 %v5866_v28, %v1851_v24  ;;  %v2245_v31 = vpop.f32.mrf.mxu0  ;;  %3220 = vperm.xlu1 %6085, %v2970_v22   ;;  %v2968_v24 = vld [vmem:[%s4439_s6] sm:$0xff]  ;;  %v2290_v28 = vpop.permute.xlu1 %2289 }
 0x2a5   :  { %v2254_v32 = vadd.f32 %v2245_v31, %v2002_v27  ;;  %v2165_v33 = vpop.f32.mrf.mxu1  ;;  %5941 = vmatpush3.msk.msra.mxu0 %vm1533_vm4, %v2255_v11  ;;  %v2263_v45 = vmul.f32 %v2255_v11, %v2255_v11  ;;  %v3688_v27 = vld [vmem:[%s4444_s17 + $0x10] sm:$0xff]  ;;  %v3689_v11 = vld [vmem:[%s4444_s17 + $0x18] sm:$0xff] }
 0x2a6   :  { %v2259_v35 = vmul.f32 %v7895_v30, %v7895_v30  ;;  %v7902_v36 = vadd.f32 %v2165_v33, %v1846_v29  ;;  %5942 = vmatprep.subr.mxu0 %v6110_v1 }
 0x2a7   :  { %5943 = vmatpush3.msra.mxu0 %v2254_v32  ;;  %v2262_v44 = vmul.f32 %v2254_v32, %v2254_v32 }
 0x2a8   :  { %v2261_v46 = vadd.f32 %v2259_v35, %v2257_v34  ;;  %v2258_v47 = vmul.f32 %v7902_v36, %v7902_v36  ;;  %5945 = vmatmul.mubr.msk.f32.vlgmr.msra.gmra.mxu0 %vm2302_vm8, %v7907_v40  ;;  %5952 = vmatprep.subr.mxu0 %v6110_v1  ;;  %v2285_v32 = vpop.permute.xlu1 %2284 }
 0x2a9   :  { %5954 = vmatprep.mubr.msk.f32.mxu0 %vm8209_vm14, %v6110_v1  ;;  %3210 = vperm.xlu1 %6085, %v2968_v24   ;;  %v2961_v24 = vld [vmem:[%s4437_s25 + $0x10] sm:$0xff] }
 0x2aa   :  { %v2265_v43 = vadd.f32 %v2263_v45, %v2261_v46  ;;  %v2260_v48 = vadd.f32 %v2258_v47, %v2256_v37  ;;  %v5892_v15 = vpop.f32.mrf.mxu0 }
 0x2ac   :  { %v2267_v49 = vmax.f32 %v2265_v43, 1e-08  ;;  %v2264_v50 = vadd.f32 %v2262_v44, %v2260_v48  ;;  %v2482_v17 = vpop.f32.mrf.mxu0 }
 0x2ae   :  { %v2266_v53 = vmax.f32 %v2264_v50, 1e-08  ;;  %6086 = vrsqrt.f32 %v2267_v49  ;;  %vm2277_vm9 = vcmp.eq.f32.partialorder %v2267_v49, inf  ;;  %v2280_v56 = vand.u32 2147483648, %v2267_v49  ;;  %v5895_v19 = vpop.f32.mrf.mxu0 }
 0x2af   :  { %vm2279_vm10 = vcmp.eq.f32.partialorder %v2267_v49, 0.0 }
 0x2b0   :  { %6088 = vrsqrt.f32 %v2266_v53  ;;  %vm2270_vm11 = vcmp.eq.f32.partialorder %v2266_v53, inf  ;;  %v2273_v38 = vand.u32 2147483648, %v2266_v53  ;;  %vm2272_vm12 = vcmp.eq.f32.partialorder %v2266_v53, 0.0  ;;  %v2492_v8 = vpop.f32.mrf.mxu0 }
 0x2b2   :  { %v7963_v9 = vpop.f32.mrf.mxu0 }
 0x2b4   :  { %v7965_v12 = vpop.f32.mrf.mxu0 }
 0x2b6   :  { %v7967_v14 = vpop.f32.mrf.mxu0 }
 0x2b8   :  { %v2698_v16 = vpop.f32.mrf.mxu0 }
 0x2bb   :  { %v6087_v54 = vpop.eup %6086 }
 0x2bc   :  { %v2276_v55 = vmul.f32 %v6087_v54, %v2267_v49 }
 0x2bd   :  { %v6089_v41 = vpop.eup %6088 }
 0x2be   :  { %v2278_v42 = vsel %vm2277_vm9, %v2267_v49, %v2276_v55  ;;  %v2269_v58 = vmul.f32 %v6089_v41, %v2266_v53 }
 0x2bf   :  { %v2281_v59 = vsel %vm2279_vm10, %v2280_v56, %v2278_v42 }
 0x2c0   :  { %5872 = vmatprep.subr.msk.mxu1 %vm1533_vm4, %v2281_v59  ;;  %v2271_v39 = vsel %vm2270_vm11, %v2266_v53, %v2269_v58 }
 0x2c1   :  { %5873 = vmatpush3.msk.msra.mxu1 %vm1533_vm4, %v2281_v59  ;;  %v2274_v60 = vsel %vm2272_vm12, %v2273_v38, %v2271_v39 }
 0x2c2   :  { %5874 = vmatprep.subr.mxu1 %v2274_v60 }
 0x2c3   :  { %5875 = vmatpush3.msra.mxu1 %v2274_v60 }
 0x2c4   :  { %5877 = vmatmul.mubr.msk.f32.vlgmr.msra.gmra.mxu1 %vm2302_vm8, %v1518_v61  ;;  %5896 = vmatprep.subr.msk.mxu1 %vm1619_vm6, %v1490_v52 }
 0x2c5   :  { %5897 = vmatpush3.msk.msra.mxu1 %vm1619_vm6, %v1490_v52  ;;  %5879 = vmatprep.mubr.msk.f32.mxu1 %vm2302_vm8, %v1519_v3 }
 0x2c6   :  { %5898 = vmatprep.subr.mxu1 %v4839_v2 }
 0x2c7   :  { %5899 = vmatpush3.msra.mxu1 %v4839_v2 }
 0x2c8   :  { %5880 = vmatmul.mubr.msk.f32.gmra.mxu1 %vm2302_vm8, %v1520_v0  ;;  %5900 = vmatprep.subr.mxu1 %v4838_v63 }
 0x2c9   :  { %5901 = vmatpush3.msra.mxu1 %v4838_v63  ;;  %5906 = vmatprep.mubr.msk.f32.mxu1 %vm2505_vm13, %v1503_v5 }
 0x2ca   :  { %5902 = vmatprep.subr.mxu1 %v4835_v4 }
 0x2cb   :  { %5903 = vmatpush3.msra.mxu1 %v4835_v4 }
 0x2cc   :  { %5904 = vmatprep.subr.mxu1 %v4834_v6 }
 0x2cd   :  { %5905 = vmatpush3.msra.mxu1 %v4834_v6 }
 0x2ce   :  { %5907 = vmatmul.mubr.msk.f32.vlgmr.msra.gmra.mxu1 %vm2505_vm13, %v1504_v7  ;;  %5926 = vmatprep.subr.mxu1 %v6110_v1 }
 0x2cf   :  { %5927 = vmatpush3.msk.msra.mxu1 %vm1533_vm4, %v7891_v23  ;;  %5909 = vmatprep.mubr.msk.f32.mxu1 %vm2505_vm13, %v1505_v10  ;;  %v2969_v23 = vld [vmem:[%s4439_s6 + $0x8] sm:$0xff] }
 0x2d0   :  { %5928 = vmatprep.subr.mxu1 %v6110_v1  ;;  %3215 = vperm.xlu0 %6084, %v2969_v23   ;;  %v2964_v23 = vld [vmem:[%s8004_s29] sm:$0xff] }
 0x2d1   :  { %5929 = vmatpush3.msra.mxu1 %v7893_v26  ;;  %v3687_v26 = vld [vmem:[%s4444_s17 + $0x8] sm:$0xff] }
 0x2d2   :  { %5910 = vmatmul.mubr.msk.f32.gmra.mxu1 %vm2505_vm13, %v1506_v13  ;;  %5933 = vmatprep.subr.mxu1 %v6110_v1 }
 0x2d3   :  { %5930 = vmatprep.mubr.msk.f32.mxu1 %vm8209_vm14, %v6110_v1  ;;  %3933 = vperm.xlu1 %6085, %v3687_v26  }
 0x2d4   :  { %3928 = vperm.xlu0 %6084, %v3686_v25   ;;  %v2962_v25 = vld [vmem:[%s4437_s25 + $0x18] sm:$0xff] }
 0x2d6   :  { %5931 = vmatmul.mubr.msk.f32.vlgmr.msra.gmra.mxu1 %vm2302_vm8, %v7907_v40 }
 0x2d7   :  { %5934 = vmatpush3.msk.msra.mxu1 %vm1533_vm4, %v7895_v30  ;;  %5937 = vmatprep.mubr.msk.f32.mxu1 %vm8209_vm14, %v6110_v1  ;;  %v2300_v30 = vpop.permute.xlu0 %2299 }
 0x2d8   :  { %5935 = vmatprep.subr.mxu1 %v6110_v1  ;;  %3938 = vperm.xlu0 %6084, %v3688_v27  }
 0x2d9   :  { %5936 = vmatpush3.msra.mxu1 %v7902_v36  ;;  %3943 = vperm.xlu1 %6085, %v3689_v11  }
 0x2da   :  { %5938 = vmatmul.mubr.msk.f32.vlgmr.msra.gmra.mxu1 %vm2302_vm8, %v7907_v40  ;;  %5947 = vmatprep.subr.mxu1 %v6110_v1 }
 0x2db   :  { %5949 = vmatprep.mubr.msk.f32.mxu1 %vm8209_vm14, %v6110_v1  ;;  %v2295_v36 = vpop.permute.xlu0 %2294 }
 0x368   :  { %v7972_v18 = vpop.f32.mrf.mxu0 }
 0x369   :  { %v2940_v39 = vmul.f32 %v7972_v18, %v7972_v18 }
 0x36a   :  { %v5946_v20 = vpop.f32.mrf.mxu0 }
 0x384   :  { %v5878_v29 = vpop.f32.mrf.mxu1 }
 0x385   :  { %v2390_v34 = vadd.f32 %v5878_v29, %v2290_v28 }
 0x386   :  { %v2384_v31 = vpop.f32.mrf.mxu1 }
 0x387   :  { %v2385_v35 = vadd.f32 %v2384_v31, %v2285_v32  ;;  %v2502_v40 = vadd.f32 %v5892_v15, %v2390_v34  ;;  %v2972_v34 = vld [vmem:[%s4440_s3] sm:$0xf] }
 0x388   :  { %v5881_v33 = vpop.f32.mrf.mxu1 }
 0x389   :  { %v2400_v45 = vadd.f32 %v5881_v33, %v2300_v30  ;;  %v2501_v47 = vadd.f32 %v2482_v17, %v2385_v35 }
 0x38a   :  { %v2394_v37 = vpop.f32.mrf.mxu1 }
 0x38b   :  { %v2395_v43 = vadd.f32 %v2394_v37, %v2295_v36  ;;  %v2504_v49 = vadd.f32 %v5895_v19, %v2400_v45  ;;  %v2963_v19 = vld [vmem:[%s4436_s21] sm:$0xf] }
 0x38d   :  { %v2503_v54 = vadd.f32 %v2492_v8, %v2395_v43 }
 0x38e   :  { %v5908_v46 = vpop.f32.mrf.mxu1 }
 0x38f   :  { %v2607_v44 = vadd.f32 %v5908_v46, %v2502_v40 }
 0x390   :  { %v2587_v48 = vpop.f32.mrf.mxu1 }
 0x391   :  { %v2606_v50 = vadd.f32 %v2587_v48, %v2501_v47  ;;  %v2966_v48 = vld [vmem:[%s8004_s29 + $0x10] sm:$0xff] }
 0x392   :  { %v5911_v53 = vpop.f32.mrf.mxu1 }
 0x393   :  { %v2609_v55 = vadd.f32 %v5911_v53, %v2504_v49  ;;  %v2707_v20 = vadd.f32 %v7965_v12, %v2606_v50  ;;  %v2960_v12 = vld [vmem:[%s4437_s25 + $0x8] sm:$0xff]  ;;  %v2967_v49 = vld [vmem:[%s8004_s29 + $0x18] sm:$0xff] }
 0x394   :  { %v2597_v41 = vpop.f32.mrf.mxu1 }
 0x395   :  { %v2608_v56 = vadd.f32 %v2597_v41, %v2503_v54  ;;  %v2710_v13 = vadd.f32 %v7967_v14, %v2609_v55  ;;  %v2708_v14 = vadd.f32 %v7963_v9, %v2607_v44  ;;  %v2711_v22 = vmax.f32 %v2707_v20, 0.0  ;;  %v2959_v9 = vld [vmem:[%s4437_s25] sm:$0xff]  ;;  %v2965_v44 = vld [vmem:[%s8004_s29 + $0x8] sm:$0xff] }
 0x396   :  { %v2787_v57 = vpop.f32.mrf.mxu1 }
 0x397   :  { %v2709_v42 = vadd.f32 %v2698_v16, %v2608_v56  ;;  %v2937_v38 = vmul.f32 %v2787_v57, %v2787_v57  ;;  %v2714_v16 = vmax.f32 %v2710_v13, 0.0 }
 0x398   :  { %v5932_v58 = vpop.f32.mrf.mxu1 }
 0x399   :  { %v2713_v21 = vmax.f32 %v2709_v42, 0.0 }
 0x39a   :  { %v2860_v59 = vpop.f32.mrf.mxu1 }
 0x39b   :  { %v2938_v51 = vmul.f32 %v2860_v59, %v2860_v59 }
 0x39c   :  { %v5939_v52 = vpop.f32.mrf.mxu1 }
 0x39d   :  { %v2939_v60 = vadd.f32 %v2938_v51, %v2937_v38 }
 0x39f   :  { %v2941_v61 = vadd.f32 %v2940_v39, %v2939_v60 }
 0x3a1   :  { %v2942_v2 = vmax.f32 %v2941_v61, 1e-08 }
 0x3a3   :  { %6090 = vrsqrt.f32 %v2942_v2  ;;  %vm2945_vm15 = vcmp.eq.f32.partialorder %v2942_v2, inf  ;;  %v2948_v63 = vand.u32 2147483648, %v2942_v2  ;;  %vm2947_vm1 = vcmp.eq.f32.partialorder %v2942_v2, 0.0 }
 0x3b0   :  { %v6091_v3 = vpop.eup %6090 }
 0x3b1   :  { %v2944_v62 = vmul.f32 %v6091_v3, %v2942_v2 }
 0x3b3   :  { %v2946_v0 = vsel %vm2945_vm15, %v2942_v2, %v2944_v62 }
 0x3b4   :  { %v2949_v4 = vsel %vm2947_vm1, %v2948_v63, %v2946_v0 }
 0x3b5   :  { %v4761_v5 = vmul.f32 -1.442695, %v2949_v4 }
 0x3b7   :  { %6092 = vpow2.f32 %v4761_v5 }
 0x3c4   :  { %v6093_v6 = vpop.eup %6092 }
 0x3c5   :  { %v2953_v7 = vadd.f32 1.0, %v6093_v6 }
 0x3c7   :  { %6094 = vrcp.f32 %v2953_v7 }
 0x3d4   :  { %v6095_v10 = vpop.eup %6094 }
 0x3d5   :  { %v2956_v15 = vmul.f32 %v6095_v10, %v2787_v57  ;;  %v2957_v17 = vmul.f32 %v6095_v10, %v2860_v59  ;;  %v2958_v8 = vmul.f32 %v6095_v10, %v7972_v18  ;;  %v2712_v18 = vmax.f32 %v2708_v14, 0.0  ;;  %v3221_v59 = vpop.permute.xlu1 %3220 }
 0x3d7   :  { %5948 = vmatpush3.msk.msra.mxu1 %vm1619_vm6, %v2956_v15  ;;  %5953 = vmatpush3.msk.msra.mxu0 %vm1619_vm6, %v2957_v17 }
 0x3d8   :  { %5950 = vmatmul.mubr.msk.f32.vlgmr.msra.gmra.mxu1 %vm1612_vm2, %v2963_v19  ;;  %5955 = vmatmul.mubr.msk.f32.vlgmr.msra.gmra.mxu0 %vm1612_vm2, %v2963_v19 }
 0x3d9   :  { %5957 = vmatprep.subr.mxu1 %v6110_v1  ;;  %5959 = vmatprep.mubr.msk.f32.mxu1 %vm8209_vm14, %v6110_v1 }
 0x3da   :  { %5958 = vmatpush3.msk.msra.mxu1 %vm1619_vm6, %v2958_v8  ;;  %5964 = vmatprep.mubr.msk.f32.mxu0 %vm1612_vm2, %v2964_v23 }
 0x3db   :  { %5970 = vmatprep.subr.mxu1 %v2714_v16 }
 0x3dc   :  { %5960 = vmatmul.mubr.msk.f32.vlgmr.msra.gmra.mxu1 %vm1612_vm2, %v2963_v19 }
 0x3dd   :  { %5971 = vmatpush3.msra.mxu1 %v2714_v16  ;;  %5978 = vmatprep.mubr.msk.f32.mxu1 %vm2403_vm7, %v2959_v9  ;;  %v3226_v16 = vpop.permute.xlu0 %3225 }
 0x3de   :  { %5972 = vmatprep.subr.mxu1 %v2713_v21 }
 0x3df   :  { %5973 = vmatpush3.msra.mxu1 %v2713_v21 }
 0x3e0   :  { %5974 = vmatprep.subr.mxu1 %v2712_v18 }
 0x3e1   :  { %5975 = vmatpush3.msra.mxu1 %v2712_v18  ;;  %v3216_v21 = vpop.permute.xlu0 %3215 }
 0x3e2   :  { %5976 = vmatprep.subr.mxu1 %v2711_v22 }
 0x3e3   :  { %5977 = vmatpush3.msra.mxu1 %v2711_v22 }
 0x3e4   :  { %5994 = vmatprep.subr.mxu1 %v6110_v1  ;;  %5979 = vmatmul.mubr.msk.f32.vlgmr.msra.gmra.mxu1 %vm2403_vm7, %v2960_v12  ;;  %v3681_v12 = vld [vmem:[%s4441_s8] sm:$0xf] }
 0x3e5   :  { %5981 = vmatprep.mubr.msk.f32.mxu1 %vm2403_vm7, %v2961_v24  ;;  %v3211_v24 = vpop.permute.xlu1 %3210 }
 0x3e8   :  { %5982 = vmatmul.mubr.msk.f32.gmra.mxu1 %vm2403_vm7, %v2962_v25 }
 0x3e9   :  { %5996 = vmatprep.mubr.msk.f32.mxu1 %vm8209_vm14, %v6110_v1 }
 0x498   :  { %v3045_v26 = vpop.f32.mrf.mxu1  ;;  %v3118_v27 = vpop.f32.mrf.mxu0 }
 0x499   :  { %v3195_v11 = vmul.f32 %v3045_v26, %v3045_v26  ;;  %v3196_v28 = vmul.f32 %v3118_v27, %v3118_v27 }
 0x49a   :  { %v5951_v29 = vpop.f32.mrf.mxu1  ;;  %v5956_v30 = vpop.f32.mrf.mxu0 }
 0x49b   :  { %v3197_v32 = vadd.f32 %v3196_v28, %v3195_v11 }
 0x49c   :  { %v3191_v31 = vpop.f32.mrf.mxu1 }
 0x49d   :  { %v3198_v33 = vmul.f32 %v3191_v31, %v3191_v31  ;;  %5995 = vmatpush3.msk.msra.mxu1 %vm1619_vm6, %v3191_v31 }
 0x49e   :  { %v5961_v35 = vpop.f32.mrf.mxu1  ;;  %5997 = vmatmul.mubr.msk.f32.vlgmr.msra.gmra.mxu1 %vm1612_vm2, %v2972_v34  ;;  %6004 = vmatprep.subr.mxu1 %v6110_v1 }
 0x49f   :  { %v3199_v36 = vadd.f32 %v3198_v33, %v3197_v32  ;;  %6006 = vmatprep.mubr.msk.f32.mxu1 %vm8209_vm14, %v6110_v1  ;;  %v3677_v32 = vld [vmem:[%s4442_s12] sm:$0xff]  ;;  %v3678_v33 = vld [vmem:[%s4442_s12 + $0x8] sm:$0xff]  ;;  %v3679_v35 = vld [vmem:[%s4442_s12 + $0x10] sm:$0xff] }
 0x4a1   :  { %v3200_v37 = vmax.f32 %v3199_v36, 1e-08  ;;  %v3680_v36 = vld [vmem:[%s4442_s12 + $0x18] sm:$0xff] }
 0x4a3   :  { %6096 = vrsqrt.f32 %v3200_v37  ;;  %vm3203_vm0 = vcmp.eq.f32.partialorder %v3200_v37, inf  ;;  %v3206_v46 = vand.u32 2147483648, %v3200_v37  ;;  %vm3205_vm3 = vcmp.eq.f32.partialorder %v3200_v37, 0.0 }
 0x4a4   :  { %v5980_v50 = vpop.f32.mrf.mxu1 }
 0x4a6   :  { %v3406_v53 = vpop.f32.mrf.mxu1 }
 0x4a8   :  { %v5983_v54 = vpop.f32.mrf.mxu1 }
 0x4aa   :  { %v3416_v55 = vpop.f32.mrf.mxu1 }
 0x4b0   :  { %v6097_v40 = vpop.eup %6096 }
 0x4b1   :  { %v3202_v45 = vmul.f32 %v6097_v40, %v3200_v37 }
 0x4b3   :  { %v3204_v47 = vsel %vm3203_vm0, %v3200_v37, %v3202_v45 }
 0x4b4   :  { %v3207_v43 = vsel %vm3205_vm3, %v3206_v46, %v3204_v47 }
 0x4b5   :  { %5962 = vmatprep.subr.msk.mxu0 %vm1619_vm6, %v3207_v43 }
 0x4b6   :  { %5963 = vmatpush3.msk.msra.mxu0 %vm1619_vm6, %v3207_v43 }
 0x4b7   :  { %5965 = vmatmul.mubr.msk.f32.vlgmr.msra.gmra.mxu0 %vm1612_vm2, %v2965_v44  ;;  %5984 = vmatprep.subr.mxu0 %v6110_v1 }
 0x4b8   :  { %5985 = vmatpush3.msk.msra.mxu0 %vm1619_vm6, %v3045_v26  ;;  %5967 = vmatprep.mubr.msk.f32.mxu0 %vm1612_vm2, %v2966_v48 }
 0x4b9   :  { %5989 = vmatprep.subr.mxu0 %v6110_v1 }
 0x4bb   :  { %5968 = vmatmul.mubr.msk.f32.gmra.mxu0 %vm1612_vm2, %v2967_v49 }
 0x4bc   :  { %5986 = vmatprep.mubr.msk.f32.mxu0 %vm8209_vm14, %v6110_v1 }
 0x4bf   :  { %5987 = vmatmul.mubr.msk.f32.vlgmr.msra.gmra.mxu0 %vm1612_vm2, %v2972_v34 }
 0x4c0   :  { %5990 = vmatpush3.msk.msra.mxu0 %vm1619_vm6, %v3118_v27  ;;  %5991 = vmatprep.mubr.msk.f32.mxu0 %vm8209_vm14, %v6110_v1 }
 0x4c1   :  { %5999 = vmatprep.subr.mxu0 %v6110_v1 }
 0x4c3   :  { %5992 = vmatmul.mubr.msk.f32.vlgmr.msra.gmra.mxu0 %vm1612_vm2, %v2972_v34  ;;  %v3682_v34 = vld [vmem:[%s8062_s15] sm:$0xff] }
 0x4c4   :  { %6001 = vmatprep.mubr.msk.f32.mxu0 %vm8209_vm14, %v6110_v1 }
 0x55e   :  { %v3651_v41 = vpop.f32.mrf.mxu1 }
 0x55f   :  { %v3658_v62 = vmul.f32 %v3651_v41, %v3651_v41 }
 0x560   :  { %v5998_v56 = vpop.f32.mrf.mxu1 }
 0x577   :  { %v5966_v57 = vpop.f32.mrf.mxu0 }
 0x578   :  { %v3315_v23 = vadd.f32 %v5966_v57, %v3216_v21 }
 0x579   :  { %v3309_v42 = vpop.f32.mrf.mxu0 }
 0x57a   :  { %v3310_v25 = vadd.f32 %v3309_v42, %v3211_v24  ;;  %v3426_v11 = vadd.f32 %v5980_v50, %v3315_v23  ;;  %v3690_v50 = vld [vmem:[%s4445_s19] sm:$0xf] }
 0x57b   :  { %v5969_v58 = vpop.f32.mrf.mxu0 }
 0x57c   :  { %v3325_v14 = vadd.f32 %v5969_v58, %v3226_v16  ;;  %v3425_v28 = vadd.f32 %v3406_v53, %v3310_v25  ;;  %v3430_v30 = vmax.f32 %v3426_v11, 0.0 }
 0x57d   :  { %v3319_v38 = vpop.f32.mrf.mxu0 }
 0x57e   :  { %v3320_v51 = vadd.f32 %v3319_v38, %v3221_v59  ;;  %v3428_v18 = vadd.f32 %v5983_v54, %v3325_v14  ;;  %v3429_v31 = vmax.f32 %v3425_v28, 0.0  ;;  %v3683_v59 = vld [vmem:[%s8062_s15 + $0x8] sm:$0xff]  ;;  %v3684_v38 = vld [vmem:[%s8062_s15 + $0x10] sm:$0xff] }
 0x57f   :  { %v3505_v39 = vpop.f32.mrf.mxu0 }
 0x580   :  { %v3427_v52 = vadd.f32 %v3416_v55, %v3320_v51  ;;  %v3655_v2 = vmul.f32 %v3505_v39, %v3505_v39  ;;  %v3432_v27 = vmax.f32 %v3428_v18, 0.0  ;;  %v3685_v51 = vld [vmem:[%s8062_s15 + $0x18] sm:$0xff] }
 0x581   :  { %v5988_v60 = vpop.f32.mrf.mxu0 }
 0x582   :  { %v3431_v29 = vmax.f32 %v3427_v52, 0.0 }
 0x583   :  { %v3578_v61 = vpop.f32.mrf.mxu0 }
 0x584   :  { %v3656_v3 = vmul.f32 %v3578_v61, %v3578_v61 }
 0x585   :  { %v5993_v63 = vpop.f32.mrf.mxu0 }
 0x586   :  { %v3657_v0 = vadd.f32 %v3656_v3, %v3655_v2  ;;  %v4805_v2 = vld [vmem:[%s4422_s23] ss:$0 sm:$0xff] }
 0x588   :  { %v3659_v4 = vadd.f32 %v3658_v62, %v3657_v0  ;;  %v3934_v0 = vpop.permute.xlu1 %3933 }
 0x58a   :  { %v3660_v5 = vmax.f32 %v3659_v4, 1e-08  ;;  %v3929_v4 = vpop.permute.xlu0 %3928 }
 0x58c   :  { %6098 = vrsqrt.f32 %v3660_v5  ;;  %vm3663_vm4 = vcmp.eq.f32.partialorder %v3660_v5, inf  ;;  %v3666_v10 = vand.u32 2147483648, %v3660_v5  ;;  %vm3665_vm5 = vcmp.eq.f32.partialorder %v3660_v5, 0.0 }
 0x58e   :  { %v3939_v16 = vpop.permute.xlu0 %3938 }
 0x599   :  { %v6099_v6 = vpop.eup %6098 }
 0x59a   :  { %v3662_v7 = vmul.f32 %v6099_v6, %v3660_v5 }
 0x59c   :  { %v3664_v13 = vsel %vm3663_vm4, %v3660_v5, %v3662_v7 }
 0x59d   :  { %v3667_v15 = vsel %vm3665_vm5, %v3666_v10, %v3664_v13 }
 0x59e   :  { %v4783_v17 = vmul.f32 -1.442695, %v3667_v15  ;;  %v3944_v15 = vpop.permute.xlu1 %3943 }
 0x5a0   :  { %6100 = vpow2.f32 %v4783_v17 }
 0x5ad   :  { %v6101_v19 = vpop.eup %6100 }
 0x5ae   :  { %v3671_v8 = vadd.f32 1.0, %v6101_v19 }
 0x5b0   :  { %6102 = vrcp.f32 %v3671_v8 }
 0x5bd   :  { %v6103_v20 = vpop.eup %6102 }
 0x5be   :  { %v3674_v22 = vmul.f32 %v6103_v20, %v3505_v39  ;;  %v3675_v9 = vmul.f32 %v6103_v20, %v3578_v61  ;;  %v3676_v26 = vmul.f32 %v6103_v20, %v3651_v41 }
 0x5c0   :  { %6000 = vmatpush3.msk.msra.mxu0 %vm1619_vm6, %v3674_v22  ;;  %6005 = vmatpush3.msk.msra.mxu1 %vm1619_vm6, %v3675_v9 }
 0x5c1   :  { %6002 = vmatmul.mubr.msk.f32.vlgmr.msra.gmra.mxu0 %vm1612_vm2, %v3681_v12  ;;  %6007 = vmatmul.mubr.msk.f32.vlgmr.msra.gmra.mxu1 %vm1612_vm2, %v3681_v12 }
 0x5c2   :  { %6009 = vmatprep.subr.mxu0 %v6110_v1  ;;  %6011 = vmatprep.mubr.msk.f32.mxu0 %vm8209_vm14, %v6110_v1 }
 0x5c3   :  { %6010 = vmatpush3.msk.msra.mxu0 %vm1619_vm6, %v3676_v26  ;;  %6016 = vmatprep.mubr.msk.f32.mxu1 %vm1612_vm2, %v3682_v34 }
 0x5c4   :  { %6022 = vmatprep.subr.mxu0 %v3432_v27 }
 0x5c5   :  { %6012 = vmatmul.mubr.msk.f32.vlgmr.msra.gmra.mxu0 %vm1612_vm2, %v3681_v12 }
 0x5c6   :  { %6023 = vmatpush3.msra.mxu0 %v3432_v27  ;;  %6030 = vmatprep.mubr.msk.f32.mxu0 %vm2403_vm7, %v3677_v32 }
 0x5c7   :  { %6024 = vmatprep.subr.mxu0 %v3431_v29 }
 0x5c8   :  { %6025 = vmatpush3.msra.mxu0 %v3431_v29 }
 0x5c9   :  { %6026 = vmatprep.subr.mxu0 %v3430_v30 }
 0x5ca   :  { %6027 = vmatpush3.msra.mxu0 %v3430_v30 }
 0x5cb   :  { %6028 = vmatprep.subr.mxu0 %v3429_v31 }
 0x5cc   :  { %6029 = vmatpush3.msra.mxu0 %v3429_v31 }
 0x5cd   :  { %6046 = vmatprep.subr.mxu0 %v6110_v1  ;;  %6031 = vmatmul.mubr.msk.f32.vlgmr.msra.gmra.mxu0 %vm2403_vm7, %v3678_v33 }
 0x5ce   :  { %6033 = vmatprep.mubr.msk.f32.mxu0 %vm2403_vm7, %v3679_v35 }
 0x5d1   :  { %6034 = vmatmul.mubr.msk.f32.gmra.mxu0 %vm2403_vm7, %v3680_v36 }
 0x5d2   :  { %6048 = vmatprep.mubr.msk.f32.mxu0 %vm8209_vm14, %v6110_v1 }
 0x681   :  { %v3763_v37 = vpop.f32.mrf.mxu0  ;;  %v3836_v40 = vpop.f32.mrf.mxu1 }
 0x682   :  { %v3913_v45 = vmul.f32 %v3763_v37, %v3763_v37  ;;  %v3914_v46 = vmul.f32 %v3836_v40, %v3836_v40 }
 0x683   :  { %v6003_v47 = vpop.f32.mrf.mxu0  ;;  %v6008_v43 = vpop.f32.mrf.mxu1 }
 0x684   :  { %v3915_v48 = vadd.f32 %v3914_v46, %v3913_v45 }
 0x685   :  { %v3909_v44 = vpop.f32.mrf.mxu0 }
 0x686   :  { %v3916_v49 = vmul.f32 %v3909_v44, %v3909_v44  ;;  %6047 = vmatpush3.msk.msra.mxu0 %vm1619_vm6, %v3909_v44 }
 0x687   :  { %v6013_v53 = vpop.f32.mrf.mxu0  ;;  %6049 = vmatmul.mubr.msk.f32.vlgmr.msra.gmra.mxu0 %vm1612_vm2, %v3690_v50 }
 0x688   :  { %v3917_v54 = vadd.f32 %v3916_v49, %v3915_v48 }
 0x68a   :  { %v3918_v55 = vmax.f32 %v3917_v54, 1e-08 }
 0x68c   :  { %6104 = vrsqrt.f32 %v3918_v55  ;;  %vm3921_vm7 = vcmp.eq.f32.partialorder %v3918_v55, inf  ;;  %v3924_v57 = vand.u32 2147483648, %v3918_v55  ;;  %vm3923_vm8 = vcmp.eq.f32.partialorder %v3918_v55, 0.0 }
 0x68d   :  { %v6032_v39 = vpop.f32.mrf.mxu0 }
 0x68f   :  { %v4124_v52 = vpop.f32.mrf.mxu0 }
 0x691   :  { %v6035_v60 = vpop.f32.mrf.mxu0 }
 0x693   :  { %v4134_v61 = vpop.f32.mrf.mxu0 }
 0x699   :  { %v6105_v41 = vpop.eup %6104 }
 0x69a   :  { %v3920_v56 = vmul.f32 %v6105_v41, %v3918_v55 }
 0x69c   :  { %v3922_v42 = vsel %vm3921_vm7, %v3918_v55, %v3920_v56 }
 0x69d   :  { %v3925_v58 = vsel %vm3923_vm8, %v3924_v57, %v3922_v42 }
 0x69e   :  { %6014 = vmatprep.subr.msk.mxu1 %vm1619_vm6, %v3925_v58 }
 0x69f   :  { %6015 = vmatpush3.msk.msra.mxu1 %vm1619_vm6, %v3925_v58 }
 0x6a0   :  { %6017 = vmatmul.mubr.msk.f32.vlgmr.msra.gmra.mxu1 %vm1612_vm2, %v3683_v59  ;;  %6036 = vmatprep.subr.mxu1 %v6110_v1 }
 0x6a1   :  { %6037 = vmatpush3.msk.msra.mxu1 %vm1619_vm6, %v3763_v37  ;;  %6019 = vmatprep.mubr.msk.f32.mxu1 %vm1612_vm2, %v3684_v38 }
 0x6a2   :  { %6041 = vmatprep.subr.mxu1 %v6110_v1 }
 0x6a4   :  { %6020 = vmatmul.mubr.msk.f32.gmra.mxu1 %vm1612_vm2, %v3685_v51 }
 0x6a5   :  { %6038 = vmatprep.mubr.msk.f32.mxu1 %vm8209_vm14, %v6110_v1 }
 0x6a8   :  { %6039 = vmatmul.mubr.msk.f32.vlgmr.msra.gmra.mxu1 %vm1612_vm2, %v3690_v50 }
 0x6a9   :  { %6042 = vmatpush3.msk.msra.mxu1 %vm1619_vm6, %v3836_v40  ;;  %6043 = vmatprep.mubr.msk.f32.mxu1 %vm8209_vm14, %v6110_v1 }
 0x6ac   :  { %6044 = vmatmul.mubr.msk.f32.vlgmr.msra.gmra.mxu1 %vm1612_vm2, %v3690_v50 }
 0x747   :  { %v4365_v1 = vpop.f32.mrf.mxu0 }
 0x748   :  { %v4407_v3 = vmul.f32 %v4805_v2, %v4365_v1 }
 0x749   :  { %v6050_v62 = vpop.f32.mrf.mxu0 }
 0x74a   :  { %v4408_v63 = vpack.c.bf16 %v4407_v3, %v4407_v3 }
 0x74c   :  { %4811 = vst [vmem:[%s8099_s27 + $0x4] sm:$0x3] %v4408_v63 }
 0x760   :  { %v6018_v5 = vpop.f32.mrf.mxu1 }
 0x761   :  { %v4033_v6 = vadd.f32 %v6018_v5, %v3934_v0 }
 0x762   :  { %v4027_v7 = vpop.f32.mrf.mxu1 }
 0x763   :  { %v4028_v10 = vadd.f32 %v4027_v7, %v3929_v4  ;;  %v4144_v13 = vadd.f32 %v6032_v39, %v4033_v6 }
 0x764   :  { %v6021_v17 = vpop.f32.mrf.mxu1 }
 0x765   :  { %v4043_v19 = vadd.f32 %v6021_v17, %v3944_v15  ;;  %v4143_v8 = vadd.f32 %v4124_v52, %v4028_v10  ;;  %v4377_v20 = vmul.f32 %v4805_v2, %v4144_v13 }
 0x766   :  { %v4037_v14 = vpop.f32.mrf.mxu1 }
 0x767   :  { %v4376_v21 = vmul.f32 %v4805_v2, %v4143_v8  ;;  %v4038_v18 = vadd.f32 %v4037_v14, %v3939_v16  ;;  %v4146_v22 = vadd.f32 %v6035_v60, %v4043_v19 }
 0x768   :  { %v4219_v9 = vpop.f32.mrf.mxu1 }
 0x769   :  { %v4843_v12 = vpack.c.bf16 %v4377_v20, %v4376_v21  ;;  %v4145_v23 = vadd.f32 %v4134_v61, %v4038_v18  ;;  %v4400_v24 = vmul.f32 %v4805_v2, %v4219_v9  ;;  %v4379_v26 = vmul.f32 %v4805_v2, %v4146_v22 }
 0x76a   :  { %v6040_v25 = vpop.f32.mrf.mxu1 }
 0x76b   :  { %4844 = vst [vmem:[%s4446_s1] sm:$0xff] %v4843_v12   ;;  %v4378_v27 = vmul.f32 %v4805_v2, %v4145_v23  ;;  %v4401_v11 = vpack.c.bf16 %v4400_v24, %v4400_v24 }
 0x76c   :  { %v4292_v28 = vpop.f32.mrf.mxu1 }
 0x76d   :  { %v4848_v29 = vpack.c.bf16 %v4379_v26, %v4378_v27  ;;  %4402 = vst [vmem:[%s8099_s27] sm:$0x3] %v4401_v11  ;;  %v4403_v30 = vmul.f32 %v4805_v2, %v4292_v28 }
 0x76e   :  { %v6045_v31 = vpop.f32.mrf.mxu1 }
 0x76f   :  { %4853 = vst [vmem:[%s4446_s1 + $0x8] sm:$0xff] %v4848_v29   ;;  %v4404_v32 = vpack.c.bf16 %v4403_v30, %v4403_v30 }
 0x771   :  { %4810 = vst [vmem:[%s8099_s27 + $0x2] sm:$0x3] %v4404_v32 }

</bundles_post_ra>
